<compile_context>
chip_gen: v7x
topology: tpu7x:2x2x1
jax: 0.10.0
libtpu: 0.0.40
codegen_flags: <defaults>
</compile_context>

<pallas_src>
import numpy as np
import jax
import jax.numpy as jnp
from jax.experimental import pallas as pl
from jax.experimental.pallas import tpu as pltpu


# ----------------------------- fused conv stack kernel -----------------------------
def conv_stack_kernel(x_ref, w1, b1, w2, b2, w3, b3, w4, b4, g1, g2,
                      o_ref, pad1, pad2, pad3, pad4):
    # x_ref : (1, H, W, Cin) NHWC image
    # w*    : (9*Cin, Cout) im2col conv weights, b*: (1, Cout)
    # g1/g2 : (4*Ho*Wo, H*W) 0/1 pooling selection matrices
    # o_ref : (1, (H//4)*(W//4), 64) flattened (h, w)-major, channel-minor features
    # pad*  : VMEM scratch holding the zero-padded activation of each conv stage
    f32 = jnp.float32
    _, H, W, _ = x_ref.shape
    H2, W2 = H // 2, W // 2

    def conv3x3_relu(x, pad_ref, w_ref, b_ref):
        h, w, cin = x.shape
        # zero the halo + write the interior (VMEM only, no HBM padding array)
        pad_ref[...] = jnp.zeros(pad_ref.shape, f32)
        pad_ref[1:h + 1, 1:w + 1, :] = x
        # im2col: 9 shifted slices concatenated along the lane (channel) axis
        cols = [pad_ref[kh:kh + h, kw:kw + w, :].reshape(h * w, cin)
                for kh in range(3) for kw in range(3)]
        patches = jnp.concatenate(cols, axis=-1)                  # (h*w, 9*cin)
        y = jnp.dot(patches, w_ref[...], preferred_element_type=f32)  # one MXU matmul
        return jnp.maximum(y + b_ref[...], 0.0)                   # (h*w, cout)

    def maxpool2x2(y, g_ref, ho, wo):
        # y: (h*w, C) rows ordered h-major. G stacks the 4 window-tap selections:
        # rows [t*n:(t+1)*n] of G@y pick tap t of every 2x2 window (n = ho*wo).
        z = jnp.dot(g_ref[...], y, preferred_element_type=f32)    # (4*n, C)
        n = ho * wo
        return jnp.maximum(jnp.maximum(z[0:n], z[n:2 * n]),
                           jnp.maximum(z[2 * n:3 * n], z[3 * n:4 * n]))  # (n, C)

    a = conv3x3_relu(x_ref[0], pad1, w1, b1)                      # (H*W, 32)
    a = conv3x3_relu(a.reshape(H, W, a.shape[-1]), pad2, w2, b2)  # (H*W, 32)
    a = maxpool2x2(a, g1, H2, W2)                                 # (H2*W2, 32)
    a = conv3x3_relu(a.reshape(H2, W2, a.shape[-1]), pad3, w3, b3)  # (H2*W2, 64)
    a = conv3x3_relu(a.reshape(H2, W2, a.shape[-1]), pad4, w4, b4)  # (H2*W2, 64)
    a = maxpool2x2(a, g2, H // 4, W // 4)                         # (H/4*W/4, 64)
    o_ref[0] = a.astype(o_ref.dtype)


def conv_stack(x_nhwc, p):
    N, H, W, Cin = x_nhwc.shape
    Ho, Wo = H // 4, W // 4

    def full(shape):
        nd = len(shape)
        return pl.BlockSpec(shape, lambda n, _nd=nd: (0,) * _nd)

    return pl.pallas_call(
        conv_stack_kernel,
        out_shape=jax.ShapeDtypeStruct((N, Ho * Wo, 64), jnp.float32),
        grid=(N,),
        in_specs=[
            pl.BlockSpec((1, H, W, Cin), lambda n: (n, 0, 0, 0)),
            full(p["cw1"].shape), full(p["cb1"].shape),
            full(p["cw2"].shape), full(p["cb2"].shape),
            full(p["cw3"].shape), full(p["cb3"].shape),
            full(p["cw4"].shape), full(p["cb4"].shape),
            full(p["pool1"].shape), full(p["pool2"].shape),
        ],
        out_specs=pl.BlockSpec((1, Ho * Wo, 64), lambda n: (n, 0, 0)),
        scratch_shapes=[
            pltpu.VMEM((H + 2, W + 2, Cin), jnp.float32),
            pltpu.VMEM((H + 2, W + 2, 32), jnp.float32),
            pltpu.VMEM((H // 2 + 2, W // 2 + 2, 32), jnp.float32),
            pltpu.VMEM((H // 2 + 2, W // 2 + 2, 64), jnp.float32),
        ],
        # batch axis parallel -> the two images land on both TensorCores on v7x
        compiler_params=pltpu.CompilerParams(dimension_semantics=("parallel",)),
    )(x_nhwc, p["cw1"], p["cb1"], p["cw2"], p["cb2"], p["cw3"], p["cb3"],
      p["cw4"], p["cb4"], p["pool1"], p["pool2"])


# -------------------------------- fused FC stack kernel -----------------------------
def fc_stack_kernel(a_ref, w1, b1, w2, b2, w3, b3, w4, b4, o_ref):
    f32 = jnp.float32
    x = a_ref[...]
    x = jnp.maximum(jnp.dot(x, w1[...], preferred_element_type=f32) + b1[...], 0.0)
    x = jnp.maximum(jnp.dot(x, w2[...], preferred_element_type=f32) + b2[...], 0.0)
    x = jnp.maximum(jnp.dot(x, w3[...], preferred_element_type=f32) + b3[...], 0.0)
    x = jnp.dot(x, w4[...], preferred_element_type=f32) + b4[...]
    o_ref[...] = x.astype(o_ref.dtype)


def fc_stack(a, p):
    N = a.shape[0]
    out_f = p["fw4"].shape[1]
    # single invocation, whole arrays resident in VMEM (~660 KB of weights)
    return pl.pallas_call(
        fc_stack_kernel,
        out_shape=jax.ShapeDtypeStruct((N, out_f), jnp.float32),
    )(a, p["fw1"], p["fb1"], p["fw2"], p["fb2"], p["fw3"], p["fb3"],
      p["fw4"], p["fb4"])


# ----------------------------------- full forward ----------------------------------
def m1_forward(x_nchw, p):
    N = x_nchw.shape[0]
    x = jnp.transpose(x_nchw, (0, 2, 3, 1))       # NCHW -> NHWC (channels on lanes)
    feat = conv_stack(x, p)                       # (N, Ho*Wo, 64), (h,w)-major
    feat = feat.reshape(N, -1)                    # (N, 1024) HWC flatten order
    return fc_stack(feat, p)                      # fc1 rows were permuted to HWC order


# ------------------------------ parameters & conversion -----------------------------
def make_pool_select(H, W):
    """0/1 matrix G (4*Ho*Wo, H*W): (G @ y)[t*n + q] = y at tap t of window q."""
    Ho, Wo = H // 2, W // 2
    g = np.zeros((4 * Ho * Wo, H * W), np.float32)
    for dh in range(2):
        for dw in range(2):
            base = (dh * 2 + dw) * Ho * Wo
            for ho in range(Ho):
                for wo in range(Wo):
                    g[base + ho * Wo + wo, (2 * ho + dh) * W + (2 * wo + dw)] = 1.0
    return jnp.asarray(g)


def init_torch_params(key, in_channels, h, w, out_features):
    """PyTorch-layout parameters (OIHW conv weights, (out,in) fc weights)."""
    keys = jax.random.split(key, 16)

    def u(k, shape, fan_in):
        bound = 1.0 / np.sqrt(fan_in)
        return jax.random.uniform(k, shape, jnp.float32, -bound, bound)

    tp = {}
    convs = [(in_channels, 32), (32, 32), (32, 64), (64, 64)]
    for i, (ci, co) in enumerate(convs, start=1):
        tp[f"conv{i}_w"] = u(keys[2 * (i - 1)], (co, ci, 3, 3), ci * 9)
        tp[f"conv{i}_b"] = u(keys[2 * (i - 1) + 1], (co,), ci * 9)

    fc_in = 64 * (h // 4) * (w // 4)
    fcs = [(fc_in, 128), (128, 128), (128, 128), (128, out_features)]
    for i, (fi, fo) in enumerate(fcs, start=1):
        tp[f"fc{i}_w"] = u(keys[8 + 2 * (i - 1)], (fo, fi), fi)
        tp[f"fc{i}_b"] = u(keys[8 + 2 * (i - 1) + 1], (fo,), fi)
    return tp


def convert_params(tp, h, w):
    """Torch layout -> kernel layout (im2col conv weights, HWC-ordered fc1 rows)."""
    p = {}
    for i in range(1, 5):
        wt = tp[f"conv{i}_w"]                                    # (Co, Ci, 3, 3)
        co, ci = wt.shape[0], wt.shape[1]
        p[f"cw{i}"] = jnp.transpose(wt, (2, 3, 1, 0)).reshape(9 * ci, co)
        p[f"cb{i}"] = tp[f"conv{i}_b"].reshape(1, co)

    ho, wo, c = h // 4, w // 4, 64
    # fc1: torch cols are CHW-ordered (NCHW flatten); permute rows to HWC order so the
    # Pallas path can flatten the NHWC features directly (no transpose before flatten).
    w1 = tp["fc1_w"].reshape(-1, c, ho, wo)                      # (O, C, H, W)
    p["fw1"] = jnp.transpose(w1, (2, 3, 1, 0)).reshape(ho * wo * c, -1)
    p["fb1"] = tp["fc1_b"].reshape(1, -1)
    for i in (2, 3, 4):
        p[f"fw{i}"] = jnp.transpose(tp[f"fc{i}_w"])
        p[f"fb{i}"] = tp[f"fc{i}_b"].reshape(1, -1)

    p["pool1"] = make_pool_select(h, w)
    p["pool2"] = make_pool_select(h // 2, w // 2)
    return p


# ------------------------------- pure-JAX reference ---------------------------------
def m1_reference(x_nchw, tp):
    """Mirrors the PyTorch forward exactly (NCHW, OIHW weights, NCHW flatten)."""
    dn = ("NCHW", "OIHW", "NCHW")

    def conv(x, wt, b):
        y = jax.lax.conv_general_dilated(x, wt, (1, 1), "SAME", dimension_numbers=dn)
        return jax.nn.relu(y + b[None, :, None, None])

    def pool(x):
        return jax.lax.reduce_window(x, -jnp.inf, jax.lax.max,
                                     (1, 1, 2, 2), (1, 1, 2, 2), "VALID")

    x = conv(x_nchw, tp["conv1_w"], tp["conv1_b"])
    x = conv(x, tp["conv2_w"], tp["conv2_b"])
    x = pool(x)
    x = conv(x, tp["conv3_w"], tp["conv3_b"])
    x = conv(x, tp["conv4_w"], tp["conv4_b"])
    x = pool(x)
    x = x.reshape(x.shape[0], -1)
    x = jax.nn.relu(x @ tp["fc1_w"].T + tp["fc1_b"])
    x = jax.nn.relu(x @ tp["fc2_w"].T + tp["fc2_b"])
    x = jax.nn.relu(x @ tp["fc3_w"].T + tp["fc3_b"])
    return x @ tp["fc4_w"].T + tp["fc4_b"]


if __name__ == "__main__":
    key = jax.random.PRNGKey(0)
    kx, kp = jax.random.split(key)

    # module config: input_shape=(4, 16, 16), out_features=10, batch=2
    N, C, H, W = 2, 4, 16, 16
    out_features = 10

    x = jax.random.normal(kx, (N, C, H, W), jnp.float32)
    tp = init_torch_params(kp, C, H, W, out_features)
    p = convert_params(tp, H, W)

    fwd = jax.jit(m1_forward)
    out = fwd(x, p)
    jax.block_until_ready(out)

    ref = m1_reference(x, tp)
    np.testing.assert_allclose(np.asarray(out), np.asarray(ref), rtol=1e-4, atol=1e-4)

    print("KERNEL_OK")
</pallas_src>

<mosaic_0001>
module attributes {stable_mosaic.version = 11 : i64} {
  func.func @conv_stack_kernel(%arg0: i32, %arg1: memref<1x16x16x4xf32, #tpu.memory_space<vmem>>, %arg2: memref<36x32xf32, #tpu.memory_space<vmem>>, %arg3: memref<1x32xf32, #tpu.memory_space<vmem>>, %arg4: memref<288x32xf32, #tpu.memory_space<vmem>>, %arg5: memref<1x32xf32, #tpu.memory_space<vmem>>, %arg6: memref<288x64xf32, #tpu.memory_space<vmem>>, %arg7: memref<1x64xf32, #tpu.memory_space<vmem>>, %arg8: memref<576x64xf32, #tpu.memory_space<vmem>>, %arg9: memref<1x64xf32, #tpu.memory_space<vmem>>, %arg10: memref<256x256xf32, #tpu.memory_space<vmem>>, %arg11: memref<64x64xf32, #tpu.memory_space<vmem>>, %arg12: memref<1x16x64xf32, #tpu.memory_space<vmem>>, %arg13: memref<18x18x4xf32, #tpu.memory_space<vmem>>, %arg14: memref<18x18x32xf32, #tpu.memory_space<vmem>>, %arg15: memref<10x10x32xf32, #tpu.memory_space<vmem>>, %arg16: memref<10x10x64xf32, #tpu.memory_space<vmem>>) attributes {dimension_semantics = [#tpu.dimension_semantics<parallel>], iteration_bounds = array<i64: 2>, scalar_prefetch = 0 : i64, scratch_operands = 4 : i64, tpu.core_type = #tpu.core_type<tc>, window_params = [{transform_indices = @transform_0, window_bounds = array<i64: 1, 16, 16, 4>}, {pipeline_mode = #tpu.pipeline_mode<synchronous>, transform_indices = @transform_1, window_bounds = array<i64: 36, 32>}, {pipeline_mode = #tpu.pipeline_mode<synchronous>, transform_indices = @transform_2, window_bounds = array<i64: 1, 32>}, {pipeline_mode = #tpu.pipeline_mode<synchronous>, transform_indices = @transform_3, window_bounds = array<i64: 288, 32>}, {pipeline_mode = #tpu.pipeline_mode<synchronous>, transform_indices = @transform_4, window_bounds = array<i64: 1, 32>}, {pipeline_mode = #tpu.pipeline_mode<synchronous>, transform_indices = @transform_5, window_bounds = array<i64: 288, 64>}, {pipeline_mode = #tpu.pipeline_mode<synchronous>, transform_indices = @transform_6, window_bounds = array<i64: 1, 64>}, {pipeline_mode = #tpu.pipeline_mode<synchronous>, transform_indices = @transform_7, window_bounds = array<i64: 576, 64>}, {pipeline_mode = #tpu.pipeline_mode<synchronous>, transform_indices = @transform_8, window_bounds = array<i64: 1, 64>}, {pipeline_mode = #tpu.pipeline_mode<synchronous>, transform_indices = @transform_9, window_bounds = array<i64: 256, 256>}, {pipeline_mode = #tpu.pipeline_mode<synchronous>, transform_indices = @transform_10, window_bounds = array<i64: 64, 64>}, {transform_indices = @transform_11, window_bounds = array<i64: 1, 16, 64>}]} {
    %c0 = arith.constant 0 : index
    %c0_0 = arith.constant 0 : index
    %c0_1 = arith.constant 0 : index
    %c0_2 = arith.constant 0 : index
    %0 = vector.load %arg1[%c0, %c0_0, %c0_1, %c0_2] : memref<1x16x16x4xf32, #tpu.memory_space<vmem>>, vector<1x16x16x4xf32>
    %1 = vector.shape_cast %0 : vector<1x16x16x4xf32> to vector<16x16x4xf32>
    %cst = arith.constant 0.000000e+00 : f32
    %2 = vector.broadcast %cst : f32 to vector<18x18x4xf32>
    %c0_3 = arith.constant 0 : index
    %c0_4 = arith.constant 0 : index
    %c0_5 = arith.constant 0 : index
    %3 = vector.load %arg13[%c0_3, %c0_4, %c0_5] : memref<18x18x4xf32, #tpu.memory_space<vmem>>, vector<18x18x4xf32>
    tpu.vector_store %arg13[%c0_3, %c0_4, %c0_5], %2 {strides = array<i32>} : memref<18x18x4xf32, #tpu.memory_space<vmem>>, vector<18x18x4xf32>,
    %c1 = arith.constant 1 : index
    %c1_6 = arith.constant 1 : index
    %c0_7 = arith.constant 0 : index
    %4 = vector.load %arg13[%c1, %c1_6, %c0_7] : memref<18x18x4xf32, #tpu.memory_space<vmem>>, vector<16x16x4xf32>
    tpu.vector_store %arg13[%c1, %c1_6, %c0_7], %1 {strides = array<i32>} : memref<18x18x4xf32, #tpu.memory_space<vmem>>, vector<16x16x4xf32>,
    %c0_8 = arith.constant 0 : index
    %c0_9 = arith.constant 0 : index
    %c0_10 = arith.constant 0 : index
    %5 = vector.load %arg13[%c0_8, %c0_9, %c0_10] : memref<18x18x4xf32, #tpu.memory_space<vmem>>, vector<16x16x4xf32>
    %6 = vector.shape_cast %5 : vector<16x16x4xf32> to vector<256x4xf32>
    %c0_11 = arith.constant 0 : index
    %c1_12 = arith.constant 1 : index
    %c0_13 = arith.constant 0 : index
    %7 = vector.load %arg13[%c0_11, %c1_12, %c0_13] : memref<18x18x4xf32, #tpu.memory_space<vmem>>, vector<16x16x4xf32>
    %8 = vector.shape_cast %7 : vector<16x16x4xf32> to vector<256x4xf32>
    %c0_14 = arith.constant 0 : index
    %c2 = arith.constant 2 : index
    %c0_15 = arith.constant 0 : index
    %9 = vector.load %arg13[%c0_14, %c2, %c0_15] : memref<18x18x4xf32, #tpu.memory_space<vmem>>, vector<16x16x4xf32>
    %10 = vector.shape_cast %9 : vector<16x16x4xf32> to vector<256x4xf32>
    %c1_16 = arith.constant 1 : index
    %c0_17 = arith.constant 0 : index
    %c0_18 = arith.constant 0 : index
    %11 = vector.load %arg13[%c1_16, %c0_17, %c0_18] : memref<18x18x4xf32, #tpu.memory_space<vmem>>, vector<16x16x4xf32>
    %12 = vector.shape_cast %11 : vector<16x16x4xf32> to vector<256x4xf32>
    %c1_19 = arith.constant 1 : index
    %c1_20 = arith.constant 1 : index
    %c0_21 = arith.constant 0 : index
    %13 = vector.load %arg13[%c1_19, %c1_20, %c0_21] : memref<18x18x4xf32, #tpu.memory_space<vmem>>, vector<16x16x4xf32>
    %14 = vector.shape_cast %13 : vector<16x16x4xf32> to vector<256x4xf32>
    %c1_22 = arith.constant 1 : index
    %c2_23 = arith.constant 2 : index
    %c0_24 = arith.constant 0 : index
    %15 = vector.load %arg13[%c1_22, %c2_23, %c0_24] : memref<18x18x4xf32, #tpu.memory_space<vmem>>, vector<16x16x4xf32>
    %16 = vector.shape_cast %15 : vector<16x16x4xf32> to vector<256x4xf32>
    %c2_25 = arith.constant 2 : index
    %c0_26 = arith.constant 0 : index
    %c0_27 = arith.constant 0 : index
    %17 = vector.load %arg13[%c2_25, %c0_26, %c0_27] : memref<18x18x4xf32, #tpu.memory_space<vmem>>, vector<16x16x4xf32>
    %18 = vector.shape_cast %17 : vector<16x16x4xf32> to vector<256x4xf32>
    %c2_28 = arith.constant 2 : index
    %c1_29 = arith.constant 1 : index
    %c0_30 = arith.constant 0 : index
    %19 = vector.load %arg13[%c2_28, %c1_29, %c0_30] : memref<18x18x4xf32, #tpu.memory_space<vmem>>, vector<16x16x4xf32>
    %20 = vector.shape_cast %19 : vector<16x16x4xf32> to vector<256x4xf32>
    %c2_31 = arith.constant 2 : index
    %c2_32 = arith.constant 2 : index
    %c0_33 = arith.constant 0 : index
    %21 = vector.load %arg13[%c2_31, %c2_32, %c0_33] : memref<18x18x4xf32, #tpu.memory_space<vmem>>, vector<16x16x4xf32>
    %22 = vector.shape_cast %21 : vector<16x16x4xf32> to vector<256x4xf32>
    %23 = tpu.concatenate %6, %8, %10, %12, %14, %16, %18, %20, %22 in 1 : vector<256x4xf32>, vector<256x4xf32>, vector<256x4xf32>, vector<256x4xf32>, vector<256x4xf32>, vector<256x4xf32>, vector<256x4xf32>, vector<256x4xf32>, vector<256x4xf32> -> vector<256x36xf32>
    %c0_34 = arith.constant 0 : index
    %c0_35 = arith.constant 0 : index
    %24 = vector.load %arg2[%c0_34, %c0_35] : memref<36x32xf32, #tpu.memory_space<vmem>>, vector<36x32xf32>
    %cst_36 = arith.constant dense<0.000000e+00> : vector<256x32xf32>
    %25 = tpu.matmul %23, %24, %cst_36 {dimension_numbers = #tpu.dot_dimension_numbers<[1], [0], [0], [1], [0, 0, 1, 1], [], []>} : vector<256x36xf32>, vector<36x32xf32>, vector<256x32xf32> -> vector<256x32xf32>
    %c0_37 = arith.constant 0 : index
    %c0_38 = arith.constant 0 : index
    %26 = vector.load %arg3[%c0_37, %c0_38] : memref<1x32xf32, #tpu.memory_space<vmem>>, vector<1x32xf32>
    %27 = vector.broadcast %26 : vector<1x32xf32> to vector<256x32xf32>
    %28 = arith.addf %25, %27 : vector<256x32xf32>
    %cst_39 = arith.constant 0.000000e+00 : f32
    %29 = vector.broadcast %cst_39 : f32 to vector<256x32xf32>
    %30 = arith.maximumf %28, %29 : vector<256x32xf32>
    %31 = vector.shape_cast %30 : vector<256x32xf32> to vector<16x16x32xf32>
    %cst_40 = arith.constant 0.000000e+00 : f32
    %32 = vector.broadcast %cst_40 : f32 to vector<18x18x32xf32>
    %c0_41 = arith.constant 0 : index
    %c0_42 = arith.constant 0 : index
    %c0_43 = arith.constant 0 : index
    %33 = vector.load %arg14[%c0_41, %c0_42, %c0_43] : memref<18x18x32xf32, #tpu.memory_space<vmem>>, vector<18x18x32xf32>
    tpu.vector_store %arg14[%c0_41, %c0_42, %c0_43], %32 {strides = array<i32>} : memref<18x18x32xf32, #tpu.memory_space<vmem>>, vector<18x18x32xf32>,
    %c1_44 = arith.constant 1 : index
    %c1_45 = arith.constant 1 : index
    %c0_46 = arith.constant 0 : index
    %34 = vector.load %arg14[%c1_44, %c1_45, %c0_46] : memref<18x18x32xf32, #tpu.memory_space<vmem>>, vector<16x16x32xf32>
    tpu.vector_store %arg14[%c1_44, %c1_45, %c0_46], %31 {strides = array<i32>} : memref<18x18x32xf32, #tpu.memory_space<vmem>>, vector<16x16x32xf32>,
    %c0_47 = arith.constant 0 : index
    %c0_48 = arith.constant 0 : index
    %c0_49 = arith.constant 0 : index
    %35 = vector.load %arg14[%c0_47, %c0_48, %c0_49] : memref<18x18x32xf32, #tpu.memory_space<vmem>>, vector<16x16x32xf32>
    %36 = vector.shape_cast %35 : vector<16x16x32xf32> to vector<256x32xf32>
    %c0_50 = arith.constant 0 : index
    %c1_51 = arith.constant 1 : index
    %c0_52 = arith.constant 0 : index
    %37 = vector.load %arg14[%c0_50, %c1_51, %c0_52] : memref<18x18x32xf32, #tpu.memory_space<vmem>>, vector<16x16x32xf32>
    %38 = vector.shape_cast %37 : vector<16x16x32xf32> to vector<256x32xf32>
    %c0_53 = arith.constant 0 : index
    %c2_54 = arith.constant 2 : index
    %c0_55 = arith.constant 0 : index
    %39 = vector.load %arg14[%c0_53, %c2_54, %c0_55] : memref<18x18x32xf32, #tpu.memory_space<vmem>>, vector<16x16x32xf32>
    %40 = vector.shape_cast %39 : vector<16x16x32xf32> to vector<256x32xf32>
    %c1_56 = arith.constant 1 : index
    %c0_57 = arith.constant 0 : index
    %c0_58 = arith.constant 0 : index
    %41 = vector.load %arg14[%c1_56, %c0_57, %c0_58] : memref<18x18x32xf32, #tpu.memory_space<vmem>>, vector<16x16x32xf32>
    %42 = vector.shape_cast %41 : vector<16x16x32xf32> to vector<256x32xf32>
    %c1_59 = arith.constant 1 : index
    %c1_60 = arith.constant 1 : index
    %c0_61 = arith.constant 0 : index
    %43 = vector.load %arg14[%c1_59, %c1_60, %c0_61] : memref<18x18x32xf32, #tpu.memory_space<vmem>>, vector<16x16x32xf32>
    %44 = vector.shape_cast %43 : vector<16x16x32xf32> to vector<256x32xf32>
    %c1_62 = arith.constant 1 : index
    %c2_63 = arith.constant 2 : index
    %c0_64 = arith.constant 0 : index
    %45 = vector.load %arg14[%c1_62, %c2_63, %c0_64] : memref<18x18x32xf32, #tpu.memory_space<vmem>>, vector<16x16x32xf32>
    %46 = vector.shape_cast %45 : vector<16x16x32xf32> to vector<256x32xf32>
    %c2_65 = arith.constant 2 : index
    %c0_66 = arith.constant 0 : index
    %c0_67 = arith.constant 0 : index
    %47 = vector.load %arg14[%c2_65, %c0_66, %c0_67] : memref<18x18x32xf32, #tpu.memory_space<vmem>>, vector<16x16x32xf32>
    %48 = vector.shape_cast %47 : vector<16x16x32xf32> to vector<256x32xf32>
    %c2_68 = arith.constant 2 : index
    %c1_69 = arith.constant 1 : index
    %c0_70 = arith.constant 0 : index
    %49 = vector.load %arg14[%c2_68, %c1_69, %c0_70] : memref<18x18x32xf32, #tpu.memory_space<vmem>>, vector<16x16x32xf32>
    %50 = vector.shape_cast %49 : vector<16x16x32xf32> to vector<256x32xf32>
    %c2_71 = arith.constant 2 : index
    %c2_72 = arith.constant 2 : index
    %c0_73 = arith.constant 0 : index
    %51 = vector.load %arg14[%c2_71, %c2_72, %c0_73] : memref<18x18x32xf32, #tpu.memory_space<vmem>>, vector<16x16x32xf32>
    %52 = vector.shape_cast %51 : vector<16x16x32xf32> to vector<256x32xf32>
    %53 = tpu.concatenate %36, %38, %40, %42, %44, %46, %48, %50, %52 in 1 : vector<256x32xf32>, vector<256x32xf32>, vector<256x32xf32>, vector<256x32xf32>, vector<256x32xf32>, vector<256x32xf32>, vector<256x32xf32>, vector<256x32xf32>, vector<256x32xf32> -> vector<256x288xf32>
    %c0_74 = arith.constant 0 : index
    %c0_75 = arith.constant 0 : index
    %54 = vector.load %arg4[%c0_74, %c0_75] : memref<288x32xf32, #tpu.memory_space<vmem>>, vector<288x32xf32>
    %cst_76 = arith.constant dense<0.000000e+00> : vector<256x32xf32>
    %55 = tpu.matmul %53, %54, %cst_76 {dimension_numbers = #tpu.dot_dimension_numbers<[1], [0], [0], [1], [0, 0, 1, 1], [], []>} : vector<256x288xf32>, vector<288x32xf32>, vector<256x32xf32> -> vector<256x32xf32>
    %c0_77 = arith.constant 0 : index
    %c0_78 = arith.constant 0 : index
    %56 = vector.load %arg5[%c0_77, %c0_78] : memref<1x32xf32, #tpu.memory_space<vmem>>, vector<1x32xf32>
    %57 = vector.broadcast %56 : vector<1x32xf32> to vector<256x32xf32>
    %58 = arith.addf %55, %57 : vector<256x32xf32>
    %cst_79 = arith.constant 0.000000e+00 : f32
    %59 = vector.broadcast %cst_79 : f32 to vector<256x32xf32>
    %60 = arith.maximumf %58, %59 : vector<256x32xf32>
    %c0_80 = arith.constant 0 : index
    %c0_81 = arith.constant 0 : index
    %61 = vector.load %arg10[%c0_80, %c0_81] : memref<256x256xf32, #tpu.memory_space<vmem>>, vector<256x256xf32>
    %cst_82 = arith.constant dense<0.000000e+00> : vector<256x32xf32>
    %62 = tpu.matmul %61, %60, %cst_82 {dimension_numbers = #tpu.dot_dimension_numbers<[1], [0], [0], [1], [0, 0, 1, 1], [], []>} : vector<256x256xf32>, vector<256x32xf32>, vector<256x32xf32> -> vector<256x32xf32>
    %63 = vector.extract_strided_slice %62 {offsets = [0, 0], sizes = [64, 32], strides = [1, 1]} : vector<256x32xf32> to vector<64x32xf32>
    %64 = vector.extract_strided_slice %62 {offsets = [64, 0], sizes = [64, 32], strides = [1, 1]} : vector<256x32xf32> to vector<64x32xf32>
    %65 = arith.maximumf %63, %64 : vector<64x32xf32>
    %66 = vector.extract_strided_slice %62 {offsets = [128, 0], sizes = [64, 32], strides = [1, 1]} : vector<256x32xf32> to vector<64x32xf32>
    %67 = vector.extract_strided_slice %62 {offsets = [192, 0], sizes = [64, 32], strides = [1, 1]} : vector<256x32xf32> to vector<64x32xf32>
    %68 = arith.maximumf %66, %67 : vector<64x32xf32>
    %69 = arith.maximumf %65, %68 : vector<64x32xf32>
    %70 = vector.shape_cast %69 : vector<64x32xf32> to vector<8x8x32xf32>
    %cst_83 = arith.constant 0.000000e+00 : f32
    %71 = vector.broadcast %cst_83 : f32 to vector<10x10x32xf32>
    %c0_84 = arith.constant 0 : index
    %c0_85 = arith.constant 0 : index
    %c0_86 = arith.constant 0 : index
    %72 = vector.load %arg15[%c0_84, %c0_85, %c0_86] : memref<10x10x32xf32, #tpu.memory_space<vmem>>, vector<10x10x32xf32>
    tpu.vector_store %arg15[%c0_84, %c0_85, %c0_86], %71 {strides = array<i32>} : memref<10x10x32xf32, #tpu.memory_space<vmem>>, vector<10x10x32xf32>,
    %c1_87 = arith.constant 1 : index
    %c1_88 = arith.constant 1 : index
    %c0_89 = arith.constant 0 : index
    %73 = vector.load %arg15[%c1_87, %c1_88, %c0_89] : memref<10x10x32xf32, #tpu.memory_space<vmem>>, vector<8x8x32xf32>
    tpu.vector_store %arg15[%c1_87, %c1_88, %c0_89], %70 {strides = array<i32>} : memref<10x10x32xf32, #tpu.memory_space<vmem>>, vector<8x8x32xf32>,
    %c0_90 = arith.constant 0 : index
    %c0_91 = arith.constant 0 : index
    %c0_92 = arith.constant 0 : index
    %74 = vector.load %arg15[%c0_90, %c0_91, %c0_92] : memref<10x10x32xf32, #tpu.memory_space<vmem>>, vector<8x8x32xf32>
    %75 = vector.shape_cast %74 : vector<8x8x32xf32> to vector<64x32xf32>
    %c0_93 = arith.constant 0 : index
    %c1_94 = arith.constant 1 : index
    %c0_95 = arith.constant 0 : index
    %76 = vector.load %arg15[%c0_93, %c1_94, %c0_95] : memref<10x10x32xf32, #tpu.memory_space<vmem>>, vector<8x8x32xf32>
    %77 = vector.shape_cast %76 : vector<8x8x32xf32> to vector<64x32xf32>
    %c0_96 = arith.constant 0 : index
    %c2_97 = arith.constant 2 : index
    %c0_98 = arith.constant 0 : index
    %78 = vector.load %arg15[%c0_96, %c2_97, %c0_98] : memref<10x10x32xf32, #tpu.memory_space<vmem>>, vector<8x8x32xf32>
    %79 = vector.shape_cast %78 : vector<8x8x32xf32> to vector<64x32xf32>
    %c1_99 = arith.constant 1 : index
    %c0_100 = arith.constant 0 : index
    %c0_101 = arith.constant 0 : index
    %80 = vector.load %arg15[%c1_99, %c0_100, %c0_101] : memref<10x10x32xf32, #tpu.memory_space<vmem>>, vector<8x8x32xf32>
    %81 = vector.shape_cast %80 : vector<8x8x32xf32> to vector<64x32xf32>
    %c1_102 = arith.constant 1 : index
    %c1_103 = arith.constant 1 : index
    %c0_104 = arith.constant 0 : index
    %82 = vector.load %arg15[%c1_102, %c1_103, %c0_104] : memref<10x10x32xf32, #tpu.memory_space<vmem>>, vector<8x8x32xf32>
    %83 = vector.shape_cast %82 : vector<8x8x32xf32> to vector<64x32xf32>
    %c1_105 = arith.constant 1 : index
    %c2_106 = arith.constant 2 : index
    %c0_107 = arith.constant 0 : index
    %84 = vector.load %arg15[%c1_105, %c2_106, %c0_107] : memref<10x10x32xf32, #tpu.memory_space<vmem>>, vector<8x8x32xf32>
    %85 = vector.shape_cast %84 : vector<8x8x32xf32> to vector<64x32xf32>
    %c2_108 = arith.constant 2 : index
    %c0_109 = arith.constant 0 : index
    %c0_110 = arith.constant 0 : index
    %86 = vector.load %arg15[%c2_108, %c0_109, %c0_110] : memref<10x10x32xf32, #tpu.memory_space<vmem>>, vector<8x8x32xf32>
    %87 = vector.shape_cast %86 : vector<8x8x32xf32> to vector<64x32xf32>
    %c2_111 = arith.constant 2 : index
    %c1_112 = arith.constant 1 : index
    %c0_113 = arith.constant 0 : index
    %88 = vector.load %arg15[%c2_111, %c1_112, %c0_113] : memref<10x10x32xf32, #tpu.memory_space<vmem>>, vector<8x8x32xf32>
    %89 = vector.shape_cast %88 : vector<8x8x32xf32> to vector<64x32xf32>
    %c2_114 = arith.constant 2 : index
    %c2_115 = arith.constant 2 : index
    %c0_116 = arith.constant 0 : index
    %90 = vector.load %arg15[%c2_114, %c2_115, %c0_116] : memref<10x10x32xf32, #tpu.memory_space<vmem>>, vector<8x8x32xf32>
    %91 = vector.shape_cast %90 : vector<8x8x32xf32> to vector<64x32xf32>
    %92 = tpu.concatenate %75, %77, %79, %81, %83, %85, %87, %89, %91 in 1 : vector<64x32xf32>, vector<64x32xf32>, vector<64x32xf32>, vector<64x32xf32>, vector<64x32xf32>, vector<64x32xf32>, vector<64x32xf32>, vector<64x32xf32>, vector<64x32xf32> -> vector<64x288xf32>
    %c0_117 = arith.constant 0 : index
    %c0_118 = arith.constant 0 : index
    %93 = vector.load %arg6[%c0_117, %c0_118] : memref<288x64xf32, #tpu.memory_space<vmem>>, vector<288x64xf32>
    %cst_119 = arith.constant dense<0.000000e+00> : vector<64x64xf32>
    %94 = tpu.matmul %92, %93, %cst_119 {dimension_numbers = #tpu.dot_dimension_numbers<[1], [0], [0], [1], [0, 0, 1, 1], [], []>} : vector<64x288xf32>, vector<288x64xf32>, vector<64x64xf32> -> vector<64x64xf32>
    %c0_120 = arith.constant 0 : index
    %c0_121 = arith.constant 0 : index
    %95 = vector.load %arg7[%c0_120, %c0_121] : memref<1x64xf32, #tpu.memory_space<vmem>>, vector<1x64xf32>
    %96 = vector.broadcast %95 : vector<1x64xf32> to vector<64x64xf32>
    %97 = arith.addf %94, %96 : vector<64x64xf32>
    %cst_122 = arith.constant 0.000000e+00 : f32
    %98 = vector.broadcast %cst_122 : f32 to vector<64x64xf32>
    %99 = arith.maximumf %97, %98 : vector<64x64xf32>
    %100 = vector.shape_cast %99 : vector<64x64xf32> to vector<8x8x64xf32>
    %cst_123 = arith.constant 0.000000e+00 : f32
    %101 = vector.broadcast %cst_123 : f32 to vector<10x10x64xf32>
    %c0_124 = arith.constant 0 : index
    %c0_125 = arith.constant 0 : index
    %c0_126 = arith.constant 0 : index
    %102 = vector.load %arg16[%c0_124, %c0_125, %c0_126] : memref<10x10x64xf32, #tpu.memory_space<vmem>>, vector<10x10x64xf32>
    tpu.vector_store %arg16[%c0_124, %c0_125, %c0_126], %101 {strides = array<i32>} : memref<10x10x64xf32, #tpu.memory_space<vmem>>, vector<10x10x64xf32>,
    %c1_127 = arith.constant 1 : index
    %c1_128 = arith.constant 1 : index
    %c0_129 = arith.constant 0 : index
    %103 = vector.load %arg16[%c1_127, %c1_128, %c0_129] : memref<10x10x64xf32, #tpu.memory_space<vmem>>, vector<8x8x64xf32>
    tpu.vector_store %arg16[%c1_127, %c1_128, %c0_129], %100 {strides = array<i32>} : memref<10x10x64xf32, #tpu.memory_space<vmem>>, vector<8x8x64xf32>,
    %c0_130 = arith.constant 0 : index
    %c0_131 = arith.constant 0 : index
    %c0_132 = arith.constant 0 : index
    %104 = vector.load %arg16[%c0_130, %c0_131, %c0_132] : memref<10x10x64xf32, #tpu.memory_space<vmem>>, vector<8x8x64xf32>
    %105 = vector.shape_cast %104 : vector<8x8x64xf32> to vector<64x64xf32>
    %c0_133 = arith.constant 0 : index
    %c1_134 = arith.constant 1 : index
    %c0_135 = arith.constant 0 : index
    %106 = vector.load %arg16[%c0_133, %c1_134, %c0_135] : memref<10x10x64xf32, #tpu.memory_space<vmem>>, vector<8x8x64xf32>
    %107 = vector.shape_cast %106 : vector<8x8x64xf32> to vector<64x64xf32>
    %c0_136 = arith.constant 0 : index
    %c2_137 = arith.constant 2 : index
    %c0_138 = arith.constant 0 : index
    %108 = vector.load %arg16[%c0_136, %c2_137, %c0_138] : memref<10x10x64xf32, #tpu.memory_space<vmem>>, vector<8x8x64xf32>
    %109 = vector.shape_cast %108 : vector<8x8x64xf32> to vector<64x64xf32>
    %c1_139 = arith.constant 1 : index
    %c0_140 = arith.constant 0 : index
    %c0_141 = arith.constant 0 : index
    %110 = vector.load %arg16[%c1_139, %c0_140, %c0_141] : memref<10x10x64xf32, #tpu.memory_space<vmem>>, vector<8x8x64xf32>
    %111 = vector.shape_cast %110 : vector<8x8x64xf32> to vector<64x64xf32>
    %c1_142 = arith.constant 1 : index
    %c1_143 = arith.constant 1 : index
    %c0_144 = arith.constant 0 : index
    %112 = vector.load %arg16[%c1_142, %c1_143, %c0_144] : memref<10x10x64xf32, #tpu.memory_space<vmem>>, vector<8x8x64xf32>
    %113 = vector.shape_cast %112 : vector<8x8x64xf32> to vector<64x64xf32>
    %c1_145 = arith.constant 1 : index
    %c2_146 = arith.constant 2 : index
    %c0_147 = arith.constant 0 : index
    %114 = vector.load %arg16[%c1_145, %c2_146, %c0_147] : memref<10x10x64xf32, #tpu.memory_space<vmem>>, vector<8x8x64xf32>
    %115 = vector.shape_cast %114 : vector<8x8x64xf32> to vector<64x64xf32>
    %c2_148 = arith.constant 2 : index
    %c0_149 = arith.constant 0 : index
    %c0_150 = arith.constant 0 : index
    %116 = vector.load %arg16[%c2_148, %c0_149, %c0_150] : memref<10x10x64xf32, #tpu.memory_space<vmem>>, vector<8x8x64xf32>
    %117 = vector.shape_cast %116 : vector<8x8x64xf32> to vector<64x64xf32>
    %c2_151 = arith.constant 2 : index
    %c1_152 = arith.constant 1 : index
    %c0_153 = arith.constant 0 : index
    %118 = vector.load %arg16[%c2_151, %c1_152, %c0_153] : memref<10x10x64xf32, #tpu.memory_space<vmem>>, vector<8x8x64xf32>
    %119 = vector.shape_cast %118 : vector<8x8x64xf32> to vector<64x64xf32>
    %c2_154 = arith.constant 2 : index
    %c2_155 = arith.constant 2 : index
    %c0_156 = arith.constant 0 : index
    %120 = vector.load %arg16[%c2_154, %c2_155, %c0_156] : memref<10x10x64xf32, #tpu.memory_space<vmem>>, vector<8x8x64xf32>
    %121 = vector.shape_cast %120 : vector<8x8x64xf32> to vector<64x64xf32>
    %122 = tpu.concatenate %105, %107, %109, %111, %113, %115, %117, %119, %121 in 1 : vector<64x64xf32>, vector<64x64xf32>, vector<64x64xf32>, vector<64x64xf32>, vector<64x64xf32>, vector<64x64xf32>, vector<64x64xf32>, vector<64x64xf32>, vector<64x64xf32> -> vector<64x576xf32>
    %c0_157 = arith.constant 0 : index
    %c0_158 = arith.constant 0 : index
    %123 = vector.load %arg8[%c0_157, %c0_158] : memref<576x64xf32, #tpu.memory_space<vmem>>, vector<576x64xf32>
    %cst_159 = arith.constant dense<0.000000e+00> : vector<64x64xf32>
    %124 = tpu.matmul %122, %123, %cst_159 {dimension_numbers = #tpu.dot_dimension_numbers<[1], [0], [0], [1], [0, 0, 1, 1], [], []>} : vector<64x576xf32>, vector<576x64xf32>, vector<64x64xf32> -> vector<64x64xf32>
    %c0_160 = arith.constant 0 : index
    %c0_161 = arith.constant 0 : index
    %125 = vector.load %arg9[%c0_160, %c0_161] : memref<1x64xf32, #tpu.memory_space<vmem>>, vector<1x64xf32>
    %126 = vector.broadcast %125 : vector<1x64xf32> to vector<64x64xf32>
    %127 = arith.addf %124, %126 : vector<64x64xf32>
    %cst_162 = arith.constant 0.000000e+00 : f32
    %128 = vector.broadcast %cst_162 : f32 to vector<64x64xf32>
    %129 = arith.maximumf %127, %128 : vector<64x64xf32>
    %c0_163 = arith.constant 0 : index
    %c0_164 = arith.constant 0 : index
    %130 = vector.load %arg11[%c0_163, %c0_164] : memref<64x64xf32, #tpu.memory_space<vmem>>, vector<64x64xf32>
    %cst_165 = arith.constant dense<0.000000e+00> : vector<64x64xf32>
    %131 = tpu.matmul %130, %129, %cst_165 {dimension_numbers = #tpu.dot_dimension_numbers<[1], [0], [0], [1], [0, 0, 1, 1], [], []>} : vector<64x64xf32>, vector<64x64xf32>, vector<64x64xf32> -> vector<64x64xf32>
    %132 = vector.extract_strided_slice %131 {offsets = [0, 0], sizes = [16, 64], strides = [1, 1]} : vector<64x64xf32> to vector<16x64xf32>
    %133 = vector.extract_strided_slice %131 {offsets = [16, 0], sizes = [16, 64], strides = [1, 1]} : vector<64x64xf32> to vector<16x64xf32>
    %134 = arith.maximumf %132, %133 : vector<16x64xf32>
    %135 = vector.extract_strided_slice %131 {offsets = [32, 0], sizes = [16, 64], strides = [1, 1]} : vector<64x64xf32> to vector<16x64xf32>
    %136 = vector.extract_strided_slice %131 {offsets = [48, 0], sizes = [16, 64], strides = [1, 1]} : vector<64x64xf32> to vector<16x64xf32>
    %137 = arith.maximumf %135, %136 : vector<16x64xf32>
    %138 = arith.maximumf %134, %137 : vector<16x64xf32>
    %c0_166 = arith.constant 0 : index
    %c0_167 = arith.constant 0 : index
    %c0_168 = arith.constant 0 : index
    %139 = vector.load %arg12[%c0_166, %c0_167, %c0_168] : memref<1x16x64xf32, #tpu.memory_space<vmem>>, vector<1x16x64xf32>
    %140 = vector.shape_cast %139 : vector<1x16x64xf32> to vector<16x64xf32>
    %141 = vector.shape_cast %138 : vector<16x64xf32> to vector<1x16x64xf32>
    tpu.vector_store %arg12[%c0_166, %c0_167, %c0_168], %141 {strides = array<i32>} : memref<1x16x64xf32, #tpu.memory_space<vmem>>, vector<1x16x64xf32>,
    return
  }
  func.func @transform_0(%arg0: i32) -> (i32, i32, i32, i32) {
    %c0_i32 = arith.constant 0 : i32
    %c0_i32_0 = arith.constant 0 : i32
    %c0_i32_1 = arith.constant 0 : i32
    %c0_i32_2 = arith.constant 0 : i32
    return %arg0, %c0_i32, %c0_i32_0, %c0_i32_1 : i32, i32, i32, i32
  }
  func.func @transform_1(%arg0: i32) -> (i32, i32) {
    %c0_i32 = arith.constant 0 : i32
    %c0_i32_0 = arith.constant 0 : i32
    %c0_i32_1 = arith.constant 0 : i32
    return %c0_i32, %c0_i32_0 : i32, i32
  }
  func.func @transform_2(%arg0: i32) -> (i32, i32) {
    %c0_i32 = arith.constant 0 : i32
    %c0_i32_0 = arith.constant 0 : i32
    %c0_i32_1 = arith.constant 0 : i32
    return %c0_i32, %c0_i32_0 : i32, i32
  }
  func.func @transform_3(%arg0: i32) -> (i32, i32) {
    %c0_i32 = arith.constant 0 : i32
    %c0_i32_0 = arith.constant 0 : i32
    %c0_i32_1 = arith.constant 0 : i32
    return %c0_i32, %c0_i32_0 : i32, i32
  }
  func.func @transform_4(%arg0: i32) -> (i32, i32) {
    %c0_i32 = arith.constant 0 : i32
    %c0_i32_0 = arith.constant 0 : i32
    %c0_i32_1 = arith.constant 0 : i32
    return %c0_i32, %c0_i32_0 : i32, i32
  }
  func.func @transform_5(%arg0: i32) -> (i32, i32) {
    %c0_i32 = arith.constant 0 : i32
    %c0_i32_0 = arith.constant 0 : i32
    %c0_i32_1 = arith.constant 0 : i32
    return %c0_i32, %c0_i32_0 : i32, i32
  }
  func.func @transform_6(%arg0: i32) -> (i32, i32) {
    %c0_i32 = arith.constant 0 : i32
    %c0_i32_0 = arith.constant 0 : i32
    %c0_i32_1 = arith.constant 0 : i32
    return %c0_i32, %c0_i32_0 : i32, i32
  }
  func.func @transform_7(%arg0: i32) -> (i32, i32) {
    %c0_i32 = arith.constant 0 : i32
    %c0_i32_0 = arith.constant 0 : i32
    %c0_i32_1 = arith.constant 0 : i32
    return %c0_i32, %c0_i32_0 : i32, i32
  }
  func.func @transform_8(%arg0: i32) -> (i32, i32) {
    %c0_i32 = arith.constant 0 : i32
    %c0_i32_0 = arith.constant 0 : i32
    %c0_i32_1 = arith.constant 0 : i32
    return %c0_i32, %c0_i32_0 : i32, i32
  }
  func.func @transform_9(%arg0: i32) -> (i32, i32) {
    %c0_i32 = arith.constant 0 : i32
    %c0_i32_0 = arith.constant 0 : i32
    %c0_i32_1 = arith.constant 0 : i32
    return %c0_i32, %c0_i32_0 : i32, i32
  }
  func.func @transform_10(%arg0: i32) -> (i32, i32) {
    %c0_i32 = arith.constant 0 : i32
    %c0_i32_0 = arith.constant 0 : i32
    %c0_i32_1 = arith.constant 0 : i32
    return %c0_i32, %c0_i32_0 : i32, i32
  }
  func.func @transform_11(%arg0: i32) -> (i32, i32, i32) {
    %c0_i32 = arith.constant 0 : i32
    %c0_i32_0 = arith.constant 0 : i32
    %c0_i32_1 = arith.constant 0 : i32
    return %arg0, %c0_i32, %c0_i32_0 : i32, i32, i32
  }
}

module attributes {stable_mosaic.version = 11 : i64} {
  func.func @fc_stack_kernel(%arg0: memref<2x1024xf32, #tpu.memory_space<vmem>>, %arg1: memref<1024x128xf32, #tpu.memory_space<vmem>>, %arg2: memref<1x128xf32, #tpu.memory_space<vmem>>, %arg3: memref<128x128xf32, #tpu.memory_space<vmem>>, %arg4: memref<1x128xf32, #tpu.memory_space<vmem>>, %arg5: memref<128x128xf32, #tpu.memory_space<vmem>>, %arg6: memref<1x128xf32, #tpu.memory_space<vmem>>, %arg7: memref<128x10xf32, #tpu.memory_space<vmem>>, %arg8: memref<1x10xf32, #tpu.memory_space<vmem>>, %arg9: memref<2x10xf32, #tpu.memory_space<vmem>>) attributes {dimension_semantics = [], scalar_prefetch = 0 : i64, scratch_operands = 0 : i64, tpu.core_type = #tpu.core_type<tc>} {
    %c0 = arith.constant 0 : index
    %c0_0 = arith.constant 0 : index
    %0 = vector.load %arg0[%c0, %c0_0] : memref<2x1024xf32, #tpu.memory_space<vmem>>, vector<2x1024xf32>
    %c0_1 = arith.constant 0 : index
    %c0_2 = arith.constant 0 : index
    %1 = vector.load %arg1[%c0_1, %c0_2] : memref<1024x128xf32, #tpu.memory_space<vmem>>, vector<1024x128xf32>
    %cst = arith.constant dense<0.000000e+00> : vector<2x128xf32>
    %2 = tpu.matmul %0, %1, %cst {dimension_numbers = #tpu.dot_dimension_numbers<[1], [0], [0], [1], [0, 0, 1, 1], [], []>} : vector<2x1024xf32>, vector<1024x128xf32>, vector<2x128xf32> -> vector<2x128xf32>
    %c0_3 = arith.constant 0 : index
    %c0_4 = arith.constant 0 : index
    %3 = vector.load %arg2[%c0_3, %c0_4] : memref<1x128xf32, #tpu.memory_space<vmem>>, vector<1x128xf32>
    %4 = vector.broadcast %3 : vector<1x128xf32> to vector<2x128xf32>
    %5 = arith.addf %2, %4 : vector<2x128xf32>
    %cst_5 = arith.constant 0.000000e+00 : f32
    %6 = vector.broadcast %cst_5 : f32 to vector<2x128xf32>
    %7 = arith.maximumf %5, %6 : vector<2x128xf32>
    %c0_6 = arith.constant 0 : index
    %c0_7 = arith.constant 0 : index
    %8 = vector.load %arg3[%c0_6, %c0_7] : memref<128x128xf32, #tpu.memory_space<vmem>>, vector<128x128xf32>
    %cst_8 = arith.constant dense<0.000000e+00> : vector<2x128xf32>
    %9 = tpu.matmul %7, %8, %cst_8 {dimension_numbers = #tpu.dot_dimension_numbers<[1], [0], [0], [1], [0, 0, 1, 1], [], []>} : vector<2x128xf32>, vector<128x128xf32>, vector<2x128xf32> -> vector<2x128xf32>
    %c0_9 = arith.constant 0 : index
    %c0_10 = arith.constant 0 : index
    %10 = vector.load %arg4[%c0_9, %c0_10] : memref<1x128xf32, #tpu.memory_space<vmem>>, vector<1x128xf32>
    %11 = vector.broadcast %10 : vector<1x128xf32> to vector<2x128xf32>
    %12 = arith.addf %9, %11 : vector<2x128xf32>
    %cst_11 = arith.constant 0.000000e+00 : f32
    %13 = vector.broadcast %cst_11 : f32 to vector<2x128xf32>
    %14 = arith.maximumf %12, %13 : vector<2x128xf32>
    %c0_12 = arith.constant 0 : index
    %c0_13 = arith.constant 0 : index
    %15 = vector.load %arg5[%c0_12, %c0_13] : memref<128x128xf32, #tpu.memory_space<vmem>>, vector<128x128xf32>
    %cst_14 = arith.constant dense<0.000000e+00> : vector<2x128xf32>
    %16 = tpu.matmul %14, %15, %cst_14 {dimension_numbers = #tpu.dot_dimension_numbers<[1], [0], [0], [1], [0, 0, 1, 1], [], []>} : vector<2x128xf32>, vector<128x128xf32>, vector<2x128xf32> -> vector<2x128xf32>
    %c0_15 = arith.constant 0 : index
    %c0_16 = arith.constant 0 : index
    %17 = vector.load %arg6[%c0_15, %c0_16] : memref<1x128xf32, #tpu.memory_space<vmem>>, vector<1x128xf32>
    %18 = vector.broadcast %17 : vector<1x128xf32> to vector<2x128xf32>
    %19 = arith.addf %16, %18 : vector<2x128xf32>
    %cst_17 = arith.constant 0.000000e+00 : f32
    %20 = vector.broadcast %cst_17 : f32 to vector<2x128xf32>
    %21 = arith.maximumf %19, %20 : vector<2x128xf32>
    %c0_18 = arith.constant 0 : index
    %c0_19 = arith.constant 0 : index
    %22 = vector.load %arg7[%c0_18, %c0_19] : memref<128x10xf32, #tpu.memory_space<vmem>>, vector<128x10xf32>
    %cst_20 = arith.constant dense<0.000000e+00> : vector<2x10xf32>
    %23 = tpu.matmul %21, %22, %cst_20 {dimension_numbers = #tpu.dot_dimension_numbers<[1], [0], [0], [1], [0, 0, 1, 1], [], []>} : vector<2x128xf32>, vector<128x10xf32>, vector<2x10xf32> -> vector<2x10xf32>
    %c0_21 = arith.constant 0 : index
    %c0_22 = arith.constant 0 : index
    %24 = vector.load %arg8[%c0_21, %c0_22] : memref<1x10xf32, #tpu.memory_space<vmem>>, vector<1x10xf32>
    %25 = vector.broadcast %24 : vector<1x10xf32> to vector<2x10xf32>
    %26 = arith.addf %23, %25 : vector<2x10xf32>
    %c0_23 = arith.constant 0 : index
    %c0_24 = arith.constant 0 : index
    %27 = vector.load %arg9[%c0_23, %c0_24] : memref<2x10xf32, #tpu.memory_space<vmem>>, vector<2x10xf32>
    tpu.vector_store %arg9[%c0_23, %c0_24], %26 {strides = array<i32>} : memref<2x10xf32, #tpu.memory_space<vmem>>, vector<2x10xf32>,
    return
  }
}

</mosaic_0001>

<bundles_post_ra>
// kernel: m1_forward.3
= control target key start
LH: loop header
LB: loop body
LE: loop exit
PB: predicated region body
PF: predicated region fallthrough
CT: control target
= control target key end

     0   :  { %v1323_v47 = vmov 1983009808   ;;  %v176_v49 = vlaneseq  ;;  %s1974_s0 = inlined_call_operand.vmem [shape: f32[2,1024], index: 0, kind: input, shape index: {}]   ;;  %s1975_s1 = inlined_call_operand.vmem [shape: f32[1024,128], index: 1, kind: input, shape index: {}]   ;;  %s1976_s2 = inlined_call_operand.vmem [shape: f32[1,128], index: 2, kind: input, shape index: {}]   ;;  %s1977_s3 = inlined_call_operand.vmem [shape: f32[128,128], index: 3, kind: input, shape index: {}]   ;;  %s1978_s4 = inlined_call_operand.vmem [shape: f32[1,128], index: 4, kind: input, shape index: {}]   ;;  %s1979_s5 = inlined_call_operand.vmem [shape: f32[128,128], index: 5, kind: input, shape index: {}]   ;;  %s1980_s6 = inlined_call_operand.vmem [shape: f32[1,128], index: 6, kind: input, shape index: {}]   ;;  %s1981_s7 = inlined_call_operand.vmem [shape: f32[128,10], index: 7, kind: input, shape index: {}]   ;;  %s1982_s8 = inlined_call_operand.vmem [shape: f32[1,10], index: 8, kind: input, shape index: {}]   ;;  %s1983_s9 = inlined_call_operand.hbm [shape: f32[2,10], index: 9, kind: output, shape index: {}]  }
   0x1   :  { %v51_v0 = vld [vmem:[%s1975_s1 + $0x80] sm:$0xff]  ;;  %v52_v1 = vld [vmem:[%s1975_s1 + $0x88] sm:$0xff]  ;;  %v53_v11 = vld [vmem:[%s1975_s1 + $0x90] sm:$0xff]  ;;  %v174_v48 = vunpack.c.l.s4 %v1323_v47 }
   0x2   :  { %v35_v2 = vld [vmem:[%s1975_s1] sm:$0xff]  ;;  %v1092_v3 = vpack.c.bf16 %v52_v1, %v51_v0  ;;  %v36_v4 = vld [vmem:[%s1975_s1 + $0x8] sm:$0xff]  ;;  %v54_v13 = vld [vmem:[%s1975_s1 + $0x98] sm:$0xff]  ;;  %v177_v0 = vshrl.u32 %v176_v49, 7 }
   0x3   :  { %v83_v5 = vld [vmem:[%s1975_s1 + $0x180] sm:$0xff]  ;;  %v84_v6 = vld [vmem:[%s1975_s1 + $0x188] sm:$0xff]  ;;  %v1094_v7 = vpack.c.bf16 %v36_v4, %v35_v2  ;;  %v37_v14 = vld [vmem:[%s1975_s1 + $0x10] sm:$0xff]  ;;  %v1096_v16 = vpack.c.bf16 %v54_v13, %v53_v11  ;;  %v175_v63 = vunpack.c.0.s8 %v174_v48 }
   0x4   :  { %v1124_v8 = vpack.c.bf16 %v84_v6, %v83_v5  ;;  %v67_v9 = vld [vmem:[%s1975_s1 + $0x100] sm:$0xff]  ;;  %v68_v10 = vld [vmem:[%s1975_s1 + $0x108] sm:$0xff]  ;;  %1093 = vmatprep.subr.bf16.mxu0 %v1092_v3  ;;  %v38_v15 = vld [vmem:[%s1975_s1 + $0x18] sm:$0xff] }
   0x5   :  { %v1126_v12 = vpack.c.bf16 %v68_v10, %v67_v9  ;;  %1095 = vmatpush3.bf16.msra.mxu0 %v1094_v7  ;;  %v1098_v17 = vpack.c.bf16 %v38_v15, %v37_v14  ;;  %v85_v18 = vld [vmem:[%s1975_s1 + $0x190] sm:$0xff]  ;;  %v86_v19 = vld [vmem:[%s1975_s1 + $0x198] sm:$0xff]  ;;  %v55_v23 = vld [vmem:[%s1975_s1 + $0xa0] sm:$0xff]  ;;  %v1528_v13 = vsub.s32 %v175_v63, %v177_v0 }
   0x6   :  { %1125 = vmatprep.subr.bf16.mxu1 %v1124_v8  ;;  %v69_v20 = vld [vmem:[%s1975_s1 + $0x110] sm:$0xff]  ;;  %v1128_v21 = vpack.c.bf16 %v86_v19, %v85_v18  ;;  %v70_v22 = vld [vmem:[%s1975_s1 + $0x118] sm:$0xff]  ;;  %v56_v24 = vld [vmem:[%s1975_s1 + $0xa8] sm:$0xff]  ;;  %1097 = vmatprep.subr.bf16.mxu0 %v1096_v16 }
   0x7   :  { %1127 = vmatpush3.bf16.msra.mxu1 %v1126_v12  ;;  %v1130_v25 = vpack.c.bf16 %v70_v22, %v69_v20  ;;  %v1100_v26 = vpack.c.bf16 %v56_v24, %v55_v23  ;;  %v39_v27 = vld [vmem:[%s1975_s1 + $0x20] sm:$0xff]  ;;  %v40_v28 = vld [vmem:[%s1975_s1 + $0x28] sm:$0xff]  ;;  %v57_v35 = vld [vmem:[%s1975_s1 + $0xb0] sm:$0xff] }
   0x8   :  { %v87_v29 = vld [vmem:[%s1975_s1 + $0x1a0] sm:$0xff]  ;;  %1129 = vmatprep.subr.bf16.mxu1 %v1128_v21  ;;  %v88_v30 = vld [vmem:[%s1975_s1 + $0x1a8] sm:$0xff]  ;;  %v1102_v33 = vpack.c.bf16 %v40_v28, %v39_v27  ;;  %v58_v36 = vld [vmem:[%s1975_s1 + $0xb8] sm:$0xff] }
   0x9   :  { %v71_v31 = vld [vmem:[%s1975_s1 + $0x120] sm:$0xff]  ;;  %v72_v32 = vld [vmem:[%s1975_s1 + $0x128] sm:$0xff]  ;;  %1099 = vmatpush3.bf16.msra.mxu0 %v1098_v17  ;;  %v1132_v34 = vpack.c.bf16 %v88_v30, %v87_v29  ;;  %v41_v37 = vld [vmem:[%s1975_s1 + $0x30] sm:$0xff]  ;;  %v1104_v39 = vpack.c.bf16 %v58_v36, %v57_v35 }
   0xa   :  { %1101 = vmatprep.subr.bf16.mxu0 %v1100_v26  ;;  %v1134_v38 = vpack.c.bf16 %v72_v32, %v71_v31  ;;  %v42_v40 = vld [vmem:[%s1975_s1 + $0x38] sm:$0xff]  ;;  %v89_v41 = vld [vmem:[%s1975_s1 + $0x1b0] sm:$0xff]  ;;  %v59_v46 = vld [vmem:[%s1975_s1 + $0xc0] sm:$0xff] }
   0xb   :  { %1131 = vmatpush3.bf16.msra.mxu1 %v1130_v25  ;;  %v90_v42 = vld [vmem:[%s1975_s1 + $0x1b8] sm:$0xff]  ;;  %v73_v44 = vld [vmem:[%s1975_s1 + $0x130] sm:$0xff]  ;;  %v60_v50 = vld [vmem:[%s1975_s1 + $0xc8] sm:$0xff]  ;;  %v1106_v51 = vpack.c.bf16 %v42_v40, %v41_v37 }
   0xc   :  { %1133 = vmatprep.subr.bf16.mxu1 %v1132_v34  ;;  %v1136_v43 = vpack.c.bf16 %v90_v42, %v89_v41  ;;  %v74_v45 = vld [vmem:[%s1975_s1 + $0x138] sm:$0xff]  ;;  %v91_v52 = vld [vmem:[%s1975_s1 + $0x1c0] sm:$0xff]  ;;  %v92_v53 = vld [vmem:[%s1975_s1 + $0x1c8] sm:$0xff]  ;;  %v1108_v55 = vpack.c.bf16 %v60_v50, %v59_v46 }
   0xd   :  { %1103 = vmatpush3.bf16.msra.mxu0 %v1102_v33  ;;  %v1138_v54 = vpack.c.bf16 %v74_v45, %v73_v44  ;;  %v43_v56 = vld [vmem:[%s1975_s1 + $0x40] sm:$0xff]  ;;  %v44_v57 = vld [vmem:[%s1975_s1 + $0x48] sm:$0xff]  ;;  %v1140_v59 = vpack.c.bf16 %v92_v53, %v91_v52  ;;  %v61_v61 = vld [vmem:[%s1975_s1 + $0xd0] sm:$0xff] }
   0xe   :  { %1105 = vmatprep.subr.bf16.mxu0 %v1104_v39  ;;  %v75_v58 = vld [vmem:[%s1975_s1 + $0x140] sm:$0xff]  ;;  %v76_v60 = vld [vmem:[%s1975_s1 + $0x148] sm:$0xff]  ;;  %v62_v62 = vld [vmem:[%s1975_s1 + $0xd8] sm:$0xff]  ;;  %v1110_v3 = vpack.c.bf16 %v44_v57, %v43_v56 }
   0xf   :  { %1135 = vmatpush3.bf16.msra.mxu1 %v1134_v38  ;;  %v93_v1 = vld [vmem:[%s1975_s1 + $0x1d0] sm:$0xff]  ;;  %v94_v2 = vld [vmem:[%s1975_s1 + $0x1d8] sm:$0xff]  ;;  %v1142_v4 = vpack.c.bf16 %v76_v60, %v75_v58  ;;  %v1112_v5 = vpack.c.bf16 %v62_v62, %v61_v61  ;;  %v63_v11 = vld [vmem:[%s1975_s1 + $0xe0] sm:$0xff] }
  0x10   :  { %1137 = vmatprep.subr.bf16.mxu1 %v1136_v43  ;;  %v45_v6 = vld [vmem:[%s1975_s1 + $0x50] sm:$0xff]  ;;  %v46_v7 = vld [vmem:[%s1975_s1 + $0x58] sm:$0xff]  ;;  %v1144_v9 = vpack.c.bf16 %v94_v2, %v93_v1  ;;  %v64_v12 = vld [vmem:[%s1975_s1 + $0xe8] sm:$0xff] }
  0x11   :  { %1107 = vmatpush3.bf16.msra.mxu0 %v1106_v51  ;;  %v77_v8 = vld [vmem:[%s1975_s1 + $0x150] sm:$0xff]  ;;  %v78_v10 = vld [vmem:[%s1975_s1 + $0x158] sm:$0xff]  ;;  %v95_v14 = vld [vmem:[%s1975_s1 + $0x1e0] sm:$0xff]  ;;  %v1114_v16 = vpack.c.bf16 %v46_v7, %v45_v6  ;;  %v1116_v19 = vpack.c.bf16 %v64_v12, %v63_v11 }
  0x12   :  { %1109 = vmatprep.subr.bf16.mxu0 %v1108_v55  ;;  %v96_v15 = vld [vmem:[%s1975_s1 + $0x1e8] sm:$0xff]  ;;  %v47_v17 = vld [vmem:[%s1975_s1 + $0x60] sm:$0xff]  ;;  %v1146_v18 = vpack.c.bf16 %v78_v10, %v77_v8  ;;  %v65_v25 = vld [vmem:[%s1975_s1 + $0xf0] sm:$0xff] }
  0x13   :  { %1139 = vmatpush3.bf16.msra.mxu1 %v1138_v54  ;;  %v48_v20 = vld [vmem:[%s1975_s1 + $0x68] sm:$0xff]  ;;  %v79_v21 = vld [vmem:[%s1975_s1 + $0x160] sm:$0xff]  ;;  %v1148_v23 = vpack.c.bf16 %v96_v15, %v95_v14  ;;  %v66_v26 = vld [vmem:[%s1975_s1 + $0xf8] sm:$0xff] }
  0x14   :  { %1141 = vmatprep.subr.bf16.mxu1 %v1140_v59  ;;  %v33_v22 = vld [vmem:[%s1974_s0] sm:$0xff]  ;;  %v80_v24 = vld [vmem:[%s1975_s1 + $0x168] sm:$0xff]  ;;  %v97_v29 = vld [vmem:[%s1975_s1 + $0x1f0] sm:$0xff]  ;;  %v1118_v31 = vpack.c.bf16 %v48_v20, %v47_v17  ;;  %v1120_v35 = vpack.c.bf16 %v66_v26, %v65_v25 }
  0x15   :  { %1111 = vmatpush3.bf16.msra.mxu0 %v1110_v3  ;;  %v179_v27 = vrot.slane %v33_v22, %v1528_v13  ;;  %v172_v28 = vcombine.high %v33_v22, %v33_v22  ;;  %v98_v30 = vld [vmem:[%s1975_s1 + $0x1f8] sm:$0xff]  ;;  %v1150_v34 = vpack.c.bf16 %v80_v24, %v79_v21  ;;  %v49_v36 = vld [vmem:[%s1975_s1 + $0x70] sm:$0xff]  ;;  %v115_v41 = vld [vmem:[%s1975_s1 + $0x280] sm:$0xff] }
  0x16   :  { %1113 = vmatprep.subr.bf16.mxu0 %v1112_v5  ;;  %v50_v37 = vld [vmem:[%s1975_s1 + $0x78] sm:$0xff]  ;;  %v81_v38 = vld [vmem:[%s1975_s1 + $0x170] sm:$0xff]  ;;  %v1152_v39 = vpack.c.bf16 %v98_v30, %v97_v29  ;;  %v116_v42 = vld [vmem:[%s1975_s1 + $0x288] sm:$0xff] }
  0x17   :  { %1143 = vmatpush3.bf16.msra.mxu1 %v1142_v4  ;;  %v187_v32 = vcombine.high %v179_v27, %v179_v27  ;;  %v186_v33 = vrot.slane %v172_v28, %v1528_v13  ;;  %v82_v40 = vld [vmem:[%s1975_s1 + $0x178] sm:$0xff]  ;;  %v147_v44 = vld [vmem:[%s1975_s1 + $0x380] sm:$0xff]  ;;  %v148_v45 = vld [vmem:[%s1975_s1 + $0x388] sm:$0xff]  ;;  %v1122_v46 = vpack.c.bf16 %v50_v37, %v49_v36  ;;  %v1156_v48 = vpack.c.bf16 %v116_v42, %v115_v41 }
  0x18   :  { %1145 = vmatprep.subr.bf16.mxu1 %v1144_v9  ;;  %v1154_v47 = vpack.c.bf16 %v82_v40, %v81_v38  ;;  %v99_v49 = vld [vmem:[%s1975_s1 + $0x200] sm:$0xff]  ;;  %v100_v50 = vld [vmem:[%s1975_s1 + $0x208] sm:$0xff]  ;;  %v1188_v52 = vpack.c.bf16 %v148_v45, %v147_v44  ;;  %v117_v54 = vld [vmem:[%s1975_s1 + $0x290] sm:$0xff] }
  0x19   :  { %1115 = vmatpush3.bf16.msra.mxu0 %v1114_v16  ;;  %278 = vmatprep.mubr.f32.mxu0 %v187_v32  ;;  %v188_v43 = vcombine.high %v186_v33, %v186_v33  ;;  %v131_v51 = vld [vmem:[%s1975_s1 + $0x300] sm:$0xff]  ;;  %v132_v53 = vld [vmem:[%s1975_s1 + $0x308] sm:$0xff]  ;;  %v118_v55 = vld [vmem:[%s1975_s1 + $0x298] sm:$0xff]  ;;  %v1158_v58 = vpack.c.bf16 %v100_v50, %v99_v49 }
  0x1a   :  { %1117 = vmatprep.subr.bf16.mxu0 %v1116_v19  ;;  %v149_v56 = vld [vmem:[%s1975_s1 + $0x390] sm:$0xff]  ;;  %v150_v57 = vld [vmem:[%s1975_s1 + $0x398] sm:$0xff]  ;;  %v1190_v59 = vpack.c.bf16 %v132_v53, %v131_v51  ;;  %v1160_v60 = vpack.c.bf16 %v118_v55, %v117_v54  ;;  %v119_v2 = vld [vmem:[%s1975_s1 + $0x2a0] sm:$0xff] }
  0x1b   :  { %1147 = vmatpush3.bf16.msra.mxu1 %v1146_v18  ;;  %348 = vmatprep.mubr.f32.mxu1 %v188_v43  ;;  %v101_v61 = vld [vmem:[%s1975_s1 + $0x210] sm:$0xff]  ;;  %v102_v62 = vld [vmem:[%s1975_s1 + $0x218] sm:$0xff]  ;;  %v1192_v0 = vpack.c.bf16 %v150_v57, %v149_v56  ;;  %v120_v3 = vld [vmem:[%s1975_s1 + $0x2a8] sm:$0xff] }
  0x1c   :  { %1149 = vmatprep.subr.bf16.mxu1 %v1148_v23  ;;  %v133_v63 = vld [vmem:[%s1975_s1 + $0x310] sm:$0xff]  ;;  %v134_v1 = vld [vmem:[%s1975_s1 + $0x318] sm:$0xff]  ;;  %v151_v4 = vld [vmem:[%s1975_s1 + $0x3a0] sm:$0xff]  ;;  %v1162_v6 = vpack.c.bf16 %v102_v62, %v101_v61  ;;  %v1164_v8 = vpack.c.bf16 %v120_v3, %v119_v2 }
  0x1d   :  { %1119 = vmatpush3.bf16.msra.mxu0 %v1118_v31  ;;  %v152_v5 = vld [vmem:[%s1975_s1 + $0x3a8] sm:$0xff]  ;;  %v1194_v7 = vpack.c.bf16 %v134_v1, %v133_v63  ;;  %v103_v9 = vld [vmem:[%s1975_s1 + $0x220] sm:$0xff]  ;;  %v121_v15 = vld [vmem:[%s1975_s1 + $0x2b0] sm:$0xff] }
  0x1e   :  { %1121 = vmatprep.subr.bf16.mxu0 %v1120_v35  ;;  %v104_v10 = vld [vmem:[%s1975_s1 + $0x228] sm:$0xff]  ;;  %v135_v11 = vld [vmem:[%s1975_s1 + $0x320] sm:$0xff]  ;;  %v1196_v12 = vpack.c.bf16 %v152_v5, %v151_v4  ;;  %v122_v16 = vld [vmem:[%s1975_s1 + $0x2b8] sm:$0xff] }
  0x1f   :  { %1151 = vmatpush3.bf16.msra.mxu1 %v1150_v34  ;;  %v136_v14 = vld [vmem:[%s1975_s1 + $0x328] sm:$0xff]  ;;  %v153_v17 = vld [vmem:[%s1975_s1 + $0x3b0] sm:$0xff]  ;;  %v154_v18 = vld [vmem:[%s1975_s1 + $0x3b8] sm:$0xff]  ;;  %v1166_v19 = vpack.c.bf16 %v104_v10, %v103_v9  ;;  %v1168_v22 = vpack.c.bf16 %v122_v16, %v121_v15 }
  0x20   :  { %1153 = vmatprep.subr.bf16.mxu1 %v1152_v39  ;;  %v105_v20 = vld [vmem:[%s1975_s1 + $0x230] sm:$0xff]  ;;  %v1198_v21 = vpack.c.bf16 %v136_v14, %v135_v11  ;;  %v106_v23 = vld [vmem:[%s1975_s1 + $0x238] sm:$0xff]  ;;  %v1200_v26 = vpack.c.bf16 %v154_v18, %v153_v17  ;;  %v124_v28 = vld [vmem:[%s1975_s1 + $0x2c8] sm:$0xff] }
  0x21   :  { %1123 = vmatpush3.bf16.msra.mxu0 %v1122_v46  ;;  %v137_v24 = vld [vmem:[%s1975_s1 + $0x330] sm:$0xff]  ;;  %v138_v25 = vld [vmem:[%s1975_s1 + $0x338] sm:$0xff]  ;;  %v155_v29 = vld [vmem:[%s1975_s1 + $0x3c0] sm:$0xff] }
  0x22   :  { %1157 = vmatprep.subr.bf16.mxu0 %v1156_v48  ;;  %v156_v30 = vld [vmem:[%s1975_s1 + $0x3c8] sm:$0xff] }
  0x23   :  { %1155 = vmatpush3.bf16.msra.mxu1 %v1154_v47  ;;  %v34_v31 = vld [vmem:[%s1974_s0 + $0x8] sm:$0xff] }
  0x24   :  { %1189 = vmatprep.subr.bf16.mxu1 %v1188_v52  ;;  %279 = vmatmul.mubr.f32.vlgmr.msra.gmra.mrb[0].mxu0 %v179_v27  ;;  %v123_v27 = vld [vmem:[%s1975_s1 + $0x2c0] sm:$0xff] }
  0x25   :  { %1159 = vmatpush3.bf16.msra.mxu0 %v1158_v58 }
  0x26   :  { %349 = vmatmul.mubr.f32.vlgmr.msra.gmra.mrb[0].mxu1 %v186_v33  ;;  %1161 = vmatprep.subr.bf16.mxu0 %v1160_v60 }
  0x27   :  { %1191 = vmatpush3.bf16.msra.mxu1 %v1190_v59 }
  0x28   :  { %1193 = vmatprep.subr.bf16.mxu1 %v1192_v0 }
  0x29   :  { %1163 = vmatpush3.bf16.msra.mxu0 %v1162_v6 }
  0x2a   :  { %1165 = vmatprep.subr.bf16.mxu0 %v1164_v8 }
  0x2b   :  { %1195 = vmatpush3.bf16.msra.mxu1 %v1194_v7 }
  0x2c   :  { %1197 = vmatprep.subr.bf16.mxu1 %v1196_v12 }
  0x2d   :  { %14 = vsyncpa [#allocation3], 0  ;;  %1167 = vmatpush3.bf16.msra.mxu0 %v1166_v19  ;;  %v1170_v32 = vpack.c.bf16 %v106_v23, %v105_v20  ;;  %v1689_v33 = vrot.slane %v34_v31, %v1528_v13  ;;  %v189_v34 = vcombine.high %v34_v31, %v34_v31  ;;  %v1202_v35 = vpack.c.bf16 %v138_v25, %v137_v24  ;;  %v107_v37 = vld [vmem:[%s1975_s1 + $0x240] sm:$0xff]  ;;  %v108_v38 = vld [vmem:[%s1975_s1 + $0x248] sm:$0xff] }
  0x2e   :  { %1169 = vmatprep.subr.bf16.mxu0 %v1168_v22  ;;  %v1172_v36 = vpack.c.bf16 %v124_v28, %v123_v27  ;;  %v139_v39 = vld [vmem:[%s1975_s1 + $0x340] sm:$0xff]  ;;  %v1204_v40 = vpack.c.bf16 %v156_v30, %v155_v29  ;;  %v140_v41 = vld [vmem:[%s1975_s1 + $0x348] sm:$0xff]  ;;  %v125_v42 = vld [vmem:[%s1975_s1 + $0x2d0] sm:$0xff]  ;;  %v1174_v48 = vpack.c.bf16 %v108_v38, %v107_v37  ;;  %v1324_v22 = vmov 0.0|0.0  }
  0x2f   :  { %1199 = vmatpush3.bf16.msra.mxu1 %v1198_v21  ;;  %v126_v43 = vld [vmem:[%s1975_s1 + $0x2d8] sm:$0xff]  ;;  %v204_v44 = vcombine.high %v1689_v33, %v1689_v33  ;;  %v203_v45 = vrot.slane %v189_v34, %v1528_v13  ;;  %v157_v46 = vld [vmem:[%s1975_s1 + $0x3d0] sm:$0xff]  ;;  %v1206_v50 = vpack.c.bf16 %v140_v41, %v139_v39  ;;  %v127_v56 = vld [vmem:[%s1975_s1 + $0x2e0] sm:$0xff]  ;;  %vm1325_vm0 = vmmov 0  }
  0x30   :  { %1201 = vmatprep.subr.bf16.mxu1 %v1200_v26  ;;  %v158_v47 = vld [vmem:[%s1975_s1 + $0x3d8] sm:$0xff]  ;;  %v1176_v51 = vpack.c.bf16 %v126_v43, %v125_v42  ;;  %v109_v13 = vld [vmem:[%s1975_s1 + $0x250] sm:$0xff]  ;;  %v128_v57 = vld [vmem:[%s1975_s1 + $0x2e8] sm:$0xff]  ;;  %vm776_vm1 = vcmask 74752  }
  0x31   :  { %1171 = vmatpush3.bf16.msra.mxu0 %v1170_v32  ;;  %418 = vmatprep.mubr.f32.mxu0 %v204_v44  ;;  %v205_v49 = vcombine.high %v203_v45, %v203_v45  ;;  %v110_v52 = vld [vmem:[%s1975_s1 + $0x258] sm:$0xff]  ;;  %v141_v53 = vld [vmem:[%s1975_s1 + $0x350] sm:$0xff]  ;;  %v1208_v54 = vpack.c.bf16 %v158_v47, %v157_v46  ;;  %v159_v58 = vld [vmem:[%s1975_s1 + $0x3e0] sm:$0xff]  ;;  %v1180_v62 = vpack.c.bf16 %v128_v57, %v127_v56  ;;  %v1326_v44 = vmov 0.0  }
  0x32   :  { %1173 = vmatprep.subr.bf16.mxu0 %v1172_v36  ;;  %v142_v55 = vld [vmem:[%s1975_s1 + $0x358] sm:$0xff]  ;;  %v160_v59 = vld [vmem:[%s1975_s1 + $0x3e8] sm:$0xff]  ;;  %v1178_v60 = vpack.c.bf16 %v110_v52, %v109_v13  ;;  %v111_v63 = vld [vmem:[%s1975_s1 + $0x260] sm:$0xff] }
  0x33   :  { %1203 = vmatpush3.bf16.msra.mxu1 %v1202_v35  ;;  %488 = vmatprep.mubr.f32.mxu1 %v205_v49  ;;  %v1210_v61 = vpack.c.bf16 %v142_v55, %v141_v53  ;;  %v112_v0 = vld [vmem:[%s1975_s1 + $0x268] sm:$0xff]  ;;  %v143_v1 = vld [vmem:[%s1975_s1 + $0x360] sm:$0xff]  ;;  %v1212_v2 = vpack.c.bf16 %v160_v59, %v159_v58  ;;  %v129_v4 = vld [vmem:[%s1975_s1 + $0x2f0] sm:$0xff] }
  0x34   :  { %1205 = vmatprep.subr.bf16.mxu1 %v1204_v40  ;;  %v144_v3 = vld [vmem:[%s1975_s1 + $0x368] sm:$0xff]  ;;  %v130_v5 = vld [vmem:[%s1975_s1 + $0x2f8] sm:$0xff]  ;;  %v161_v6 = vld [vmem:[%s1975_s1 + $0x3f0] sm:$0xff]  ;;  %v1182_v8 = vpack.c.bf16 %v112_v0, %v111_v63 }
  0x35   :  { %1175 = vmatpush3.bf16.msra.mxu0 %v1174_v48  ;;  %v162_v7 = vld [vmem:[%s1975_s1 + $0x3f8] sm:$0xff]  ;;  %v1214_v9 = vpack.c.bf16 %v144_v3, %v143_v1  ;;  %v1184_v10 = vpack.c.bf16 %v130_v5, %v129_v4  ;;  %v113_v11 = vld [vmem:[%s1975_s1 + $0x270] sm:$0xff]  ;;  %v495_v19 = vld [vmem:[%s1977_s3] sm:$0xff] }
  0x36   :  { %1177 = vmatprep.subr.bf16.mxu0 %v1176_v51  ;;  %v114_v12 = vld [vmem:[%s1975_s1 + $0x278] sm:$0xff]  ;;  %v1216_v14 = vpack.c.bf16 %v162_v7, %v161_v6  ;;  %v145_v15 = vld [vmem:[%s1975_s1 + $0x370] sm:$0xff]  ;;  %v496_v20 = vld [vmem:[%s1977_s3 + $0x8] sm:$0xff] }
  0x37   :  { %1207 = vmatpush3.bf16.msra.mxu1 %v1206_v50  ;;  %v146_v16 = vld [vmem:[%s1975_s1 + $0x378] sm:$0xff]  ;;  %v1186_v17 = vpack.c.bf16 %v114_v12, %v113_v11  ;;  %v497_v21 = vld [vmem:[%s1977_s3 + $0x10] sm:$0xff]  ;;  %v1221_v23 = vpack.c.bf16 %v496_v20, %v495_v19  ;;  %v499_v26 = vld [vmem:[%s1977_s3 + $0x20] sm:$0xff]  ;;  %s1327_s1 = smov [#allocation2]  }
  0x38   :  { %1209 = vmatprep.subr.bf16.mxu1 %v1208_v54  ;;  %v1218_v18 = vpack.c.bf16 %v146_v16, %v145_v15  ;;  %v498_v24 = vld [vmem:[%s1977_s3 + $0x18] sm:$0xff]  ;;  %v500_v27 = vld [vmem:[%s1977_s3 + $0x28] sm:$0xff]  ;;  %v501_v29 = vld [vmem:[%s1977_s3 + $0x30] sm:$0xff]  ;;  %s784_s18 = sshll.u32 %s1327_s1, 4  ;;  %s785_s18 = int_to_ptr.vmem [resolvable:$true] %s784_s18 }
  0x39   :  { %1179 = vmatpush3.bf16.msra.mxu0 %v1178_v60  ;;  %v1224_v25 = vpack.c.bf16 %v498_v24, %v497_v21  ;;  %v1227_v28 = vpack.c.bf16 %v500_v27, %v499_v26  ;;  %v502_v30 = vld [vmem:[%s1977_s3 + $0x38] sm:$0xff]  ;;  %v503_v32 = vld [vmem:[%s1977_s3 + $0x40] sm:$0xff]  ;;  %v505_v35 = vld [vmem:[%s1977_s3 + $0x50] sm:$0xff]  ;;  %p1304_p1 = scmp.lt.s32.totalorder %s785_s18, %s785_s18 }
  0x3a   :  { %1181 = vmatprep.subr.bf16.mxu0 %v1180_v62  ;;  %v1230_v31 = vpack.c.bf16 %v502_v30, %v501_v29  ;;  %v506_v36 = vld [vmem:[%s1977_s3 + $0x58] sm:$0xff]  ;;  %v507_v38 = vld [vmem:[%s1977_s3 + $0x60] sm:$0xff]  ;;  %v508_v39 = vld [vmem:[%s1977_s3 + $0x68] sm:$0xff] }
  0x3b   :  { %1211 = vmatpush3.bf16.msra.mxu1 %v1210_v61  ;;  %v1236_v37 = vpack.c.bf16 %v506_v36, %v505_v35  ;;  %v1239_v40 = vpack.c.bf16 %v508_v39, %v507_v38  ;;  %v509_v41 = vld [vmem:[%s1977_s3 + $0x70] sm:$0xff]  ;;  %v510_v42 = vld [vmem:[%s1977_s3 + $0x78] sm:$0xff]  ;;  %v590_v46 = vld [vmem:[%s1979_s5 + $0x8] sm:$0xff] }
  0x3c   :  { %1213 = vmatprep.subr.bf16.mxu1 %v1212_v2  ;;  %v1242_v43 = vpack.c.bf16 %v510_v42, %v509_v41  ;;  %v591_v47 = vld [vmem:[%s1979_s5 + $0x10] sm:$0xff]  ;;  %v592_v49 = vld [vmem:[%s1979_s5 + $0x18] sm:$0xff]  ;;  %v593_v51 = vld [vmem:[%s1979_s5 + $0x20] sm:$0xff] }
  0x3d   :  { %1183 = vmatpush3.bf16.msra.mxu0 %v1182_v8  ;;  %v1248_v50 = vpack.c.bf16 %v592_v49, %v591_v47  ;;  %v594_v13 = vld [vmem:[%s1979_s5 + $0x28] sm:$0xff]  ;;  %v595_v53 = vld [vmem:[%s1979_s5 + $0x30] sm:$0xff]  ;;  %v596_v54 = vld [vmem:[%s1979_s5 + $0x38] sm:$0xff] }
  0x3e   :  { %1185 = vmatprep.subr.bf16.mxu0 %v1184_v10  ;;  %v1251_v52 = vpack.c.bf16 %v594_v13, %v593_v51  ;;  %v1254_v55 = vpack.c.bf16 %v596_v54, %v595_v53  ;;  %v597_v56 = vld [vmem:[%s1979_s5 + $0x40] sm:$0xff]  ;;  %v598_v57 = vld [vmem:[%s1979_s5 + $0x48] sm:$0xff]  ;;  %v599_v59 = vld [vmem:[%s1979_s5 + $0x50] sm:$0xff] }
  0x3f   :  { %1215 = vmatpush3.bf16.msra.mxu1 %v1214_v9  ;;  %v1257_v58 = vpack.c.bf16 %v598_v57, %v597_v56  ;;  %v600_v60 = vld [vmem:[%s1979_s5 + $0x58] sm:$0xff]  ;;  %v601_v62 = vld [vmem:[%s1979_s5 + $0x60] sm:$0xff]  ;;  %v602_v63 = vld [vmem:[%s1979_s5 + $0x68] sm:$0xff] }
  0x40   :  { %1217 = vmatprep.subr.bf16.mxu1 %v1216_v14  ;;  %v1260_v61 = vpack.c.bf16 %v600_v60, %v599_v59  ;;  %v1263_v0 = vpack.c.bf16 %v602_v63, %v601_v62  ;;  %v792_v2 = vld [vmem:[%s1976_s2] ss:$0 sm:$0xff]  ;;  %v603_v20 = vld [vmem:[%s1979_s5 + $0x70] sm:$0xff]  ;;  %v604_v21 = vld [vmem:[%s1979_s5 + $0x78] sm:$0xff] }
  0x41   :  { %1187 = vmatpush3.bf16.msra.mxu0 %v1186_v17  ;;  %v683_v24 = vld [vmem:[%s1981_s7] sm:$0xff]  ;;  %v685_v26 = vld [vmem:[%s1981_s7 + $0x10] sm:$0xff]  ;;  %v698_v51 = vld [vmem:[%s1981_s7 + $0x78] sm:$0xff] }
  0x42   :  { %1220 = vmatprep.subr.bf16.mxu0 %v1324_v22  ;;  %v687_v30 = vld [vmem:[%s1981_s7 + $0x20] sm:$0xff]  ;;  %v693_v39 = vld [vmem:[%s1981_s7 + $0x50] sm:$0xff] }
  0x43   :  { %1219 = vmatpush3.bf16.msra.mxu1 %v1218_v18  ;;  %v691_v36 = vld [vmem:[%s1981_s7 + $0x40] sm:$0xff] }
  0x44   :  { %419 = vmatmul.mubr.f32.vlgmr.msra.gmra.mrb[2].mxu0 %v1689_v33  ;;  %1244 = vmatprep.subr.bf16.mxu1 %v1324_v22  ;;  %v504_v33 = vld [vmem:[%s1977_s3 + $0x48] sm:$0xff]  ;;  %v695_v42 = vld [vmem:[%s1981_s7 + $0x60] sm:$0xff] }
  0x45   :  { %1222 = vmatpush3.bf16.msra.mxu0 %v1221_v23  ;;  %v1233_v34 = vpack.c.bf16 %v504_v33, %v503_v32  ;;  %1019 = vmatprep.mubr.msk.f32.mxu0 %vm1325_vm0, %v1326_v44  ;;  %v1266_v23 = vpack.c.bf16 %v604_v21, %v603_v20  ;;  %v689_v33 = vld [vmem:[%s1981_s7 + $0x30] sm:$0xff]  ;;  %v795_v56 = vld [vmem:[%s1982_s8] ss:$0 sm:$0xff] }
  0x46   :  { %489 = vmatmul.mubr.f32.vlgmr.msra.gmra.mrb[2].mxu1 %v203_v45  ;;  %1223 = vmatprep.subr.bf16.mxu0 %v1324_v22  ;;  %v589_v45 = vld [vmem:[%s1979_s5] sm:$0xff] }
  0x47   :  { %1054 = vmatprep.mubr.msk.f32.mxu1 %vm1325_vm0, %v1326_v44  ;;  %v1245_v48 = vpack.c.bf16 %v590_v46, %v589_v45  ;;  %v793_v45 = vld [vmem:[%s1978_s4] ss:$0 sm:$0xff] }
  0x49   :  { %1225 = vmatpush3.bf16.msra.mxu0 %v1224_v25  ;;  %1246 = vmatpush3.bf16.msra.mxu1 %v1245_v48  ;;  %v684_v25 = vld [vmem:[%s1981_s7 + $0x8] sm:$0xff] }
  0x4a   :  { %1226 = vmatprep.subr.bf16.mxu0 %v1324_v22  ;;  %1247 = vmatprep.subr.bf16.mxu1 %v1324_v22  ;;  %v1269_v27 = vpack.c.bf16 %v684_v25, %v683_v24 }
  0x4d   :  { %1228 = vmatpush3.bf16.msra.mxu0 %v1227_v28  ;;  %1249 = vmatpush3.bf16.msra.mxu1 %v1248_v50  ;;  %v686_v28 = vld [vmem:[%s1981_s7 + $0x18] sm:$0xff]  ;;  %v697_v50 = vld [vmem:[%s1981_s7 + $0x70] sm:$0xff] }
  0x4e   :  { %1229 = vmatprep.subr.bf16.mxu0 %v1324_v22  ;;  %1250 = vmatprep.subr.bf16.mxu1 %v1324_v22  ;;  %v1272_v29 = vpack.c.bf16 %v686_v28, %v685_v26  ;;  %v1290_v13 = vpack.c.bf16 %v698_v51, %v697_v50 }
  0x51   :  { %1231 = vmatpush3.bf16.msra.mxu0 %v1230_v31  ;;  %1252 = vmatpush3.bf16.msra.mxu1 %v1251_v52  ;;  %v688_v31 = vld [vmem:[%s1981_s7 + $0x28] sm:$0xff] }
  0x52   :  { %1232 = vmatprep.subr.bf16.mxu0 %v1324_v22  ;;  %1253 = vmatprep.subr.bf16.mxu1 %v1324_v22  ;;  %v1275_v32 = vpack.c.bf16 %v688_v31, %v687_v30 }
  0x55   :  { %1234 = vmatpush3.bf16.msra.mxu0 %v1233_v34  ;;  %1255 = vmatpush3.bf16.msra.mxu1 %v1254_v55  ;;  %v690_v34 = vld [vmem:[%s1981_s7 + $0x38] sm:$0xff] }
  0x56   :  { %1235 = vmatprep.subr.bf16.mxu0 %v1324_v22  ;;  %1256 = vmatprep.subr.bf16.mxu1 %v1324_v22  ;;  %v1278_v35 = vpack.c.bf16 %v690_v34, %v689_v33 }
  0x59   :  { %1237 = vmatpush3.bf16.msra.mxu0 %v1236_v37  ;;  %1258 = vmatpush3.bf16.msra.mxu1 %v1257_v58  ;;  %v692_v37 = vld [vmem:[%s1981_s7 + $0x48] sm:$0xff] }
  0x5a   :  { %1238 = vmatprep.subr.bf16.mxu0 %v1324_v22  ;;  %1259 = vmatprep.subr.bf16.mxu1 %v1324_v22  ;;  %v1281_v38 = vpack.c.bf16 %v692_v37, %v691_v36 }
  0x5d   :  { %1240 = vmatpush3.bf16.msra.mxu0 %v1239_v40  ;;  %1261 = vmatpush3.bf16.msra.mxu1 %v1260_v61  ;;  %v694_v40 = vld [vmem:[%s1981_s7 + $0x58] sm:$0xff] }
  0x5e   :  { %1241 = vmatprep.subr.bf16.mxu0 %v1324_v22  ;;  %1262 = vmatprep.subr.bf16.mxu1 %v1324_v22  ;;  %v1284_v41 = vpack.c.bf16 %v694_v40, %v693_v39 }
  0x61   :  { %1243 = vmatpush3.bf16.msra.mxu0 %v1242_v43  ;;  %1264 = vmatpush3.bf16.msra.mxu1 %v1263_v0  ;;  %v696_v43 = vld [vmem:[%s1981_s7 + $0x68] sm:$0xff]  ;;  %s1299_s7 = scalar_lea.vmem %s785_s18, 32 }
  0x62   :  { %1268 = vmatprep.subr.bf16.mxu0 %v1324_v22  ;;  %1265 = vmatprep.subr.bf16.mxu1 %v1324_v22  ;;  %p1300_p0 = scmp.ne.s32.totalorder %s785_s18, %s1299_s7  ;;  %p1305_p2 = scmp.lt.s32.totalorder %s1299_s7, %s1299_s7 }
  0x64   :  { %p1306_p3 = por %p1305_p2, %p1304_p1 }
  0x65   :  { %1267 = vmatpush3.bf16.msra.mxu1 %v1266_v23 }
  0x66   :  { %p1307_p4 = pnand %p1306_p3, %p1300_p0 }
  0xf7   :  { %v828_v1 = vpop.f32.mrb[0].mxu0 }
  0xf8   :  { %v829_v3 = vpop.f32.mrb[1].mxu0 }
  0xf9   :  { %v863_v4 = vpop.f32.mrb[0].mxu1  ;;  %v830_v5 = vadd.f32 %v829_v3, %v828_v1 }
  0xfa   :  { %v864_v6 = vpop.f32.mrb[1].mxu1 }
  0xfb   :  { %v865_v7 = vadd.f32 %v864_v6, %v863_v4  ;;  %v281_v8 = vadd.f32 %v830_v5, %v792_v2 }
  0xfd   :  { %v351_v9 = vadd.f32 %v865_v7, %v281_v8 }
 0x117   :  { %v898_v10 = vpop.f32.mrb[2].mxu0 }
 0x118   :  { %v899_v11 = vpop.f32.mrb[3].mxu0 }
 0x119   :  { %v933_v12 = vpop.f32.mrb[2].mxu1  ;;  %v900_v14 = vadd.f32 %v899_v11, %v898_v10 }
 0x11a   :  { %v934_v15 = vpop.f32.mrb[3].mxu1 }
 0x11b   :  { %v935_v16 = vadd.f32 %v934_v15, %v933_v12  ;;  %v421_v17 = vadd.f32 %v900_v14, %v351_v9 }
 0x11d   :  { %v491_v18 = vadd.f32 %v935_v16, %v421_v17 }
 0x11f   :  { %v494_v19 = vmax.f32 %v491_v18, 0.0 }
 0x121   :  { %1020 = vmatmul.mubr.f32.vlgmr.msra.gmra.mrb[4].mxu0 %v494_v19 }
 0x122   :  { %1089 = vmatprep.mubr.msk.f32.mxu0 %vm1325_vm0, %v1326_v44  ;;  %1270 = vmatpush3.bf16.msra.mxu0 %v1269_v27  ;;  %v1287_v44 = vpack.c.bf16 %v696_v43, %v695_v42 }
 0x123   :  { %1271 = vmatprep.subr.bf16.mxu0 %v1324_v22 }
 0x126   :  { %1273 = vmatpush3.bf16.msra.mxu0 %v1272_v29 }
 0x127   :  { %1274 = vmatprep.subr.bf16.mxu0 %v1324_v22 }
 0x12a   :  { %1276 = vmatpush3.bf16.msra.mxu0 %v1275_v32 }
 0x12b   :  { %1277 = vmatprep.subr.bf16.mxu0 %v1324_v22 }
 0x12e   :  { %1279 = vmatpush3.bf16.msra.mxu0 %v1278_v35 }
 0x12f   :  { %1280 = vmatprep.subr.bf16.mxu0 %v1324_v22 }
 0x132   :  { %1282 = vmatpush3.bf16.msra.mxu0 %v1281_v38 }
 0x133   :  { %1283 = vmatprep.subr.bf16.mxu0 %v1324_v22 }
 0x136   :  { %1285 = vmatpush3.bf16.msra.mxu0 %v1284_v41 }
 0x137   :  { %1286 = vmatprep.subr.bf16.mxu0 %v1324_v22 }
 0x13a   :  { %1288 = vmatpush3.bf16.msra.mxu0 %v1287_v44 }
 0x13b   :  { %1289 = vmatprep.subr.bf16.mxu0 %v1324_v22  ;;  %v794_v22 = vld [vmem:[%s1980_s6] ss:$0 sm:$0xff] }
 0x13e   :  { %1291 = vmatpush3.bf16.msra.mxu0 %v1290_v13 }
 0x1f4   :  { %v584_v46 = vpop.f32.mrb[4].mxu0 }
 0x1f5   :  { %v585_v47 = vadd.f32 %v793_v45, %v584_v46  ;;  %v1021_v48 = vpop.f32.mrb[5].mxu0 }
 0x1f7   :  { %v588_v49 = vmax.f32 %v585_v47, 0.0 }
 0x1f9   :  { %1055 = vmatmul.mubr.f32.vlgmr.msra.gmra.mrb[4].mxu1 %v588_v49 }
 0x2cc   :  { %v678_v52 = vpop.f32.mrb[4].mxu1 }
 0x2cd   :  { %v679_v53 = vadd.f32 %v794_v22, %v678_v52  ;;  %v1056_v54 = vpop.f32.mrb[5].mxu1 }
 0x2cf   :  { %v682_v55 = vmax.f32 %v679_v53, 0.0 }
 0x2d1   :  { %1090 = vmatmul.mubr.f32.vlgmr.msra.gmra.mrb[6].mxu0 %v682_v55 }
 0x3a4   :  { %v772_v57 = vpop.f32.mrb[6].mxu0 }
 0x3a5   :  { %v773_v58 = vadd.f32 %v795_v56, %v772_v57  ;;  %v1091_v59 = vpop.f32.mrb[7].mxu0 }
 0x3a7   :  { %777 = vst.msk [vmem:[#allocation2] sm:$0x3] %vm776_vm1, %v773_v58 }
 0x3a8   :  { %1310 = shalt.err (!%p1307_p4)
}
 0x3a9   :  { %s1311_s20 = scalar_lea.hbm %s1983_s9, 32 }
 0x3aa   :  { %p1312_p5 = scmp.ne.s32.totalorder %s1983_s9, %s1311_s20  ;;  %p1315_p6 = scmp.lt.u32.totalorder %s1311_s20, %s1983_s9 }
 0x3ac   :  { %p1317_p7 = pnand %p1315_p6, %p1312_p5 }
 0x3ae   :  { %1320 = shalt.err (!%p1317_p7)
}
 0x3af   :  { %787 = dma.vmem_to_hbm [thread:$0]  %s785_s18, 32, %s1983_s9, [#allocation3]  }
 0x3b0   :  { %1321 = dma.done.wait [#allocation3], 32  }
 0x3b1   :  { %1322 = vsyncadd [#allocation3], 4294967264 }
 0x3b2   :  { %791 = vsyncpa [#allocation3], 1 }

// kernel: m1_forward.2
= control target key start
LH: loop header
LB: loop body
LE: loop exit
PB: predicated region body
PF: predicated region fallthrough
CT: control target
= control target key end

     0   :  { %s7868_s17 = smov 0   ;;  %s11278_s0 = inlined_call_operand.vmem [shape: f32[2,16,16,4], index: 0, kind: input, shape index: {}]   ;;  %s11279_s1 = inlined_call_operand.vmem [shape: f32[36,32], index: 1, kind: input, shape index: {}]   ;;  %s11280_s2 = inlined_call_operand.vmem [shape: f32[1,32], index: 2, kind: input, shape index: {}]   ;;  %s11281_s3 = inlined_call_operand.vmem [shape: f32[288,32], index: 3, kind: input, shape index: {}]   ;;  %s11282_s4 = inlined_call_operand.vmem [shape: f32[1,32], index: 4, kind: input, shape index: {}]   ;;  %s11283_s5 = inlined_call_operand.vmem [shape: f32[288,64], index: 5, kind: input, shape index: {}]   ;;  %s11284_s6 = inlined_call_operand.vmem [shape: f32[1,64], index: 6, kind: input, shape index: {}]   ;;  %s11285_s7 = inlined_call_operand.vmem [shape: f32[576,64], index: 7, kind: input, shape index: {}]   ;;  %s11286_s8 = inlined_call_operand.vmem [shape: f32[1,64], index: 8, kind: input, shape index: {}]   ;;  %s11287_s9 = inlined_call_operand.vmem [shape: f32[256,256], index: 9, kind: input, shape index: {}]   ;;  %s11288_s10 = inlined_call_operand.vmem [shape: f32[64,64], index: 10, kind: input, shape index: {}]   ;;  %s11289_s11 = inlined_call_operand.vmem [shape: f32[2,16,64], index: 11, kind: output, shape index: {}]  }
   0x1 LB: > { %s6243_s18 = sadd.s32 4294967295, %s7794_s17   ;;  %p6247_p0 = scmp.ge.s32.totalorder %s7794_s17, 1  ;;  %s7794_s17 = sphi %s7868_s17, %s21_s17  }
   0x2   : > { %p337_p1 = scmp.lt.s32.totalorder %s7794_s17, 3 }
   0x4   : > { %p338_p2 = pnand %p6247_p0, %p337_p1 }
   0x5   : > { %vm419_vm0 = vcmask (!%p338_p2), 31744   ;;  %vm422_vm1 = vcmask (!%p338_p2), 25600   ;;  %v7796_v0 = vmov (!%p338_p2), 0.0   ;;  %p377_p3 = scmp.lt.s32.totalorder (!%p338_p2), %s6243_s18, 1  ;;  %s7797_s23 = smov (!%p338_p2), 8   ;;  %v2084_v24 = vld [vmem:[%s11279_s1] sm:$0xff] (!%p338_p2) }
   0x6   : > { %341 = sbr.rel (%p338_p2) target bundleno = 2581 (0xa15), region = 64  ;;  %420 = vst.msk [vmem:[#allocation2] sm:$0xff] (!%p338_p2), %vm419_vm0, %v7796_v0  ;;  %421 = vst.msk [vmem:[#allocation2 + $0x8] sm:$0xff] (!%p338_p2), %vm419_vm0, %v7796_v0  ;;  %s7798_s24 = smov (!%p338_p2), 4   ;;  %v2085_v25 = vld [vmem:[%s11279_s1 + $0x8] sm:$0xff] (!%p338_p2)  ;;  %vm2051_vm2 = vcmask (!%p338_p2), 261120  }
   0x7   : > { %424 = vst.msk [vmem:[#allocation2 + $0x18] sm:$0xff] (!%p338_p2), %vm419_vm0, %v7796_v0  ;;  %425 = vst.msk [vmem:[#allocation2 + $0x20] sm:$0xff] (!%p338_p2), %vm419_vm0, %v7796_v0  ;;  %s7799_s25 = smov (!%p338_p2), 12   ;;  %s7800_s26 = smov (!%p338_p2), 16   ;;  %v6824_v26 = vpack.c.bf16 (!%p338_p2), %v2085_v25, %v2084_v24  ;;  %v2086_v27 = vld [vmem:[%s11279_s1 + $0x10] sm:$0xff] (!%p338_p2)  ;;  %v2087_v28 = vld [vmem:[%s11279_s1 + $0x18] sm:$0xff] (!%p338_p2) }
   0x8   : > { %427 = vst.msk [vmem:[#allocation2 + $0x30] sm:$0xff] (!%p338_p2), %vm419_vm0, %v7796_v0  ;;  %428 = vst.msk [vmem:[#allocation2 + $0x38] sm:$0xff] (!%p338_p2), %vm419_vm0, %v7796_v0  ;;  %s7801_s27 = smov (!%p338_p2), 20   ;;  %s7802_s13 = smov (!%p338_p2), 24   ;;  %v6828_v31 = vpack.c.bf16 (!%p338_p2), %v2087_v28, %v2086_v27  ;;  %v2088_v32 = vld [vmem:[%s11279_s1 + $0x20] sm:$0xf] (!%p338_p2) }
   0x9   : > { %430 = vst.msk [vmem:[#allocation2 + $0x48] sm:$0xff] (!%p338_p2), %vm419_vm0, %v7796_v0  ;;  %431 = vst.msk [vmem:[#allocation2 + $0x50] sm:$0xff] (!%p338_p2), %vm419_vm0, %v7796_v0  ;;  %6825 = vmatprep.subr.bf16.mxu0 (!%p338_p2), %v6824_v26  ;;  %s7803_s20 = smov (!%p338_p2), 28   ;;  %vm2193_vm3 = vcmask (!%p338_p2), 1043456   ;;  %s7804_s29 = smov (!%p338_p2), 32   ;;  %vm1853_vm4 = vcmask (!%p338_p2), 64512  }
   0xa   : > { %433 = vst.msk [vmem:[#allocation2 + $0x60] sm:$0xff] (!%p338_p2), %vm419_vm0, %v7796_v0  ;;  %434 = vst.msk [vmem:[#allocation2 + $0x68] sm:$0xff] (!%p338_p2), %vm419_vm0, %v7796_v0  ;;  %6827 = vmatpush3.bf16.msra.mxu0 (!%p338_p2), %v6824_v26  ;;  %vm1886_vm5 = vcmask (!%p338_p2), 97280   ;;  %vm1919_vm6 = vcmask (!%p338_p2), 130048   ;;  %vm1952_vm7 = vcmask (!%p338_p2), 162816   ;;  %vm1985_vm8 = vcmask (!%p338_p2), 195584  }
   0xb   : > { %436 = vst.msk [vmem:[#allocation2 + $0x78] sm:$0xff] (!%p338_p2), %vm419_vm0, %v7796_v0  ;;  %437 = vst.msk [vmem:[#allocation2 + $0x80] sm:$0xff] (!%p338_p2), %vm419_vm0, %v7796_v0  ;;  %6829 = vmatprep.subr.bf16.mxu0 (!%p338_p2), %v6828_v31  ;;  %vm2018_vm9 = vcmask (!%p338_p2), 228352   ;;  %vm2096_vm10 = vcmask (!%p338_p2), 293888   ;;  %vm2456_vm11 = vcmask (!%p338_p2), 254976   ;;  %vm3631_vm12 = vcmask (!%p338_p2), 523264  }
   0xc   : > { %439 = vst.msk [vmem:[#allocation2 + $0x90] sm:$0xff] (!%p338_p2), %vm419_vm0, %v7796_v0  ;;  %440 = vst.msk [vmem:[#allocation2 + $0x98] sm:$0xff] (!%p338_p2), %vm419_vm0, %v7796_v0  ;;  %vm3664_vm13 = vcmask (!%p338_p2), 785408   ;;  %vm5355_vm14 = vcmask (!%p338_p2), 517120  }
   0xd   : > { %442 = vst.msk [vmem:[#allocation2 + $0xa8] sm:$0xff] %vm419_vm0, %v7796_v0  ;;  %443 = vst.msk [vmem:[#allocation2 + $0xb0] sm:$0xff] %vm419_vm0, %v7796_v0  ;;  %s11291_s18 = smov (!%p377_p3, %s6243_s18), 1  ;;  %v572_v4 = vld [vmem:[#allocation2 + $0x2] sm:$0xff] }
   0xe   : > { %445 = vst.msk [vmem:[#allocation2 + $0xc0] sm:$0xff] %vm419_vm0, %v7796_v0  ;;  %446 = vst.msk [vmem:[#allocation2 + $0xc8] sm:$0xff] %vm419_vm0, %v7796_v0  ;;  %s6347_s19 = sshll.u32 %s11291_s18, 8  ;;  %v540_v5 = vld [vmem:[#allocation2 + $0x1] sm:$0xff]  ;;  %957 = vrot.lane.b32.xlu1 %v572_v4, %s7797_s23  ;;  %6831 = vmatpush3.bf16.msra.mxu0 %v6828_v31  ;;  %s6348_s28 = sshll.u32 %s11291_s18, 4 }
   0xf   : > { %448 = vst.msk [vmem:[#allocation2 + $0xd8] sm:$0xff] %vm419_vm0, %v7796_v0  ;;  %449 = vst.msk [vmem:[#allocation2 + $0xe0] sm:$0xff] %vm419_vm0, %v7796_v0  ;;  %s7994_s22 = scalar_lea.vmem %s11278_s0, %s6347_s19  ;;  %829 = vrot.lane.b32.xlu0 %v540_v5, %s7798_s24  ;;  %6642 = vmatprep.subr.msk.mxu0 %vm2193_vm3, %v2088_v32  ;;  %v509_v31 = vld [vmem:[#allocation2 + $0x8] sm:$0xff] }
  0x10   : > { %451 = vst.msk [vmem:[#allocation2 + $0xf0] sm:$0xff] %vm419_vm0, %v7796_v0  ;;  %452 = vst.msk [vmem:[#allocation2 + $0xf8] sm:$0xff] %vm419_vm0, %v7796_v0  ;;  %v387_v1 = vld [vmem:[%s7994_s22] sm:$0xff]  ;;  %v388_v2 = vld [vmem:[%s7994_s22 + $0x8] sm:$0xff] }
  0x11   : > { %454 = vst.msk [vmem:[#allocation2 + $0x108] sm:$0xff] %vm419_vm0, %v7796_v0  ;;  %455 = vst.msk [vmem:[#allocation2 + $0x110] sm:$0xff] %vm419_vm0, %v7796_v0  ;;  %v389_v3 = vld [vmem:[%s7994_s22 + $0x10] sm:$0xff]  ;;  %v390_v8 = vld [vmem:[%s7994_s22 + $0x18] sm:$0xff] }
  0x12   : > { %457 = vst.msk [vmem:[#allocation2 + $0x120] sm:$0xff] %vm419_vm0, %v7796_v0  ;;  %458 = vst.msk [vmem:[#allocation2 + $0x128] sm:$0xff] %vm419_vm0, %v7796_v0  ;;  %v391_v9 = vld [vmem:[%s7994_s22 + $0x20] sm:$0xff]  ;;  %v392_v10 = vld [vmem:[%s7994_s22 + $0x28] sm:$0xff]  ;;  %6643 = vmatpush3.msk.msra.mxu0 %vm2193_vm3, %v2088_v32 }
  0x13   : > { %460 = vst.msk [vmem:[#allocation2 + $0x138] sm:$0xff] %vm419_vm0, %v7796_v0  ;;  %461 = vst.msk [vmem:[#allocation2 + $0x140] sm:$0xff] %vm419_vm0, %v7796_v0  ;;  %v393_v11 = vld [vmem:[%s7994_s22 + $0x30] sm:$0xff]  ;;  %v394_v12 = vld [vmem:[%s7994_s22 + $0x38] sm:$0xff] }
  0x14   : > { %463 = vst.msk [vmem:[#allocation2 + $0x150] sm:$0xff] %vm419_vm0, %v7796_v0  ;;  %464 = vst.msk [vmem:[#allocation2 + $0x158] sm:$0xff] %vm419_vm0, %v7796_v0  ;;  %v395_v13 = vld [vmem:[%s7994_s22 + $0x40] sm:$0xff]  ;;  %v396_v14 = vld [vmem:[%s7994_s22 + $0x48] sm:$0xff] }
  0x15   : > { %466 = vst.msk [vmem:[#allocation2 + $0x168] sm:$0xff] %vm419_vm0, %v7796_v0  ;;  %467 = vst.msk [vmem:[#allocation2 + $0x170] sm:$0xff] %vm419_vm0, %v7796_v0  ;;  %v397_v20 = vld [vmem:[%s7994_s22 + $0x50] sm:$0xff]  ;;  %v398_v21 = vld [vmem:[%s7994_s22 + $0x58] sm:$0xff] }
  0x16   : > { %469 = vst.msk [vmem:[#allocation2 + $0x180] sm:$0xff] %vm419_vm0, %v7796_v0  ;;  %470 = vst.msk [vmem:[#allocation2 + $0x188] sm:$0xff] %vm419_vm0, %v7796_v0  ;;  %v399_v35 = vld [vmem:[%s7994_s22 + $0x60] sm:$0xff]  ;;  %v400_v36 = vld [vmem:[%s7994_s22 + $0x68] sm:$0xff] }
  0x17   : > { %472 = vst.msk [vmem:[#allocation2 + $0x198] sm:$0xff] %vm419_vm0, %v7796_v0  ;;  %473 = vst.msk [vmem:[#allocation2 + $0x1a0] sm:$0xff] %vm419_vm0, %v7796_v0  ;;  %v401_v44 = vld [vmem:[%s7994_s22 + $0x70] sm:$0xff]  ;;  %v402_v45 = vld [vmem:[%s7994_s22 + $0x78] sm:$0xff] }
  0x18   : > { %423 = vst.msk [vmem:[#allocation2 + $0x10] sm:$0x3] %vm422_vm1, %v7796_v0  ;;  %426 = vst.msk [vmem:[#allocation2 + $0x28] sm:$0x3] %vm422_vm1, %v7796_v0  ;;  %v403_v52 = vld [vmem:[%s7994_s22 + $0x80] sm:$0xff]  ;;  %v404_v53 = vld [vmem:[%s7994_s22 + $0x88] sm:$0xff] }
  0x19   : > { %429 = vst.msk [vmem:[#allocation2 + $0x40] sm:$0x3] %vm422_vm1, %v7796_v0  ;;  %432 = vst.msk [vmem:[#allocation2 + $0x58] sm:$0x3] %vm422_vm1, %v7796_v0 }
  0x1a   : > { %435 = vst.msk [vmem:[#allocation2 + $0x70] sm:$0x3] %vm422_vm1, %v7796_v0  ;;  %438 = vst.msk [vmem:[#allocation2 + $0x88] sm:$0x3] %vm422_vm1, %v7796_v0 }
  0x1b   : > { %441 = vst.msk [vmem:[#allocation2 + $0xa0] sm:$0x3] %vm422_vm1, %v7796_v0  ;;  %444 = vst.msk [vmem:[#allocation2 + $0xb8] sm:$0x3] %vm422_vm1, %v7796_v0 }
  0x1c   : > { %447 = vst.msk [vmem:[#allocation2 + $0xd0] sm:$0x3] %vm422_vm1, %v7796_v0  ;;  %450 = vst.msk [vmem:[#allocation2 + $0xe8] sm:$0x3] %vm422_vm1, %v7796_v0 }
  0x1d   : > { %453 = vst.msk [vmem:[#allocation2 + $0x100] sm:$0x3] %vm422_vm1, %v7796_v0  ;;  %456 = vst.msk [vmem:[#allocation2 + $0x118] sm:$0x3] %vm422_vm1, %v7796_v0 }
  0x1e   : > { %459 = vst.msk [vmem:[#allocation2 + $0x130] sm:$0x3] %vm422_vm1, %v7796_v0  ;;  %462 = vst.msk [vmem:[#allocation2 + $0x148] sm:$0x3] %vm422_vm1, %v7796_v0 }
  0x1f   : > { %465 = vst.msk [vmem:[#allocation2 + $0x160] sm:$0x3] %vm422_vm1, %v7796_v0  ;;  %468 = vst.msk [vmem:[#allocation2 + $0x178] sm:$0x3] %vm422_vm1, %v7796_v0  ;;  %v573_v6 = vld [vmem:[#allocation2 + $0xa] sm:$0xff] }
  0x20   : > { %471 = vst.msk [vmem:[#allocation2 + $0x190] sm:$0x3] %vm422_vm1, %v7796_v0  ;;  %474 = vst.msk [vmem:[#allocation2 + $0x1a8] sm:$0x3] %vm422_vm1, %v7796_v0  ;;  %v541_v7 = vld [vmem:[#allocation2 + $0x9] sm:$0xff]  ;;  %959 = vrot.lane.b32.xlu1 %v573_v6, %s7797_s23 }
  0x21   : > { %476 = vst.msk [vmem:[#allocation2 + $0x19] sm:$0xff] %vm419_vm0, %v387_v1  ;;  %477 = vst.msk [vmem:[#allocation2 + $0x21] sm:$0xff] %vm419_vm0, %v388_v2  ;;  %831 = vrot.lane.b32.xlu0 %v541_v7, %s7798_s24 }
  0x22   : > { %478 = vst.msk [vmem:[#allocation2 + $0x31] sm:$0xff] %vm419_vm0, %v389_v3  ;;  %479 = vst.msk [vmem:[#allocation2 + $0x39] sm:$0xff] %vm419_vm0, %v390_v8 }
  0x23   : > { %480 = vst.msk [vmem:[#allocation2 + $0x49] sm:$0xff] %vm419_vm0, %v391_v9  ;;  %481 = vst.msk [vmem:[#allocation2 + $0x51] sm:$0xff] %vm419_vm0, %v392_v10 }
  0x24   : > { %482 = vst.msk [vmem:[#allocation2 + $0x61] sm:$0xff] %vm419_vm0, %v393_v11  ;;  %483 = vst.msk [vmem:[#allocation2 + $0x69] sm:$0xff] %vm419_vm0, %v394_v12  ;;  %v405_v11 = vld [vmem:[%s7994_s22 + $0x90] sm:$0xff]  ;;  %v406_v12 = vld [vmem:[%s7994_s22 + $0x98] sm:$0xff] }
  0x25   : > { %484 = vst.msk [vmem:[#allocation2 + $0x79] sm:$0xff] %vm419_vm0, %v395_v13  ;;  %485 = vst.msk [vmem:[#allocation2 + $0x81] sm:$0xff] %vm419_vm0, %v396_v14 }
  0x26   : > { %486 = vst.msk [vmem:[#allocation2 + $0x91] sm:$0xff] %vm419_vm0, %v397_v20  ;;  %487 = vst.msk [vmem:[#allocation2 + $0x99] sm:$0xff] %vm419_vm0, %v398_v21 }
  0x27   : > { %2454 = vst.msk [vmem:[#allocation3] sm:$0xff] %vm2051_vm2, %v7796_v0  ;;  %2455 = vst.msk [vmem:[#allocation3 + $0x8] sm:$0xff] %vm2051_vm2, %v7796_v0 }
  0x28   : > { %v8020_v15 = vld [vmem:[#allocation2 + $0x20] sm:$0xff]  ;;  %v8022_v16 = vld [vmem:[#allocation2 + $0x18] sm:$0xff]  ;;  %2458 = vst.msk [vmem:[#allocation3 + $0x18] sm:$0xff] %vm2051_vm2, %v7796_v0  ;;  %2459 = vst.msk [vmem:[#allocation3 + $0x20] sm:$0xff] %vm2051_vm2, %v7796_v0 }
  0x29   : > { %1087 = vrot.lane.b32.xlu1 %v8020_v15, %s7799_s25  ;;  %1085 = vrot.lane.b32.xlu0 %v8022_v16, %s7799_s25  ;;  %v636_v17 = vld [vmem:[#allocation2 + $0x19] sm:$0xff]  ;;  %v637_v18 = vld [vmem:[#allocation2 + $0x21] sm:$0xff]  ;;  %v8038_v23 = vld [vmem:[#allocation2 + $0x30] sm:$0xff]  ;;  %2461 = vst.msk [vmem:[#allocation3 + $0x30] sm:$0xff] %vm2051_vm2, %v7796_v0 }
  0x2a   : > { %v668_v19 = vld [vmem:[#allocation2 + $0x1a] sm:$0xff]  ;;  %v669_v22 = vld [vmem:[#allocation2 + $0x22] sm:$0xff]  ;;  %2462 = vst.msk [vmem:[#allocation3 + $0x38] sm:$0xff] %vm2051_vm2, %v7796_v0  ;;  %2464 = vst.msk [vmem:[#allocation3 + $0x48] sm:$0xff] %vm2051_vm2, %v7796_v0 }
  0x2b   : > { %2465 = vst.msk [vmem:[#allocation3 + $0x50] sm:$0xff] %vm2051_vm2, %v7796_v0  ;;  %2467 = vst.msk [vmem:[#allocation3 + $0x60] sm:$0xff] %vm2051_vm2, %v7796_v0  ;;  %v8150_v29 = vld [vmem:[#allocation2 + $0x38] sm:$0xff]  ;;  %v8171_v38 = vld [vmem:[#allocation2 + $0x48] sm:$0xff] }
  0x2c   : > { %2468 = vst.msk [vmem:[#allocation3 + $0x68] sm:$0xff] %vm2051_vm2, %v7796_v0  ;;  %2470 = vst.msk [vmem:[#allocation3 + $0x78] sm:$0xff] %vm2051_vm2, %v7796_v0  ;;  %v733_v30 = vld [vmem:[#allocation2 + $0x31] sm:$0xff]  ;;  %v734_v33 = vld [vmem:[#allocation2 + $0x39] sm:$0xff] }
  0x2d   : > { %1213 = vrot.lane.b32.xlu0 %v636_v17, %s7800_s26  ;;  %833 = vrot.lane.b32.xlu1 %v636_v17, %s7798_s24  ;;  %2471 = vst.msk [vmem:[#allocation3 + $0x80] sm:$0xff] %vm2051_vm2, %v7796_v0  ;;  %2473 = vst.msk [vmem:[#allocation3 + $0x90] sm:$0xff] %vm2051_vm2, %v7796_v0  ;;  %v765_v34 = vld [vmem:[#allocation2 + $0x32] sm:$0xff]  ;;  %v766_v37 = vld [vmem:[#allocation2 + $0x3a] sm:$0xff] }
  0x2e   : > { %2474 = vst.msk [vmem:[#allocation3 + $0x98] sm:$0xff] %vm2051_vm2, %v7796_v0  ;;  %2476 = vst.msk [vmem:[#allocation3 + $0xa8] sm:$0xff] %vm2051_vm2, %v7796_v0  ;;  %v8173_v39 = vld [vmem:[#allocation2 + $0x50] sm:$0xff]  ;;  %v8199_v46 = vld [vmem:[#allocation2 + $0x60] sm:$0xff] }
  0x2f   : > { %2477 = vst.msk [vmem:[#allocation3 + $0xb0] sm:$0xff] %vm2051_vm2, %v7796_v0  ;;  %2479 = vst.msk [vmem:[#allocation3 + $0xc0] sm:$0xff] %vm2051_vm2, %v7796_v0  ;;  %v735_v40 = vld [vmem:[#allocation2 + $0x49] sm:$0xff]  ;;  %v736_v41 = vld [vmem:[#allocation2 + $0x51] sm:$0xff] }
  0x30   : > { %2480 = vst.msk [vmem:[#allocation3 + $0xc8] sm:$0xff] %vm2051_vm2, %v7796_v0  ;;  %2482 = vst.msk [vmem:[#allocation3 + $0xd8] sm:$0xff] %vm2051_vm2, %v7796_v0  ;;  %v767_v42 = vld [vmem:[#allocation2 + $0x4a] sm:$0xff]  ;;  %v768_v43 = vld [vmem:[#allocation2 + $0x52] sm:$0xff] }
  0x31   : > { %1215 = vrot.lane.b32.xlu0 %v637_v18, %s7800_s26  ;;  %1341 = vrot.lane.b32.xlu1 %v668_v19, %s7801_s27  ;;  %2483 = vst.msk [vmem:[#allocation3 + $0xe0] sm:$0xff] %vm2051_vm2, %v7796_v0  ;;  %2485 = vst.msk [vmem:[#allocation3 + $0xf0] sm:$0xff] %vm2051_vm2, %v7796_v0  ;;  %v8201_v47 = vld [vmem:[#allocation2 + $0x68] sm:$0xff]  ;;  %v8227_v54 = vld [vmem:[#allocation2 + $0x78] sm:$0xff] }
  0x32   : > { %2486 = vst.msk [vmem:[#allocation3 + $0xf8] sm:$0xff] %vm2051_vm2, %v7796_v0  ;;  %2488 = vst.msk [vmem:[#allocation3 + $0x108] sm:$0xff] %vm2051_vm2, %v7796_v0  ;;  %v737_v48 = vld [vmem:[#allocation2 + $0x61] sm:$0xff]  ;;  %v738_v49 = vld [vmem:[#allocation2 + $0x69] sm:$0xff] }
  0x33   : > { %2489 = vst.msk [vmem:[#allocation3 + $0x110] sm:$0xff] %vm2051_vm2, %v7796_v0  ;;  %2491 = vst.msk [vmem:[#allocation3 + $0x120] sm:$0xff] %vm2051_vm2, %v7796_v0  ;;  %v769_v50 = vld [vmem:[#allocation2 + $0x62] sm:$0xff]  ;;  %v770_v51 = vld [vmem:[#allocation2 + $0x6a] sm:$0xff] }
  0x34   : > { %2492 = vst.msk [vmem:[#allocation3 + $0x128] sm:$0xff] %vm2051_vm2, %v7796_v0  ;;  %2494 = vst.msk [vmem:[#allocation3 + $0x138] sm:$0xff] %vm2051_vm2, %v7796_v0  ;;  %v8229_v55 = vld [vmem:[#allocation2 + $0x80] sm:$0xff]  ;;  %v8295_v25 = vld [vmem:[#allocation2 + $0x91] sm:$0xff] }
  0x35   : > { %835 = vrot.lane.b32.xlu0 %v637_v18, %s7798_s24  ;;  %961 = vrot.lane.b32.xlu1 %v668_v19, %s7797_s23  ;;  %2495 = vst.msk [vmem:[#allocation3 + $0x140] sm:$0xff] %vm2051_vm2, %v7796_v0  ;;  %2497 = vst.msk [vmem:[#allocation3 + $0x150] sm:$0xff] %vm2051_vm2, %v7796_v0  ;;  %v8235_v58 = vld [vmem:[#allocation2 + $0x79] sm:$0xff]  ;;  %v8237_v59 = vld [vmem:[#allocation2 + $0x81] sm:$0xff] }
  0x36   : > { %2498 = vst.msk [vmem:[#allocation3 + $0x158] sm:$0xff] %vm2051_vm2, %v7796_v0  ;;  %2500 = vst.msk [vmem:[#allocation3 + $0x168] sm:$0xff] %vm2051_vm2, %v7796_v0  ;;  %v8245_v62 = vld [vmem:[#allocation2 + $0x7a] sm:$0xff]  ;;  %v8252_v2 = vld [vmem:[#allocation2 + $0x82] sm:$0xff] }
  0x37   : > { %2501 = vst.msk [vmem:[#allocation3 + $0x170] sm:$0xff] %vm2051_vm2, %v7796_v0  ;;  %2503 = vst.msk [vmem:[#allocation3 + $0x180] sm:$0xff] %vm2051_vm2, %v7796_v0  ;;  %v508_v17 = vld [vmem:[#allocation2] sm:$0xff]  ;;  %v8285_v18 = vld [vmem:[#allocation2 + $0x90] sm:$0xff] }
  0x38   : > { %2504 = vst.msk [vmem:[#allocation3 + $0x188] sm:$0xff] %vm2051_vm2, %v7796_v0  ;;  %2506 = vst.msk [vmem:[#allocation3 + $0x198] sm:$0xff] %vm2051_vm2, %v7796_v0  ;;  %v8287_v19 = vld [vmem:[#allocation2 + $0x98] sm:$0xff] }
  0x39   : > { %1343 = vrot.lane.b32.xlu0 %v669_v22, %s7801_s27  ;;  %1469 = vrot.lane.b32.xlu1 %v8038_v23, %s7802_s13  ;;  %2507 = vst.msk [vmem:[#allocation3 + $0x1a0] sm:$0xff] %vm2051_vm2, %v7796_v0  ;;  %4727 = vst.msk [vmem:[#allocation4] sm:$0xff] %vm2051_vm2, %v7796_v0  ;;  %v8297_v26 = vld [vmem:[#allocation2 + $0x99] sm:$0xff] }
  0x3a   : > { %4729 = vst.msk [vmem:[#allocation4 + $0x10] sm:$0xff] %vm2051_vm2, %v7796_v0  ;;  %4731 = vst.msk [vmem:[#allocation4 + $0x20] sm:$0xff] %vm2051_vm2, %v7796_v0 }
  0x3b   : > { %4733 = vst.msk [vmem:[#allocation4 + $0x30] sm:$0xff] %vm2051_vm2, %v7796_v0  ;;  %4735 = vst.msk [vmem:[#allocation4 + $0x40] sm:$0xff] %vm2051_vm2, %v7796_v0 }
  0x3c   : > { %4737 = vst.msk [vmem:[#allocation4 + $0x50] sm:$0xff] %vm2051_vm2, %v7796_v0  ;;  %4739 = vst.msk [vmem:[#allocation4 + $0x60] sm:$0xff] %vm2051_vm2, %v7796_v0 }
  0x3d   : > { %4741 = vst.msk [vmem:[#allocation4 + $0x70] sm:$0xff] %vm2051_vm2, %v7796_v0  ;;  %4743 = vst.msk [vmem:[#allocation4 + $0x80] sm:$0xff] %vm2051_vm2, %v7796_v0  ;;  %963 = vrot.lane.b32.xlu0 %v669_v22, %s7797_s23  ;;  %1089 = vrot.lane.b32.xlu1 %v8038_v23, %s7799_s25 }
  0x3e   : > { %4745 = vst.msk [vmem:[#allocation4 + $0x90] sm:$0xff] %vm2051_vm2, %v7796_v0 }
  0x3f   : > { %488 = vst.msk [vmem:[#allocation2 + $0xa9] sm:$0xff] %vm419_vm0, %v399_v35  ;;  %489 = vst.msk [vmem:[#allocation2 + $0xb1] sm:$0xff] %vm419_vm0, %v400_v36  ;;  %v8307_v35 = vld [vmem:[#allocation2 + $0x92] sm:$0xff] }
  0x40   : > { %490 = vst.msk [vmem:[#allocation2 + $0xc1] sm:$0xff] %vm419_vm0, %v401_v44  ;;  %491 = vst.msk [vmem:[#allocation2 + $0xc9] sm:$0xff] %vm419_vm0, %v402_v45  ;;  %v8319_v44 = vld [vmem:[#allocation2 + $0x9a] sm:$0xff] }
  0x41   : > { %1471 = vrot.lane.b32.xlu0 %v8150_v29, %s7802_s13  ;;  %1597 = vrot.lane.b32.xlu1 %v733_v30, %s7803_s20  ;;  %492 = vst.msk [vmem:[#allocation2 + $0xd9] sm:$0xff] %vm419_vm0, %v403_v52  ;;  %493 = vst.msk [vmem:[#allocation2 + $0xe1] sm:$0xff] %vm419_vm0, %v404_v53 }
  0x42   : > { %494 = vst.msk [vmem:[#allocation2 + $0xf1] sm:$0xff] %vm419_vm0, %v405_v11  ;;  %495 = vst.msk [vmem:[#allocation2 + $0xf9] sm:$0xff] %vm419_vm0, %v406_v12 }
  0x43   : > { %2460 = vst.msk [vmem:[#allocation3 + $0x28] sm:$0x3] %vm2456_vm11, %v7796_v0  ;;  %2457 = vst.msk [vmem:[#allocation3 + $0x10] sm:$0x3] %vm2456_vm11, %v7796_v0 }
  0x44   : > { %2463 = vst.msk [vmem:[#allocation3 + $0x40] sm:$0x3] %vm2456_vm11, %v7796_v0  ;;  %2466 = vst.msk [vmem:[#allocation3 + $0x58] sm:$0x3] %vm2456_vm11, %v7796_v0 }
  0x45   : > { %1091 = vrot.lane.b32.xlu0 %v8150_v29, %s7799_s25  ;;  %1217 = vrot.lane.b32.xlu1 %v733_v30, %s7800_s26  ;;  %2469 = vst.msk [vmem:[#allocation3 + $0x70] sm:$0x3] %vm2456_vm11, %v7796_v0  ;;  %2472 = vst.msk [vmem:[#allocation3 + $0x88] sm:$0x3] %vm2456_vm11, %v7796_v0 }
  0x46   : > { %2475 = vst.msk [vmem:[#allocation3 + $0xa0] sm:$0x3] %vm2456_vm11, %v7796_v0  ;;  %2478 = vst.msk [vmem:[#allocation3 + $0xb8] sm:$0x3] %vm2456_vm11, %v7796_v0 }
  0x47   : > { %2481 = vst.msk [vmem:[#allocation3 + $0xd0] sm:$0x3] %vm2456_vm11, %v7796_v0  ;;  %2484 = vst.msk [vmem:[#allocation3 + $0xe8] sm:$0x3] %vm2456_vm11, %v7796_v0 }
  0x48   : > { %2487 = vst.msk [vmem:[#allocation3 + $0x100] sm:$0x3] %vm2456_vm11, %v7796_v0  ;;  %2490 = vst.msk [vmem:[#allocation3 + $0x118] sm:$0x3] %vm2456_vm11, %v7796_v0 }
  0x49   : > { %1599 = vrot.lane.b32.xlu0 %v734_v33, %s7803_s20  ;;  %1725 = vrot.lane.b32.xlu1 %v765_v34, %s7804_s29  ;;  %2493 = vst.msk [vmem:[#allocation3 + $0x130] sm:$0x3] %vm2456_vm11, %v7796_v0  ;;  %2496 = vst.msk [vmem:[#allocation3 + $0x148] sm:$0x3] %vm2456_vm11, %v7796_v0 }
  0x4a   : > { %2499 = vst.msk [vmem:[#allocation3 + $0x160] sm:$0x3] %vm2456_vm11, %v7796_v0  ;;  %2502 = vst.msk [vmem:[#allocation3 + $0x178] sm:$0x3] %vm2456_vm11, %v7796_v0 }
  0x4b   : > { %2505 = vst.msk [vmem:[#allocation3 + $0x190] sm:$0x3] %vm2456_vm11, %v7796_v0  ;;  %2508 = vst.msk [vmem:[#allocation3 + $0x1a8] sm:$0x3] %vm2456_vm11, %v7796_v0 }
  0x4c   : > { %4728 = vst.msk [vmem:[#allocation4 + $0x8] sm:$0x3] %vm2456_vm11, %v7796_v0  ;;  %4730 = vst.msk [vmem:[#allocation4 + $0x18] sm:$0x3] %vm2456_vm11, %v7796_v0 }
  0x4d   : > { %1219 = vrot.lane.b32.xlu0 %v734_v33, %s7800_s26  ;;  %1345 = vrot.lane.b32.xlu1 %v765_v34, %s7801_s27  ;;  %4732 = vst.msk [vmem:[#allocation4 + $0x28] sm:$0x3] %vm2456_vm11, %v7796_v0  ;;  %4734 = vst.msk [vmem:[#allocation4 + $0x38] sm:$0x3] %vm2456_vm11, %v7796_v0 }
  0x4e   : > { %4736 = vst.msk [vmem:[#allocation4 + $0x48] sm:$0x3] %vm2456_vm11, %v7796_v0  ;;  %4738 = vst.msk [vmem:[#allocation4 + $0x58] sm:$0x3] %vm2456_vm11, %v7796_v0 }
  0x4f   : > { %4740 = vst.msk [vmem:[#allocation4 + $0x68] sm:$0x3] %vm2456_vm11, %v7796_v0  ;;  %4742 = vst.msk [vmem:[#allocation4 + $0x78] sm:$0x3] %vm2456_vm11, %v7796_v0 }
  0x50   : > { %4744 = vst.msk [vmem:[#allocation4 + $0x88] sm:$0x3] %vm2456_vm11, %v7796_v0  ;;  %4746 = vst.msk [vmem:[#allocation4 + $0x98] sm:$0x3] %vm2456_vm11, %v7796_v0 }
  0x51   : > { %1727 = vrot.lane.b32.xlu0 %v766_v37, %s7804_s29  ;;  %1347 = vrot.lane.b32.xlu1 %v766_v37, %s7801_s27  ;;  %5354 = vst.msk [vmem:[#allocation5] sm:$0xff] %vm3631_vm12, %v7796_v0  ;;  %5357 = vst.msk [vmem:[#allocation5 + $0x10] sm:$0xff] %vm3631_vm12, %v7796_v0 }
  0x52   : > { %5359 = vst.msk [vmem:[#allocation5 + $0x20] sm:$0xff] %vm3631_vm12, %v7796_v0  ;;  %5361 = vst.msk [vmem:[#allocation5 + $0x30] sm:$0xff] %vm3631_vm12, %v7796_v0 }
  0x53   : > { %5363 = vst.msk [vmem:[#allocation5 + $0x40] sm:$0xff] %vm3631_vm12, %v7796_v0  ;;  %5365 = vst.msk [vmem:[#allocation5 + $0x50] sm:$0xff] %vm3631_vm12, %v7796_v0 }
  0x54   : > { %5367 = vst.msk [vmem:[#allocation5 + $0x60] sm:$0xff] %vm3631_vm12, %v7796_v0  ;;  %5369 = vst.msk [vmem:[#allocation5 + $0x70] sm:$0xff] %vm3631_vm12, %v7796_v0 }
  0x55   : > { %1473 = vrot.lane.b32.xlu0 %v8171_v38, %s7802_s13  ;;  %1475 = vrot.lane.b32.xlu1 %v8173_v39, %s7802_s13  ;;  %5371 = vst.msk [vmem:[#allocation5 + $0x80] sm:$0xff] %vm3631_vm12, %v7796_v0  ;;  %5373 = vst.msk [vmem:[#allocation5 + $0x90] sm:$0xff] %vm3631_vm12, %v7796_v0 }
  0x56   : > { %5360 = vst.msk [vmem:[#allocation5 + $0x28] sm:$0x3] %vm5355_vm14, %v7796_v0  ;;  %5356 = vst.msk [vmem:[#allocation5 + $0x8] sm:$0x3] %vm5355_vm14, %v7796_v0 }
  0x57   : > { %5358 = vst.msk [vmem:[#allocation5 + $0x18] sm:$0x3] %vm5355_vm14, %v7796_v0  ;;  %5362 = vst.msk [vmem:[#allocation5 + $0x38] sm:$0x3] %vm5355_vm14, %v7796_v0 }
  0x58   : > { %5364 = vst.msk [vmem:[#allocation5 + $0x48] sm:$0x3] %vm5355_vm14, %v7796_v0  ;;  %5366 = vst.msk [vmem:[#allocation5 + $0x58] sm:$0x3] %vm5355_vm14, %v7796_v0 }
  0x59   : > { %1601 = vrot.lane.b32.xlu0 %v735_v40, %s7803_s20  ;;  %1603 = vrot.lane.b32.xlu1 %v736_v41, %s7803_s20  ;;  %5368 = vst.msk [vmem:[#allocation5 + $0x68] sm:$0x3] %vm5355_vm14, %v7796_v0  ;;  %5370 = vst.msk [vmem:[#allocation5 + $0x78] sm:$0x3] %vm5355_vm14, %v7796_v0 }
  0x5a   : > { %5372 = vst.msk [vmem:[#allocation5 + $0x88] sm:$0x3] %vm5355_vm14, %v7796_v0  ;;  %5374 = vst.msk [vmem:[#allocation5 + $0x98] sm:$0x3] %vm5355_vm14, %v7796_v0  ;;  %v5667_v0 = vld [vmem:[%s11285_s7 + $0x190] sm:$0xff] }
  0x5d   : > { %1729 = vrot.lane.b32.xlu0 %v767_v42, %s7804_s29  ;;  %837 = vrot.lane.b32.xlu1 %v733_v30, %s7798_s24 }
  0x61   : > { %1731 = vrot.lane.b32.xlu0 %v768_v43, %s7804_s29  ;;  %839 = vrot.lane.b32.xlu1 %v734_v33, %s7798_s24 }
  0x65   : > { %965 = vrot.lane.b32.xlu0 %v765_v34, %s7797_s23  ;;  %967 = vrot.lane.b32.xlu1 %v766_v37, %s7797_s23 }
  0x69   : > { %1093 = vrot.lane.b32.xlu0 %v8171_v38, %s7799_s25  ;;  %1095 = vrot.lane.b32.xlu1 %v8173_v39, %s7799_s25 }
  0x6d   : > { %1221 = vrot.lane.b32.xlu0 %v735_v40, %s7800_s26  ;;  %1223 = vrot.lane.b32.xlu1 %v736_v41, %s7800_s26 }
  0x71   : > { %1349 = vrot.lane.b32.xlu0 %v767_v42, %s7801_s27  ;;  %1351 = vrot.lane.b32.xlu1 %v768_v43, %s7801_s27 }
  0x75   : > { %1477 = vrot.lane.b32.xlu0 %v8199_v46, %s7802_s13  ;;  %1479 = vrot.lane.b32.xlu1 %v8201_v47, %s7802_s13 }
  0x79   : > { %1605 = vrot.lane.b32.xlu0 %v737_v48, %s7803_s20  ;;  %1607 = vrot.lane.b32.xlu1 %v738_v49, %s7803_s20 }
  0x7d   : > { %1733 = vrot.lane.b32.xlu0 %v769_v50, %s7804_s29  ;;  %841 = vrot.lane.b32.xlu1 %v735_v40, %s7798_s24 }
  0x80   : > { %v958_v56 = vpop.permute.xlu1 %957 }
  0x81   : > { %1735 = vrot.lane.b32.xlu0 %v770_v51, %s7804_s29  ;;  %843 = vrot.lane.b32.xlu1 %v736_v41, %s7798_s24  ;;  %v830_v57 = vpop.permute.xlu0 %829 }
  0x82   : > { %v1821_v20 = vsel %vm419_vm0, %v508_v17, %v830_v57 }
  0x83   : > { %v1854_v24 = vsel %vm1853_vm4, %v1821_v20, %v958_v56  ;;  %v8375_v20 = vld [vmem:[#allocation2 + $0xa8] sm:$0xff] }
  0x85   : > { %969 = vrot.lane.b32.xlu0 %v767_v42, %s7797_s23  ;;  %971 = vrot.lane.b32.xlu1 %v768_v43, %s7797_s23 }
  0x89   : > { %1097 = vrot.lane.b32.xlu0 %v8199_v46, %s7799_s25  ;;  %1099 = vrot.lane.b32.xlu1 %v8201_v47, %s7799_s25 }
  0x8d   : > { %1225 = vrot.lane.b32.xlu0 %v737_v48, %s7800_s26  ;;  %1227 = vrot.lane.b32.xlu1 %v738_v49, %s7800_s26 }
  0x91   : > { %1353 = vrot.lane.b32.xlu0 %v769_v50, %s7801_s27  ;;  %1355 = vrot.lane.b32.xlu1 %v770_v51, %s7801_s27 }
  0x92   : > { %v8239_v60 = vpop.permute.xlu1 %959 }
  0x93   : > { %v832_v61 = vpop.permute.xlu0 %831 }
  0x94   : > { %v1822_v36 = vsel %vm419_vm0, %v509_v31, %v832_v61  ;;  %v8388_v31 = vld [vmem:[#allocation2 + $0xb1] sm:$0xff] }
  0x95   : > { %1481 = vrot.lane.b32.xlu0 %v8227_v54, %s7802_s13  ;;  %1483 = vrot.lane.b32.xlu1 %v8229_v55, %s7802_s13  ;;  %v1855_v43 = vsel %vm1853_vm4, %v1822_v36, %v8239_v60 }
  0x99   : > { %1609 = vrot.lane.b32.xlu0 %v8235_v58, %s7803_s20  ;;  %1611 = vrot.lane.b32.xlu1 %v8237_v59, %s7803_s20 }
  0x9b   : > { %v8247_v63 = vpop.permute.xlu1 %1087  ;;  %v1086_v1 = vpop.permute.xlu0 %1085 }
  0x9c   : > { %v1887_v27 = vsel %vm1886_vm5, %v1854_v24, %v1086_v1  ;;  %v1888_v45 = vsel %vm1886_vm5, %v1855_v43, %v8247_v63 }
  0x9d   : > { %1737 = vrot.lane.b32.xlu0 %v8245_v62, %s7804_s29  ;;  %845 = vrot.lane.b32.xlu1 %v737_v48, %s7798_s24 }
  0x9f   : > { %v1214_v3 = vpop.permute.xlu0 %1213  ;;  %v8254_v4 = vpop.permute.xlu1 %833 }
  0xa0   : > { %v1920_v32 = vsel %vm1919_vm6, %v1887_v27, %v1214_v3  ;;  %v1823_v61 = vsel %vm419_vm0, %v8022_v16, %v8254_v4 }
  0xa1   : > { %1739 = vrot.lane.b32.xlu0 %v8252_v2, %s7804_s29  ;;  %847 = vrot.lane.b32.xlu1 %v738_v49, %s7798_s24 }
  0xa3   : > { %v1216_v5 = vpop.permute.xlu0 %1215  ;;  %v1342_v6 = vpop.permute.xlu1 %1341 }
  0xa4   : > { %v1953_v33 = vsel %vm1952_vm7, %v1920_v32, %v1342_v6  ;;  %v408_v6 = vld [vmem:[%s7994_s22 + $0xa8] sm:$0xff] }
  0xa5   : > { %973 = vrot.lane.b32.xlu0 %v769_v50, %s7797_s23  ;;  %975 = vrot.lane.b32.xlu1 %v770_v51, %s7797_s23  ;;  %v1921_v50 = vsel %vm1919_vm6, %v1888_v45, %v1216_v5  ;;  %v407_v5 = vld [vmem:[%s7994_s22 + $0xa0] sm:$0xff]  ;;  %497 = vst.msk [vmem:[#allocation2 + $0x111] sm:$0xff] %vm419_vm0, %v408_v6 }
  0xa6   : > { %496 = vst.msk [vmem:[#allocation2 + $0x109] sm:$0xff] %vm419_vm0, %v407_v5 }
  0xa7   : > { %v8261_v7 = vpop.permute.xlu0 %835  ;;  %v8263_v8 = vpop.permute.xlu1 %961 }
  0xa8   : > { %v1824_v16 = vsel %vm419_vm0, %v8020_v15, %v8261_v7 }
  0xa9   : > { %1101 = vrot.lane.b32.xlu0 %v8227_v54, %s7799_s25  ;;  %1103 = vrot.lane.b32.xlu1 %v8229_v55, %s7799_s25 }
  0xab   : > { %v1344_v9 = vpop.permute.xlu0 %1343  ;;  %v1470_v10 = vpop.permute.xlu1 %1469 }
  0xac   : > { %v1986_v34 = vsel %vm1985_vm8, %v1953_v33, %v1470_v10  ;;  %v1954_v51 = vsel %vm1952_vm7, %v1921_v50, %v1344_v9 }
  0xad   : > { %1229 = vrot.lane.b32.xlu0 %v8235_v58, %s7800_s26  ;;  %1231 = vrot.lane.b32.xlu1 %v8237_v59, %s7800_s26 }
  0xaf   : > { %v8277_v13 = vpop.permute.xlu0 %963  ;;  %v8279_v14 = vpop.permute.xlu1 %1089 }
  0xb1   : > { %1357 = vrot.lane.b32.xlu0 %v8245_v62, %s7801_s27  ;;  %1359 = vrot.lane.b32.xlu1 %v8252_v2, %s7801_s27 }
  0xb3   : > { %v1472_v21 = vpop.permute.xlu0 %1471  ;;  %v1598_v22 = vpop.permute.xlu1 %1597 }
  0xb4   : > { %v2019_v37 = vsel %vm2018_vm9, %v1986_v34, %v1598_v22  ;;  %v1987_v52 = vsel %vm1985_vm8, %v1954_v51, %v1472_v21  ;;  %v8377_v21 = vld [vmem:[#allocation2 + $0xb0] sm:$0xff] }
  0xb5   : > { %1485 = vrot.lane.b32.xlu0 %v8285_v18, %s7802_s13  ;;  %1487 = vrot.lane.b32.xlu1 %v8287_v19, %s7802_s13  ;;  %v8394_v34 = vld [vmem:[#allocation2 + $0xaa] sm:$0xff] }
  0xb7   : > { %v1092_v28 = vpop.permute.xlu0 %1091  ;;  %v1218_v30 = vpop.permute.xlu1 %1217 }
  0xb9   : > { %1613 = vrot.lane.b32.xlu0 %v8295_v25, %s7803_s20  ;;  %1615 = vrot.lane.b32.xlu1 %v8297_v26, %s7803_s20 }
  0xbb   : > { %v1600_v40 = vpop.permute.xlu0 %1599  ;;  %v1726_v41 = vpop.permute.xlu1 %1725 }
  0xbc   : > { %v2052_v42 = vsel %vm2051_vm2, %v2019_v37, %v1726_v41  ;;  %v2020_v53 = vsel %vm2018_vm9, %v1987_v52, %v1600_v40  ;;  %v8400_v40 = vld [vmem:[#allocation2 + $0xb2] sm:$0xff] }
  0xbd   : > { %1741 = vrot.lane.b32.xlu0 %v8307_v35, %s7804_s29  ;;  %849 = vrot.lane.b32.xlu1 %v8235_v58, %s7798_s24 }
  0xbe   : > { %6644 = vmatprep.mubr.msk.f32.mxu0 %vm2096_vm10, %v2052_v42 }
  0xbf   : > { %v1220_v48 = vpop.permute.xlu0 %1219  ;;  %v1346_v49 = vpop.permute.xlu1 %1345 }
  0xc1   : > { %1743 = vrot.lane.b32.xlu0 %v8319_v44, %s7804_s29  ;;  %851 = vrot.lane.b32.xlu1 %v8237_v59, %s7798_s24 }
  0xc3   : > { %v1728_v56 = vpop.permute.xlu0 %1727  ;;  %v1348_v57 = vpop.permute.xlu1 %1347 }
  0xc4   : > { %v2053_v58 = vsel %vm2051_vm2, %v2020_v53, %v1728_v56  ;;  %v410_v56 = vld [vmem:[%s7994_s22 + $0xb8] sm:$0xff] }
  0xc5   : > { %977 = vrot.lane.b32.xlu0 %v8245_v62, %s7797_s23  ;;  %979 = vrot.lane.b32.xlu1 %v8252_v2, %s7797_s23  ;;  %v1856_v62 = vsel %vm1853_vm4, %v1823_v61, %v8263_v8  ;;  %v1857_v8 = vsel %vm1853_vm4, %v1824_v16, %v8277_v13  ;;  %499 = vst.msk [vmem:[#allocation2 + $0x129] sm:$0xff] %vm419_vm0, %v410_v56  ;;  %v8445_v16 = vld [vmem:[#allocation2 + $0xc8] sm:$0xff] }
  0xc6   : > { %6645 = vmatmul.mubr.msk.f32.vlgmr.msra.gmra.mrb[0].mxu0 %vm2096_vm10, %v2053_v58  ;;  %v1889_v63 = vsel %vm1886_vm5, %v1856_v62, %v8279_v14  ;;  %v1890_v15 = vsel %vm1886_vm5, %v1857_v8, %v1092_v28 }
  0xc7   : > { %v1474_v60 = vpop.permute.xlu0 %1473  ;;  %v1476_v59 = vpop.permute.xlu1 %1475  ;;  %v1922_v3 = vsel %vm1919_vm6, %v1889_v63, %v1218_v30  ;;  %v1923_v12 = vsel %vm1919_vm6, %v1890_v15, %v1220_v48  ;;  %v8386_v30 = vld [vmem:[#allocation2 + $0xa9] sm:$0xff] }
  0xc8   : > { %v1955_v4 = vsel %vm1952_vm7, %v1922_v3, %v1346_v49  ;;  %v1956_v17 = vsel %vm1952_vm7, %v1923_v12, %v1348_v57  ;;  %v8443_v3 = vld [vmem:[#allocation2 + $0xc0] sm:$0xff]  ;;  %v8456_v15 = vld [vmem:[#allocation2 + $0xc9] sm:$0xff] }
  0xc9   : > { %1105 = vrot.lane.b32.xlu0 %v8285_v18, %s7799_s25  ;;  %1107 = vrot.lane.b32.xlu1 %v8287_v19, %s7799_s25  ;;  %v1988_v9 = vsel %vm1985_vm8, %v1955_v4, %v1474_v60  ;;  %v1989_v13 = vsel %vm1985_vm8, %v1956_v17, %v1476_v59  ;;  %v8468_v17 = vld [vmem:[#allocation2 + $0xca] sm:$0xff] }
  0xcb   : > { %v1602_v1 = vpop.permute.xlu0 %1601  ;;  %v1604_v2 = vpop.permute.xlu1 %1603 }
  0xcc   : > { %v2021_v7 = vsel %vm2018_vm9, %v1988_v9, %v1602_v1  ;;  %v2022_v22 = vsel %vm2018_vm9, %v1989_v13, %v1604_v2  ;;  %v8454_v9 = vld [vmem:[#allocation2 + $0xc1] sm:$0xff] }
  0xcd   : > { %1233 = vrot.lane.b32.xlu0 %v8295_v25, %s7800_s26  ;;  %1235 = vrot.lane.b32.xlu1 %v8297_v26, %s7800_s26 }
  0xcf   : > { %v1730_v10 = vpop.permute.xlu0 %1729  ;;  %v838_v11 = vpop.permute.xlu1 %837 }
  0xd0   : > { %v2054_v14 = vsel %vm2051_vm2, %v2021_v7, %v1730_v10  ;;  %v1825_v49 = vsel %vm419_vm0, %v8038_v23, %v838_v11  ;;  %v409_v23 = vld [vmem:[%s7994_s22 + $0xb0] sm:$0xff]  ;;  %v8462_v11 = vld [vmem:[#allocation2 + $0xc2] sm:$0xff] }
  0xd1   : > { %1361 = vrot.lane.b32.xlu0 %v8307_v35, %s7801_s27  ;;  %1363 = vrot.lane.b32.xlu1 %v8319_v44, %s7801_s27  ;;  %498 = vst.msk [vmem:[#allocation2 + $0x121] sm:$0xff] %vm419_vm0, %v409_v23 }
  0xd2   : > { %6647 = vmatprep.mubr.msk.f32.mxu0 %vm2096_vm10, %v2054_v14 }
  0xd3   : > { %v1732_v24 = vpop.permute.xlu0 %1731  ;;  %v840_v27 = vpop.permute.xlu1 %839 }
  0xd4   : > { %v2055_v28 = vsel %vm2051_vm2, %v2022_v22, %v1732_v24  ;;  %v1826_v52 = vsel %vm419_vm0, %v8150_v29, %v840_v27 }
  0xd5   : > { %1489 = vrot.lane.b32.xlu0 %v8375_v20, %s7802_s13  ;;  %1491 = vrot.lane.b32.xlu1 %v8377_v21, %s7802_s13 }
  0xd6   : > { %6648 = vmatmul.mubr.msk.f32.gmra.mrb[2].mxu0 %vm2096_vm10, %v2055_v28 }
  0xd7   : > { %v966_v32 = vpop.permute.xlu0 %965  ;;  %v968_v33 = vpop.permute.xlu1 %967 }
  0xd8   : > { %v1859_v57 = vsel %vm1853_vm4, %v1826_v52, %v968_v33  ;;  %v8515_v52 = vld [vmem:[#allocation2 + $0xe0] sm:$0xff] }
  0xd9   : > { %1617 = vrot.lane.b32.xlu0 %v8386_v30, %s7803_s20  ;;  %1619 = vrot.lane.b32.xlu1 %v8388_v31, %s7803_s20 }
  0xdb   : > { %v1094_v36 = vpop.permute.xlu0 %1093  ;;  %v1096_v37 = vpop.permute.xlu1 %1095 }
  0xdc   : > { %v1892_v29 = vsel %vm1886_vm5, %v1859_v57, %v1096_v37 }
  0xdd   : > { %1745 = vrot.lane.b32.xlu0 %v8394_v34, %s7804_s29  ;;  %853 = vrot.lane.b32.xlu1 %v8295_v25, %s7798_s24 }
  0xdf   : > { %v1222_v41 = vpop.permute.xlu0 %1221  ;;  %v1224_v42 = vpop.permute.xlu1 %1223 }
  0xe0   : > { %v1925_v62 = vsel %vm1919_vm6, %v1892_v29, %v1224_v42  ;;  %v412_v42 = vld [vmem:[%s7994_s22 + $0xc8] sm:$0xff] }
  0xe1   : > { %1747 = vrot.lane.b32.xlu0 %v8400_v40, %s7804_s29  ;;  %855 = vrot.lane.b32.xlu1 %v8297_v26, %s7798_s24  ;;  %v1858_v26 = vsel %vm1853_vm4, %v1825_v49, %v966_v32  ;;  %501 = vst.msk [vmem:[#allocation2 + $0x141] sm:$0xff] %vm419_vm0, %v412_v42  ;;  %v8528_v29 = vld [vmem:[#allocation2 + $0xe1] sm:$0xff] }
  0xe3   : > { %v1350_v43 = vpop.permute.xlu0 %1349  ;;  %v1352_v45 = vpop.permute.xlu1 %1351 }
  0xe4   : > { %v1958_v1 = vsel %vm1952_vm7, %v1925_v62, %v1352_v45 }
  0xe5   : > { %981 = vrot.lane.b32.xlu0 %v8307_v35, %s7797_s23  ;;  %983 = vrot.lane.b32.xlu1 %v8319_v44, %s7797_s23  ;;  %v1891_v35 = vsel %vm1886_vm5, %v1858_v26, %v1094_v36 }
  0xe6   : > { %v1924_v44 = vsel %vm1919_vm6, %v1891_v35, %v1222_v41 }
  0xe7   : > { %v1478_v25 = vpop.permute.xlu0 %1477  ;;  %v1480_v48 = vpop.permute.xlu1 %1479  ;;  %v1957_v53 = vsel %vm1952_vm7, %v1924_v44, %v1350_v43  ;;  %v8513_v44 = vld [vmem:[#allocation2 + $0xd8] sm:$0xff] }
  0xe8   : > { %v1990_v58 = vsel %vm1985_vm8, %v1957_v53, %v1478_v25  ;;  %v1991_v2 = vsel %vm1985_vm8, %v1958_v1, %v1480_v48  ;;  %v8598_v1 = vld [vmem:[#allocation2 + $0xe2] sm:$0xff] }
  0xe9   : > { %1109 = vrot.lane.b32.xlu0 %v8375_v20, %s7799_s25  ;;  %1111 = vrot.lane.b32.xlu1 %v8377_v21, %s7799_s25 }
  0xeb   : > { %v1606_v50 = vpop.permute.xlu0 %1605  ;;  %v1608_v51 = vpop.permute.xlu1 %1607 }
  0xec   : > { %v2023_v60 = vsel %vm2018_vm9, %v1990_v58, %v1606_v50  ;;  %v2024_v4 = vsel %vm2018_vm9, %v1991_v2, %v1608_v51  ;;  %v8526_v58 = vld [vmem:[#allocation2 + $0xd9] sm:$0xff] }
  0xed   : > { %1237 = vrot.lane.b32.xlu0 %v8386_v30, %s7800_s26  ;;  %1239 = vrot.lane.b32.xlu1 %v8388_v31, %s7800_s26 }
  0xef   : > { %v1734_v59 = vpop.permute.xlu0 %1733  ;;  %v842_v61 = vpop.permute.xlu1 %841 }
  0xf0   : > { %v2056_v63 = vsel %vm2051_vm2, %v2023_v60, %v1734_v59  ;;  %v1827_v32 = vsel %vm419_vm0, %v8171_v38, %v842_v61  ;;  %v411_v38 = vld [vmem:[%s7994_s22 + $0xc0] sm:$0xff] }
  0xf1   : > { %1365 = vrot.lane.b32.xlu0 %v8394_v34, %s7801_s27  ;;  %1367 = vrot.lane.b32.xlu1 %v8400_v40, %s7801_s27  ;;  %500 = vst.msk [vmem:[#allocation2 + $0x139] sm:$0xff] %vm419_vm0, %v411_v38  ;;  %v8536_v61 = vld [vmem:[#allocation2 + $0xda] sm:$0xff] }
  0xf2   : > { %6650 = vmatprep.mubr.msk.f32.mxu0 %vm2096_vm10, %v2056_v63 }
  0xf3   : > { %v1736_v5 = vpop.permute.xlu0 %1735  ;;  %v844_v6 = vpop.permute.xlu1 %843 }
  0xf4   : > { %v2057_v8 = vsel %vm2051_vm2, %v2024_v4, %v1736_v5 }
  0xf5   : > { %1493 = vrot.lane.b32.xlu0 %v8443_v3, %s7802_s13  ;;  %1495 = vrot.lane.b32.xlu1 %v8445_v16, %s7802_s13 }
  0xf6   : > { %6651 = vmatmul.mubr.msk.f32.gmra.mrb[4].mxu0 %vm2096_vm10, %v2057_v8 }
  0xf7   : > { %v970_v7 = vpop.permute.xlu0 %969  ;;  %v972_v10 = vpop.permute.xlu1 %971 }
  0xf9   : > { %1621 = vrot.lane.b32.xlu0 %v8454_v9, %s7803_s20  ;;  %1623 = vrot.lane.b32.xlu1 %v8456_v15, %s7803_s20 }
  0xfb   : > { %v1098_v12 = vpop.permute.xlu0 %1097  ;;  %v1100_v14 = vpop.permute.xlu1 %1099 }
  0xfd   : > { %1749 = vrot.lane.b32.xlu0 %v8462_v11, %s7804_s29  ;;  %857 = vrot.lane.b32.xlu1 %v8386_v30, %s7798_s24 }
  0xff   : > { %v1226_v13 = vpop.permute.xlu0 %1225  ;;  %v1228_v22 = vpop.permute.xlu1 %1227 }
 0x101   : > { %1751 = vrot.lane.b32.xlu0 %v8468_v17, %s7804_s29  ;;  %859 = vrot.lane.b32.xlu1 %v8388_v31, %s7798_s24  ;;  %v1860_v31 = vsel %vm1853_vm4, %v1827_v32, %v970_v7 }
 0x102   : > { %v1893_v33 = vsel %vm1886_vm5, %v1860_v31, %v1098_v12 }
 0x103   : > { %v1354_v24 = vpop.permute.xlu0 %1353  ;;  %v1356_v27 = vpop.permute.xlu1 %1355  ;;  %v1926_v37 = vsel %vm1919_vm6, %v1893_v33, %v1226_v13  ;;  %v413_v13 = vld [vmem:[%s7994_s22 + $0xd0] sm:$0xff] }
 0x104   : > { %v1959_v41 = vsel %vm1952_vm7, %v1926_v37, %v1354_v24  ;;  %502 = vst.msk [vmem:[#allocation2 + $0x151] sm:$0xff] %vm419_vm0, %v413_v13  ;;  %v8644_v37 = vld [vmem:[#allocation2 + $0xf0] sm:$0xff] }
 0x105   : > { %985 = vrot.lane.b32.xlu0 %v8394_v34, %s7797_s23  ;;  %987 = vrot.lane.b32.xlu1 %v8400_v40, %s7797_s23  ;;  %v1828_v40 = vsel %vm419_vm0, %v8173_v39, %v844_v6 }
 0x106   : > { %v1861_v43 = vsel %vm1853_vm4, %v1828_v40, %v972_v10  ;;  %v8646_v40 = vld [vmem:[#allocation2 + $0xf8] sm:$0xff] }
 0x107   : > { %v1482_v28 = vpop.permute.xlu0 %1481  ;;  %v1484_v30 = vpop.permute.xlu1 %1483  ;;  %v1894_v39 = vsel %vm1886_vm5, %v1861_v43, %v1100_v14 }
 0x108   : > { %v1992_v45 = vsel %vm1985_vm8, %v1959_v41, %v1482_v28  ;;  %v1927_v26 = vsel %vm1919_vm6, %v1894_v39, %v1228_v22  ;;  %v414_v22 = vld [vmem:[%s7994_s22 + $0xd8] sm:$0xff] }
 0x109   : > { %1113 = vrot.lane.b32.xlu0 %v8443_v3, %s7799_s25  ;;  %1115 = vrot.lane.b32.xlu1 %v8445_v16, %s7799_s25  ;;  %v1960_v50 = vsel %vm1952_vm7, %v1927_v26, %v1356_v27  ;;  %503 = vst.msk [vmem:[#allocation2 + $0x159] sm:$0xff] %vm419_vm0, %v414_v22  ;;  %v8657_v39 = vld [vmem:[#allocation2 + $0xf9] sm:$0xff] }
 0x10a   : > { %v1993_v51 = vsel %vm1985_vm8, %v1960_v50, %v1484_v30  ;;  %v8669_v50 = vld [vmem:[#allocation2 + $0xfa] sm:$0xff] }
 0x10b   : > { %v1610_v34 = vpop.permute.xlu0 %1609  ;;  %v1612_v36 = vpop.permute.xlu1 %1611 }
 0x10c   : > { %v2025_v25 = vsel %vm2018_vm9, %v1992_v45, %v1610_v34  ;;  %v2026_v53 = vsel %vm2018_vm9, %v1993_v51, %v1612_v36  ;;  %v8655_v45 = vld [vmem:[#allocation2 + $0xf1] sm:$0xff] }
 0x10d   : > { %1241 = vrot.lane.b32.xlu0 %v8454_v9, %s7800_s26  ;;  %1243 = vrot.lane.b32.xlu1 %v8456_v15, %s7800_s26 }
 0x10f   : > { %v1738_v48 = vpop.permute.xlu0 %1737  ;;  %v8502_v49 = vpop.permute.xlu1 %845 }
 0x110   : > { %v2058_v35 = vsel %vm2051_vm2, %v2025_v25, %v1738_v48  ;;  %v1829_v7 = vsel %vm419_vm0, %v8199_v46, %v8502_v49  ;;  %v8663_v49 = vld [vmem:[#allocation2 + $0xf2] sm:$0xff] }
 0x111   : > { %1369 = vrot.lane.b32.xlu0 %v8462_v11, %s7801_s27  ;;  %1371 = vrot.lane.b32.xlu1 %v8468_v17, %s7801_s27 }
 0x112   : > { %6653 = vmatprep.mubr.msk.f32.mxu0 %vm2096_vm10, %v2058_v35 }
 0x113   : > { %v1740_v23 = vpop.permute.xlu0 %1739  ;;  %v8518_v56 = vpop.permute.xlu1 %847 }
 0x114   : > { %v2059_v57 = vsel %vm2051_vm2, %v2026_v53, %v1740_v23 }
 0x115   : > { %1497 = vrot.lane.b32.xlu0 %v8513_v44, %s7802_s13  ;;  %1499 = vrot.lane.b32.xlu1 %v8515_v52, %s7802_s13 }
 0x116   : > { %6654 = vmatmul.mubr.msk.f32.gmra.mrb[6].mxu0 %vm2096_vm10, %v2059_v57 }
 0x117   : > { %v974_v60 = vpop.permute.xlu0 %973  ;;  %v8530_v59 = vpop.permute.xlu1 %975 }
 0x119   : > { %1625 = vrot.lane.b32.xlu0 %v8526_v58, %s7803_s20  ;;  %1627 = vrot.lane.b32.xlu1 %v8528_v29, %s7803_s20 }
 0x11b   : > { %v1102_v62 = vpop.permute.xlu0 %1101  ;;  %v1104_v63 = vpop.permute.xlu1 %1103 }
 0x11d   : > { %1753 = vrot.lane.b32.xlu0 %v8536_v61, %s7804_s29  ;;  %861 = vrot.lane.b32.xlu1 %v8454_v9, %s7798_s24 }
 0x11f   : > { %v1230_v2 = vpop.permute.xlu0 %1229  ;;  %v1232_v4 = vpop.permute.xlu1 %1231 }
 0x121   : > { %1755 = vrot.lane.b32.xlu0 %v8598_v1, %s7804_s29  ;;  %863 = vrot.lane.b32.xlu1 %v8456_v15, %s7798_s24  ;;  %v1862_v15 = vsel %vm1853_vm4, %v1829_v7, %v974_v60 }
 0x122   : > { %v1895_v10 = vsel %vm1886_vm5, %v1862_v15, %v1102_v62 }
 0x123   : > { %v1358_v5 = vpop.permute.xlu0 %1357  ;;  %v1360_v6 = vpop.permute.xlu1 %1359  ;;  %v1928_v14 = vsel %vm1919_vm6, %v1895_v10, %v1230_v2 }
 0x124   : > { %v1961_v46 = vsel %vm1952_vm7, %v1928_v14, %v1358_v5  ;;  %v8712_v14 = vld [vmem:[#allocation2 + $0x108] sm:$0xff] }
 0x125   : > { %989 = vrot.lane.b32.xlu0 %v8462_v11, %s7797_s23  ;;  %991 = vrot.lane.b32.xlu1 %v8468_v17, %s7797_s23  ;;  %v1830_v17 = vsel %vm419_vm0, %v8201_v47, %v8518_v56 }
 0x126   : > { %v1863_v24 = vsel %vm1853_vm4, %v1830_v17, %v8530_v59  ;;  %v8714_v17 = vld [vmem:[#allocation2 + $0x110] sm:$0xff] }
 0x127   : > { %v1486_v8 = vpop.permute.xlu0 %1485  ;;  %v1488_v9 = vpop.permute.xlu1 %1487  ;;  %v1896_v47 = vsel %vm1886_vm5, %v1863_v24, %v1104_v63 }
 0x128   : > { %v1994_v27 = vsel %vm1985_vm8, %v1961_v46, %v1486_v8  ;;  %v1929_v31 = vsel %vm1919_vm6, %v1896_v47, %v1232_v4  ;;  %v416_v4 = vld [vmem:[%s7994_s22 + $0xe8] sm:$0xff]  ;;  %v8725_v47 = vld [vmem:[#allocation2 + $0x111] sm:$0xff] }
 0x129   : > { %1117 = vrot.lane.b32.xlu0 %v8513_v44, %s7799_s25  ;;  %1119 = vrot.lane.b32.xlu1 %v8515_v52, %s7799_s25  ;;  %v1962_v34 = vsel %vm1952_vm7, %v1929_v31, %v1360_v6  ;;  %505 = vst.msk [vmem:[#allocation2 + $0x171] sm:$0xff] %vm419_vm0, %v416_v4 }
 0x12a   : > { %v1995_v36 = vsel %vm1985_vm8, %v1962_v34, %v1488_v9  ;;  %v8737_v34 = vld [vmem:[#allocation2 + $0x112] sm:$0xff] }
 0x12b   : > { %v1614_v11 = vpop.permute.xlu0 %1613  ;;  %v1616_v12 = vpop.permute.xlu1 %1615 }
 0x12c   : > { %v2027_v28 = vsel %vm2018_vm9, %v1994_v27, %v1614_v11  ;;  %v2028_v41 = vsel %vm2018_vm9, %v1995_v36, %v1616_v12  ;;  %v8723_v27 = vld [vmem:[#allocation2 + $0x109] sm:$0xff] }
 0x12d   : > { %1245 = vrot.lane.b32.xlu0 %v8526_v58, %s7800_s26  ;;  %1247 = vrot.lane.b32.xlu1 %v8528_v29, %s7800_s26 }
 0x12f   : > { %v1742_v30 = vpop.permute.xlu0 %1741  ;;  %v850_v32 = vpop.permute.xlu1 %849 }
 0x130   : > { %v2060_v33 = vsel %vm2051_vm2, %v2027_v28, %v1742_v30  ;;  %v1831_v60 = vsel %vm419_vm0, %v8227_v54, %v850_v32  ;;  %v415_v54 = vld [vmem:[%s7994_s22 + $0xe0] sm:$0xff]  ;;  %v8731_v32 = vld [vmem:[#allocation2 + $0x10a] sm:$0xff] }
 0x131   : > { %1373 = vrot.lane.b32.xlu0 %v8536_v61, %s7801_s27  ;;  %1375 = vrot.lane.b32.xlu1 %v8598_v1, %s7801_s27  ;;  %504 = vst.msk [vmem:[#allocation2 + $0x169] sm:$0xff] %vm419_vm0, %v415_v54 }
 0x132   : > { %6656 = vmatprep.mubr.msk.f32.mxu0 %vm2096_vm10, %v2060_v33 }
 0x133   : > { %v1744_v38 = vpop.permute.xlu0 %1743  ;;  %v852_v42 = vpop.permute.xlu1 %851 }
 0x134   : > { %v2061_v43 = vsel %vm2051_vm2, %v2028_v41, %v1744_v38 }
 0x135   : > { %1501 = vrot.lane.b32.xlu0 %v8644_v37, %s7802_s13  ;;  %1503 = vrot.lane.b32.xlu1 %v8646_v40, %s7802_s13 }
 0x136   : > { %6657 = vmatmul.mubr.msk.f32.gmra.mrb[8].mxu0 %vm2096_vm10, %v2061_v43 }
 0x137   : > { %v978_v25 = vpop.permute.xlu0 %977  ;;  %v980_v48 = vpop.permute.xlu1 %979 }
 0x139   : > { %1629 = vrot.lane.b32.xlu0 %v8655_v45, %s7803_s20  ;;  %1631 = vrot.lane.b32.xlu1 %v8657_v39, %s7803_s20 }
 0x13b   : > { %v1106_v26 = vpop.permute.xlu0 %1105  ;;  %v1108_v35 = vpop.permute.xlu1 %1107 }
 0x13d   : > { %1757 = vrot.lane.b32.xlu0 %v8663_v49, %s7804_s29  ;;  %865 = vrot.lane.b32.xlu1 %v8526_v58, %s7798_s24 }
 0x13f   : > { %v1234_v51 = vpop.permute.xlu0 %1233  ;;  %v1236_v53 = vpop.permute.xlu1 %1235 }
 0x141   : > { %1759 = vrot.lane.b32.xlu0 %v8669_v50, %s7804_s29  ;;  %867 = vrot.lane.b32.xlu1 %v8528_v29, %s7798_s24  ;;  %v1864_v29 = vsel %vm1853_vm4, %v1831_v60, %v978_v25 }
 0x142   : > { %v1897_v59 = vsel %vm1886_vm5, %v1864_v29, %v1106_v26 }
 0x143   : > { %v1362_v23 = vpop.permute.xlu0 %1361  ;;  %v1364_v56 = vpop.permute.xlu1 %1363  ;;  %v1930_v63 = vsel %vm1919_vm6, %v1897_v59, %v1234_v51 }
 0x144   : > { %v1963_v2 = vsel %vm1952_vm7, %v1930_v63, %v1362_v23  ;;  %v8780_v63 = vld [vmem:[#allocation2 + $0x120] sm:$0xff] }
 0x145   : > { %993 = vrot.lane.b32.xlu0 %v8536_v61, %s7797_s23  ;;  %995 = vrot.lane.b32.xlu1 %v8598_v1, %s7797_s23  ;;  %v1832_v1 = vsel %vm419_vm0, %v8229_v55, %v852_v42 }
 0x146   : > { %v1865_v5 = vsel %vm1853_vm4, %v1832_v1, %v980_v48  ;;  %v8782_v1 = vld [vmem:[#allocation2 + $0x128] sm:$0xff] }
 0x147   : > { %v1490_v57 = vpop.permute.xlu0 %1489  ;;  %v1492_v58 = vpop.permute.xlu1 %1491  ;;  %v1898_v55 = vsel %vm1886_vm5, %v1865_v5, %v1108_v35 }
 0x148   : > { %v1996_v6 = vsel %vm1985_vm8, %v1963_v2, %v1490_v57  ;;  %v1931_v15 = vsel %vm1919_vm6, %v1898_v55, %v1236_v53  ;;  %v418_v53 = vld [vmem:[%s7994_s22 + $0xf8] sm:$0xff]  ;;  %v8793_v55 = vld [vmem:[#allocation2 + $0x129] sm:$0xff] }
 0x149   : > { %1121 = vrot.lane.b32.xlu0 %v8644_v37, %s7799_s25  ;;  %1123 = vrot.lane.b32.xlu1 %v8646_v40, %s7799_s25  ;;  %v1964_v11 = vsel %vm1952_vm7, %v1931_v15, %v1364_v56  ;;  %507 = vst.msk [vmem:[#allocation2 + $0x189] sm:$0xff] %vm419_vm0, %v418_v53  ;;  %v8849_v53 = vld [vmem:[#allocation2 + $0x139] sm:$0xff] }
 0x14a   : > { %v1997_v12 = vsel %vm1985_vm8, %v1964_v11, %v1492_v58  ;;  %v8805_v11 = vld [vmem:[#allocation2 + $0x12a] sm:$0xff] }
 0x14b   : > { %v1618_v61 = vpop.permute.xlu0 %1617  ;;  %v1620_v62 = vpop.permute.xlu1 %1619 }
 0x14c   : > { %v2029_v8 = vsel %vm2018_vm9, %v1996_v6, %v1618_v61  ;;  %v2030_v46 = vsel %vm2018_vm9, %v1997_v12, %v1620_v62  ;;  %v8791_v6 = vld [vmem:[#allocation2 + $0x121] sm:$0xff] }
 0x14d   : > { %1249 = vrot.lane.b32.xlu0 %v8655_v45, %s7800_s26  ;;  %1251 = vrot.lane.b32.xlu1 %v8657_v39, %s7800_s26 }
 0x14f   : > { %v1746_v9 = vpop.permute.xlu0 %1745  ;;  %v854_v7 = vpop.permute.xlu1 %853 }
 0x150   : > { %v2062_v10 = vsel %vm2051_vm2, %v2029_v8, %v1746_v9  ;;  %v1833_v25 = vsel %vm419_vm0, %v8285_v18, %v854_v7  ;;  %v417_v18 = vld [vmem:[%s7994_s22 + $0xf0] sm:$0xff]  ;;  %v8799_v7 = vld [vmem:[#allocation2 + $0x122] sm:$0xff] }
 0x151   : > { %1377 = vrot.lane.b32.xlu0 %v8663_v49, %s7801_s27  ;;  %1379 = vrot.lane.b32.xlu1 %v8669_v50, %s7801_s27  ;;  %506 = vst.msk [vmem:[#allocation2 + $0x181] sm:$0xff] %vm419_vm0, %v417_v18 }
 0x152   : > { %6659 = vmatprep.mubr.msk.f32.mxu0 %vm2096_vm10, %v2062_v10 }
 0x153   : > { %v1748_v13 = vpop.permute.xlu0 %1747  ;;  %v856_v22 = vpop.permute.xlu1 %855 }
 0x154   : > { %v2063_v24 = vsel %vm2051_vm2, %v2030_v46, %v1748_v13 }
 0x155   : > { %1505 = vrot.lane.b32.xlu0 %v8712_v14, %s7802_s13  ;;  %1507 = vrot.lane.b32.xlu1 %v8714_v17, %s7802_s13 }
 0x156   : > { %6660 = vmatmul.mubr.msk.f32.gmra.mrb[10].mxu0 %vm2096_vm10, %v2063_v24 }
 0x157   : > { %v982_v28 = vpop.permute.xlu0 %981  ;;  %v984_v30 = vpop.permute.xlu1 %983 }
 0x159   : > { %1633 = vrot.lane.b32.xlu0 %v8723_v27, %s7803_s20  ;;  %1635 = vrot.lane.b32.xlu1 %v8725_v47, %s7803_s20 }
 0x15b   : > { %v1110_v31 = vpop.permute.xlu0 %1109  ;;  %v1112_v33 = vpop.permute.xlu1 %1111 }
 0x15d   : > { %1761 = vrot.lane.b32.xlu0 %v8731_v32, %s7804_s29  ;;  %869 = vrot.lane.b32.xlu1 %v8655_v45, %s7798_s24 }
 0x15f   : > { %v1238_v36 = vpop.permute.xlu0 %1237  ;;  %v1240_v41 = vpop.permute.xlu1 %1239 }
 0x161   : > { %1763 = vrot.lane.b32.xlu0 %v8737_v34, %s7804_s29  ;;  %871 = vrot.lane.b32.xlu1 %v8657_v39, %s7798_s24  ;;  %v1866_v39 = vsel %vm1853_vm4, %v1833_v25, %v982_v28 }
 0x162   : > { %v1899_v48 = vsel %vm1886_vm5, %v1866_v39, %v1110_v31 }
 0x163   : > { %v1366_v38 = vpop.permute.xlu0 %1365  ;;  %v1368_v42 = vpop.permute.xlu1 %1367  ;;  %v1932_v35 = vsel %vm1919_vm6, %v1899_v48, %v1238_v36 }
 0x164   : > { %v1965_v51 = vsel %vm1952_vm7, %v1932_v35, %v1366_v38 }
 0x165   : > { %997 = vrot.lane.b32.xlu0 %v8663_v49, %s7797_s23  ;;  %999 = vrot.lane.b32.xlu1 %v8669_v50, %s7797_s23  ;;  %v1834_v50 = vsel %vm419_vm0, %v8287_v19, %v856_v22 }
 0x166   : > { %v1867_v23 = vsel %vm1853_vm4, %v1834_v50, %v984_v30 }
 0x167   : > { %v1494_v43 = vpop.permute.xlu0 %1493  ;;  %v1496_v45 = vpop.permute.xlu1 %1495  ;;  %v1900_v19 = vsel %vm1886_vm5, %v1867_v23, %v1112_v33  ;;  %v8851_v23 = vld [vmem:[#allocation2 + $0x141] sm:$0xff] }
 0x168   : > { %v1998_v56 = vsel %vm1985_vm8, %v1965_v51, %v1494_v43  ;;  %v1933_v29 = vsel %vm1919_vm6, %v1900_v19, %v1240_v41 }
 0x169   : > { %1125 = vrot.lane.b32.xlu0 %v8712_v14, %s7799_s25  ;;  %1127 = vrot.lane.b32.xlu1 %v8714_v17, %s7799_s25  ;;  %v1966_v61 = vsel %vm1952_vm7, %v1933_v29, %v1368_v42 }
 0x16a   : > { %v1999_v62 = vsel %vm1985_vm8, %v1966_v61, %v1496_v45 }
 0x16b   : > { %v1622_v49 = vpop.permute.xlu0 %1621  ;;  %v1624_v26 = vpop.permute.xlu1 %1623 }
 0x16c   : > { %v2031_v57 = vsel %vm2018_vm9, %v1998_v56, %v1622_v49  ;;  %v2032_v2 = vsel %vm2018_vm9, %v1999_v62, %v1624_v26  ;;  %v723_v49 = vld [vmem:[#allocation2 + $0x138] sm:$0xff]  ;;  %v724_v26 = vld [vmem:[#allocation2 + $0x140] sm:$0xff] }
 0x16d   : > { %1253 = vrot.lane.b32.xlu0 %v8723_v27, %s7800_s26  ;;  %1255 = vrot.lane.b32.xlu1 %v8725_v47, %s7800_s26 }
 0x16f   : > { %v1750_v58 = vpop.permute.xlu0 %1749  ;;  %v858_v60 = vpop.permute.xlu1 %857 }
 0x170   : > { %v2064_v59 = vsel %vm2051_vm2, %v2031_v57, %v1750_v58  ;;  %v1835_v28 = vsel %vm419_vm0, %v8375_v20, %v858_v60  ;;  %v8856_v57 = vld [vmem:[%s11280_s2] ss:$0 sm:$0xff] }
 0x171   : > { %1381 = vrot.lane.b32.xlu0 %v8731_v32, %s7801_s27  ;;  %1383 = vrot.lane.b32.xlu1 %v8737_v34, %s7801_s27 }
 0x172   : > { %6662 = vmatprep.mubr.msk.f32.mxu0 %vm2096_vm10, %v2064_v59  ;;  %v8863_v59 = vld [vmem:[#allocation2 + $0x13a] sm:$0xff] }
 0x173   : > { %v1752_v54 = vpop.permute.xlu0 %1751  ;;  %v860_v4 = vpop.permute.xlu1 %859 }
 0x174   : > { %v2065_v5 = vsel %vm2051_vm2, %v2032_v2, %v1752_v54 }
 0x175   : > { %1509 = vrot.lane.b32.xlu0 %v8780_v63, %s7802_s13  ;;  %1511 = vrot.lane.b32.xlu1 %v8782_v1, %s7802_s13 }
 0x176   : > { %6663 = vmatmul.mubr.msk.f32.gmra.mrb[12].mxu0 %vm2096_vm10, %v2065_v5  ;;  %v8871_v5 = vld [vmem:[#allocation2 + $0x142] sm:$0xff] }
 0x177   : > { %v986_v8 = vpop.permute.xlu0 %985  ;;  %v988_v9 = vpop.permute.xlu1 %987 }
 0x179   : > { %1637 = vrot.lane.b32.xlu0 %v8791_v6, %s7803_s20  ;;  %1639 = vrot.lane.b32.xlu1 %v8793_v55, %s7803_s20 }
 0x17b   : > { %v1114_v15 = vpop.permute.xlu0 %1113  ;;  %v1116_v10 = vpop.permute.xlu1 %1115 }
 0x17d   : > { %1765 = vrot.lane.b32.xlu0 %v8799_v7, %s7804_s29  ;;  %873 = vrot.lane.b32.xlu1 %v8723_v27, %s7798_s24 }
 0x17f   : > { %v1242_v12 = vpop.permute.xlu0 %1241  ;;  %v1244_v46 = vpop.permute.xlu1 %1243 }
 0x181   : > { %1767 = vrot.lane.b32.xlu0 %v8805_v11, %s7804_s29  ;;  %875 = vrot.lane.b32.xlu1 %v8725_v47, %s7798_s24  ;;  %v1868_v47 = vsel %vm1853_vm4, %v1835_v28, %v986_v8 }
 0x182   : > { %v1901_v30 = vsel %vm1886_vm5, %v1868_v47, %v1114_v15 }
 0x183   : > { %v1370_v13 = vpop.permute.xlu0 %1369  ;;  %v1372_v22 = vpop.permute.xlu1 %1371  ;;  %v1934_v33 = vsel %vm1919_vm6, %v1901_v30, %v1242_v12 }
 0x184   : > { %v1967_v36 = vsel %vm1952_vm7, %v1934_v33, %v1370_v13 }
 0x185   : > { %1001 = vrot.lane.b32.xlu0 %v8731_v32, %s7797_s23  ;;  %1003 = vrot.lane.b32.xlu1 %v8737_v34, %s7797_s23  ;;  %v1836_v34 = vsel %vm419_vm0, %v8377_v21, %v860_v4 }
 0x186   : > { %v1869_v20 = vsel %vm1853_vm4, %v1836_v34, %v988_v9 }
 0x187   : > { %v1498_v24 = vpop.permute.xlu0 %1497  ;;  %v1500_v27 = vpop.permute.xlu1 %1499  ;;  %v1902_v38 = vsel %vm1886_vm5, %v1869_v20, %v1116_v10 }
 0x188   : > { %v2000_v41 = vsel %vm1985_vm8, %v1967_v36, %v1498_v24  ;;  %v1935_v21 = vsel %vm1919_vm6, %v1902_v38, %v1244_v46 }
 0x189   : > { %1129 = vrot.lane.b32.xlu0 %v8780_v63, %s7799_s25  ;;  %1131 = vrot.lane.b32.xlu1 %v8782_v1, %s7799_s25  ;;  %v1968_v39 = vsel %vm1952_vm7, %v1935_v21, %v1372_v22  ;;  %v725_v21 = vld [vmem:[#allocation2 + $0x150] sm:$0xff] }
 0x18a   : > { %v2001_v48 = vsel %vm1985_vm8, %v1968_v39, %v1500_v27 }
 0x18b   : > { %v1626_v31 = vpop.permute.xlu0 %1625  ;;  %v1628_v32 = vpop.permute.xlu1 %1627 }
 0x18c   : > { %v2033_v42 = vsel %vm2018_vm9, %v2000_v41, %v1626_v31  ;;  %v2034_v35 = vsel %vm2018_vm9, %v2001_v48, %v1628_v32 }
 0x18d   : > { %1257 = vrot.lane.b32.xlu0 %v8791_v6, %s7800_s26  ;;  %1259 = vrot.lane.b32.xlu1 %v8793_v55, %s7800_s26 }
 0x18f   : > { %v1754_v43 = vpop.permute.xlu0 %1753  ;;  %v862_v45 = vpop.permute.xlu1 %861 }
 0x190   : > { %v2066_v25 = vsel %vm2051_vm2, %v2033_v42, %v1754_v43  ;;  %v1837_v46 = vsel %vm419_vm0, %v8443_v3, %v862_v45 }
 0x191   : > { %1385 = vrot.lane.b32.xlu0 %v8799_v7, %s7801_s27  ;;  %1387 = vrot.lane.b32.xlu1 %v8805_v11, %s7801_s27 }
 0x192   : > { %6665 = vmatprep.mubr.msk.f32.mxu0 %vm2096_vm10, %v2066_v25  ;;  %v726_v25 = vld [vmem:[#allocation2 + $0x158] sm:$0xff] }
 0x193   : > { %v1756_v50 = vpop.permute.xlu0 %1755  ;;  %v864_v51 = vpop.permute.xlu1 %863 }
 0x194   : > { %v2067_v18 = vsel %vm2051_vm2, %v2034_v35, %v1756_v50  ;;  %v1838_v3 = vsel %vm419_vm0, %v8445_v16, %v864_v51  ;;  %v8918_v35 = vld [vmem:[#allocation2 + $0x151] sm:$0xff]  ;;  %v8920_v50 = vld [vmem:[#allocation2 + $0x159] sm:$0xff] }
 0x195   : > { %1513 = vrot.lane.b32.xlu0 %v723_v49, %s7802_s13  ;;  %1515 = vrot.lane.b32.xlu1 %v724_v26, %s7802_s13 }
 0x196   : > { %6666 = vmatmul.mubr.msk.f32.gmra.mrb[14].mxu0 %vm2096_vm10, %v2067_v18 }
 0x197   : > { %v990_v56 = vpop.permute.xlu0 %989  ;;  %v992_v19 = vpop.permute.xlu1 %991 }
 0x198   : > { %v1871_v33 = vsel %vm1853_vm4, %v1838_v3, %v992_v19 }
 0x199   : > { %v6646_v58 = vpop.f32.mrb[0].mxu0  ;;  %1641 = vrot.lane.b32.xlu0 %v8849_v53, %s7803_s20  ;;  %1643 = vrot.lane.b32.xlu1 %v8851_v23, %s7803_s20 }
 0x19a   : > { %v2269_v60 = vadd.f32 %v6646_v58, %v8856_v57  ;;  %v2263_v29 = vpop.f32.mrb[1].mxu0 }
 0x19b   : > { %v2264_v61 = vadd.f32 %v8856_v57, %v2263_v29  ;;  %v1118_v62 = vpop.permute.xlu0 %1117  ;;  %v1120_v2 = vpop.permute.xlu1 %1119 }
 0x19c   : > { %v2423_v54 = vmax.f32 %v2269_v60, 0.0  ;;  %v1904_v36 = vsel %vm1886_vm5, %v1871_v33, %v1120_v2  ;;  %v8932_v60 = vld [vmem:[#allocation2 + $0x15a] sm:$0xff] }
 0x19d   : > { %v2422_v4 = vmax.f32 %v2264_v61, 0.0  ;;  %1769 = vrot.lane.b32.xlu0 %v8863_v59, %s7804_s29  ;;  %877 = vrot.lane.b32.xlu1 %v8791_v6, %s7798_s24 }
 0x19e   : > { %2511 = vst.msk [vmem:[#allocation3 + $0x21] sm:$0xff] %vm2051_vm2, %v2423_v54 }
 0x19f   : > { %2510 = vst.msk [vmem:[#allocation3 + $0x19] sm:$0xff] %vm2051_vm2, %v2422_v4  ;;  %v1246_v8 = vpop.permute.xlu0 %1245  ;;  %v1248_v9 = vpop.permute.xlu1 %1247 }
 0x1a0   : > { %v1937_v38 = vsel %vm1919_vm6, %v1904_v36, %v1248_v9 }
 0x1a1   : > { %1771 = vrot.lane.b32.xlu0 %v8871_v5, %s7804_s29  ;;  %879 = vrot.lane.b32.xlu1 %v8793_v55, %s7798_s24  ;;  %v1870_v55 = vsel %vm1853_vm4, %v1837_v46, %v990_v56  ;;  %v8926_v56 = vld [vmem:[#allocation2 + $0x152] sm:$0xff] }
 0x1a3   : > { %v1374_v15 = vpop.permute.xlu0 %1373  ;;  %v1376_v10 = vpop.permute.xlu1 %1375 }
 0x1a4   : > { %v1970_v43 = vsel %vm1952_vm7, %v1937_v38, %v1376_v10 }
 0x1a5   : > { %1005 = vrot.lane.b32.xlu0 %v8799_v7, %s7797_s23  ;;  %1007 = vrot.lane.b32.xlu1 %v8805_v11, %s7797_s23  ;;  %v1903_v7 = vsel %vm1886_vm5, %v1870_v55, %v1118_v62 }
 0x1a6   : > { %v1936_v47 = vsel %vm1919_vm6, %v1903_v7, %v1246_v8 }
 0x1a7   : > { %v1502_v6 = vpop.permute.xlu0 %1501  ;;  %v1504_v12 = vpop.permute.xlu1 %1503  ;;  %v1969_v31 = vsel %vm1952_vm7, %v1936_v47, %v1374_v15 }
 0x1a8   : > { %v2002_v34 = vsel %vm1985_vm8, %v1969_v31, %v1502_v6  ;;  %v2003_v45 = vsel %vm1985_vm8, %v1970_v43, %v1504_v12  ;;  %v727_v31 = vld [vmem:[#allocation2 + $0x168] sm:$0xff] }
 0x1a9   : > { %v6649_v13 = vpop.f32.mrb[2].mxu0  ;;  %1133 = vrot.lane.b32.xlu0 %v723_v49, %s7799_s25  ;;  %1135 = vrot.lane.b32.xlu1 %v724_v26, %s7799_s25  ;;  %v8990_v43 = vld [vmem:[#allocation2 + $0x16a] sm:$0xff] }
 0x1aa   : > { %v2279_v22 = vadd.f32 %v6649_v13, %v8856_v57  ;;  %v2273_v24 = vpop.f32.mrb[3].mxu0 }
 0x1ab   : > { %v2274_v27 = vadd.f32 %v8856_v57, %v2273_v24  ;;  %v1630_v11 = vpop.permute.xlu0 %1629  ;;  %v1632_v28 = vpop.permute.xlu1 %1631 }
 0x1ac   : > { %v2425_v30 = vmax.f32 %v2279_v22, 0.0  ;;  %v2035_v16 = vsel %vm2018_vm9, %v2002_v34, %v1630_v11  ;;  %v2036_v39 = vsel %vm2018_vm9, %v2003_v45, %v1632_v28 }
 0x1ad   : > { %v2424_v32 = vmax.f32 %v2274_v27, 0.0  ;;  %1261 = vrot.lane.b32.xlu0 %v8849_v53, %s7800_s26  ;;  %1263 = vrot.lane.b32.xlu1 %v8851_v23, %s7800_s26 }
 0x1ae   : > { %2513 = vst.msk [vmem:[#allocation3 + $0x39] sm:$0xff] %vm2051_vm2, %v2425_v30 }
 0x1af   : > { %2512 = vst.msk [vmem:[#allocation3 + $0x31] sm:$0xff] %vm2051_vm2, %v2424_v32  ;;  %v1758_v20 = vpop.permute.xlu0 %1757  ;;  %v866_v41 = vpop.permute.xlu1 %865  ;;  %v728_v32 = vld [vmem:[#allocation2 + $0x170] sm:$0xff] }
 0x1b0   : > { %v2068_v42 = vsel %vm2051_vm2, %v2035_v16, %v1758_v20  ;;  %v1839_v4 = vsel %vm419_vm0, %v8513_v44, %v866_v41  ;;  %v8980_v20 = vld [vmem:[#allocation2 + $0x169] sm:$0xff]  ;;  %v8982_v41 = vld [vmem:[#allocation2 + $0x171] sm:$0xff] }
 0x1b1   : > { %1389 = vrot.lane.b32.xlu0 %v8863_v59, %s7801_s27  ;;  %1391 = vrot.lane.b32.xlu1 %v8871_v5, %s7801_s27 }
 0x1b2   : > { %6668 = vmatprep.mubr.msk.f32.mxu0 %vm2096_vm10, %v2068_v42 }
 0x1b3   : > { %v1760_v48 = vpop.permute.xlu0 %1759  ;;  %v868_v49 = vpop.permute.xlu1 %867 }
 0x1b4   : > { %v2069_v26 = vsel %vm2051_vm2, %v2036_v39, %v1760_v48  ;;  %v1840_v44 = vsel %vm419_vm0, %v8515_v52, %v868_v49  ;;  %v3794_v39 = vld [vmem:[%s11281_s3 + $0x8] sm:$0xff]  ;;  %v9002_v49 = vld [vmem:[#allocation2 + $0x172] sm:$0xff] }
 0x1b5   : > { %1517 = vrot.lane.b32.xlu0 %v725_v21, %s7802_s13  ;;  %1519 = vrot.lane.b32.xlu1 %v726_v25, %s7802_s13 }
 0x1b6   : > { %6669 = vmatmul.mubr.msk.f32.gmra.mrb[16].mxu0 %vm2096_vm10, %v2069_v26  ;;  %v7805_v26 = vmov 0.0|0.0  }
 0x1b7   : > { %v994_v51 = vpop.permute.xlu0 %993  ;;  %v996_v18 = vpop.permute.xlu1 %995  ;;  %6832 = vmatprep.subr.bf16.mxu1 %v7805_v26 }
 0x1b8   : > { %v1873_v22 = vsel %vm1853_vm4, %v1840_v44, %v996_v18  ;;  %v3801_v44 = vld [vmem:[%s11281_s3 + $0x40] sm:$0xff] }
 0x1b9   : > { %1645 = vrot.lane.b32.xlu0 %v8918_v35, %s7803_s20  ;;  %1647 = vrot.lane.b32.xlu1 %v8920_v50, %s7803_s20 }
 0x1bb   : > { %v1122_v19 = vpop.permute.xlu0 %1121  ;;  %v1124_v58 = vpop.permute.xlu1 %1123 }
 0x1bc   : > { %v1906_v7 = vsel %vm1886_vm5, %v1873_v22, %v1124_v58  ;;  %v3796_v58 = vld [vmem:[%s11281_s3 + $0x18] sm:$0xff] }
 0x1bd   : > { %1773 = vrot.lane.b32.xlu0 %v8926_v56, %s7804_s29  ;;  %881 = vrot.lane.b32.xlu1 %v8849_v53, %s7798_s24 }
 0x1bf   : > { %v1250_v29 = vpop.permute.xlu0 %1249  ;;  %v1252_v61 = vpop.permute.xlu1 %1251 }
 0x1c0   : > { %v1939_v28 = vsel %vm1919_vm6, %v1906_v7, %v1252_v61 }
 0x1c1   : > { %1775 = vrot.lane.b32.xlu0 %v8932_v60, %s7804_s29  ;;  %883 = vrot.lane.b32.xlu1 %v8851_v23, %s7798_s24  ;;  %v1872_v23 = vsel %vm1853_vm4, %v1839_v4, %v994_v51  ;;  %v3799_v4 = vld [vmem:[%s11281_s3 + $0x30] sm:$0xff] }
 0x1c3   : > { %v1378_v62 = vpop.permute.xlu0 %1377  ;;  %v1380_v2 = vpop.permute.xlu1 %1379 }
 0x1c4   : > { %v1972_v30 = vsel %vm1952_vm7, %v1939_v28, %v1380_v2  ;;  %v3798_v2 = vld [vmem:[%s11281_s3 + $0x28] sm:$0xff] }
 0x1c5   : > { %1009 = vrot.lane.b32.xlu0 %v8863_v59, %s7797_s23  ;;  %1011 = vrot.lane.b32.xlu1 %v8871_v5, %s7797_s23  ;;  %v1905_v59 = vsel %vm1886_vm5, %v1872_v23, %v1122_v19  ;;  %v3795_v19 = vld [vmem:[%s11281_s3 + $0x10] sm:$0xff] }
 0x1c6   : > { %v1938_v12 = vsel %vm1919_vm6, %v1905_v59, %v1250_v29 }
 0x1c7   : > { %v1506_v54 = vpop.permute.xlu0 %1505  ;;  %v1508_v53 = vpop.permute.xlu1 %1507  ;;  %v1971_v13 = vsel %vm1952_vm7, %v1938_v12, %v1378_v62  ;;  %v3797_v62 = vld [vmem:[%s11281_s3 + $0x20] sm:$0xff] }
 0x1c8   : > { %v2004_v24 = vsel %vm1985_vm8, %v1971_v13, %v1506_v54  ;;  %v2005_v3 = vsel %vm1985_vm8, %v1972_v30, %v1508_v53  ;;  %v3802_v13 = vld [vmem:[%s11281_s3 + $0x48] sm:$0xff] }
 0x1c9   : > { %v6652_v8 = vpop.f32.mrb[4].mxu0  ;;  %1137 = vrot.lane.b32.xlu0 %v725_v21, %s7799_s25  ;;  %1139 = vrot.lane.b32.xlu1 %v726_v25, %s7799_s25  ;;  %v3793_v25 = vld [vmem:[%s11281_s3] sm:$0xff]  ;;  %v6845_v7 = vpack.c.bf16 %v3802_v13, %v3801_v44  ;;  %v3816_v44 = vld [vmem:[%s11281_s3 + $0xb8] sm:$0xff] }
 0x1ca   : > { %v2289_v9 = vadd.f32 %v6652_v8, %v8856_v57  ;;  %v2283_v15 = vpop.f32.mrb[5].mxu0  ;;  %v6833_v48 = vpack.c.bf16 %v3794_v39, %v3793_v25  ;;  %v3800_v8 = vld [vmem:[%s11281_s3 + $0x38] sm:$0xff]  ;;  %v3805_v39 = vld [vmem:[%s11281_s3 + $0x60] sm:$0xff] }
 0x1cb   : > { %v2284_v10 = vadd.f32 %v8856_v57, %v2283_v15  ;;  %v1634_v5 = vpop.permute.xlu0 %1633  ;;  %v1636_v6 = vpop.permute.xlu1 %1635 }
 0x1cc   : > { %v2427_v46 = vmax.f32 %v2289_v9, 0.0  ;;  %v2037_v52 = vsel %vm2018_vm9, %v2004_v24, %v1634_v5  ;;  %v2038_v33 = vsel %vm2018_vm9, %v2005_v3, %v1636_v6  ;;  %6834 = vmatpush1.bf16.msra.mxu1 %v6833_v48  ;;  %v3806_v48 = vld [vmem:[%s11281_s3 + $0x68] sm:$0xff] }
 0x1cd   : > { %v2426_v55 = vmax.f32 %v2284_v10, 0.0  ;;  %1265 = vrot.lane.b32.xlu0 %v8918_v35, %s7800_s26  ;;  %1267 = vrot.lane.b32.xlu1 %v8920_v50, %s7800_s26 }
 0x1ce   : > { %2515 = vst.msk [vmem:[#allocation3 + $0x51] sm:$0xff] %vm2051_vm2, %v2427_v46  ;;  %6835 = vmatprep.subr.bf16.mxu1 %v7805_v26 }
 0x1cf   : > { %2514 = vst.msk [vmem:[#allocation3 + $0x49] sm:$0xff] %vm2051_vm2, %v2426_v55  ;;  %v1762_v27 = vpop.permute.xlu0 %1761  ;;  %v870_v11 = vpop.permute.xlu1 %869 }
 0x1d0   : > { %v2070_v47 = vsel %vm2051_vm2, %v2037_v52, %v1762_v27 }
 0x1d1   : > { %1393 = vrot.lane.b32.xlu0 %v8926_v56, %s7801_s27  ;;  %1395 = vrot.lane.b32.xlu1 %v8932_v60, %s7801_s27 }
 0x1d2   : > { %6671 = vmatprep.mubr.msk.f32.mxu0 %vm2096_vm10, %v2070_v47 }
 0x1d3   : > { %v1764_v34 = vpop.permute.xlu0 %1763  ;;  %v8974_v36 = vpop.permute.xlu1 %871 }
 0x1d4   : > { %v2071_v16 = vsel %vm2051_vm2, %v2038_v33, %v1764_v34  ;;  %v1842_v55 = vsel %vm419_vm0, %v8646_v40, %v8974_v36 }
 0x1d5   : > { %1521 = vrot.lane.b32.xlu0 %v727_v31, %s7802_s13  ;;  %1523 = vrot.lane.b32.xlu1 %v728_v32, %s7802_s13 }
 0x1d6   : > { %6672 = vmatmul.mubr.msk.f32.gmra.mrb[18].mxu0 %vm2096_vm10, %v2071_v16  ;;  %v729_v16 = vld [vmem:[#allocation2 + $0x180] sm:$0xff] }
 0x1d7   : > { %v998_v38 = vpop.permute.xlu0 %997  ;;  %v8984_v42 = vpop.permute.xlu1 %999 }
 0x1d8   : > { %v1875_v52 = vsel %vm1853_vm4, %v1842_v55, %v8984_v42 }
 0x1d9   : > { %1649 = vrot.lane.b32.xlu0 %v8980_v20, %s7803_s20  ;;  %1651 = vrot.lane.b32.xlu1 %v8982_v41, %s7803_s20 }
 0x1db   : > { %v1126_v45 = vpop.permute.xlu0 %1125  ;;  %v1128_v21 = vpop.permute.xlu1 %1127 }
 0x1dd   : > { %1777 = vrot.lane.b32.xlu0 %v8990_v43, %s7804_s29  ;;  %885 = vrot.lane.b32.xlu1 %v8918_v35, %s7798_s24  ;;  %v6836_v35 = vpack.c.bf16 %v3796_v58, %v3795_v19  ;;  %v9099_v19 = vld [vmem:[#allocation2 + $0x189] sm:$0xff] }
 0x1df   : > { %v1254_v51 = vpop.permute.xlu0 %1253  ;;  %v1256_v18 = vpop.permute.xlu1 %1255  ;;  %6837 = vmatpush1.bf16.msra.mxu1 %v6836_v35 }
 0x1e0   : > { %6838 = vmatprep.subr.bf16.mxu1 %v7805_v26 }
 0x1e1   : > { %1779 = vrot.lane.b32.xlu0 %v9002_v49, %s7804_s29  ;;  %887 = vrot.lane.b32.xlu1 %v8920_v50, %s7798_s24  ;;  %v6839_v50 = vpack.c.bf16 %v3798_v2, %v3797_v62  ;;  %v9114_v2 = vld [vmem:[#allocation2 + $0x182] sm:$0xff] }
 0x1e3   : > { %v1382_v29 = vpop.permute.xlu0 %1381  ;;  %v1384_v61 = vpop.permute.xlu1 %1383  ;;  %6840 = vmatpush1.bf16.msra.mxu1 %v6839_v50 }
 0x1e4   : > { %6841 = vmatprep.subr.bf16.mxu1 %v7805_v26 }
 0x1e5   : > { %1013 = vrot.lane.b32.xlu0 %v8926_v56, %s7797_s23  ;;  %1015 = vrot.lane.b32.xlu1 %v8932_v60, %s7797_s23  ;;  %v1841_v56 = vsel %vm419_vm0, %v8644_v37, %v870_v11  ;;  %v6842_v60 = vpack.c.bf16 %v3800_v8, %v3799_v4  ;;  %v1908_v11 = vsel %vm1886_vm5, %v1875_v52, %v1128_v21  ;;  %v3810_v4 = vld [vmem:[%s11281_s3 + $0x88] sm:$0xff] }
 0x1e6   : > { %v1874_v9 = vsel %vm1853_vm4, %v1841_v56, %v998_v38  ;;  %v1941_v30 = vsel %vm1919_vm6, %v1908_v11, %v1256_v18  ;;  %v730_v38 = vld [vmem:[#allocation2 + $0x188] sm:$0xff] }
 0x1e7   : > { %v1510_v54 = vpop.permute.xlu0 %1509  ;;  %v1512_v53 = vpop.permute.xlu1 %1511  ;;  %v1907_v10 = vsel %vm1886_vm5, %v1874_v9, %v1126_v45  ;;  %6843 = vmatpush1.bf16.msra.mxu1 %v6842_v60  ;;  %v1974_v33 = vsel %vm1952_vm7, %v1941_v30, %v1384_v61  ;;  %v9097_v18 = vld [vmem:[#allocation2 + $0x181] sm:$0xff]  ;;  %v3808_v61 = vld [vmem:[%s11281_s3 + $0x78] sm:$0xff]  ;;  %v9129_v56 = vld [vmem:[#allocation2 + $0x18a] sm:$0xff] }
 0x1e8   : > { %v1940_v37 = vsel %vm1919_vm6, %v1907_v10, %v1254_v51  ;;  %6844 = vmatprep.subr.bf16.mxu1 %v7805_v26  ;;  %v2007_v36 = vsel %vm1985_vm8, %v1974_v33, %v1512_v53  ;;  %v6851_v51 = vpack.c.bf16 %v3806_v48, %v3805_v39  ;;  %v3809_v53 = vld [vmem:[%s11281_s3 + $0x80] sm:$0xff]  ;;  %v3811_v9 = vld [vmem:[%s11281_s3 + $0x90] sm:$0xff] }
 0x1e9   : > { %v6655_v23 = vpop.f32.mrb[6].mxu0  ;;  %1141 = vrot.lane.b32.xlu0 %v727_v31, %s7799_s25  ;;  %1143 = vrot.lane.b32.xlu1 %v728_v32, %s7799_s25  ;;  %v1973_v22 = vsel %vm1952_vm7, %v1940_v37, %v1382_v29  ;;  %v3803_v31 = vld [vmem:[%s11281_s3 + $0x50] sm:$0xff]  ;;  %v3804_v32 = vld [vmem:[%s11281_s3 + $0x58] sm:$0xff]  ;;  %v6857_v8 = vpack.c.bf16 %v3810_v4, %v3809_v53 }
 0x1ea   : > { %v2299_v15 = vadd.f32 %v6655_v23, %v8856_v57  ;;  %v2293_v59 = vpop.f32.mrb[7].mxu0  ;;  %v2006_v27 = vsel %vm1985_vm8, %v1973_v22, %v1510_v54  ;;  %v6848_v34 = vpack.c.bf16 %v3804_v32, %v3803_v31  ;;  %v3807_v29 = vld [vmem:[%s11281_s3 + $0x70] sm:$0xff]  ;;  %v3825_v33 = vld [vmem:[%s11281_s3 + $0x100] sm:$0xff] }
 0x1eb   : > { %v2294_v5 = vadd.f32 %v8856_v57, %v2293_v59  ;;  %v1638_v6 = vpop.permute.xlu0 %1637  ;;  %v1640_v12 = vpop.permute.xlu1 %1639  ;;  %6846 = vmatpush1.bf16.msra.mxu1 %v6845_v7  ;;  %v6854_v62 = vpack.c.bf16 %v3808_v61, %v3807_v29  ;;  %v3819_v48 = vld [vmem:[%s11281_s3 + $0xd0] sm:$0xff]  ;;  %v731_v61 = vld [vmem:[#allocation2 + $0x198] sm:$0xff] }
 0x1ec   : > { %v2429_v46 = vmax.f32 %v2299_v15, 0.0  ;;  %v2039_v40 = vsel %vm2018_vm9, %v2006_v27, %v1638_v6  ;;  %6847 = vmatprep.subr.bf16.mxu1 %v7805_v26  ;;  %v2040_v42 = vsel %vm2018_vm9, %v2007_v36, %v1640_v12  ;;  %v3812_v15 = vld [vmem:[%s11281_s3 + $0x98] sm:$0xff]  ;;  %v3814_v6 = vld [vmem:[%s11281_s3 + $0xa8] sm:$0xff] }
 0x1ed   : > { %v2428_v24 = vmax.f32 %v2294_v5, 0.0  ;;  %1269 = vrot.lane.b32.xlu0 %v8980_v20, %s7800_s26  ;;  %1271 = vrot.lane.b32.xlu1 %v8982_v41, %s7800_s26  ;;  %v3813_v5 = vld [vmem:[%s11281_s3 + $0xa0] sm:$0xff] }
 0x1ee   : > { %2517 = vst.msk [vmem:[#allocation3 + $0x69] sm:$0xff] %vm2051_vm2, %v2429_v46  ;;  %v3815_v46 = vld [vmem:[%s11281_s3 + $0xb0] sm:$0xff] }
 0x1ef   : > { %2516 = vst.msk [vmem:[#allocation3 + $0x61] sm:$0xff] %vm2051_vm2, %v2428_v24  ;;  %v1766_v28 = vpop.permute.xlu0 %1765  ;;  %v9065_v47 = vpop.permute.xlu1 %873  ;;  %6849 = vmatpush1.bf16.msra.mxu1 %v6848_v34  ;;  %v3826_v34 = vld [vmem:[%s11281_s3 + $0x108] sm:$0xff] }
 0x1f0   : > { %v2072_v3 = vsel %vm2051_vm2, %v2039_v40, %v1766_v28  ;;  %6850 = vmatprep.subr.bf16.mxu1 %v7805_v26  ;;  %v3817_v28 = vld [vmem:[%s11281_s3 + $0xc0] sm:$0xff] }
 0x1f1   : > { %1397 = vrot.lane.b32.xlu0 %v8990_v43, %s7801_s27  ;;  %1399 = vrot.lane.b32.xlu1 %v9002_v49, %s7801_s27 }
 0x1f2   : > { %6674 = vmatprep.mubr.msk.f32.mxu0 %vm2096_vm10, %v2072_v3 }
 0x1f3   : > { %v1768_v45 = vpop.permute.xlu0 %1767  ;;  %v9084_v21 = vpop.permute.xlu1 %875  ;;  %6852 = vmatpush1.bf16.msra.mxu1 %v6851_v51  ;;  %v3820_v51 = vld [vmem:[%s11281_s3 + $0xd8] sm:$0xff] }
 0x1f4   : > { %v2073_v25 = vsel %vm2051_vm2, %v2040_v42, %v1768_v45  ;;  %6853 = vmatprep.subr.bf16.mxu1 %v7805_v26  ;;  %v1844_v30 = vsel %vm419_vm0, %v8714_v17, %v9084_v21 }
 0x1f5   : > { %1525 = vrot.lane.b32.xlu0 %v729_v16, %s7802_s13  ;;  %1527 = vrot.lane.b32.xlu1 %v730_v38, %s7802_s13 }
 0x1f6   : > { %6675 = vmatmul.mubr.msk.f32.gmra.mrb[20].mxu0 %vm2096_vm10, %v2073_v25 }
 0x1f7   : > { %v1002_v58 = vpop.permute.xlu0 %1001  ;;  %v9101_v35 = vpop.permute.xlu1 %1003  ;;  %6855 = vmatpush1.bf16.msra.mxu1 %v6854_v62  ;;  %v732_v62 = vld [vmem:[#allocation2 + $0x1a0] sm:$0xff] }
 0x1f8   : > { %6856 = vmatprep.subr.bf16.mxu1 %v7805_v26  ;;  %v1877_v17 = vsel %vm1853_vm4, %v1844_v30, %v9101_v35  ;;  %v3828_v35 = vld [vmem:[%s11281_s3 + $0x118] sm:$0xff] }
 0x1f9   : > { %1653 = vrot.lane.b32.xlu0 %v9097_v18, %s7803_s20  ;;  %1655 = vrot.lane.b32.xlu1 %v9099_v19, %s7803_s20  ;;  %v2607_v30 = vld [vmem:[#allocation3 + $0xa] sm:$0xff] }
 0x1fb   : > { %v1130_v50 = vpop.permute.xlu0 %1129  ;;  %v9116_v54 = vpop.permute.xlu1 %1131  ;;  %6858 = vmatpush1.bf16.msra.mxu1 %v6857_v8  ;;  %v3821_v8 = vld [vmem:[%s11281_s3 + $0xe0] sm:$0xff] }
 0x1fc   : > { %6859 = vmatprep.subr.bf16.mxu1 %v7805_v26 }
 0x1fd   : > { %1781 = vrot.lane.b32.xlu0 %v9114_v2, %s7804_s29  ;;  %889 = vrot.lane.b32.xlu1 %v8980_v20, %s7798_s24  ;;  %v6860_v20 = vpack.c.bf16 %v3812_v15, %v3811_v9  ;;  %v764_v9 = vld [vmem:[#allocation2 + $0x1a1] sm:$0xff] }
 0x1ff   : > { %v1258_v23 = vpop.permute.xlu0 %1257  ;;  %v1260_v60 = vpop.permute.xlu1 %1259  ;;  %6861 = vmatpush1.bf16.msra.mxu1 %v6860_v20 }
 0x200   : > { %6862 = vmatprep.subr.bf16.mxu1 %v7805_v26 }
 0x201   : > { %1783 = vrot.lane.b32.xlu0 %v9129_v56, %s7804_s29  ;;  %891 = vrot.lane.b32.xlu1 %v8982_v41, %s7798_s24  ;;  %v6863_v41 = vpack.c.bf16 %v3814_v6, %v3813_v5  ;;  %v795_v6 = vld [vmem:[#allocation2 + $0x19a] sm:$0xff]  ;;  %s386_s24 = scalar_lea.vmem %s11289_s11, %s6348_s28 }
 0x203   : > { %v1386_v59 = vpop.permute.xlu0 %1385  ;;  %v1388_v10 = vpop.permute.xlu1 %1387  ;;  %6864 = vmatpush1.bf16.msra.mxu1 %v6863_v41  ;;  %v796_v41 = vld [vmem:[#allocation2 + $0x1a2] sm:$0xff] }
 0x204   : > { %6865 = vmatprep.subr.bf16.mxu1 %v7805_v26 }
 0x205   : > { %1017 = vrot.lane.b32.xlu0 %v8990_v43, %s7797_s23  ;;  %1019 = vrot.lane.b32.xlu1 %v9002_v49, %s7797_s23  ;;  %v1843_v43 = vsel %vm419_vm0, %v8712_v14, %v9065_v47  ;;  %v6866_v49 = vpack.c.bf16 %v3816_v44, %v3815_v46  ;;  %v3818_v47 = vld [vmem:[%s11281_s3 + $0xc8] sm:$0xff]  ;;  %v2574_v46 = vld [vmem:[#allocation3 + $0x1] sm:$0xff] }
 0x206   : > { %v1876_v55 = vsel %vm1853_vm4, %v1843_v43, %v1002_v58  ;;  %v6869_v32 = vpack.c.bf16 %v3818_v47, %v3817_v28  ;;  %v3827_v58 = vld [vmem:[%s11281_s3 + $0x110] sm:$0xff] }
 0x207   : > { %v1514_v12 = vpop.permute.xlu0 %1513  ;;  %v1516_v37 = vpop.permute.xlu1 %1515  ;;  %v1909_v7 = vsel %vm1886_vm5, %v1876_v55, %v1130_v50  ;;  %6867 = vmatpush1.bf16.msra.mxu1 %v6866_v49  ;;  %v2702_v44 = vld [vmem:[#allocation3 + $0x1a] sm:$0xff]  ;;  %v2606_v43 = vld [vmem:[#allocation3 + $0x2] sm:$0xff] }
 0x208   : > { %v1942_v14 = vsel %vm1919_vm6, %v1909_v7, %v1258_v23  ;;  %6868 = vmatprep.subr.bf16.mxu1 %v7805_v26  ;;  %v9278_v7 = vld [vmem:[#allocation3 + $0x31] sm:$0xff] }
 0x209   : > { %v6658_v13 = vpop.f32.mrb[8].mxu0  ;;  %1145 = vrot.lane.b32.xlu0 %v729_v16, %s7799_s25  ;;  %1147 = vrot.lane.b32.xlu1 %v730_v38, %s7799_s25  ;;  %v1975_v3 = vsel %vm1952_vm7, %v1942_v14, %v1386_v59  ;;  %v6880_v16 = vpack.c.bf16 %v3826_v34, %v3825_v33  ;;  %v1910_v38 = vsel %vm1886_vm5, %v1877_v17, %v9116_v54  ;;  %v3823_v59 = vld [vmem:[%s11281_s3 + $0xf0] sm:$0xff] }
 0x20a   : > { %v2309_v22 = vadd.f32 %v6658_v13, %v8856_v57  ;;  %v2303_v24 = vpop.f32.mrb[9].mxu0  ;;  %v2008_v36 = vsel %vm1985_vm8, %v1975_v3, %v1514_v12  ;;  %v1943_v25 = vsel %vm1919_vm6, %v1910_v38, %v1260_v60  ;;  %v763_v60 = vld [vmem:[#allocation2 + $0x199] sm:$0xff]  ;;  %v9286_v3 = vld [vmem:[#allocation3 + $0x38] sm:$0xff] }
 0x20b   : > { %v2304_v52 = vadd.f32 %v8856_v57, %v2303_v24  ;;  %v1642_v27 = vpop.permute.xlu0 %1641  ;;  %v1644_v11 = vpop.permute.xlu1 %1643  ;;  %6870 = vmatpush1.bf16.msra.mxu1 %v6869_v32  ;;  %6881 = vmatprep.subr.bf16.mxu0 %v6880_v16  ;;  %v9273_v13 = vld [vmem:[#allocation3 + $0x30] sm:$0xff]  ;;  %v2639_v32 = vld [vmem:[#allocation3 + $0x20] sm:$0xff]  ;;  %v7120_v17 = vpack.i.bf16 %v2607_v30, %v9286_v3 }
 0x20c   : > { %v2431_v40 = vmax.f32 %v2309_v22, 0.0  ;;  %v2041_v42 = vsel %vm2018_vm9, %v2008_v36, %v1642_v27  ;;  %6871 = vmatprep.subr.bf16.mxu1 %v7805_v26  ;;  %6883 = vmatpush3.bf16.msra.mxu0 %v6880_v16  ;;  %v7100_v22 = vpack.i.bf16 %v2574_v46, %v2702_v44  ;;  %v7105_v24 = vpack.i.bf16 %v2606_v43, %v9273_v13  ;;  %v9280_v27 = vld [vmem:[#allocation3 + $0x22] sm:$0xff]  ;;  %v9296_v38 = vld [vmem:[#allocation3 + $0x32] sm:$0xff] }
 0x20d   : > { %v2430_v31 = vmax.f32 %v2304_v52, 0.0  ;;  %1273 = vrot.lane.b32.xlu0 %v9097_v18, %s7800_s26  ;;  %1275 = vrot.lane.b32.xlu1 %v9099_v19, %s7800_s26  ;;  %v1976_v18 = vsel %vm1952_vm7, %v1943_v25, %v1388_v10  ;;  %v6872_v19 = vpack.c.bf16 %v3820_v51, %v3819_v48  ;;  %v3824_v10 = vld [vmem:[%s11281_s3 + $0xf8] sm:$0xff]  ;;  %v9306_v51 = vld [vmem:[#allocation3 + $0x19] sm:$0xff] }
 0x20e   : > { %2519 = vst.msk [vmem:[#allocation3 + $0x81] sm:$0xff] %vm2051_vm2, %v2431_v40  ;;  %v2009_v29 = vsel %vm1985_vm8, %v1976_v18, %v1516_v37  ;;  %v6878_v5 = vpack.c.bf16 %v3824_v10, %v3823_v59  ;;  %v2575_v52 = vld [vmem:[#allocation3 + $0x9] sm:$0xff] }
 0x20f   : > { %2518 = vst.msk [vmem:[#allocation3 + $0x79] sm:$0xff] %vm2051_vm2, %v2430_v31  ;;  %v1770_v45 = vpop.permute.xlu0 %1769  ;;  %v9199_v21 = vpop.permute.xlu1 %877  ;;  %v2042_v50 = vsel %vm2018_vm9, %v2009_v29, %v1644_v11  ;;  %6873 = vmatpush1.bf16.msra.mxu1 %v6872_v19  ;;  %v2638_v11 = vld [vmem:[#allocation3 + $0x18] sm:$0xff]  ;;  %v7115_v47 = vpack.i.bf16 %v2575_v52, %v9280_v27  ;;  %v9294_v16 = vld [vmem:[#allocation3 + $0x48] sm:$0xff] }
 0x210   : > { %v2074_v39 = vsel %vm2051_vm2, %v2041_v42, %v1770_v45  ;;  %6874 = vmatprep.subr.bf16.mxu1 %v7805_v26  ;;  %v7110_v28 = vpack.i.bf16 %v2638_v11, %v9278_v7  ;;  %v9288_v31 = vld [vmem:[#allocation3 + $0x39] sm:$0xff]  ;;  %v1845_v42 = vsel %vm419_vm0, %v8780_v63, %v9199_v21  ;;  %v7135_v63 = vpack.i.bf16 %v2702_v44, %v9294_v16 }
 0x211   : > { %1401 = vrot.lane.b32.xlu0 %v9114_v2, %s7801_s27  ;;  %1403 = vrot.lane.b32.xlu1 %v9129_v56, %s7801_s27  ;;  %v6884_v2 = vpack.c.bf16 %v3828_v35, %v3827_v58  ;;  %v3822_v56 = vld [vmem:[%s11281_s3 + $0xe8] sm:$0xff]  ;;  %v7125_v36 = vpack.i.bf16 %v2639_v32, %v9288_v31  ;;  %v7130_v21 = vpack.i.bf16 %v9306_v51, %v9296_v38  ;;  %v9369_v32 = vld [vmem:[#allocation3 + $0x69] sm:$0xff] }
 0x212   : > { %6677 = vmatprep.mubr.msk.f32.mxu0 %vm2096_vm10, %v2074_v39  ;;  %v6875_v23 = vpack.c.bf16 %v3822_v56, %v3821_v8 }
 0x213   : > { %v1772_v54 = vpop.permute.xlu0 %1771  ;;  %v9224_v53 = vpop.permute.xlu1 %879  ;;  %6885 = vmatprep.subr.bf16.mxu0 %v6884_v2 }
 0x214   : > { %v2075_v4 = vsel %vm2051_vm2, %v2042_v50, %v1772_v54  ;;  %6887 = vmatpush3.bf16.msra.mxu0 %v6884_v2  ;;  %6876 = vmatpush1.bf16.msra.mxu1 %v6875_v23  ;;  %v1846_v2 = vsel %vm419_vm0, %v8782_v1, %v9224_v53  ;;  %v9328_v23 = vld [vmem:[#allocation3 + $0x21] sm:$0xff] }
 0x215   : > { %1529 = vrot.lane.b32.xlu0 %v731_v61, %s7802_s13  ;;  %1531 = vrot.lane.b32.xlu1 %v732_v62, %s7802_s13  ;;  %s7806_s13 = smov 64   ;;  %v9314_v62 = vld [vmem:[#allocation3 + $0x3a] sm:$0xff] }
 0x216   : > { %6678 = vmatmul.mubr.msk.f32.gmra.mrb[22].mxu0 %vm2096_vm10, %v2075_v4  ;;  %6877 = vmatprep.subr.bf16.mxu1 %v7805_v26  ;;  %v9322_v4 = vld [vmem:[#allocation3 + $0x49] sm:$0xff] }
 0x217   : > { %v9237_v15 = vpop.permute.xlu0 %1005  ;;  %v9239_v20 = vpop.permute.xlu1 %1007  ;;  %6888 = vmatprep.subr.bf16.mxu0 %v7805_v26  ;;  %v7140_v10 = vpack.i.bf16 %v9273_v13, %v9322_v4 }
 0x218   : > { %6879 = vmatpush1.bf16.msra.mxu1 %v6878_v5  ;;  %v1878_v25 = vsel %vm1853_vm4, %v1845_v42, %v9237_v15  ;;  %v1879_v8 = vsel %vm1853_vm4, %v1846_v2, %v9239_v20  ;;  %v7145_v15 = vpack.i.bf16 %v9328_v23, %v9314_v62  ;;  %v2770_v5 = vld [vmem:[#allocation3 + $0x51] sm:$0xff] }
 0x219   : > { %1657 = vrot.lane.b32.xlu0 %v763_v60, %s7803_s20  ;;  %1659 = vrot.lane.b32.xlu1 %v764_v9, %s7803_s20  ;;  %s7807_s20 = smov 96   ;;  %v7155_v43 = vpack.i.bf16 %v9286_v3, %v2770_v5  ;;  %v9375_v42 = vld [vmem:[#allocation3 + $0x78] sm:$0xff] }
 0x21b   : > { %v1134_v12 = vpop.permute.xlu0 %1133  ;;  %v9271_v37 = vpop.permute.xlu1 %1135 }
 0x21c   : > { %v1911_v18 = vsel %vm1886_vm5, %v1878_v25, %v1134_v12  ;;  %v1912_v1 = vsel %vm1886_vm5, %v1879_v8, %v9271_v37 }
 0x21d   : > { %1785 = vrot.lane.b32.xlu0 %v795_v6, %s7804_s29  ;;  %1787 = vrot.lane.b32.xlu1 %v796_v41, %s7804_s29  ;;  %v2738_v41 = vld [vmem:[#allocation3 + $0x50] sm:$0xff] }
 0x21f   : > { %v1262_v49 = vpop.permute.xlu0 %1261  ;;  %v1264_v55 = vpop.permute.xlu1 %1263 }
 0x220   : > { %v1944_v29 = vsel %vm1919_vm6, %v1911_v18, %v1262_v49  ;;  %v1945_v20 = vsel %vm1919_vm6, %v1912_v1, %v1264_v55  ;;  %v7150_v49 = vpack.i.bf16 %v9280_v27, %v2738_v41  ;;  %v2739_v55 = vld [vmem:[#allocation3 + $0x60] sm:$0xff] }
 0x221   : > { %7101 = vrot.lane.b32.xlu0 %v7100_v22, %s7804_s29  ;;  %7106 = vrot.lane.b32.xlu1 %v7105_v24, %s7806_s13  ;;  %v9353_v22 = vld [vmem:[#allocation3 + $0x4a] sm:$0xff]  ;;  %v7165_v11 = vpack.i.bf16 %v9296_v38, %v2739_v55  ;;  %v9362_v27 = vld [vmem:[#allocation3 + $0x61] sm:$0xff]  ;;  %v9388_v18 = vld [vmem:[#allocation3 + $0x79] sm:$0xff] }
 0x222   : > { %v7170_v3 = vpack.i.bf16 %v9294_v16, %v9362_v27  ;;  %v7195_v25 = vpack.i.bf16 %v9353_v22, %v9375_v42 }
 0x223   : > { %v1390_v14 = vpop.permute.xlu0 %1389  ;;  %v1392_v40 = vpop.permute.xlu1 %1391 }
 0x224   : > { %v1977_v50 = vsel %vm1952_vm7, %v1944_v29, %v1390_v14  ;;  %v1978_v6 = vsel %vm1952_vm7, %v1945_v20, %v1392_v40  ;;  %v7160_v14 = vpack.i.bf16 %v9278_v7, %v9353_v22  ;;  %v9359_v40 = vld [vmem:[#allocation3 + $0x52] sm:$0xff]  ;;  %v2740_v7 = vld [vmem:[#allocation3 + $0x68] sm:$0xff] }
 0x225   : > { %7111 = vrot.lane.b32.xlu0 %v7110_v28, %s7807_s20  ;;  %7116 = vrot.lane.b32.xlu1 %v7115_v47, %s7804_s29  ;;  %v7175_v30 = vpack.i.bf16 %v9288_v31, %v9359_v40  ;;  %v9378_v31 = vld [vmem:[#allocation3 + $0x62] sm:$0xff] }
 0x226   : > { %v7780_v29 = vld [vmem:[#allocation2 + $0x138] sm:$0xff] }
 0x227   : > { %v1518_v33 = vpop.permute.xlu0 %1517  ;;  %v1520_v34 = vpop.permute.xlu1 %1519 }
 0x228   : > { %v2010_v56 = vsel %vm1985_vm8, %v1977_v50, %v1518_v33  ;;  %v2011_v12 = vsel %vm1985_vm8, %v1978_v6, %v1520_v34  ;;  %v2742_v50 = vld [vmem:[#allocation3 + $0x80] sm:$0xff] }
 0x229   : > { %v6661_v45 = vpop.f32.mrb[10].mxu0  ;;  %7121 = vrot.lane.b32.xlu0 %v7120_v17, %s7806_s13  ;;  %7126 = vrot.lane.b32.xlu1 %v7125_v36, %s7807_s20  ;;  %v7185_v17 = vpack.i.bf16 %v2738_v41, %v9369_v32  ;;  %v7180_v36 = vpack.i.bf16 %v9314_v62, %v2740_v7 }
 0x22a   : > { %v2319_v39 = vadd.f32 %v6661_v45, %v8856_v57  ;;  %v2313_v48 = vpop.f32.mrb[11].mxu0 }
 0x22b   : > { %v2314_v19 = vadd.f32 %v8856_v57, %v2313_v48  ;;  %v1646_v58 = vpop.permute.xlu0 %1645  ;;  %v1648_v35 = vpop.permute.xlu1 %1647  ;;  %v9385_v48 = vld [vmem:[#allocation3 + $0x6a] sm:$0xff] }
 0x22c   : > { %v2433_v61 = vmax.f32 %v2319_v39, 0.0  ;;  %v2043_v53 = vsel %vm2018_vm9, %v2010_v56, %v1646_v58  ;;  %v2044_v37 = vsel %vm2018_vm9, %v2011_v12, %v1648_v35  ;;  %v7190_v39 = vpack.i.bf16 %v9322_v4, %v9378_v31 }
 0x22d   : > { %v2432_v54 = vmax.f32 %v2314_v19, 0.0  ;;  %7136 = vrot.lane.b32.xlu1 %v7135_v63, %s7806_s13  ;;  %7131 = vrot.lane.b32.xlu0 %v7130_v21, %s7804_s29  ;;  %v7205_v35 = vpack.i.bf16 %v2770_v5, %v9385_v48  ;;  %v7200_v63 = vpack.i.bf16 %v2739_v55, %v9388_v18  ;;  %v9393_v21 = vld [vmem:[#allocation3 + $0x81] sm:$0xff]  ;;  %v7781_v5 = vld [vmem:[#allocation2 + $0x140] sm:$0xff] }
 0x22e   : > { %2521 = vst.msk [vmem:[#allocation3 + $0x99] sm:$0xff] %vm2051_vm2, %v2433_v61 }
 0x22f   : > { %2520 = vst.msk [vmem:[#allocation3 + $0x91] sm:$0xff] %vm2051_vm2, %v2432_v54  ;;  %v1774_v60 = vpop.permute.xlu0 %1773  ;;  %v882_v9 = vpop.permute.xlu1 %881 }
 0x230   : > { %v2076_v59 = vsel %vm2051_vm2, %v2043_v53, %v1774_v60  ;;  %v1847_v61 = vsel %vm419_vm0, %v7780_v29, %v882_v9 }
 0x231   : > { %6680 = vmatprep.mubr.msk.f32.mxu0 %vm2096_vm10, %v2076_v59  ;;  %7146 = vrot.lane.b32.xlu1 %v7145_v15, %s7804_s29  ;;  %v7215_v15 = vpack.i.bf16 %v2740_v7, %v9393_v21  ;;  %v7210_v59 = vpack.i.bf16 %v9359_v40, %v2742_v50 }
 0x232   : > { %7141 = vrot.lane.b32.xlu0 %v7140_v10, %s7807_s20 }
 0x233   : > { %v1776_v46 = vpop.permute.xlu0 %1775  ;;  %v9346_v44 = vpop.permute.xlu1 %883 }
 0x234   : > { %v2077_v13 = vsel %vm2051_vm2, %v2044_v37, %v1776_v46  ;;  %v1848_v6 = vsel %vm419_vm0, %v7781_v5, %v9346_v44 }
 0x235   : > { %6681 = vmatmul.mubr.msk.f32.gmra.mrb[24].mxu0 %vm2096_vm10, %v2077_v13  ;;  %7156 = vrot.lane.b32.xlu1 %v7155_v43, %s7807_s20 }
 0x236   : > { %7151 = vrot.lane.b32.xlu0 %v7150_v49, %s7806_s13  ;;  %v2743_v10 = vld [vmem:[#allocation3 + $0x90] sm:$0xff] }
 0x237   : > { %v1010_v24 = vpop.permute.xlu0 %1009  ;;  %v1012_v52 = vpop.permute.xlu1 %1011  ;;  %v7225_v55 = vpack.i.bf16 %v9378_v31, %v2743_v10 }
 0x238   : > { %v1880_v54 = vsel %vm1853_vm4, %v1847_v61, %v1010_v24  ;;  %v1881_v37 = vsel %vm1853_vm4, %v1848_v6, %v1012_v52  ;;  %v9452_v61 = vld [vmem:[#allocation3 + $0x9a] sm:$0xff] }
 0x239   : > { %7166 = vrot.lane.b32.xlu1 %v7165_v11, %s7806_s13 }
 0x23a   : > { %7161 = vrot.lane.b32.xlu0 %v7160_v14, %s7804_s29  ;;  %v9423_v14 = vld [vmem:[#allocation3 + $0x82] sm:$0xff] }
 0x23b   : > { %v1138_v28 = vpop.permute.xlu0 %1137  ;;  %v1140_v47 = vpop.permute.xlu1 %1139 }
 0x23c   : > { %v1913_v56 = vsel %vm1886_vm5, %v1880_v54, %v1138_v28  ;;  %v1914_v43 = vsel %vm1886_vm5, %v1881_v37, %v1140_v47  ;;  %v2775_v47 = vld [vmem:[#allocation3 + $0x91] sm:$0xff] }
 0x23d   : > { %7176 = vrot.lane.b32.xlu1 %v7175_v30, %s7804_s29 }
 0x23e   : > { %7171 = vrot.lane.b32.xlu0 %v7170_v3, %s7807_s20 }
 0x23f   : > { %v1266_v33 = vpop.permute.xlu0 %1265  ;;  %v1268_v34 = vpop.permute.xlu1 %1267 }
 0x240   : > { %v1946_v9 = vsel %vm1919_vm6, %v1913_v56, %v1266_v33  ;;  %v1947_v24 = vsel %vm1919_vm6, %v1914_v43, %v1268_v34 }
 0x241   : > { %7186 = vrot.lane.b32.xlu1 %v7185_v17, %s7807_s20  ;;  %v7230_v17 = vpack.i.bf16 %v9375_v42, %v2775_v47  ;;  %v9445_v42 = vld [vmem:[#allocation3 + $0x92] sm:$0xff] }
 0x242   : > { %7181 = vrot.lane.b32.xlu0 %v7180_v36, %s7806_s13  ;;  %v9435_v36 = vld [vmem:[#allocation3 + $0x99] sm:$0xff]  ;;  %v7250_v29 = vpack.i.bf16 %v9388_v18, %v9445_v42 }
 0x243   : > { %v1394_v16 = vpop.permute.xlu0 %1393  ;;  %v1396_v45 = vpop.permute.xlu1 %1395 }
 0x244   : > { %v1979_v41 = vsel %vm1952_vm7, %v1946_v9, %v1394_v16  ;;  %v1980_v28 = vsel %vm1952_vm7, %v1947_v24, %v1396_v45  ;;  %v2744_v16 = vld [vmem:[#allocation3 + $0x98] sm:$0xff] }
 0x245   : > { %7196 = vrot.lane.b32.xlu1 %v7195_v25, %s7806_s13 }
 0x246   : > { %7191 = vrot.lane.b32.xlu0 %v7190_v39, %s7804_s29  ;;  %v7245_v39 = vpack.i.bf16 %v2742_v50, %v9435_v36 }
 0x247   : > { %v1522_v19 = vpop.permute.xlu0 %1521  ;;  %v1524_v58 = vpop.permute.xlu1 %1523 }
 0x248   : > { %v2012_v46 = vsel %vm1985_vm8, %v1979_v41, %v1522_v19  ;;  %v2013_v30 = vsel %vm1985_vm8, %v1980_v28, %v1524_v58  ;;  %v7240_v19 = vpack.i.bf16 %v9385_v48, %v2744_v16 }
 0x249   : > { %v6664_v2 = vpop.f32.mrb[12].mxu0  ;;  %7206 = vrot.lane.b32.xlu1 %v7205_v35, %s7804_s29 }
 0x24a   : > { %v2329_v4 = vadd.f32 %v6664_v2, %v8856_v57  ;;  %v2323_v8 = vpop.f32.mrb[13].mxu0  ;;  %7201 = vrot.lane.b32.xlu0 %v7200_v63, %s7807_s20 }
 0x24b   : > { %v2324_v1 = vadd.f32 %v8856_v57, %v2323_v8  ;;  %v1650_v53 = vpop.permute.xlu0 %1649  ;;  %v1652_v60 = vpop.permute.xlu1 %1651  ;;  %v9409_v57 = vld [vmem:[#allocation3 + $0x7a] sm:$0xff] }
 0x24c   : > { %v2435_v20 = vmax.f32 %v2329_v4, 0.0  ;;  %v2045_v44 = vsel %vm2018_vm9, %v2012_v46, %v1650_v53  ;;  %v7220_v11 = vpack.i.bf16 %v9362_v27, %v9409_v57  ;;  %v2046_v3 = vsel %vm2018_vm9, %v2013_v30, %v1652_v60 }
 0x24d   : > { %v2434_v12 = vmax.f32 %v2324_v1, 0.0  ;;  %7216 = vrot.lane.b32.xlu1 %v7215_v15, %s7807_s20  ;;  %v7235_v27 = vpack.i.bf16 %v9369_v32, %v9423_v14  ;;  %v7265_v4 = vpack.i.bf16 %v9393_v21, %v9452_v61 }
 0x24e   : > { %2523 = vst.msk [vmem:[#allocation3 + $0xb1] sm:$0xff] %vm2051_vm2, %v2435_v20  ;;  %7211 = vrot.lane.b32.xlu0 %v7210_v59, %s7806_s13 }
 0x24f   : > { %2522 = vst.msk [vmem:[#allocation3 + $0xa9] sm:$0xff] %vm2051_vm2, %v2434_v12  ;;  %v1778_v13 = vpop.permute.xlu0 %1777  ;;  %v886_v49 = vpop.permute.xlu1 %885  ;;  %v9480_v12 = vld [vmem:[%s11280_s2] ss:$0 sm:$0xff] }
 0x250   : > { %v2078_v52 = vsel %vm2051_vm2, %v2045_v44, %v1778_v13 }
 0x251   : > { %6683 = vmatprep.mubr.msk.f32.mxu0 %vm2096_vm10, %v2078_v52  ;;  %7226 = vrot.lane.b32.xlu1 %v7225_v55, %s7806_s13  ;;  %v7784_v52 = vld [vmem:[#allocation2 + $0x158] sm:$0xff] }
 0x252   : > { %7221 = vrot.lane.b32.xlu0 %v7220_v11, %s7804_s29 }
 0x253   : > { %v1780_v7 = vpop.permute.xlu0 %1779  ;;  %v888_v33 = vpop.permute.xlu1 %887 }
 0x254   : > { %v2079_v34 = vsel %vm2051_vm2, %v2046_v3, %v1780_v7  ;;  %v1850_v11 = vsel %vm419_vm0, %v7784_v52, %v888_v33 }
 0x255   : > { %6684 = vmatmul.mubr.msk.f32.gmra.mrb[26].mxu0 %vm2096_vm10, %v2079_v34  ;;  %7236 = vrot.lane.b32.xlu1 %v7235_v27, %s7804_s29  ;;  %v9461_v56 = vld [vmem:[#allocation3 + $0xb1] sm:$0xff] }
 0x256   : > { %7231 = vrot.lane.b32.xlu0 %v7230_v17, %s7807_s20  ;;  %v9442_v32 = vld [vmem:[#allocation3 + $0xa8] sm:$0xff]  ;;  %v9464_v18 = vld [vmem:[#allocation3 + $0xb0] sm:$0xff]  ;;  %v7275_v60 = vpack.i.bf16 %v2744_v16, %v9461_v56 }
 0x257   : > { %v1014_v45 = vpop.permute.xlu0 %1013  ;;  %v1016_v25 = vpop.permute.xlu1 %1015  ;;  %v7255_v63 = vpack.i.bf16 %v9409_v57, %v9442_v32  ;;  %v9455_v2 = vld [vmem:[#allocation3 + $0xa9] sm:$0xff]  ;;  %v7270_v15 = vpack.i.bf16 %v9423_v14, %v9464_v18 }
 0x258   : > { %v7260_v8 = vpack.i.bf16 %v2743_v10, %v9455_v2  ;;  %v9471_v21 = vld [vmem:[#allocation3 + $0xaa] sm:$0xff]  ;;  %v7782_v10 = vld [vmem:[#allocation2 + $0x150] sm:$0xff]  ;;  %v1883_v30 = vsel %vm1853_vm4, %v1850_v11, %v1016_v25 }
 0x259   : > { %7246 = vrot.lane.b32.xlu1 %v7245_v39, %s7807_s20  ;;  %v7280_v59 = vpack.i.bf16 %v2775_v47, %v9471_v21  ;;  %v1849_v5 = vsel %vm419_vm0, %v7782_v10, %v886_v49 }
 0x25a   : > { %7241 = vrot.lane.b32.xlu0 %v7240_v19, %s7806_s13  ;;  %v1882_v41 = vsel %vm1853_vm4, %v1849_v5, %v1014_v45 }
 0x25b   : > { %v1142_v58 = vpop.permute.xlu0 %1141  ;;  %v1144_v35 = vpop.permute.xlu1 %1143 }
 0x25c   : > { %v1915_v43 = vsel %vm1886_vm5, %v1882_v41, %v1142_v58  ;;  %v1916_v7 = vsel %vm1886_vm5, %v1883_v30, %v1144_v35 }
 0x25d   : > { %7256 = vrot.lane.b32.xlu1 %v7255_v63, %s7806_s13 }
 0x25e   : > { %7251 = vrot.lane.b32.xlu0 %v7250_v29, %s7804_s29 }
 0x25f   : > { %v1270_v50 = vpop.permute.xlu0 %1269  ;;  %v1272_v54 = vpop.permute.xlu1 %1271 }
 0x260   : > { %v1948_v49 = vsel %vm1919_vm6, %v1915_v43, %v1270_v50  ;;  %v1949_v16 = vsel %vm1919_vm6, %v1916_v7, %v1272_v54 }
 0x261   : > { %7266 = vrot.lane.b32.xlu1 %v7265_v4, %s7804_s29 }
 0x262   : > { %7261 = vrot.lane.b32.xlu0 %v7260_v8, %s7807_s20 }
 0x263   : > { %v1398_v1 = vpop.permute.xlu0 %1397  ;;  %v1400_v53 = vpop.permute.xlu1 %1399 }
 0x264   : > { %v1981_v28 = vsel %vm1952_vm7, %v1948_v49, %v1398_v1  ;;  %v1982_v45 = vsel %vm1952_vm7, %v1949_v16, %v1400_v53  ;;  %v9511_v1 = vld [vmem:[#allocation3 + $0xb2] sm:$0xff] }
 0x265   : > { %7276 = vrot.lane.b32.xlu1 %v7275_v60, %s7807_s20 }
 0x266   : > { %7271 = vrot.lane.b32.xlu0 %v7270_v15, %s7806_s13 }
 0x267   : > { %v1526_v9 = vpop.permute.xlu0 %1525  ;;  %v1528_v20 = vpop.permute.xlu1 %1527 }
 0x268   : > { %v2014_v3 = vsel %vm1985_vm8, %v1981_v28, %v1526_v9  ;;  %v2015_v25 = vsel %vm1985_vm8, %v1982_v45, %v1528_v20  ;;  %v7295_v9 = vpack.i.bf16 %v9435_v36, %v9511_v1 }
 0x269   : > { %v6667_v6 = vpop.f32.mrb[14].mxu0 }
 0x26a   : > { %v2339_v37 = vadd.f32 %v9480_v12, %v6667_v6  ;;  %v2333_v46 = vpop.f32.mrb[15].mxu0  ;;  %7281 = vrot.lane.b32.xlu0 %v7280_v59, %s7804_s29 }
 0x26b   : > { %v2334_v44 = vadd.f32 %v9480_v12, %v2333_v46  ;;  %v1654_v13 = vpop.permute.xlu0 %1653  ;;  %v1656_v55 = vpop.permute.xlu1 %1655 }
 0x26c   : > { %v2437_v24 = vmax.f32 %v2339_v37, 0.0  ;;  %v2047_v27 = vsel %vm2018_vm9, %v2014_v3, %v1654_v13  ;;  %v2048_v39 = vsel %vm2018_vm9, %v2015_v25, %v1656_v55  ;;  %v7786_v55 = vld [vmem:[#allocation2 + $0x170] sm:$0xff] }
 0x26d   : > { %v2436_v47 = vmax.f32 %v2334_v44, 0.0  ;;  %v7785_v44 = vld [vmem:[#allocation2 + $0x168] sm:$0xff] }
 0x26e   : > { %2525 = vst.msk [vmem:[#allocation3 + $0xc9] sm:$0xff] %vm2051_vm2, %v2437_v24 }
 0x26f   : > { %2524 = vst.msk [vmem:[#allocation3 + $0xc1] sm:$0xff] %vm2051_vm2, %v2436_v47  ;;  %v1782_v34 = vpop.permute.xlu0 %1781  ;;  %v890_v17 = vpop.permute.xlu1 %889 }
 0x270   : > { %v2080_v33 = vsel %vm2051_vm2, %v2047_v27, %v1782_v34  ;;  %v1851_v13 = vsel %vm419_vm0, %v7785_v44, %v890_v17 }
 0x271   : > { %6686 = vmatprep.mubr.msk.f32.mxu0 %vm2096_vm10, %v2080_v33 }
 0x273   : > { %v1784_v19 = vpop.permute.xlu0 %1783  ;;  %v892_v58 = vpop.permute.xlu1 %891 }
 0x274   : > { %v2081_v35 = vsel %vm2051_vm2, %v2048_v39, %v1784_v19  ;;  %v1852_v49 = vsel %vm419_vm0, %v7786_v55, %v892_v58 }
 0x275   : > { %6687 = vmatmul.mubr.msk.f32.gmra.mrb[28].mxu0 %vm2096_vm10, %v2081_v35  ;;  %v9521_v59 = vld [vmem:[#allocation3 + $0xc9] sm:$0xff] }
 0x276   : > { %v9503_v63 = vld [vmem:[#allocation3 + $0xc0] sm:$0xff]  ;;  %v9513_v53 = vld [vmem:[#allocation3 + $0xc8] sm:$0xff]  ;;  %v7305_v6 = vpack.i.bf16 %v9464_v18, %v9521_v59 }
 0x277   : > { %v9505_v29 = vld [vmem:[#allocation3 + $0xc1] sm:$0xff]  ;;  %v1018_v50 = vpop.permute.xlu0 %1017  ;;  %v1020_v54 = vpop.permute.xlu1 %1019  ;;  %v7285_v4 = vpack.i.bf16 %v9445_v42, %v9503_v63  ;;  %v7300_v20 = vpack.i.bf16 %v9452_v61, %v9513_v53  ;;  %v9572_v55 = vld [vmem:[#allocation3 + $0xca] sm:$0xff] }
 0x278   : > { %v7290_v8 = vpack.i.bf16 %v9442_v32, %v9505_v29  ;;  %v9523_v10 = vld [vmem:[#allocation3 + $0xc2] sm:$0xff]  ;;  %v1884_v18 = vsel %vm1853_vm4, %v1851_v13, %v1018_v50  ;;  %v1885_v52 = vsel %vm1853_vm4, %v1852_v49, %v1020_v54 }
 0x279   : > { %7286 = vrot.lane.b32.xlu1 %v7285_v4, %s7806_s13  ;;  %v7310_v41 = vpack.i.bf16 %v9455_v2, %v9523_v10 }
 0x27a   : > { %7291 = vrot.lane.b32.xlu0 %v7290_v8, %s7807_s20 }
 0x27b   : > { %v1146_v60 = vpop.permute.xlu0 %1145  ;;  %v1148_v15 = vpop.permute.xlu1 %1147 }
 0x27c   : > { %v1917_v28 = vsel %vm1886_vm5, %v1884_v18, %v1146_v60  ;;  %v1918_v47 = vsel %vm1886_vm5, %v1885_v52, %v1148_v15  ;;  %v2542_v15 = vld [vmem:[#allocation3] sm:$0xff] }
 0x27d   : > { %7296 = vrot.lane.b32.xlu1 %v7295_v9, %s7804_s29 }
 0x27e   : > { %7301 = vrot.lane.b32.xlu0 %v7300_v20, %s7806_s13 }
 0x27f   : > { %v1274_v32 = vpop.permute.xlu0 %1273  ;;  %v1276_v5 = vpop.permute.xlu1 %1275 }
 0x280   : > { %v1950_v27 = vsel %vm1919_vm6, %v1917_v28, %v1274_v32  ;;  %v1951_v34 = vsel %vm1919_vm6, %v1918_v47, %v1276_v5  ;;  %v7325_v47 = vpack.i.bf16 %v9461_v56, %v9572_v55 }
 0x281   : > { %7306 = vrot.lane.b32.xlu1 %v7305_v6, %s7807_s20 }
 0x282   : > { %7311 = vrot.lane.b32.xlu0 %v7310_v41, %s7804_s29 }
 0x283   : > { %v1402_v36 = vpop.permute.xlu0 %1401  ;;  %v1404_v37 = vpop.permute.xlu1 %1403 }
 0x284   : > { %v1983_v16 = vsel %vm1952_vm7, %v1950_v27, %v1402_v36  ;;  %v1984_v33 = vsel %vm1952_vm7, %v1951_v34, %v1404_v37 }
 0x287   : > { %v1530_v46 = vpop.permute.xlu0 %1529  ;;  %v1532_v43 = vpop.permute.xlu1 %1531 }
 0x288   : > { %v2016_v25 = vsel %vm1985_vm8, %v1983_v16, %v1530_v46  ;;  %v2017_v39 = vsel %vm1985_vm8, %v1984_v33, %v1532_v43 }
 0x289   : > { %v6670_v24 = vpop.f32.mrb[16].mxu0 }
 0x28a   : > { %v2349_v2 = vadd.f32 %v9480_v12, %v6670_v24  ;;  %v2343_v11 = vpop.f32.mrb[17].mxu0 }
 0x28b   : > { %v2344_v30 = vadd.f32 %v9480_v12, %v2343_v11  ;;  %v1658_v3 = vpop.permute.xlu0 %1657  ;;  %v1660_v7 = vpop.permute.xlu1 %1659 }
 0x28c   : > { %v2439_v17 = vmax.f32 %v2349_v2, 0.0  ;;  %v2049_v19 = vsel %vm2018_vm9, %v2016_v25, %v1658_v3  ;;  %v2050_v58 = vsel %vm2018_vm9, %v2017_v39, %v1660_v7  ;;  %v2543_v2 = vld [vmem:[#allocation3 + $0x8] sm:$0xff] }
 0x28d   : > { %v2438_v45 = vmax.f32 %v2344_v30, 0.0 }
 0x28e   : > { %2527 = vst.msk [vmem:[#allocation3 + $0xe1] sm:$0xff] %vm2051_vm2, %v2439_v17 }
 0x28f   : > { %2526 = vst.msk [vmem:[#allocation3 + $0xd9] sm:$0xff] %vm2051_vm2, %v2438_v45  ;;  %v1786_v35 = vpop.permute.xlu0 %1785  ;;  %v1788_v50 = vpop.permute.xlu1 %1787 }
 0x290   : > { %v2082_v54 = vsel %vm2051_vm2, %v2049_v19, %v1786_v35  ;;  %v2083_v4 = vsel %vm2051_vm2, %v2050_v58, %v1788_v50 }
 0x291   : > { %6689 = vmatprep.mubr.msk.f32.mxu0 %vm2096_vm10, %v2082_v54  ;;  %v2672_v54 = vld [vmem:[#allocation3 + $0x31] sm:$0xff] }
 0x292   : > { %6690 = vmatmul.mubr.msk.f32.gmra.mrb[30].mxu0 %vm2096_vm10, %v2083_v4 }
 0x293   : > { %v7102_v8 = vpop.permute.xlu0 %7101  ;;  %6700 = vmatprep.mubr.msk.f32.mxu0 %vm2051_vm2, %v9296_v38  ;;  %v7107_v60 = vpop.permute.xlu1 %7106 }
 0x294   : > { %v7104_v9 = vunpack.i.h.bf16 %v7102_v8  ;;  %v7103_v20 = vunpack.i.l.bf16 %v7102_v8  ;;  %v7109_v32 = vunpack.i.h.bf16 %v7107_v60  ;;  %v7108_v5 = vunpack.i.l.bf16 %v7107_v60 }
 0x295   : > { %v9590_v34 = vld [vmem:[#allocation3 + $0xe1] sm:$0xff] }
 0x296   : > { %6701 = vmatmul.mubr.msk.f32.vlgmr.msra.gmra.mrb[32].mxu0 %vm2051_vm2, %v9314_v62  ;;  %v9559_v6 = vld [vmem:[#allocation3 + $0xd8] sm:$0xff]  ;;  %v3697_v36 = vsel %vm2051_vm2, %v9306_v51, %v7103_v20  ;;  %v3599_v37 = vsel %vm2051_vm2, %v2542_v15, %v7104_v9  ;;  %v9574_v49 = vld [vmem:[#allocation3 + $0xe0] sm:$0xff]  ;;  %v7335_v19 = vpack.i.bf16 %v9513_v53, %v9590_v34 }
 0x297   : > { %v9561_v41 = vld [vmem:[#allocation3 + $0xd9] sm:$0xff]  ;;  %6703 = vmatprep.mubr.msk.f32.mxu0 %vm2051_vm2, %v9353_v22  ;;  %v7112_v38 = vpop.permute.xlu0 %7111  ;;  %v7117_v46 = vpop.permute.xlu1 %7116  ;;  %v7315_v43 = vpack.i.bf16 %v9471_v21, %v9559_v6  ;;  %v3729_v22 = vsel %vm3631_vm12, %v3697_v36, %v7108_v5  ;;  %v3632_v18 = vsel %vm3631_vm12, %v3599_v37, %v7109_v32  ;;  %v7330_v30 = vpack.i.bf16 %v9511_v1, %v9574_v49 }
 0x298   : > { %v7320_v62 = vpack.i.bf16 %v9503_v63, %v9561_v41  ;;  %v7114_v44 = vunpack.i.h.bf16 %v7112_v38  ;;  %v7113_v13 = vunpack.i.l.bf16 %v7112_v38  ;;  %v7119_v51 = vunpack.i.h.bf16 %v7117_v46  ;;  %v9592_v17 = vld [vmem:[#allocation3 + $0xda] sm:$0xff] }
 0x299   : > { %v7118_v24 = vunpack.i.l.bf16 %v7117_v46  ;;  %7316 = vrot.lane.b32.xlu1 %v7315_v43, %s7806_s13  ;;  %v2544_v53 = vld [vmem:[#allocation3 + $0x18] sm:$0xff] }
 0x29a   : > { %7321 = vrot.lane.b32.xlu0 %v7320_v62, %s7807_s20  ;;  %6704 = vmatmul.mubr.msk.f32.gmra.mrb[34].mxu0 %vm2051_vm2, %v9359_v40  ;;  %v3761_v63 = vsel %vm3664_vm13, %v3729_v22, %v7113_v13  ;;  %v3665_v52 = vsel %vm3664_vm13, %v3632_v18, %v7114_v44  ;;  %v3600_v56 = vsel %vm2051_vm2, %v2543_v2, %v7119_v51  ;;  %v2545_v51 = vld [vmem:[#allocation3 + $0x20] sm:$0xff] }
 0x29b   : > { %6706 = vmatprep.mubr.msk.f32.mxu0 %vm2051_vm2, %v9378_v31  ;;  %v7122_v11 = vpop.permute.xlu0 %7121  ;;  %v7127_v28 = vpop.permute.xlu1 %7126  ;;  %3996 = vmatprep.mubr.f32.mxu1 %v3761_v63  ;;  %v3698_v31 = vsel %vm2051_vm2, %v9328_v23, %v7118_v24  ;;  %v7340_v23 = vpack.i.bf16 %v9505_v29, %v9592_v17 }
 0x29c   : > { %v7124_v3 = vunpack.i.h.bf16 %v7122_v11  ;;  %v7123_v7 = vunpack.i.l.bf16 %v7122_v11  ;;  %v7129_v40 = vunpack.i.h.bf16 %v7127_v28  ;;  %v7128_v27 = vunpack.i.l.bf16 %v7127_v28  ;;  %3997 = vmatmul.mubr.f32.vlgmr.msra.gmra.mrb[0].mxu1 %v3665_v52 }
 0x29d   : > { %7326 = vrot.lane.b32.xlu1 %v7325_v47, %s7804_s29 }
 0x29e   : > { %7331 = vrot.lane.b32.xlu0 %v7330_v30, %s7806_s13  ;;  %6707 = vmatmul.mubr.msk.f32.gmra.mrb[36].mxu0 %vm2051_vm2, %v9385_v48  ;;  %v3730_v16 = vsel %vm3631_vm12, %v3698_v31, %v7123_v7  ;;  %v3633_v33 = vsel %vm3631_vm12, %v3600_v56, %v7124_v3  ;;  %v2674_v56 = vld [vmem:[#allocation3 + $0x49] sm:$0xff] }
 0x29f   : > { %6709 = vmatprep.mubr.msk.f32.mxu0 %vm2051_vm2, %v9409_v57  ;;  %v7137_v45 = vpop.permute.xlu1 %7136  ;;  %v7132_v25 = vpop.permute.xlu0 %7131  ;;  %v3762_v39 = vsel %vm3664_vm13, %v3730_v16, %v7128_v27  ;;  %v3666_v58 = vsel %vm3664_vm13, %v3633_v33, %v7129_v40  ;;  %v2546_v16 = vld [vmem:[#allocation3 + $0x30] sm:$0xff] }
 0x2a0   : > { %v7134_v48 = vunpack.i.h.bf16 %v7132_v25  ;;  %v7133_v35 = vunpack.i.l.bf16 %v7132_v25  ;;  %4001 = vmatprep.mubr.f32.mxu1 %v3762_v39  ;;  %v7139_v57 = vunpack.i.h.bf16 %v7137_v45  ;;  %v7138_v50 = vunpack.i.l.bf16 %v7137_v45 }
 0x2a1   : > { %7336 = vrot.lane.b32.xlu1 %v7335_v19, %s7807_s20  ;;  %4002 = vmatmul.mubr.f32.gmra.mrb[2].mxu1 %v3666_v58  ;;  %v9647_v58 = vld [vmem:[#allocation3 + $0xe2] sm:$0xff] }
 0x2a2   : > { %7341 = vrot.lane.b32.xlu0 %v7340_v23, %s7804_s29  ;;  %6710 = vmatmul.mubr.msk.f32.gmra.mrb[38].mxu0 %vm2051_vm2, %v9423_v14  ;;  %v3699_v4 = vsel %vm2051_vm2, %v2672_v54, %v7133_v35  ;;  %v3601_v8 = vsel %vm2051_vm2, %v2544_v53, %v7134_v48 }
 0x2a3   : > { %6712 = vmatprep.mubr.msk.f32.mxu0 %vm2051_vm2, %v9445_v42  ;;  %v7147_v29 = vpop.permute.xlu1 %7146  ;;  %v3731_v14 = vsel %vm3631_vm12, %v3699_v4, %v7138_v50  ;;  %v3634_v5 = vsel %vm3631_vm12, %v3601_v8, %v7139_v57 }
 0x2a4   : > { %v7142_v60 = vpop.permute.xlu0 %7141  ;;  %v7149_v20 = vunpack.i.h.bf16 %v7147_v29  ;;  %v7148_v32 = vunpack.i.l.bf16 %v7147_v29 }
 0x2a5   : > { %v7144_v15 = vunpack.i.h.bf16 %v7142_v60  ;;  %v7143_v9 = vunpack.i.l.bf16 %v7142_v60 }
 0x2a6   : > { %6713 = vmatmul.mubr.msk.f32.gmra.mrb[40].mxu0 %vm2051_vm2, %v9452_v61  ;;  %v2673_v61 = vld [vmem:[#allocation3 + $0x39] sm:$0xff]  ;;  %v3602_v18 = vsel %vm2051_vm2, %v2545_v51, %v7149_v20  ;;  %v2675_v20 = vld [vmem:[#allocation3 + $0x51] sm:$0xff] }
 0x2a7   : > { %6715 = vmatprep.mubr.msk.f32.mxu0 %vm2051_vm2, %v9471_v21  ;;  %v7157_v42 = vpop.permute.xlu1 %7156  ;;  %v3763_v36 = vsel %vm3664_vm13, %v3731_v14, %v7143_v9  ;;  %v3667_v37 = vsel %vm3664_vm13, %v3634_v5, %v7144_v15  ;;  %v3700_v21 = vsel %vm2051_vm2, %v2673_v61, %v7148_v32  ;;  %v2547_v32 = vld [vmem:[#allocation3 + $0x38] sm:$0xff] }
 0x2a8   : > { %v7158_v38 = vunpack.i.l.bf16 %v7157_v42  ;;  %v7152_v46 = vpop.permute.xlu0 %7151  ;;  %4006 = vmatprep.mubr.f32.mxu1 %v3763_v36  ;;  %v7159_v43 = vunpack.i.h.bf16 %v7157_v42 }
 0x2a9   : > { %v7154_v62 = vunpack.i.h.bf16 %v7152_v46  ;;  %v7153_v44 = vunpack.i.l.bf16 %v7152_v46  ;;  %v6673_v13 = vpop.f32.mrb[18].mxu0  ;;  %4007 = vmatmul.mubr.f32.gmra.mrb[4].mxu1 %v3667_v37 }
 0x2aa   : > { %v2359_v24 = vadd.f32 %v9480_v12, %v6673_v13  ;;  %v2353_v22 = vpop.f32.mrb[19].mxu0  ;;  %6716 = vmatmul.mubr.msk.f32.gmra.mrb[42].mxu0 %vm2051_vm2, %v9511_v1 }
 0x2ab   : > { %v2354_v63 = vadd.f32 %v9480_v12, %v2353_v22  ;;  %6718 = vmatprep.mubr.msk.f32.mxu0 %vm2051_vm2, %v9523_v10  ;;  %v7167_v52 = vpop.permute.xlu1 %7166  ;;  %v3732_v2 = vsel %vm3631_vm12, %v3700_v21, %v7153_v44  ;;  %v3635_v11 = vsel %vm3631_vm12, %v3602_v18, %v7154_v62 }
 0x2ac   : > { %v2441_v28 = vmax.f32 %v2359_v24, 0.0  ;;  %v7162_v47 = vpop.permute.xlu0 %7161  ;;  %v3764_v30 = vsel %vm3664_vm13, %v3732_v2, %v7158_v38  ;;  %v3668_v40 = vsel %vm3664_vm13, %v3635_v11, %v7159_v43  ;;  %v7169_v27 = vunpack.i.h.bf16 %v7167_v52 }
 0x2ad   : > { %v2440_v3 = vmax.f32 %v2354_v63, 0.0  ;;  %v7164_v1 = vunpack.i.h.bf16 %v7162_v47  ;;  %v7163_v7 = vunpack.i.l.bf16 %v7162_v47  ;;  %4011 = vmatprep.mubr.f32.mxu1 %v3764_v30  ;;  %v7168_v31 = vunpack.i.l.bf16 %v7167_v52  ;;  %v2676_v63 = vld [vmem:[#allocation3 + $0x61] sm:$0xff] }
 0x2ae   : > { %2529 = vst.msk [vmem:[#allocation3 + $0xf9] sm:$0xff] %vm2051_vm2, %v2441_v28  ;;  %4012 = vmatmul.mubr.f32.gmra.mrb[6].mxu1 %v3668_v40  ;;  %6719 = vmatmul.mubr.msk.f32.gmra.mrb[44].mxu0 %vm2051_vm2, %v9572_v55  ;;  %v2548_v52 = vld [vmem:[#allocation3 + $0x48] sm:$0xff]  ;;  %v7355_v11 = vpack.i.bf16 %v9521_v59, %v9647_v58 }
 0x2af   : > { %2528 = vst.msk [vmem:[#allocation3 + $0xf1] sm:$0xff] %vm2051_vm2, %v2440_v3  ;;  %6721 = vmatprep.mubr.msk.f32.mxu0 %vm2051_vm2, %v9592_v17  ;;  %v7177_v33 = vpop.permute.xlu1 %7176  ;;  %v3701_v45 = vsel %vm2051_vm2, %v2674_v56, %v7163_v7  ;;  %v3603_v25 = vsel %vm2051_vm2, %v2546_v16, %v7164_v1 }
 0x2b0   : > { %v7172_v39 = vpop.permute.xlu0 %7171  ;;  %v7179_v48 = vunpack.i.h.bf16 %v7177_v33  ;;  %v7178_v35 = vunpack.i.l.bf16 %v7177_v33  ;;  %v3733_v57 = vsel %vm3631_vm12, %v3701_v45, %v7168_v31  ;;  %v3636_v50 = vsel %vm3631_vm12, %v3603_v25, %v7169_v27 }
 0x2b1   : > { %v7174_v19 = vunpack.i.h.bf16 %v7172_v39  ;;  %v7173_v23 = vunpack.i.l.bf16 %v7172_v39 }
 0x2b2   : > { %6722 = vmatmul.mubr.msk.f32.gmra.mrb[46].mxu0 %vm2051_vm2, %v9647_v58  ;;  %v3702_v36 = vsel %vm2051_vm2, %v2675_v20, %v7178_v35  ;;  %v3604_v37 = vsel %vm2051_vm2, %v2547_v32, %v7179_v48 }
 0x2b3   : > { %v7187_v54 = vpop.permute.xlu1 %7186  ;;  %v3765_v53 = vsel %vm3664_vm13, %v3733_v57, %v7173_v23  ;;  %v3669_v29 = vsel %vm3664_vm13, %v3636_v50, %v7174_v19  ;;  %v2677_v57 = vld [vmem:[#allocation3 + $0x69] sm:$0xff] }
 0x2b4   : > { %v7189_v4 = vunpack.i.h.bf16 %v7187_v54  ;;  %v7188_v8 = vunpack.i.l.bf16 %v7187_v54  ;;  %v7182_v60 = vpop.permute.xlu0 %7181  ;;  %4016 = vmatprep.mubr.f32.mxu1 %v3765_v53  ;;  %v2549_v50 = vld [vmem:[#allocation3 + $0x50] sm:$0xff] }
 0x2b5   : > { %v7184_v15 = vunpack.i.h.bf16 %v7182_v60  ;;  %v7183_v9 = vunpack.i.l.bf16 %v7182_v60  ;;  %4017 = vmatmul.mubr.f32.gmra.mrb[8].mxu1 %v3669_v29  ;;  %v9665_v38 = vld [vmem:[#allocation3 + $0xfa] sm:$0xff] }
 0x2b6   : > { %v9655_v14 = vld [vmem:[#allocation3 + $0xf2] sm:$0xff] }
 0x2b7   : > { %v9657_v5 = vld [vmem:[#allocation3 + $0xf0] sm:$0xff]  ;;  %6724 = vmatprep.mubr.msk.f32.mxu0 %vm2051_vm2, %v9655_v14  ;;  %v7197_v46 = vpop.permute.xlu1 %7196  ;;  %v3734_v44 = vsel %vm3631_vm12, %v3702_v36, %v7183_v9  ;;  %v3637_v13 = vsel %vm3631_vm12, %v3604_v37, %v7184_v15  ;;  %v9677_v22 = vld [vmem:[#allocation3 + $0xf8] sm:$0xff]  ;;  %v7370_v45 = vpack.i.bf16 %v9561_v41, %v9655_v14  ;;  %v2550_v37 = vld [vmem:[#allocation3 + $0x60] sm:$0xff] }
 0x2b8   : > { %v9659_v42 = vld [vmem:[#allocation3 + $0xf1] sm:$0xff]  ;;  %v7345_v43 = vpack.i.bf16 %v9523_v10, %v9657_v5  ;;  %6725 = vmatmul.mubr.msk.f32.gmra.mrb[48].mxu0 %vm2051_vm2, %v9665_v38  ;;  %v7192_v61 = vpop.permute.xlu0 %7191  ;;  %v3766_v51 = vsel %vm3664_vm13, %v3734_v44, %v7188_v8  ;;  %v3670_v24 = vsel %vm3664_vm13, %v3637_v13, %v7189_v4  ;;  %v7199_v10 = vunpack.i.h.bf16 %v7197_v46  ;;  %v9687_v1 = vld [vmem:[#allocation3 + $0xf9] sm:$0xff] }
 0x2b9   : > { %v7350_v62 = vpack.i.bf16 %v9559_v6, %v9659_v42  ;;  %v7194_v21 = vunpack.i.h.bf16 %v7192_v61  ;;  %v7193_v18 = vunpack.i.l.bf16 %v7192_v61  ;;  %v7198_v6 = vunpack.i.l.bf16 %v7197_v46  ;;  %4021 = vmatprep.mubr.f32.mxu1 %v3766_v51  ;;  %v2678_v36 = vld [vmem:[#allocation3 + $0x79] sm:$0xff] }
 0x2ba   : > { %7346 = vrot.lane.b32.xlu1 %v7345_v43, %s7806_s13  ;;  %4022 = vmatmul.mubr.f32.gmra.mrb[10].mxu1 %v3670_v24  ;;  %v7360_v28 = vpack.i.bf16 %v9572_v55, %v9677_v22  ;;  %v7365_v33 = vpack.i.bf16 %v9574_v49, %v9687_v1 }
 0x2bb   : > { %7351 = vrot.lane.b32.xlu0 %v7350_v62, %s7807_s20  ;;  %v7207_v2 = vpop.permute.xlu1 %7206  ;;  %v3703_v47 = vsel %vm2051_vm2, %v2676_v63, %v7193_v18  ;;  %v3605_v30 = vsel %vm2051_vm2, %v2548_v52, %v7194_v21 }
 0x2bc   : > { %v7202_v3 = vpop.permute.xlu0 %7201  ;;  %v7209_v27 = vunpack.i.h.bf16 %v7207_v2  ;;  %v7208_v31 = vunpack.i.l.bf16 %v7207_v2  ;;  %v3735_v59 = vsel %vm3631_vm12, %v3703_v47, %v7198_v6  ;;  %v3638_v56 = vsel %vm3631_vm12, %v3605_v30, %v7199_v10 }
 0x2bd   : > { %v7204_v7 = vunpack.i.h.bf16 %v7202_v3  ;;  %v7203_v40 = vunpack.i.l.bf16 %v7202_v3 }
 0x2be   : > { %7356 = vrot.lane.b32.xlu1 %v7355_v11, %s7804_s29  ;;  %v3704_v49 = vsel %vm2051_vm2, %v2677_v57, %v7208_v31  ;;  %v3606_v54 = vsel %vm2051_vm2, %v2549_v50, %v7209_v27 }
 0x2bf   : > { %7361 = vrot.lane.b32.xlu0 %v7360_v28, %s7806_s13  ;;  %v7217_v55 = vpop.permute.xlu1 %7216  ;;  %v3767_v16 = vsel %vm3664_vm13, %v3735_v59, %v7203_v40  ;;  %v3671_v25 = vsel %vm3664_vm13, %v3638_v56, %v7204_v7  ;;  %v2679_v59 = vld [vmem:[#allocation3 + $0x81] sm:$0xff] }
 0x2c0   : > { %v7219_v39 = vunpack.i.h.bf16 %v7217_v55  ;;  %v7218_v19 = vunpack.i.l.bf16 %v7217_v55  ;;  %v7212_v23 = vpop.permute.xlu0 %7211  ;;  %4026 = vmatprep.mubr.f32.mxu1 %v3767_v16  ;;  %v2551_v56 = vld [vmem:[#allocation3 + $0x68] sm:$0xff] }
 0x2c1   : > { %v7214_v48 = vunpack.i.h.bf16 %v7212_v23  ;;  %v7213_v35 = vunpack.i.l.bf16 %v7212_v23  ;;  %4027 = vmatmul.mubr.f32.gmra.mrb[12].mxu1 %v3671_v25 }
 0x2c2   : > { %7366 = vrot.lane.b32.xlu1 %v7365_v33, %s7807_s20 }
 0x2c3   : > { %7371 = vrot.lane.b32.xlu0 %v7370_v45, %s7804_s29  ;;  %v7227_v41 = vpop.permute.xlu1 %7226  ;;  %v3736_v53 = vsel %vm3631_vm12, %v3704_v49, %v7213_v35  ;;  %v3639_v29 = vsel %vm3631_vm12, %v3606_v54, %v7214_v48  ;;  %v2680_v49 = vld [vmem:[#allocation3 + $0x91] sm:$0xff] }
 0x2c4   : > { %v7222_v4 = vpop.permute.xlu0 %7221  ;;  %v3768_v8 = vsel %vm3664_vm13, %v3736_v53, %v7218_v19  ;;  %v3672_v60 = vsel %vm3664_vm13, %v3639_v29, %v7219_v39  ;;  %v7229_v20 = vunpack.i.h.bf16 %v7227_v41  ;;  %v7228_v32 = vunpack.i.l.bf16 %v7227_v41  ;;  %v2552_v54 = vld [vmem:[#allocation3 + $0x78] sm:$0xff] }
 0x2c5   : > { %v7224_v15 = vunpack.i.h.bf16 %v7222_v4  ;;  %v7223_v9 = vunpack.i.l.bf16 %v7222_v4  ;;  %4031 = vmatprep.mubr.f32.mxu1 %v3768_v8 }
 0x2c6   : > { %4032 = vmatmul.mubr.f32.gmra.mrb[14].mxu1 %v3672_v60 }
 0x2c7   : > { %v7237_v46 = vpop.permute.xlu1 %7236  ;;  %v3705_v43 = vsel %vm2051_vm2, %v2678_v36, %v7223_v9  ;;  %v3607_v62 = vsel %vm2051_vm2, %v2550_v37, %v7224_v15 }
 0x2c8   : > { %v7232_v44 = vpop.permute.xlu0 %7231  ;;  %v7239_v13 = vunpack.i.h.bf16 %v7237_v46  ;;  %v7238_v21 = vunpack.i.l.bf16 %v7237_v46  ;;  %v3737_v6 = vsel %vm3631_vm12, %v3705_v43, %v7228_v32  ;;  %v3640_v63 = vsel %vm3631_vm12, %v3607_v62, %v7229_v20 }
 0x2c9   : > { %v7234_v61 = vunpack.i.h.bf16 %v7232_v44  ;;  %v7233_v51 = vunpack.i.l.bf16 %v7232_v44  ;;  %v6676_v24 = vpop.f32.mrb[20].mxu0 }
 0x2ca   : > { %v2369_v18 = vadd.f32 %v9480_v12, %v6676_v24  ;;  %v2363_v10 = vpop.f32.mrb[21].mxu0  ;;  %v3706_v55 = vsel %vm2051_vm2, %v2679_v59, %v7238_v21  ;;  %v3608_v16 = vsel %vm2051_vm2, %v2551_v56, %v7239_v13 }
 0x2cb   : > { %v2364_v52 = vadd.f32 %v9480_v12, %v2363_v10  ;;  %v7247_v2 = vpop.permute.xlu1 %7246  ;;  %v3769_v11 = vsel %vm3664_vm13, %v3737_v6, %v7233_v51  ;;  %v3673_v28 = vsel %vm3664_vm13, %v3640_v63, %v7234_v61 }
 0x2cc   : > { %v2443_v47 = vmax.f32 %v2369_v18, 0.0  ;;  %v7249_v30 = vunpack.i.h.bf16 %v7247_v2  ;;  %v7248_v3 = vunpack.i.l.bf16 %v7247_v2  ;;  %v7242_v7 = vpop.permute.xlu0 %7241  ;;  %4036 = vmatprep.mubr.f32.mxu1 %v3769_v11 }
 0x2cd   : > { %v2442_v40 = vmax.f32 %v2364_v52, 0.0  ;;  %v7244_v27 = vunpack.i.h.bf16 %v7242_v7  ;;  %v7243_v31 = vunpack.i.l.bf16 %v7242_v7  ;;  %4037 = vmatmul.mubr.f32.gmra.mrb[16].mxu1 %v3673_v28  ;;  %v2553_v52 = vld [vmem:[#allocation3 + $0x80] sm:$0xff]  ;;  %v7385_v28 = vpack.i.bf16 %v9590_v34, %v9665_v38 }
 0x2ce   : > { %2531 = vst.msk [vmem:[#allocation3 + $0x111] sm:$0xff] %vm2051_vm2, %v2443_v47 }
 0x2cf   : > { %2530 = vst.msk [vmem:[#allocation3 + $0x109] sm:$0xff] %vm2051_vm2, %v2442_v40  ;;  %v7257_v33 = vpop.permute.xlu1 %7256  ;;  %v3738_v45 = vsel %vm3631_vm12, %v3706_v55, %v7243_v31  ;;  %v3641_v25 = vsel %vm3631_vm12, %v3608_v16, %v7244_v27 }
 0x2d0   : > { %v7252_v39 = vpop.permute.xlu0 %7251  ;;  %v3770_v19 = vsel %vm3664_vm13, %v3738_v45, %v7248_v3  ;;  %v3674_v23 = vsel %vm3664_vm13, %v3641_v25, %v7249_v30  ;;  %v7259_v57 = vunpack.i.h.bf16 %v7257_v33  ;;  %v7258_v50 = vunpack.i.l.bf16 %v7257_v33 }
 0x2d1   : > { %v7254_v48 = vunpack.i.h.bf16 %v7252_v39  ;;  %v7253_v35 = vunpack.i.l.bf16 %v7252_v39  ;;  %4041 = vmatprep.mubr.f32.mxu1 %v3770_v19 }
 0x2d2   : > { %4042 = vmatmul.mubr.f32.gmra.mrb[18].mxu1 %v3674_v23 }
 0x2d3   : > { %v7267_v41 = vpop.permute.xlu1 %7266  ;;  %v3707_v53 = vsel %vm2051_vm2, %v2680_v49, %v7253_v35  ;;  %v3609_v29 = vsel %vm2051_vm2, %v2552_v54, %v7254_v48 }
 0x2d4   : > { %v7262_v4 = vpop.permute.xlu0 %7261  ;;  %v7269_v15 = vunpack.i.h.bf16 %v7267_v41  ;;  %v7268_v9 = vunpack.i.l.bf16 %v7267_v41  ;;  %v3739_v32 = vsel %vm3631_vm12, %v3707_v53, %v7258_v50  ;;  %v3642_v46 = vsel %vm3631_vm12, %v3609_v29, %v7259_v57  ;;  %v2682_v57 = vld [vmem:[#allocation3 + $0xa9] sm:$0xff] }
 0x2d5   : > { %v7264_v8 = vunpack.i.h.bf16 %v7262_v4  ;;  %v7263_v60 = vunpack.i.l.bf16 %v7262_v4  ;;  %v9735_v43 = vld [vmem:[#allocation3 + $0x112] sm:$0xff] }
 0x2d6   : > { %v9725_v20 = vld [vmem:[#allocation3 + $0x10a] sm:$0xff]  ;;  %v3610_v11 = vsel %vm2051_vm2, %v2553_v52, %v7269_v15 }
 0x2d7   : > { %v9728_v36 = vld [vmem:[#allocation3 + $0x108] sm:$0xff]  ;;  %6727 = vmatprep.mubr.msk.f32.mxu0 %vm2051_vm2, %v9725_v20  ;;  %v7277_v62 = vpop.permute.xlu1 %7276  ;;  %v3771_v44 = vsel %vm3664_vm13, %v3739_v32, %v7263_v60  ;;  %v3675_v51 = vsel %vm3664_vm13, %v3642_v46, %v7264_v8  ;;  %v9745_v10 = vld [vmem:[#allocation3 + $0x110] sm:$0xff] }
 0x2d8   : > { %v9730_v37 = vld [vmem:[#allocation3 + $0x109] sm:$0xff]  ;;  %v7375_v13 = vpack.i.bf16 %v9592_v17, %v9728_v36  ;;  %6728 = vmatmul.mubr.msk.f32.gmra.mrb[50].mxu0 %vm2051_vm2, %v9735_v43  ;;  %v7279_v24 = vunpack.i.h.bf16 %v7277_v62  ;;  %v7278_v21 = vunpack.i.l.bf16 %v7277_v62  ;;  %v7272_v18 = vpop.permute.xlu0 %7271  ;;  %4046 = vmatprep.mubr.f32.mxu1 %v3771_v44  ;;  %v2681_v17 = vld [vmem:[#allocation3 + $0x99] sm:$0xff]  ;;  %v7390_v47 = vpack.i.bf16 %v9647_v58, %v9745_v10  ;;  %v9759_v27 = vld [vmem:[#allocation3 + $0x111] sm:$0xff] }
 0x2d9   : > { %v7380_v61 = vpack.i.bf16 %v9657_v5, %v9730_v37  ;;  %v7274_v6 = vunpack.i.h.bf16 %v7272_v18  ;;  %v7273_v63 = vunpack.i.l.bf16 %v7272_v18  ;;  %4047 = vmatmul.mubr.f32.gmra.mrb[20].mxu1 %v3675_v51  ;;  %v3708_v2 = vsel %vm2051_vm2, %v2681_v17, %v7268_v9  ;;  %v2554_v50 = vld [vmem:[#allocation3 + $0x90] sm:$0xff] }
 0x2da   : > { %7376 = vrot.lane.b32.xlu1 %v7375_v13, %s7806_s13  ;;  %v7395_v31 = vpack.i.bf16 %v9677_v22, %v9759_v27  ;;  %v7400_v58 = vpack.i.bf16 %v9659_v42, %v9725_v20  ;;  %v2683_v13 = vld [vmem:[#allocation3 + $0xb1] sm:$0xff] }
 0x2db   : > { %7381 = vrot.lane.b32.xlu0 %v7380_v61, %s7807_s20  ;;  %v3740_v30 = vsel %vm3631_vm12, %v3708_v2, %v7273_v63  ;;  %v3643_v3 = vsel %vm3631_vm12, %v3610_v11, %v7274_v6  ;;  %v2555_v61 = vld [vmem:[#allocation3 + $0x98] sm:$0xff] }
 0x2dc   : > { %v3772_v7 = vsel %vm3664_vm13, %v3740_v30, %v7278_v21  ;;  %v3676_v40 = vsel %vm3664_vm13, %v3643_v3, %v7279_v24  ;;  %v7282_v59 = vpop.permute.xlu0 %7281 }
 0x2dd   : > { %4051 = vmatprep.mubr.f32.mxu1 %v3772_v7  ;;  %v7284_v56 = vunpack.i.h.bf16 %v7282_v59  ;;  %v7283_v55 = vunpack.i.l.bf16 %v7282_v59 }
 0x2de   : > { %7386 = vrot.lane.b32.xlu1 %v7385_v28, %s7804_s29  ;;  %4052 = vmatmul.mubr.f32.gmra.mrb[22].mxu1 %v3676_v40 }
 0x2df   : > { %7391 = vrot.lane.b32.xlu0 %v7390_v47, %s7806_s13  ;;  %v3709_v41 = vsel %vm2051_vm2, %v2682_v57, %v7283_v55  ;;  %v3611_v53 = vsel %vm2051_vm2, %v2554_v50, %v7284_v56 }
 0x2e2   : > { %7396 = vrot.lane.b32.xlu1 %v7395_v31, %s7807_s20  ;;  %v7415_v31 = vpack.i.bf16 %v9687_v1, %v9735_v43 }
 0x2e3   : > { %7401 = vrot.lane.b32.xlu0 %v7400_v58, %s7804_s29 }
 0x2e9   : > { %v6679_v16 = vpop.f32.mrb[22].mxu0 }
 0x2ea   : > { %v2379_v33 = vadd.f32 %v9480_v12, %v6679_v16  ;;  %v2373_v45 = vpop.f32.mrb[23].mxu0 }
 0x2eb   : > { %v2374_v25 = vadd.f32 %v9480_v12, %v2373_v45  ;;  %v7287_v39 = vpop.permute.xlu1 %7286 }
 0x2ec   : > { %v7292_v19 = vpop.permute.xlu0 %7291  ;;  %v2445_v23 = vmax.f32 %v2379_v33, 0.0  ;;  %v7289_v22 = vunpack.i.h.bf16 %v7287_v39  ;;  %v7288_v48 = vunpack.i.l.bf16 %v7287_v39 }
 0x2ed   : > { %v7294_v35 = vunpack.i.h.bf16 %v7292_v19  ;;  %v2444_v49 = vmax.f32 %v2374_v25, 0.0  ;;  %v7293_v54 = vunpack.i.l.bf16 %v7292_v19 }
 0x2ee   : > { %2533 = vst.msk [vmem:[#allocation3 + $0x129] sm:$0xff] %vm2051_vm2, %v2445_v23  ;;  %v3741_v29 = vsel %vm3631_vm12, %v3709_v41, %v7288_v48  ;;  %v3644_v4 = vsel %vm3631_vm12, %v3611_v53, %v7289_v22 }
 0x2ef   : > { %2532 = vst.msk [vmem:[#allocation3 + $0x121] sm:$0xff] %vm2051_vm2, %v2444_v49  ;;  %v7297_v8 = vpop.permute.xlu1 %7296  ;;  %v3773_v15 = vsel %vm3664_vm13, %v3741_v29, %v7293_v54  ;;  %v3677_v9 = vsel %vm3664_vm13, %v3644_v4, %v7294_v35  ;;  %v2684_v49 = vld [vmem:[#allocation3 + $0xc1] sm:$0xff] }
 0x2f0   : > { %v7302_v60 = vpop.permute.xlu0 %7301  ;;  %v7299_v32 = vunpack.i.h.bf16 %v7297_v8  ;;  %v7298_v46 = vunpack.i.l.bf16 %v7297_v8  ;;  %4056 = vmatprep.mubr.f32.mxu1 %v3773_v15  ;;  %v2556_v54 = vld [vmem:[#allocation3 + $0xa8] sm:$0xff] }
 0x2f1   : > { %v7304_v62 = vunpack.i.h.bf16 %v7302_v60  ;;  %v7303_v44 = vunpack.i.l.bf16 %v7302_v60  ;;  %4057 = vmatmul.mubr.f32.gmra.mrb[24].mxu1 %v3677_v9 }
 0x2f2   : > { %v3710_v51 = vsel %vm2051_vm2, %v2683_v13, %v7298_v46  ;;  %v3612_v24 = vsel %vm2051_vm2, %v2555_v61, %v7299_v32  ;;  %v2685_v13 = vld [vmem:[#allocation3 + $0xc9] sm:$0xff] }
 0x2f3   : > { %v7307_v21 = vpop.permute.xlu1 %7306  ;;  %v3742_v63 = vsel %vm3631_vm12, %v3710_v51, %v7303_v44  ;;  %v3645_v17 = vsel %vm3631_vm12, %v3612_v24, %v7304_v62  ;;  %v2557_v61 = vld [vmem:[#allocation3 + $0xb0] sm:$0xff] }
 0x2f4   : > { %v7309_v18 = vunpack.i.h.bf16 %v7307_v21  ;;  %v7308_v6 = vunpack.i.l.bf16 %v7307_v21  ;;  %v7312_v55 = vpop.permute.xlu0 %7311 }
 0x2f5   : > { %v9793_v30 = vld [vmem:[#allocation3 + $0x12a] sm:$0xff]  ;;  %v7314_v33 = vunpack.i.h.bf16 %v7312_v55 }
 0x2f6   : > { %v3774_v52 = vsel %vm3664_vm13, %v3742_v63, %v7308_v6  ;;  %v9784_v2 = vld [vmem:[#allocation3 + $0x122] sm:$0xff]  ;;  %v3678_v11 = vsel %vm3664_vm13, %v3645_v17, %v7309_v18 }
 0x2f7   : > { %v9787_v28 = vld [vmem:[#allocation3 + $0x120] sm:$0xff]  ;;  %4061 = vmatprep.mubr.f32.mxu1 %v3774_v52  ;;  %6730 = vmatprep.mubr.msk.f32.mxu0 %vm2051_vm2, %v9784_v2  ;;  %v9801_v40 = vld [vmem:[#allocation3 + $0x128] sm:$0xff]  ;;  %v7430_v56 = vpack.i.bf16 %v9730_v37, %v9784_v2  ;;  %v3613_v29 = vsel %vm2051_vm2, %v2556_v54, %v7314_v33 }
 0x2f8   : > { %v9789_v47 = vld [vmem:[#allocation3 + $0x121] sm:$0xff]  ;;  %v7405_v3 = vpack.i.bf16 %v9655_v14, %v9787_v28  ;;  %4062 = vmatmul.mubr.f32.gmra.mrb[26].mxu1 %v3678_v11  ;;  %6731 = vmatmul.mubr.msk.f32.gmra.mrb[52].mxu0 %vm2051_vm2, %v9793_v30  ;;  %v7420_v58 = vpack.i.bf16 %v9665_v38, %v9801_v40  ;;  %v9809_v14 = vld [vmem:[#allocation3 + $0x129] sm:$0xff]  ;;  %v7313_v38 = vunpack.i.l.bf16 %v7312_v55 }
 0x2f9   : > { %v7410_v7 = vpack.i.bf16 %v9728_v36, %v9789_v47  ;;  %v7425_v59 = vpack.i.bf16 %v9745_v10, %v9809_v14 }
 0x2fa   : > { %7406 = vrot.lane.b32.xlu1 %v7405_v3, %s7806_s13  ;;  %v3711_v53 = vsel %vm2051_vm2, %v2684_v49, %v7313_v38 }
 0x2fb   : > { %7411 = vrot.lane.b32.xlu0 %v7410_v7, %s7807_s20 }
 0x2fe   : > { %7416 = vrot.lane.b32.xlu1 %v7415_v31, %s7804_s29 }
 0x2ff   : > { %7421 = vrot.lane.b32.xlu0 %v7420_v58, %s7806_s13 }
 0x302   : > { %7426 = vrot.lane.b32.xlu1 %v7425_v59, %s7807_s20 }
 0x303   : > { %7431 = vrot.lane.b32.xlu0 %v7430_v56, %s7804_s29 }
 0x308   : > { %v6682_v16 = vpop.f32.mrb[24].mxu0 }
 0x309   : > { %v2389_v45 = vadd.f32 %v9480_v12, %v6682_v16  ;;  %v2383_v25 = vpop.f32.mrb[25].mxu0  ;;  %v7445_v16 = vpack.i.bf16 %v9759_v27, %v9793_v30 }
 0x30a   : > { %v2384_v39 = vadd.f32 %v9480_v12, %v2383_v25 }
 0x30b   : > { %v2447_v19 = vmax.f32 %v2389_v45, 0.0  ;;  %v7317_v23 = vpop.permute.xlu1 %7316 }
 0x30c   : > { %v7322_v22 = vpop.permute.xlu0 %7321  ;;  %v2446_v48 = vmax.f32 %v2384_v39, 0.0  ;;  %v7319_v35 = vunpack.i.h.bf16 %v7317_v23  ;;  %v7318_v57 = vunpack.i.l.bf16 %v7317_v23  ;;  %v9872_v23 = vld [vmem:[%s11280_s2] ss:$0 sm:$0xff] }
 0x30d   : > { %v7324_v50 = vunpack.i.h.bf16 %v7322_v22  ;;  %2535 = vst.msk [vmem:[#allocation3 + $0x141] sm:$0xff] %vm2051_vm2, %v2447_v19  ;;  %v7323_v41 = vunpack.i.l.bf16 %v7322_v22 }
 0x30e   : > { %2534 = vst.msk [vmem:[#allocation3 + $0x139] sm:$0xff] %vm2051_vm2, %v2446_v48  ;;  %v3743_v12 = vsel %vm3631_vm12, %v3711_v53, %v7318_v57  ;;  %v3646_v4 = vsel %vm3631_vm12, %v3613_v29, %v7319_v35 }
 0x30f   : > { %v7327_v8 = vpop.permute.xlu1 %7326  ;;  %v3775_v15 = vsel %vm3664_vm13, %v3743_v12, %v7323_v41  ;;  %v3679_v9 = vsel %vm3664_vm13, %v3646_v4, %v7324_v50  ;;  %v2686_v12 = vld [vmem:[#allocation3 + $0xd9] sm:$0xff] }
 0x310   : > { %v7332_v60 = vpop.permute.xlu0 %7331  ;;  %v7329_v32 = vunpack.i.h.bf16 %v7327_v8  ;;  %v7328_v46 = vunpack.i.l.bf16 %v7327_v8  ;;  %4066 = vmatprep.mubr.f32.mxu1 %v3775_v15  ;;  %v2558_v4 = vld [vmem:[#allocation3 + $0xc0] sm:$0xff] }
 0x311   : > { %v7334_v62 = vunpack.i.h.bf16 %v7332_v60  ;;  %v7333_v44 = vunpack.i.l.bf16 %v7332_v60  ;;  %4067 = vmatmul.mubr.f32.gmra.mrb[28].mxu1 %v3679_v9 }
 0x312   : > { %v3712_v51 = vsel %vm2051_vm2, %v2685_v13, %v7328_v46  ;;  %v3614_v24 = vsel %vm2051_vm2, %v2557_v61, %v7329_v32 }
 0x313   : > { %v7337_v21 = vpop.permute.xlu1 %7336  ;;  %v3744_v63 = vsel %vm3631_vm12, %v3712_v51, %v7333_v44  ;;  %v3647_v52 = vsel %vm3631_vm12, %v3614_v24, %v7334_v62 }
 0x314   : > { %v7339_v18 = vunpack.i.h.bf16 %v7337_v21  ;;  %v7338_v6 = vunpack.i.l.bf16 %v7337_v21  ;;  %v9843_v58 = vld [vmem:[#allocation3 + $0x142] sm:$0xff]  ;;  %v7342_v25 = vpop.permute.xlu0 %7341 }
 0x315   : > { %v9832_v17 = vld [vmem:[#allocation3 + $0x13a] sm:$0xff]  ;;  %v7344_v19 = vunpack.i.h.bf16 %v7342_v25 }
 0x316   : > { %v9835_v11 = vld [vmem:[#allocation3 + $0x138] sm:$0xff]  ;;  %v3776_v7 = vsel %vm3664_vm13, %v3744_v63, %v7338_v6  ;;  %6733 = vmatprep.mubr.msk.f32.mxu0 %vm2051_vm2, %v9832_v17  ;;  %v3680_v31 = vsel %vm3664_vm13, %v3647_v52, %v7339_v18  ;;  %v9852_v55 = vld [vmem:[#allocation3 + $0x140] sm:$0xff]  ;;  %v7460_v45 = vpack.i.bf16 %v9789_v47, %v9832_v17  ;;  %v2559_v18 = vld [vmem:[#allocation3 + $0xc8] sm:$0xff] }
 0x317   : > { %v9837_v3 = vld [vmem:[#allocation3 + $0x139] sm:$0xff]  ;;  %v7435_v59 = vpack.i.bf16 %v9725_v20, %v9835_v11  ;;  %4071 = vmatprep.mubr.f32.mxu1 %v3776_v7  ;;  %6734 = vmatmul.mubr.msk.f32.gmra.mrb[54].mxu0 %vm2051_vm2, %v9843_v58  ;;  %v7450_v20 = vpack.i.bf16 %v9735_v43, %v9852_v55  ;;  %v9859_v33 = vld [vmem:[#allocation3 + $0x141] sm:$0xff]  ;;  %v7343_v43 = vunpack.i.l.bf16 %v7342_v25  ;;  %v3615_v15 = vsel %vm2051_vm2, %v2558_v4, %v7344_v19 }
 0x318   : > { %v7440_v56 = vpack.i.bf16 %v9787_v28, %v9837_v3  ;;  %4072 = vmatmul.mubr.f32.gmra.mrb[30].mxu1 %v3680_v31  ;;  %v7455_v38 = vpack.i.bf16 %v9801_v40, %v9859_v33 }
 0x319   : > { %7436 = vrot.lane.b32.xlu1 %v7435_v59, %s7806_s13  ;;  %v3713_v60 = vsel %vm2051_vm2, %v2686_v12, %v7343_v43 }
 0x31a   : > { %7441 = vrot.lane.b32.xlu0 %v7440_v56, %s7807_s20 }
 0x31d   : > { %7446 = vrot.lane.b32.xlu1 %v7445_v16, %s7804_s29 }
 0x31e   : > { %7451 = vrot.lane.b32.xlu0 %v7450_v20, %s7806_s13 }
 0x321   : > { %7456 = vrot.lane.b32.xlu1 %v7455_v38, %s7807_s20 }
 0x322   : > { %7461 = vrot.lane.b32.xlu0 %v7460_v45, %s7804_s29 }
 0x328   : > { %v6685_v39 = vpop.f32.mrb[26].mxu0 }
 0x329   : > { %v2399_v22 = vadd.f32 %v9872_v23, %v6685_v39  ;;  %v2393_v48 = vpop.f32.mrb[27].mxu0 }
 0x32a   : > { %v2394_v35 = vadd.f32 %v9872_v23, %v2393_v48 }
 0x32b   : > { %v2449_v57 = vmax.f32 %v2399_v22, 0.0  ;;  %v7475_v22 = vpack.i.bf16 %v9809_v14, %v9843_v58 }
 0x32c   : > { %v7347_v50 = vpop.permute.xlu1 %7346  ;;  %v2448_v54 = vmax.f32 %v2394_v35, 0.0 }
 0x32d   : > { %v7352_v49 = vpop.permute.xlu0 %7351  ;;  %v7349_v41 = vunpack.i.h.bf16 %v7347_v50  ;;  %v7348_v53 = vunpack.i.l.bf16 %v7347_v50  ;;  %2537 = vst.msk [vmem:[#allocation3 + $0x159] sm:$0xff] %vm2051_vm2, %v2449_v57 }
 0x32e   : > { %v7354_v29 = vunpack.i.h.bf16 %v7352_v49  ;;  %v7353_v8 = vunpack.i.l.bf16 %v7352_v49  ;;  %2536 = vst.msk [vmem:[#allocation3 + $0x151] sm:$0xff] %vm2051_vm2, %v2448_v54 }
 0x32f   : > { %v3745_v9 = vsel %vm3631_vm12, %v3713_v60, %v7348_v53  ;;  %v3648_v32 = vsel %vm3631_vm12, %v3615_v15, %v7349_v41 }
 0x330   : > { %v7357_v46 = vpop.permute.xlu1 %7356  ;;  %v3777_v44 = vsel %vm3664_vm13, %v3745_v9, %v7353_v8  ;;  %v3681_v13 = vsel %vm3664_vm13, %v3648_v32, %v7354_v29 }
 0x331   : > { %v7362_v62 = vpop.permute.xlu0 %7361  ;;  %v7359_v61 = vunpack.i.h.bf16 %v7357_v46  ;;  %v7358_v51 = vunpack.i.l.bf16 %v7357_v46  ;;  %4076 = vmatprep.mubr.f32.mxu1 %v3777_v44  ;;  %v2560_v46 = vld [vmem:[#allocation3 + $0xd8] sm:$0xff] }
 0x332   : > { %v7364_v24 = vunpack.i.h.bf16 %v7362_v62  ;;  %v7363_v21 = vunpack.i.l.bf16 %v7362_v62  ;;  %4077 = vmatmul.mubr.f32.gmra.mrb[32].mxu1 %v3681_v13 }
 0x333   : > { %v3714_v6 = vsel %vm2051_vm2, %v9590_v34, %v7358_v51  ;;  %v3616_v63 = vsel %vm2051_vm2, %v2559_v18, %v7359_v61 }
 0x334   : > { %v7367_v52 = vpop.permute.xlu1 %7366  ;;  %v3746_v59 = vsel %vm3631_vm12, %v3714_v6, %v7363_v21  ;;  %v3649_v16 = vsel %vm3631_vm12, %v3616_v63, %v7364_v24  ;;  %v9899_v25 = vld [vmem:[#allocation3 + $0x15a] sm:$0xff] }
 0x335   : > { %v7369_v7 = vunpack.i.h.bf16 %v7367_v52  ;;  %v7368_v31 = vunpack.i.l.bf16 %v7367_v52  ;;  %v9888_v56 = vld [vmem:[#allocation3 + $0x152] sm:$0xff]  ;;  %v7372_v50 = vpop.permute.xlu0 %7371 }
 0x336   : > { %v9891_v20 = vld [vmem:[#allocation3 + $0x150] sm:$0xff]  ;;  %6736 = vmatprep.mubr.msk.f32.mxu0 %vm2051_vm2, %v9888_v56  ;;  %v9908_v43 = vld [vmem:[#allocation3 + $0x158] sm:$0xff]  ;;  %v7490_v57 = vpack.i.bf16 %v9837_v3, %v9888_v56  ;;  %v7374_v54 = vunpack.i.h.bf16 %v7372_v50 }
 0x337   : > { %v9893_v38 = vld [vmem:[#allocation3 + $0x151] sm:$0xff]  ;;  %v3778_v45 = vsel %vm3664_vm13, %v3746_v59, %v7368_v31  ;;  %v3682_v34 = vsel %vm3664_vm13, %v3649_v16, %v7369_v7  ;;  %v7465_v39 = vpack.i.bf16 %v9784_v2, %v9891_v20  ;;  %6737 = vmatmul.mubr.msk.f32.gmra.mrb[56].mxu0 %vm2051_vm2, %v9899_v25  ;;  %v7480_v2 = vpack.i.bf16 %v9793_v30, %v9908_v43  ;;  %v9915_v48 = vld [vmem:[#allocation3 + $0x159] sm:$0xff] }
 0x338   : > { %v7470_v19 = vpack.i.bf16 %v9835_v11, %v9893_v38  ;;  %4081 = vmatprep.mubr.f32.mxu1 %v3778_v45  ;;  %v7485_v35 = vpack.i.bf16 %v9852_v55, %v9915_v48  ;;  %v7373_v30 = vunpack.i.l.bf16 %v7372_v50  ;;  %v3617_v13 = vsel %vm2051_vm2, %v2560_v46, %v7374_v54 }
 0x339   : > { %4082 = vmatmul.mubr.f32.gmra.mrb[34].mxu1 %v3682_v34  ;;  %7466 = vrot.lane.b32.xlu1 %v7465_v39, %s7806_s13 }
 0x33a   : > { %7471 = vrot.lane.b32.xlu0 %v7470_v19, %s7807_s20  ;;  %v3715_v44 = vsel %vm2051_vm2, %v9659_v42, %v7373_v30  ;;  %v2561_v42 = vld [vmem:[#allocation3 + $0xe0] sm:$0xff] }
 0x33d   : > { %7476 = vrot.lane.b32.xlu1 %v7475_v22, %s7804_s29 }
 0x33e   : > { %7481 = vrot.lane.b32.xlu0 %v7480_v2, %s7806_s13 }
 0x341   : > { %7486 = vrot.lane.b32.xlu1 %v7485_v35, %s7807_s20 }
 0x342   : > { %7491 = vrot.lane.b32.xlu0 %v7490_v57, %s7804_s29 }
 0x348   : > { %v6688_v49 = vpop.f32.mrb[28].mxu0 }
 0x349   : > { %v2409_v41 = vadd.f32 %v9872_v23, %v6688_v49  ;;  %v2403_v53 = vpop.f32.mrb[29].mxu0 }
 0x34a   : > { %v2404_v29 = vadd.f32 %v9872_v23, %v2403_v53  ;;  %v7505_v53 = vpack.i.bf16 %v9859_v33, %v9899_v25 }
 0x34b   : > { %v2451_v12 = vmax.f32 %v2409_v41, 0.0 }
 0x34c   : > { %v7377_v4 = vpop.permute.xlu1 %7376  ;;  %v2450_v60 = vmax.f32 %v2404_v29, 0.0 }
 0x34d   : > { %v7382_v8 = vpop.permute.xlu0 %7381  ;;  %v7379_v15 = vunpack.i.h.bf16 %v7377_v4  ;;  %v7378_v9 = vunpack.i.l.bf16 %v7377_v4  ;;  %2539 = vst.msk [vmem:[#allocation3 + $0x171] sm:$0xff] %vm2051_vm2, %v2451_v12 }
 0x34e   : > { %v7384_v32 = vunpack.i.h.bf16 %v7382_v8  ;;  %v7383_v62 = vunpack.i.l.bf16 %v7382_v8  ;;  %2538 = vst.msk [vmem:[#allocation3 + $0x169] sm:$0xff] %vm2051_vm2, %v2450_v60 }
 0x34f   : > { %v3747_v61 = vsel %vm3631_vm12, %v3715_v44, %v7378_v9  ;;  %v3650_v51 = vsel %vm3631_vm12, %v3617_v13, %v7379_v15 }
 0x350   : > { %v7387_v24 = vpop.permute.xlu1 %7386  ;;  %v3779_v18 = vsel %vm3664_vm13, %v3747_v61, %v7383_v62  ;;  %v3683_v6 = vsel %vm3664_vm13, %v3650_v51, %v7384_v32 }
 0x351   : > { %v7392_v21 = vpop.permute.xlu0 %7391  ;;  %v7389_v63 = vunpack.i.h.bf16 %v7387_v24  ;;  %v7388_v52 = vunpack.i.l.bf16 %v7387_v24  ;;  %4086 = vmatprep.mubr.f32.mxu1 %v3779_v18 }
 0x352   : > { %v7394_v7 = vunpack.i.h.bf16 %v7392_v21  ;;  %v7393_v31 = vunpack.i.l.bf16 %v7392_v21  ;;  %4087 = vmatmul.mubr.f32.gmra.mrb[36].mxu1 %v3683_v6 }
 0x353   : > { %v3716_v59 = vsel %vm2051_vm2, %v9687_v1, %v7388_v52  ;;  %v3618_v16 = vsel %vm2051_vm2, %v2561_v42, %v7389_v63  ;;  %v9992_v42 = vld [vmem:[%s11282_s4] ss:$0 sm:$0xff] }
 0x354   : > { %v7397_v45 = vpop.permute.xlu1 %7396  ;;  %v3748_v19 = vsel %vm3631_vm12, %v3716_v59, %v7393_v31  ;;  %v3651_v2 = vsel %vm3631_vm12, %v3618_v16, %v7394_v7  ;;  %v9951_v49 = vld [vmem:[#allocation3 + $0x172] sm:$0xff] }
 0x355   : > { %v7399_v34 = vunpack.i.h.bf16 %v7397_v45  ;;  %v7398_v39 = vunpack.i.l.bf16 %v7397_v45  ;;  %v9940_v22 = vld [vmem:[#allocation3 + $0x16a] sm:$0xff]  ;;  %v7402_v60 = vpop.permute.xlu0 %7401 }
 0x356   : > { %v9943_v35 = vld [vmem:[#allocation3 + $0x168] sm:$0xff]  ;;  %6739 = vmatprep.mubr.msk.f32.mxu0 %vm2051_vm2, %v9940_v22  ;;  %v9960_v41 = vld [vmem:[#allocation3 + $0x170] sm:$0xff]  ;;  %v7520_v4 = vpack.i.bf16 %v9893_v38, %v9940_v22  ;;  %v7404_v46 = vunpack.i.h.bf16 %v7402_v60  ;;  %v7403_v62 = vunpack.i.l.bf16 %v7402_v60 }
 0x357   : > { %v9945_v57 = vld [vmem:[#allocation3 + $0x169] sm:$0xff]  ;;  %v3780_v50 = vsel %vm3664_vm13, %v3748_v19, %v7398_v39  ;;  %v3684_v1 = vsel %vm3664_vm13, %v3651_v2, %v7399_v34  ;;  %v7495_v54 = vpack.i.bf16 %v9832_v17, %v9943_v35  ;;  %6740 = vmatmul.mubr.msk.f32.gmra.mrb[58].mxu0 %vm2051_vm2, %v9951_v49  ;;  %v7510_v17 = vpack.i.bf16 %v9843_v58, %v9960_v41  ;;  %v9967_v29 = vld [vmem:[#allocation3 + $0x171] sm:$0xff] }
 0x358   : > { %v7500_v30 = vpack.i.bf16 %v9891_v20, %v9945_v57  ;;  %4091 = vmatprep.mubr.f32.mxu1 %v3780_v50  ;;  %v7515_v12 = vpack.i.bf16 %v9908_v43, %v9967_v29  ;;  %v3619_v7 = vsel %vm2051_vm2, %v9657_v5, %v7404_v46 }
 0x359   : > { %4092 = vmatmul.mubr.f32.gmra.mrb[38].mxu1 %v3684_v1  ;;  %7496 = vrot.lane.b32.xlu1 %v7495_v54, %s7806_s13 }
 0x35a   : > { %7501 = vrot.lane.b32.xlu0 %v7500_v30, %s7807_s20 }
 0x35d   : > { %7506 = vrot.lane.b32.xlu1 %v7505_v53, %s7804_s29 }
 0x35e   : > { %7511 = vrot.lane.b32.xlu0 %v7510_v17, %s7806_s13  ;;  %v2563_v17 = vld [vmem:[#allocation3 + $0xf8] sm:$0xff] }
 0x361   : > { %7516 = vrot.lane.b32.xlu1 %v7515_v12, %s7807_s20 }
 0x362   : > { %7521 = vrot.lane.b32.xlu0 %v7520_v4, %s7804_s29 }
 0x365   : > { %v6691_v8 = vpop.f32.mrb[30].mxu0 }
 0x366   : > { %v2419_v58 = vadd.f32 %v9872_v23, %v6691_v8  ;;  %v2413_v15 = vpop.f32.mrb[31].mxu0 }
 0x367   : > { %v2414_v9 = vadd.f32 %v9872_v23, %v2413_v15  ;;  %v3717_v23 = vsel %vm2051_vm2, %v9730_v37, %v7403_v62 }
 0x368   : > { %v2453_v32 = vmax.f32 %v2419_v58, 0.0 }
 0x369   : > { %v2452_v44 = vmax.f32 %v2414_v9, 0.0  ;;  %v6702_v13 = vpop.f32.mrb[32].mxu0 }
 0x36a   : > { %2541 = vst.msk [vmem:[#allocation3 + $0x189] sm:$0xff] %vm2051_vm2, %v2453_v32  ;;  %v4223_v61 = vpop.f32.mrb[33].mxu0 }
 0x36b   : > { %2540 = vst.msk [vmem:[#allocation3 + $0x181] sm:$0xff] %vm2051_vm2, %v2452_v44 }
 0x36c   : > { %v7407_v51 = vpop.permute.xlu1 %7406 }
 0x36d   : > { %v7412_v24 = vpop.permute.xlu0 %7411  ;;  %v7409_v21 = vunpack.i.h.bf16 %v7407_v51  ;;  %v7408_v18 = vunpack.i.l.bf16 %v7407_v51  ;;  %v9981_v52 = vpop.f32.mrb[34].mxu0 }
 0x36e   : > { %v7414_v6 = vunpack.i.h.bf16 %v7412_v24  ;;  %v7413_v63 = vunpack.i.l.bf16 %v7412_v24  ;;  %v9987_v31 = vpop.f32.mrb[35].mxu0 }
 0x36f   : > { %v3749_v59 = vsel %vm3631_vm12, %v3717_v23, %v7408_v18  ;;  %v3652_v16 = vsel %vm3631_vm12, %v3619_v7, %v7409_v21  ;;  %v3998_v5 = vpop.f32.mrb[0].mxu1 }
 0x370   : > { %v7417_v45 = vpop.permute.xlu1 %7416  ;;  %v3781_v39 = vsel %vm3664_vm13, %v3749_v59, %v7413_v63  ;;  %v3685_v37 = vsel %vm3664_vm13, %v3652_v16, %v7414_v6  ;;  %v3999_v54 = vadd.f32 %v9992_v42, %v3998_v5  ;;  %v4000_v30 = vpop.f32.mrb[1].mxu1  ;;  %v7535_v16 = vpack.i.bf16 %v9915_v48, %v9951_v49 }
 0x371   : > { %v7422_v34 = vpop.permute.xlu0 %7421  ;;  %v7419_v19 = vunpack.i.h.bf16 %v7417_v45  ;;  %v7418_v2 = vunpack.i.l.bf16 %v7417_v45  ;;  %4096 = vmatprep.mubr.f32.mxu1 %v3781_v39  ;;  %v9999_v53 = vpop.f32.mrb[36].mxu0  ;;  %v10009_v46 = vld [vmem:[#allocation3 + $0x18a] sm:$0xff] }
 0x372   : > { %v7424_v50 = vunpack.i.h.bf16 %v7422_v34  ;;  %v7423_v1 = vunpack.i.l.bf16 %v7422_v34  ;;  %4097 = vmatmul.mubr.f32.gmra.mrb[40].mxu1 %v3685_v37  ;;  %v10001_v12 = vpop.f32.mrb[37].mxu0  ;;  %v2827_v4 = vld [vmem:[#allocation3 + $0x182] sm:$0xff]  ;;  %v4224_v9 = vadd.f32 %v4223_v61, %v3999_v54 }
 0x373   : > { %v2763_v8 = vld [vmem:[#allocation3 + $0x180] sm:$0xff]  ;;  %v3718_v58 = vsel %vm2051_vm2, %v9759_v27, %v7418_v2  ;;  %v3620_v15 = vsel %vm2051_vm2, %v2563_v17, %v7419_v19  ;;  %6742 = vmatprep.mubr.msk.f32.mxu0 %vm2051_vm2, %v2827_v4  ;;  %v10016_v21 = vld [vmem:[#allocation3 + $0x188] sm:$0xff]  ;;  %v2765_v17 = vld [vmem:[#allocation3 + $0x198] sm:$0xff] }
 0x374   : > { %v10003_v60 = vld [vmem:[#allocation3 + $0x181] sm:$0xff]  ;;  %v7427_v32 = vpop.permute.xlu1 %7426  ;;  %v7525_v62 = vpack.i.bf16 %v9888_v56, %v2763_v8  ;;  %6743 = vmatmul.mubr.msk.f32.gmra.mrb[60].mxu0 %vm2051_vm2, %v10009_v46  ;;  %v4003_v27 = vpop.f32.mrb[2].mxu1  ;;  %v3750_v61 = vsel %vm3631_vm12, %v3718_v58, %v7423_v1  ;;  %v3653_v56 = vsel %vm3631_vm12, %v3620_v15, %v7424_v50  ;;  %v7540_v45 = vpack.i.bf16 %v9899_v25, %v10016_v21  ;;  %v10033_v39 = vld [vmem:[#allocation3 + $0x189] sm:$0xff]  ;;  %v2797_v58 = vld [vmem:[#allocation3 + $0x199] sm:$0xff] }
 0x375   : > { %v7530_v44 = vpack.i.bf16 %v9943_v35, %v10003_v60  ;;  %v7429_v51 = vunpack.i.h.bf16 %v7427_v32  ;;  %v7428_v24 = vunpack.i.l.bf16 %v7427_v32  ;;  %v10018_v18 = vpop.f32.mrb[38].mxu0  ;;  %v4004_v6 = vadd.f32 %v9992_v42, %v4003_v27  ;;  %v4005_v63 = vpop.f32.mrb[3].mxu1  ;;  %v2829_v50 = vld [vmem:[#allocation3 + $0x19a] sm:$0xff]  ;;  %v2830_v1 = vld [vmem:[#allocation3 + $0x1a2] sm:$0xff] }
 0x376   : > { %7526 = vrot.lane.b32.xlu1 %v7525_v62, %s7806_s13  ;;  %v10026_v7 = vpop.f32.mrb[39].mxu0  ;;  %v4382_v19 = vmax.f32 %v4224_v9, 0.0  ;;  %v7545_v54 = vpack.i.bf16 %v9960_v41, %v10033_v39  ;;  %v7550_v25 = vpack.i.bf16 %v9945_v57, %v2827_v4  ;;  %6745 = vmatprep.mubr.msk.f32.mxu0 %vm2051_vm2, %v2829_v50 }
 0x377   : > { %7531 = vrot.lane.b32.xlu0 %v7530_v44, %s7807_s20  ;;  %v3782_v23 = vsel %vm3664_vm13, %v3750_v61, %v7428_v24  ;;  %v3686_v59 = vsel %vm3664_vm13, %v3653_v56, %v7429_v51  ;;  %v4229_v34 = vadd.f32 %v6702_v13, %v4004_v6  ;;  %v7555_v44 = vpack.i.bf16 %v9940_v22, %v2765_v17  ;;  %v2766_v24 = vld [vmem:[#allocation3 + $0x1a0] sm:$0xff] }
 0x378   : > { %4101 = vmatprep.mubr.f32.mxu1 %v3782_v23  ;;  %6746 = vmatmul.mubr.msk.f32.gmra.mrb[62].mxu0 %vm2051_vm2, %v2830_v1  ;;  %v7560_v51 = vpack.i.bf16 %v2763_v8, %v2797_v58  ;;  %v7570_v22 = vpack.i.bf16 %v9951_v49, %v2766_v24  ;;  %v2798_v23 = vld [vmem:[#allocation3 + $0x1a1] sm:$0xff] }
 0x379   : > { %4102 = vmatmul.mubr.f32.gmra.mrb[42].mxu1 %v3686_v59  ;;  %v10035_v37 = vpop.f32.mrb[40].mxu0  ;;  %v4383_v2 = vmax.f32 %v4229_v34, 0.0  ;;  %v7432_v59 = vpop.permute.xlu0 %7431 }
 0x37a   : > { %7536 = vrot.lane.b32.xlu1 %v7535_v16, %s7804_s29  ;;  %v10039_v5 = vpop.f32.mrb[41].mxu0  ;;  %v7434_v50 = vunpack.i.h.bf16 %v7432_v59 }
 0x37b   : > { %7541 = vrot.lane.b32.xlu0 %v7540_v45, %s7806_s13  ;;  %v6889_v13 = vpack.c.bf16 %v4383_v2, %v4382_v19  ;;  %v7575_v2 = vpack.i.bf16 %v10016_v21, %v2798_v23 }
 0x37c   : > { %v4008_v30 = vpop.f32.mrb[4].mxu1 }
 0x37d   : > { %v4009_v15 = vadd.f32 %v9992_v42, %v4008_v30  ;;  %v4010_v9 = vpop.f32.mrb[5].mxu1  ;;  %v10047_v32 = vpop.f32.mrb[42].mxu0  ;;  %6890 = vmatpush1.bf16.msra.mxu0 %v6889_v13 }
 0x37e   : > { %7546 = vrot.lane.b32.xlu1 %v7545_v54, %s7807_s20  ;;  %v10051_v62 = vpop.f32.mrb[43].mxu0  ;;  %6891 = vmatprep.subr.bf16.mxu0 %v7805_v26 }
 0x37f   : > { %7551 = vrot.lane.b32.xlu0 %v7550_v25, %s7804_s29  ;;  %v4234_v4 = vadd.f32 %v9987_v31, %v4009_v15  ;;  %v7565_v31 = vpack.i.bf16 %v9967_v29, %v10009_v46  ;;  %v7433_v46 = vunpack.i.l.bf16 %v7432_v59 }
 0x381   : > { %v4013_v27 = vpop.f32.mrb[6].mxu1  ;;  %v10056_v61 = vpop.f32.mrb[44].mxu0  ;;  %v4384_v45 = vmax.f32 %v4234_v4, 0.0 }
 0x382   : > { %7556 = vrot.lane.b32.xlu1 %v7555_v44, %s7806_s13  ;;  %v4014_v56 = vadd.f32 %v9992_v42, %v4013_v27  ;;  %v4015_v6 = vpop.f32.mrb[7].mxu1  ;;  %v10061_v63 = vpop.f32.mrb[45].mxu0  ;;  %v3719_v44 = vsel %vm2051_vm2, %v9789_v47, %v7433_v46 }
 0x383   : > { %7561 = vrot.lane.b32.xlu0 %v7560_v51, %s7807_s20  ;;  %v3621_v51 = vsel %vm2051_vm2, %v9728_v36, %v7434_v50 }
 0x384   : > { %v4239_v8 = vadd.f32 %v9981_v52, %v4014_v56 }
 0x385   : > { %v10067_v16 = vpop.f32.mrb[46].mxu0 }
 0x386   : > { %7566 = vrot.lane.b32.xlu1 %v7565_v31, %s7804_s29  ;;  %v4385_v34 = vmax.f32 %v4239_v8, 0.0  ;;  %v10071_v19 = vpop.f32.mrb[47].mxu0 }
 0x387   : > { %7571 = vrot.lane.b32.xlu0 %v7570_v22, %s7806_s13 }
 0x388   : > { %v6892_v1 = vpack.c.bf16 %v4385_v34, %v4384_v45  ;;  %v4018_v49 = vpop.f32.mrb[8].mxu1 }
 0x389   : > { %v4019_v52 = vadd.f32 %v9992_v42, %v4018_v49  ;;  %v4020_v54 = vpop.f32.mrb[9].mxu1 }
 0x38a   : > { %7576 = vrot.lane.b32.xlu1 %v7575_v2, %s7807_s20  ;;  %6893 = vmatpush1.bf16.msra.mxu0 %v6892_v1 }
 0x38b   : > { %v7437_v25 = vpop.permute.xlu1 %7436  ;;  %v4244_v13 = vadd.f32 %v10001_v12, %v4019_v52  ;;  %v10077_v30 = vpop.f32.mrb[48].mxu0  ;;  %6894 = vmatprep.subr.bf16.mxu0 %v7805_v26 }
 0x38c   : > { %v7439_v17 = vunpack.i.h.bf16 %v7437_v25  ;;  %v7438_v58 = vunpack.i.l.bf16 %v7437_v25  ;;  %v7442_v15 = vpop.permute.xlu0 %7441  ;;  %v10080_v4 = vpop.f32.mrb[49].mxu0 }
 0x38d   : > { %v7444_v21 = vunpack.i.h.bf16 %v7442_v15  ;;  %v7443_v9 = vunpack.i.l.bf16 %v7442_v15  ;;  %v4023_v27 = vpop.f32.mrb[10].mxu1  ;;  %v4386_v1 = vmax.f32 %v4244_v13, 0.0 }
 0x38e   : > { %v3751_v24 = vsel %vm3631_vm12, %v3719_v44, %v7438_v58  ;;  %v3654_v12 = vsel %vm3631_vm12, %v3621_v51, %v7439_v17  ;;  %v4024_v22 = vadd.f32 %v9992_v42, %v4023_v27  ;;  %v4025_v8 = vpop.f32.mrb[11].mxu1 }
 0x38f   : > { %v7447_v56 = vpop.permute.xlu1 %7446  ;;  %v3783_v6 = vsel %vm3664_vm13, %v3751_v24, %v7443_v9  ;;  %v3687_v31 = vsel %vm3664_vm13, %v3654_v12, %v7444_v21 }
 0x390   : > { %v7449_v23 = vunpack.i.h.bf16 %v7447_v56  ;;  %v7448_v59 = vunpack.i.l.bf16 %v7447_v56  ;;  %v7452_v45 = vpop.permute.xlu0 %7451  ;;  %4106 = vmatprep.mubr.f32.mxu1 %v3783_v6  ;;  %v4249_v36 = vadd.f32 %v9999_v53, %v4024_v22 }
 0x391   : > { %v7454_v47 = vunpack.i.h.bf16 %v7452_v45  ;;  %v7453_v34 = vunpack.i.l.bf16 %v7452_v45  ;;  %4107 = vmatmul.mubr.f32.gmra.mrb[44].mxu1 %v3687_v31 }
 0x392   : > { %v3720_v2 = vsel %vm2051_vm2, %v9809_v14, %v7448_v59  ;;  %v3622_v50 = vsel %vm2051_vm2, %v9745_v10, %v7449_v23  ;;  %v4387_v49 = vmax.f32 %v4249_v36, 0.0 }
 0x393   : > { %v7457_v46 = vpop.permute.xlu1 %7456  ;;  %v3752_v25 = vsel %vm3631_vm12, %v3720_v2, %v7453_v34  ;;  %v3655_v17 = vsel %vm3631_vm12, %v3622_v50, %v7454_v47 }
 0x394   : > { %v7459_v52 = vunpack.i.h.bf16 %v7457_v46  ;;  %v7458_v54 = vunpack.i.l.bf16 %v7457_v46  ;;  %v6895_v58 = vpack.c.bf16 %v4387_v49, %v4386_v1  ;;  %v4028_v15 = vpop.f32.mrb[12].mxu1 }
 0x395   : > { %v4029_v14 = vadd.f32 %v9992_v42, %v4028_v15  ;;  %v4030_v9 = vpop.f32.mrb[13].mxu1 }
 0x396   : > { %v3784_v21 = vsel %vm3664_vm13, %v3752_v25, %v7458_v54  ;;  %v3688_v53 = vsel %vm3664_vm13, %v3655_v17, %v7459_v52  ;;  %6896 = vmatpush1.bf16.msra.mxu0 %v6895_v58 }
 0x397   : > { %4111 = vmatprep.mubr.f32.mxu1 %v3784_v21  ;;  %v4254_v10 = vadd.f32 %v10026_v7, %v4029_v14  ;;  %6897 = vmatprep.subr.bf16.mxu0 %v7805_v26  ;;  %v7462_v7 = vpop.permute.xlu0 %7461 }
 0x398   : > { %4112 = vmatmul.mubr.f32.gmra.mrb[46].mxu1 %v3688_v53  ;;  %v7463_v47 = vunpack.i.l.bf16 %v7462_v7  ;;  %v7464_v34 = vunpack.i.h.bf16 %v7462_v7 }
 0x399   : > { %v4033_v13 = vpop.f32.mrb[14].mxu1  ;;  %v4388_v12 = vmax.f32 %v4254_v10, 0.0 }
 0x39a   : > { %v4034_v44 = vadd.f32 %v9992_v42, %v4033_v13  ;;  %v4035_v51 = vpop.f32.mrb[15].mxu1  ;;  %v3623_v15 = vsel %vm2051_vm2, %v9787_v28, %v7464_v34 }
 0x39c   : > { %v4259_v24 = vadd.f32 %v10018_v18, %v4034_v44 }
 0x39e   : > { %v4389_v27 = vmax.f32 %v4259_v24, 0.0 }
 0x3a0   : > { %v6898_v56 = vpack.c.bf16 %v4389_v27, %v4388_v12  ;;  %v4038_v6 = vpop.f32.mrb[16].mxu1 }
 0x3a1   : > { %v4039_v31 = vadd.f32 %v9992_v42, %v4038_v6  ;;  %v4040_v22 = vpop.f32.mrb[17].mxu1 }
 0x3a2   : > { %6899 = vmatpush1.bf16.msra.mxu0 %v6898_v56 }
 0x3a3   : > { %v4264_v8 = vadd.f32 %v10039_v5, %v4039_v31  ;;  %6900 = vmatprep.subr.bf16.mxu0 %v7805_v26  ;;  %v3721_v5 = vsel %vm2051_vm2, %v9837_v3, %v7463_v47 }
 0x3a5   : > { %v4043_v23 = vpop.f32.mrb[18].mxu1  ;;  %v4390_v36 = vmax.f32 %v4264_v8, 0.0 }
 0x3a6   : > { %v4044_v59 = vadd.f32 %v9992_v42, %v4043_v23  ;;  %v4045_v45 = vpop.f32.mrb[19].mxu1 }
 0x3a8   : > { %v4269_v18 = vadd.f32 %v10035_v37, %v4044_v59 }
 0x3aa   : > { %v4391_v2 = vmax.f32 %v4269_v18, 0.0 }
 0x3ab   : > { %v7467_v50 = vpop.permute.xlu1 %7466  ;;  %v10110_v46 = vpop.f32.mrb[50].mxu0 }
 0x3ac   : > { %v7469_v1 = vunpack.i.h.bf16 %v7467_v50  ;;  %v7468_v49 = vunpack.i.l.bf16 %v7467_v50  ;;  %v7472_v52 = vpop.permute.xlu0 %7471  ;;  %v6901_v54 = vpack.c.bf16 %v4391_v2, %v4390_v36  ;;  %v10114_v58 = vpop.f32.mrb[51].mxu0 }
 0x3ad   : > { %v7474_v25 = vunpack.i.h.bf16 %v7472_v52  ;;  %v7473_v17 = vunpack.i.l.bf16 %v7472_v52  ;;  %v4048_v37 = vpop.f32.mrb[20].mxu1 }
 0x3ae   : > { %v3753_v21 = vsel %vm3631_vm12, %v3721_v5, %v7468_v49  ;;  %v3656_v53 = vsel %vm3631_vm12, %v3623_v15, %v7469_v1  ;;  %v4049_v14 = vadd.f32 %v9992_v42, %v4048_v37  ;;  %v4050_v9 = vpop.f32.mrb[21].mxu1  ;;  %6902 = vmatpush1.bf16.msra.mxu0 %v6901_v54 }
 0x3af   : > { %v7477_v10 = vpop.permute.xlu1 %7476  ;;  %v3785_v3 = vsel %vm3664_vm13, %v3753_v21, %v7473_v17  ;;  %v3689_v13 = vsel %vm3664_vm13, %v3656_v53, %v7474_v25  ;;  %6903 = vmatprep.subr.bf16.mxu0 %v7805_v26 }
 0x3b0   : > { %v7479_v44 = vunpack.i.h.bf16 %v7477_v10  ;;  %v7478_v51 = vunpack.i.l.bf16 %v7477_v10  ;;  %v7482_v24 = vpop.permute.xlu0 %7481  ;;  %4116 = vmatprep.mubr.f32.mxu1 %v3785_v3  ;;  %v4274_v28 = vadd.f32 %v10051_v62, %v4049_v14 }
 0x3b1   : > { %v7484_v12 = vunpack.i.h.bf16 %v7482_v24  ;;  %v7483_v27 = vunpack.i.l.bf16 %v7482_v24  ;;  %4117 = vmatmul.mubr.f32.gmra.mrb[48].mxu1 %v3689_v13  ;;  %v4053_v31 = vpop.f32.mrb[22].mxu1 }
 0x3b2   : > { %v3722_v56 = vsel %vm2051_vm2, %v9859_v33, %v7478_v51  ;;  %v3624_v6 = vsel %vm2051_vm2, %v9801_v40, %v7479_v44  ;;  %v4054_v8 = vadd.f32 %v9992_v42, %v4053_v31  ;;  %v4055_v7 = vpop.f32.mrb[23].mxu1  ;;  %v4392_v18 = vmax.f32 %v4274_v28, 0.0 }
 0x3b3   : > { %v7487_v22 = vpop.permute.xlu1 %7486  ;;  %v3754_v45 = vsel %vm3631_vm12, %v3722_v56, %v7483_v27  ;;  %v3657_v62 = vsel %vm3631_vm12, %v3624_v6, %v7484_v12 }
 0x3b4   : > { %v7489_v23 = vunpack.i.h.bf16 %v7487_v22  ;;  %v7488_v59 = vunpack.i.l.bf16 %v7487_v22  ;;  %v4279_v47 = vadd.f32 %v10047_v32, %v4054_v8  ;;  %v7492_v50 = vpop.permute.xlu0 %7491 }
 0x3b5   : > { %v7494_v32 = vunpack.i.h.bf16 %v7492_v50  ;;  %v7493_v5 = vunpack.i.l.bf16 %v7492_v50 }
 0x3b6   : > { %v3786_v34 = vsel %vm3664_vm13, %v3754_v45, %v7488_v59  ;;  %v3690_v33 = vsel %vm3664_vm13, %v3657_v62, %v7489_v23  ;;  %v4393_v40 = vmax.f32 %v4279_v47, 0.0 }
 0x3b7   : > { %4121 = vmatprep.mubr.f32.mxu1 %v3786_v34  ;;  %v3723_v10 = vsel %vm2051_vm2, %v9893_v38, %v7493_v5  ;;  %v3625_v3 = vsel %vm2051_vm2, %v9835_v11, %v7494_v32 }
 0x3b8   : > { %4122 = vmatmul.mubr.f32.gmra.mrb[50].mxu1 %v3690_v33  ;;  %v6904_v36 = vpack.c.bf16 %v4393_v40, %v4392_v18 }
 0x3ba   : > { %6905 = vmatpush1.bf16.msra.mxu0 %v6904_v36 }
 0x3bb   : > { %6906 = vmatprep.subr.bf16.mxu0 %v7805_v26 }
 0x3c4   : > { %v4058_v2 = vpop.f32.mrb[24].mxu1 }
 0x3c5   : > { %v4059_v1 = vadd.f32 %v9992_v42, %v4058_v2  ;;  %v4060_v49 = vpop.f32.mrb[25].mxu1 }
 0x3c7   : > { %v4284_v52 = vadd.f32 %v10061_v63, %v4059_v1 }
 0x3c9   : > { %v4394_v22 = vmax.f32 %v4284_v52, 0.0 }
 0x3cb   : > { %v7497_v54 = vpop.permute.xlu1 %7496  ;;  %v10138_v25 = vpop.f32.mrb[52].mxu0 }
 0x3cc   : > { %v7499_v17 = vunpack.i.h.bf16 %v7497_v54  ;;  %v7498_v15 = vunpack.i.l.bf16 %v7497_v54  ;;  %v7502_v37 = vpop.permute.xlu0 %7501  ;;  %v4063_v14 = vpop.f32.mrb[26].mxu1 }
 0x3cd   : > { %v7504_v21 = vunpack.i.h.bf16 %v7502_v37  ;;  %v7503_v53 = vunpack.i.l.bf16 %v7502_v37  ;;  %v10140_v9 = vpop.f32.mrb[53].mxu0  ;;  %v4064_v63 = vadd.f32 %v9992_v42, %v4063_v14  ;;  %v4065_v13 = vpop.f32.mrb[27].mxu1 }
 0x3ce   : > { %v3755_v44 = vsel %vm3631_vm12, %v3723_v10, %v7498_v15  ;;  %v3658_v51 = vsel %vm3631_vm12, %v3625_v3, %v7499_v17 }
 0x3cf   : > { %v7507_v24 = vpop.permute.xlu1 %7506  ;;  %v3787_v28 = vsel %vm3664_vm13, %v3755_v44, %v7503_v53  ;;  %v3691_v12 = vsel %vm3664_vm13, %v3658_v51, %v7504_v21  ;;  %v4289_v27 = vadd.f32 %v10056_v61, %v4064_v63 }
 0x3d0   : > { %v7509_v56 = vunpack.i.h.bf16 %v7507_v24  ;;  %v7508_v6 = vunpack.i.l.bf16 %v7507_v24  ;;  %v7512_v38 = vpop.permute.xlu0 %7511  ;;  %4126 = vmatprep.mubr.f32.mxu1 %v3787_v28 }
 0x3d1   : > { %v7514_v31 = vunpack.i.h.bf16 %v7512_v38  ;;  %v7513_v11 = vunpack.i.l.bf16 %v7512_v38  ;;  %4127 = vmatmul.mubr.f32.gmra.mrb[52].mxu1 %v3691_v12  ;;  %v4395_v8 = vmax.f32 %v4289_v27, 0.0 }
 0x3d2   : > { %v3724_v7 = vsel %vm2051_vm2, %v9915_v48, %v7508_v6  ;;  %v3626_v23 = vsel %vm2051_vm2, %v9852_v55, %v7509_v56 }
 0x3d3   : > { %v7517_v59 = vpop.permute.xlu1 %7516  ;;  %v6907_v45 = vpack.c.bf16 %v4395_v8, %v4394_v22  ;;  %v3756_v61 = vsel %vm3631_vm12, %v3724_v7, %v7513_v11  ;;  %v3659_v34 = vsel %vm3631_vm12, %v3626_v23, %v7514_v31 }
 0x3d4   : > { %v7519_v62 = vunpack.i.h.bf16 %v7517_v59  ;;  %v7518_v47 = vunpack.i.l.bf16 %v7517_v59  ;;  %v7522_v48 = vpop.permute.xlu0 %7521 }
 0x3d5   : > { %6908 = vmatpush1.bf16.msra.mxu0 %v6907_v45  ;;  %v7524_v55 = vunpack.i.h.bf16 %v7522_v48  ;;  %v7523_v36 = vunpack.i.l.bf16 %v7522_v48 }
 0x3d6   : > { %v3788_v33 = vsel %vm3664_vm13, %v3756_v61, %v7518_v47  ;;  %v3692_v18 = vsel %vm3664_vm13, %v3659_v34, %v7519_v62  ;;  %6909 = vmatprep.subr.bf16.mxu0 %v7805_v26 }
 0x3d7   : > { %4131 = vmatprep.mubr.f32.mxu1 %v3788_v33  ;;  %v3725_v15 = vsel %vm2051_vm2, %v9945_v57, %v7523_v36  ;;  %v3627_v37 = vsel %vm2051_vm2, %v9891_v20, %v7524_v55 }
 0x3d8   : > { %4132 = vmatmul.mubr.f32.gmra.mrb[54].mxu1 %v3692_v18 }
 0x3e4   : > { %v4068_v40 = vpop.f32.mrb[28].mxu1 }
 0x3e5   : > { %v4069_v2 = vadd.f32 %v9992_v42, %v4068_v40  ;;  %v4070_v50 = vpop.f32.mrb[29].mxu1 }
 0x3e7   : > { %v4294_v1 = vadd.f32 %v10071_v19, %v4069_v2 }
 0x3e8   : > { %v7527_v49 = vpop.permute.xlu1 %7526 }
 0x3e9   : > { %v7532_v52 = vpop.permute.xlu0 %7531  ;;  %v7529_v32 = vunpack.i.h.bf16 %v7527_v49  ;;  %v7528_v5 = vunpack.i.l.bf16 %v7527_v49  ;;  %v4396_v38 = vmax.f32 %v4294_v1, 0.0 }
 0x3ea   : > { %v7534_v54 = vunpack.i.h.bf16 %v7532_v52  ;;  %v7533_v17 = vunpack.i.l.bf16 %v7532_v52  ;;  %v10167_v21 = vpop.f32.mrb[54].mxu0 }
 0x3eb   : > { %v3757_v53 = vsel %vm3631_vm12, %v3725_v15, %v7528_v5  ;;  %v3660_v14 = vsel %vm3631_vm12, %v3627_v37, %v7529_v32  ;;  %v4073_v10 = vpop.f32.mrb[30].mxu1  ;;  %v10171_v19 = vpop.f32.mrb[55].mxu0 }
 0x3ec   : > { %v3789_v3 = vsel %vm3664_vm13, %v3757_v53, %v7533_v17  ;;  %v3693_v63 = vsel %vm3664_vm13, %v3660_v14, %v7534_v54  ;;  %v4074_v13 = vadd.f32 %v9992_v42, %v4073_v10  ;;  %v7537_v44 = vpop.permute.xlu1 %7536  ;;  %v4075_v28 = vpop.f32.mrb[31].mxu1 }
 0x3ed   : > { %v7542_v57 = vpop.permute.xlu0 %7541  ;;  %4136 = vmatprep.mubr.f32.mxu1 %v3789_v3  ;;  %v7539_v51 = vunpack.i.h.bf16 %v7537_v44  ;;  %v7538_v20 = vunpack.i.l.bf16 %v7537_v44 }
 0x3ee   : > { %v7543_v24 = vunpack.i.l.bf16 %v7542_v57  ;;  %4137 = vmatmul.mubr.f32.gmra.mrb[56].mxu1 %v3693_v63  ;;  %v4299_v12 = vadd.f32 %v10067_v16, %v4074_v13  ;;  %v7544_v27 = vunpack.i.h.bf16 %v7542_v57 }
 0x3ef   : > { %v3726_v56 = vsel %vm2051_vm2, %v9967_v29, %v7538_v20  ;;  %v3628_v6 = vsel %vm2051_vm2, %v9908_v43, %v7539_v51 }
 0x3f0   : > { %v4397_v31 = vmax.f32 %v4299_v12, 0.0  ;;  %v7547_v11 = vpop.permute.xlu1 %7546  ;;  %v3758_v23 = vsel %vm3631_vm12, %v3726_v56, %v7543_v24  ;;  %v3661_v16 = vsel %vm3631_vm12, %v3628_v6, %v7544_v27 }
 0x3f1   : > { %v7552_v22 = vpop.permute.xlu0 %7551  ;;  %v7549_v8 = vunpack.i.h.bf16 %v7547_v11  ;;  %v7548_v7 = vunpack.i.l.bf16 %v7547_v11 }
 0x3f2   : > { %v6910_v59 = vpack.c.bf16 %v4397_v31, %v4396_v38  ;;  %v7554_v45 = vunpack.i.h.bf16 %v7552_v22  ;;  %v7553_v62 = vunpack.i.l.bf16 %v7552_v22 }
 0x3f3   : > { %v3790_v47 = vsel %vm3664_vm13, %v3758_v23, %v7548_v7  ;;  %v3694_v29 = vsel %vm3664_vm13, %v3661_v16, %v7549_v8 }
 0x3f4   : > { %v7557_v61 = vpop.permute.xlu1 %7556  ;;  %4141 = vmatprep.mubr.f32.mxu1 %v3790_v47  ;;  %6911 = vmatpush1.bf16.msra.mxu0 %v6910_v59  ;;  %v3727_v40 = vsel %vm2051_vm2, %v10003_v60, %v7553_v62  ;;  %v3629_v55 = vsel %vm2051_vm2, %v9943_v35, %v7554_v45 }
 0x3f5   : > { %v7562_v34 = vpop.permute.xlu0 %7561  ;;  %v7559_v43 = vunpack.i.h.bf16 %v7557_v61  ;;  %v7558_v33 = vunpack.i.l.bf16 %v7557_v61  ;;  %4142 = vmatmul.mubr.f32.gmra.mrb[58].mxu1 %v3694_v29  ;;  %6912 = vmatprep.subr.bf16.mxu0 %v7805_v26 }
 0x3f6   : > { %v7564_v18 = vunpack.i.h.bf16 %v7562_v34  ;;  %v7563_v48 = vunpack.i.l.bf16 %v7562_v34 }
 0x3f7   : > { %v3759_v36 = vsel %vm3631_vm12, %v3727_v40, %v7558_v33  ;;  %v3662_v2 = vsel %vm3631_vm12, %v3629_v55, %v7559_v43 }
 0x3f8   : > { %v7567_v50 = vpop.permute.xlu1 %7566  ;;  %v3791_v49 = vsel %vm3664_vm13, %v3759_v36, %v7563_v48  ;;  %v3695_v52 = vsel %vm3664_vm13, %v3662_v2, %v7564_v18 }
 0x3f9   : > { %v7572_v1 = vpop.permute.xlu0 %7571  ;;  %v7569_v32 = vunpack.i.h.bf16 %v7567_v50  ;;  %v7568_v5 = vunpack.i.l.bf16 %v7567_v50  ;;  %4146 = vmatprep.mubr.f32.mxu1 %v3791_v49 }
 0x3fa   : > { %v7574_v54 = vunpack.i.h.bf16 %v7572_v1  ;;  %v7573_v17 = vunpack.i.l.bf16 %v7572_v1  ;;  %4147 = vmatmul.mubr.f32.gmra.mrb[60].mxu1 %v3695_v52 }
 0x3fb   : > { %v3728_v60 = vsel %vm2051_vm2, %v10033_v39, %v7568_v5  ;;  %v3630_v35 = vsel %vm2051_vm2, %v9960_v41, %v7569_v32 }
 0x3fc   : > { %v7577_v15 = vpop.permute.xlu1 %7576  ;;  %v3760_v14 = vsel %vm3631_vm12, %v3728_v60, %v7573_v17  ;;  %v3663_v10 = vsel %vm3631_vm12, %v3630_v35, %v7574_v54 }
 0x3fd   : > { %v7579_v37 = vunpack.i.h.bf16 %v7577_v15  ;;  %v7578_v53 = vunpack.i.l.bf16 %v7577_v15 }
 0x3ff   : > { %v3792_v3 = vsel %vm3664_vm13, %v3760_v14, %v7578_v53  ;;  %v3696_v63 = vsel %vm3664_vm13, %v3663_v10, %v7579_v37 }
 0x400   : > { %4151 = vmatprep.mubr.f32.mxu1 %v3792_v3 }
 0x401   : > { %4152 = vmatmul.mubr.f32.gmra.mrb[62].mxu1 %v3696_v63 }
 0x405   : > { %v4078_v13 = vpop.f32.mrb[32].mxu1 }
 0x406   : > { %v4079_v44 = vadd.f32 %v9992_v42, %v4078_v13  ;;  %v4080_v39 = vpop.f32.mrb[33].mxu1 }
 0x408   : > { %v4304_v57 = vadd.f32 %v10080_v4, %v4079_v44 }
 0x40a   : > { %v10204_v41 = vpop.f32.mrb[56].mxu0  ;;  %v4398_v27 = vmax.f32 %v4304_v57, 0.0 }
 0x40b   : > { %v4343_v20 = vpop.f32.mrb[57].mxu0 }
 0x40c   : > { %v4083_v51 = vpop.f32.mrb[34].mxu1 }
 0x40d   : > { %v4084_v24 = vadd.f32 %v9992_v42, %v4083_v51  ;;  %v4085_v28 = vpop.f32.mrb[35].mxu1 }
 0x40f   : > { %v4309_v12 = vadd.f32 %v10077_v30, %v4084_v24 }
 0x411   : > { %v4399_v56 = vmax.f32 %v4309_v12, 0.0 }
 0x413   : > { %v6913_v6 = vpack.c.bf16 %v4399_v56, %v4398_v27 }
 0x415   : > { %6914 = vmatpush1.bf16.msra.mxu0 %v6913_v6 }
 0x416   : > { %6915 = vmatprep.subr.bf16.mxu0 %v7805_v26 }
 0x425   : > { %v4088_v38 = vpop.f32.mrb[36].mxu1 }
 0x426   : > { %v4089_v31 = vadd.f32 %v9992_v42, %v4088_v38  ;;  %v4090_v11 = vpop.f32.mrb[37].mxu1 }
 0x428   : > { %v4314_v4 = vadd.f32 %v10114_v58, %v4089_v31 }
 0x42a   : > { %v10211_v22 = vpop.f32.mrb[58].mxu0  ;;  %v4400_v45 = vmax.f32 %v4314_v4, 0.0 }
 0x42b   : > { %v4353_v7 = vpop.f32.mrb[59].mxu0 }
 0x42c   : > { %v4093_v8 = vpop.f32.mrb[38].mxu1 }
 0x42d   : > { %v4094_v23 = vadd.f32 %v9992_v42, %v4093_v8  ;;  %v4095_v59 = vpop.f32.mrb[39].mxu1 }
 0x42f   : > { %v4319_v30 = vadd.f32 %v10110_v46, %v4094_v23 }
 0x431   : > { %v4401_v62 = vmax.f32 %v4319_v30, 0.0 }
 0x433   : > { %v6916_v16 = vpack.c.bf16 %v4401_v62, %v4400_v45 }
 0x435   : > { %6917 = vmatpush1.bf16.msra.mxu0 %v6916_v16 }
 0x436   : > { %6918 = vmatprep.subr.bf16.mxu0 %v7805_v26 }
 0x445   : > { %v4098_v47 = vpop.f32.mrb[40].mxu1 }
 0x446   : > { %v4099_v29 = vadd.f32 %v9992_v42, %v4098_v47  ;;  %v4100_v61 = vpop.f32.mrb[41].mxu1 }
 0x447   : > { %v6744_v34 = vpop.f32.mrb[60].mxu0 }
 0x448   : > { %v4324_v58 = vadd.f32 %v10140_v9, %v4099_v29  ;;  %v4363_v43 = vpop.f32.mrb[61].mxu0  ;;  %v4415_v9 = vld [vmem:[%s11287_s9 + $0x8] sm:$0xff] }
 0x449   : > { %4542 = vmatprep.mubr.f32.mxu0 %v4415_v9  ;;  %v4423_v9 = vld [vmem:[%s11287_s9 + $0x48] sm:$0xff] }
 0x44a   : > { %v4402_v55 = vmax.f32 %v4324_v58, 0.0 }
 0x44b   : > { %v10220_v40 = vpop.f32.mrb[62].mxu0 }
 0x44c   : > { %v4103_v33 = vpop.f32.mrb[42].mxu1  ;;  %v4373_v2 = vpop.f32.mrb[63].mxu0 }
 0x44d   : > { %v4104_v18 = vadd.f32 %v9992_v42, %v4103_v33  ;;  %v4105_v48 = vpop.f32.mrb[43].mxu1 }
 0x44f   : > { %v4329_v46 = vadd.f32 %v10138_v25, %v4104_v18 }
 0x451   : > { %v4403_v36 = vmax.f32 %v4329_v46, 0.0 }
 0x453   : > { %v6919_v50 = vpack.c.bf16 %v4403_v36, %v4402_v55  ;;  %v4414_v55 = vld [vmem:[%s11287_s9] sm:$0xff]  ;;  %v4417_v36 = vld [vmem:[%s11287_s9 + $0x18] sm:$0xff] }
 0x455   : > { %6920 = vmatpush1.bf16.msra.mxu0 %v6919_v50  ;;  %v4420_v50 = vld [vmem:[%s11287_s9 + $0x30] sm:$0xff] }
 0x456   : > { %6921 = vmatprep.subr.bf16.mxu0 %v7805_v26 }
 0x464   : > { %v4108_v1 = vpop.f32.mrb[44].mxu1 }
 0x465   : > { %v4109_v49 = vadd.f32 %v9992_v42, %v4108_v1  ;;  %v4110_v52 = vpop.f32.mrb[45].mxu1  ;;  %v4422_v1 = vld [vmem:[%s11287_s9 + $0x40] sm:$0xff] }
 0x466   : > { %v4424_v52 = vld [vmem:[%s11287_s9 + $0x50] sm:$0xff] }
 0x467   : > { %v4334_v25 = vadd.f32 %v10171_v19, %v4109_v49  ;;  %v4425_v49 = vld [vmem:[%s11287_s9 + $0x58] sm:$0xff] }
 0x469   : > { %v4404_v60 = vmax.f32 %v4334_v25, 0.0  ;;  %v4427_v25 = vld [vmem:[%s11287_s9 + $0x68] sm:$0xff] }
 0x46b   : > { %v4113_v32 = vpop.f32.mrb[46].mxu1 }
 0x46c   : > { %v4114_v5 = vadd.f32 %v9992_v42, %v4113_v32  ;;  %v4115_v54 = vpop.f32.mrb[47].mxu1  ;;  %v4426_v32 = vld [vmem:[%s11287_s9 + $0x60] sm:$0xff] }
 0x46d   : > { %v4428_v54 = vld [vmem:[%s11287_s9 + $0x70] sm:$0xff] }
 0x46e   : > { %v4339_v17 = vadd.f32 %v10167_v21, %v4114_v5  ;;  %v4429_v5 = vld [vmem:[%s11287_s9 + $0x78] sm:$0xff] }
 0x470   : > { %v4405_v35 = vmax.f32 %v4339_v17, 0.0  ;;  %v4431_v17 = vld [vmem:[%s11287_s9 + $0x88] sm:$0xff] }
 0x472   : > { %v6922_v15 = vpack.c.bf16 %v4405_v35, %v4404_v60  ;;  %v4430_v60 = vld [vmem:[%s11287_s9 + $0x80] sm:$0xff]  ;;  %v4433_v35 = vld [vmem:[%s11287_s9 + $0x98] sm:$0xff] }
 0x474   : > { %6923 = vmatpush1.bf16.msra.mxu0 %v6922_v15  ;;  %v4432_v15 = vld [vmem:[%s11287_s9 + $0x90] sm:$0xff] }
 0x475   : > { %6924 = vmatprep.subr.bf16.mxu0 %v7805_v26 }
 0x484   : > { %v4118_v37 = vpop.f32.mrb[48].mxu1 }
 0x485   : > { %v4119_v53 = vadd.f32 %v9992_v42, %v4118_v37  ;;  %v4120_v14 = vpop.f32.mrb[49].mxu1  ;;  %v4435_v37 = vld [vmem:[%s11287_s9 + $0xa8] sm:$0xff] }
 0x486   : > { %v4437_v14 = vld [vmem:[%s11287_s9 + $0xb8] sm:$0xff] }
 0x487   : > { %v4344_v10 = vadd.f32 %v4343_v20, %v4119_v53  ;;  %v4434_v53 = vld [vmem:[%s11287_s9 + $0xa0] sm:$0xff] }
 0x489   : > { %v4406_v44 = vmax.f32 %v4344_v10, 0.0  ;;  %v4436_v10 = vld [vmem:[%s11287_s9 + $0xb0] sm:$0xff] }
 0x48b   : > { %v4123_v3 = vpop.f32.mrb[50].mxu1 }
 0x48c   : > { %v4124_v19 = vadd.f32 %v9992_v42, %v4123_v3  ;;  %v4125_v63 = vpop.f32.mrb[51].mxu1  ;;  %v4439_v3 = vld [vmem:[%s11287_s9 + $0xc8] sm:$0xff] }
 0x48d   : > { %v4441_v63 = vld [vmem:[%s11287_s9 + $0xd8] sm:$0xff] }
 0x48e   : > { %v4349_v13 = vadd.f32 %v10204_v41, %v4124_v19  ;;  %v4438_v19 = vld [vmem:[%s11287_s9 + $0xc0] sm:$0xff] }
 0x490   : > { %v4407_v39 = vmax.f32 %v4349_v13, 0.0  ;;  %v4440_v13 = vld [vmem:[%s11287_s9 + $0xd0] sm:$0xff] }
 0x492   : > { %v6925_v21 = vpack.c.bf16 %v4407_v39, %v4406_v44  ;;  %v4443_v44 = vld [vmem:[%s11287_s9 + $0xe8] sm:$0xff]  ;;  %v4442_v39 = vld [vmem:[%s11287_s9 + $0xe0] sm:$0xff] }
 0x494   : > { %6926 = vmatpush1.bf16.msra.mxu0 %v6925_v21  ;;  %v4445_v21 = vld [vmem:[%s11287_s9 + $0xf8] sm:$0xff] }
 0x495   : > { %6927 = vmatprep.subr.bf16.mxu0 %v7805_v26 }
 0x4a4   : > { %v4128_v57 = vpop.f32.mrb[52].mxu1 }
 0x4a5   : > { %v4129_v51 = vadd.f32 %v9992_v42, %v4128_v57  ;;  %v4130_v24 = vpop.f32.mrb[53].mxu1  ;;  %v4444_v57 = vld [vmem:[%s11287_s9 + $0xf0] sm:$0xff] }
 0x4a6   : > { %v4446_v24 = vld [vmem:[%s11287_s9 + $0x100] sm:$0xff] }
 0x4a7   : > { %v4354_v28 = vadd.f32 %v4353_v7, %v4129_v51  ;;  %v4447_v51 = vld [vmem:[%s11287_s9 + $0x108] sm:$0xff] }
 0x4a9   : > { %v4408_v6 = vmax.f32 %v4354_v28, 0.0  ;;  %v4449_v28 = vld [vmem:[%s11287_s9 + $0x118] sm:$0xff] }
 0x4ab   : > { %v4133_v12 = vpop.f32.mrb[54].mxu1 }
 0x4ac   : > { %v4134_v20 = vadd.f32 %v9992_v42, %v4133_v12  ;;  %v4135_v27 = vpop.f32.mrb[55].mxu1  ;;  %v4448_v12 = vld [vmem:[%s11287_s9 + $0x110] sm:$0xff] }
 0x4ad   : > { %v4450_v27 = vld [vmem:[%s11287_s9 + $0x120] sm:$0xff] }
 0x4ae   : > { %v4359_v56 = vadd.f32 %v10211_v22, %v4134_v20  ;;  %v4451_v20 = vld [vmem:[%s11287_s9 + $0x128] sm:$0xff] }
 0x4b0   : > { %v4409_v38 = vmax.f32 %v4359_v56, 0.0  ;;  %v4453_v56 = vld [vmem:[%s11287_s9 + $0x138] sm:$0xff] }
 0x4b2   : > { %v6928_v41 = vpack.c.bf16 %v4409_v38, %v4408_v6  ;;  %v4452_v6 = vld [vmem:[%s11287_s9 + $0x130] sm:$0xff]  ;;  %v4455_v38 = vld [vmem:[%s11287_s9 + $0x148] sm:$0xff] }
 0x4b4   : > { %6929 = vmatpush1.bf16.msra.mxu0 %v6928_v41  ;;  %v4454_v41 = vld [vmem:[%s11287_s9 + $0x140] sm:$0xff] }
 0x4b5   : > { %6930 = vmatprep.subr.bf16.mxu0 %v7805_v26 }
 0x4c1   : > { %v4138_v31 = vpop.f32.mrb[56].mxu1 }
 0x4c2   : > { %v4139_v11 = vadd.f32 %v9992_v42, %v4138_v31  ;;  %v4140_v4 = vpop.f32.mrb[57].mxu1  ;;  %v4457_v31 = vld [vmem:[%s11287_s9 + $0x158] sm:$0xff] }
 0x4c3   : > { %v4459_v4 = vld [vmem:[%s11287_s9 + $0x168] sm:$0xff] }
 0x4c4   : > { %v4364_v8 = vadd.f32 %v4363_v43, %v4139_v11  ;;  %v4456_v11 = vld [vmem:[%s11287_s9 + $0x150] sm:$0xff] }
 0x4c6   : > { %v4410_v45 = vmax.f32 %v4364_v8, 0.0  ;;  %v4458_v8 = vld [vmem:[%s11287_s9 + $0x160] sm:$0xff] }
 0x4c8   : > { %v4143_v23 = vpop.f32.mrb[58].mxu1 }
 0x4c9   : > { %v4144_v7 = vadd.f32 %v9992_v42, %v4143_v23  ;;  %v4145_v59 = vpop.f32.mrb[59].mxu1  ;;  %v4461_v23 = vld [vmem:[%s11287_s9 + $0x178] sm:$0xff] }
 0x4ca   : > { %v4463_v59 = vld [vmem:[%s11287_s9 + $0x188] sm:$0xff] }
 0x4cb   : > { %v4369_v30 = vadd.f32 %v6744_v34, %v4144_v7  ;;  %v4460_v7 = vld [vmem:[%s11287_s9 + $0x170] sm:$0xff] }
 0x4cd   : > { %v4411_v62 = vmax.f32 %v4369_v30, 0.0  ;;  %v4148_v16 = vpop.f32.mrb[60].mxu1  ;;  %v4462_v30 = vld [vmem:[%s11287_s9 + $0x180] sm:$0xff] }
 0x4ce   : > { %v4149_v22 = vadd.f32 %v9992_v42, %v4148_v16  ;;  %v4150_v47 = vpop.f32.mrb[61].mxu1  ;;  %v4467_v16 = vld [vmem:[%s11287_s9 + $0x1a8] sm:$0xff] }
 0x4cf   : > { %v6931_v29 = vpack.c.bf16 %v4411_v62, %v4410_v45  ;;  %v4465_v45 = vld [vmem:[%s11287_s9 + $0x198] sm:$0xff]  ;;  %v4464_v62 = vld [vmem:[%s11287_s9 + $0x190] sm:$0xff] }
 0x4d0   : > { %v4374_v61 = vadd.f32 %v4373_v2, %v4149_v22  ;;  %v4421_v2 = vld [vmem:[%s11287_s9 + $0x38] sm:$0xff]  ;;  %v4466_v22 = vld [vmem:[%s11287_s9 + $0x1a0] sm:$0xff] }
 0x4d1   : > { %6932 = vmatpush1.bf16.msra.mxu0 %v6931_v29  ;;  %v4469_v47 = vld [vmem:[%s11287_s9 + $0x1b8] sm:$0xff]  ;;  %v4468_v29 = vld [vmem:[%s11287_s9 + $0x1b0] sm:$0xff] }
 0x4d2   : > { %6933 = vmatprep.subr.bf16.mxu0 %v7805_v26  ;;  %v4412_v48 = vmax.f32 %v4374_v61, 0.0  ;;  %v4416_v26 = vld [vmem:[%s11287_s9 + $0x10] sm:$0xff]  ;;  %v4471_v61 = vld [vmem:[%s11287_s9 + $0x1c8] sm:$0xff] }
 0x4d4   : > { %v4153_v58 = vpop.f32.mrb[62].mxu1 }
 0x4d5   : > { %v4154_v33 = vadd.f32 %v9992_v42, %v4153_v58  ;;  %v4155_v43 = vpop.f32.mrb[63].mxu1  ;;  %v4419_v42 = vld [vmem:[%s11287_s9 + $0x28] sm:$0xff]  ;;  %v4470_v58 = vld [vmem:[%s11287_s9 + $0x1c0] sm:$0xff] }
 0x4d6   : > { %v4472_v43 = vld [vmem:[%s11287_s9 + $0x1d0] sm:$0xff] }
 0x4d7   : > { %v4379_v18 = vadd.f32 %v10220_v40, %v4154_v33  ;;  %v4418_v40 = vld [vmem:[%s11287_s9 + $0x20] sm:$0xff]  ;;  %v4473_v33 = vld [vmem:[%s11287_s9 + $0x1d8] sm:$0xff] }
 0x4d9   : > { %v4413_v46 = vmax.f32 %v4379_v18, 0.0  ;;  %v4475_v18 = vld [vmem:[%s11287_s9 + $0x1e8] sm:$0xff] }
 0x4db   : > { %v6934_v34 = vpack.c.bf16 %v4413_v46, %v4412_v48  ;;  %v4474_v48 = vld [vmem:[%s11287_s9 + $0x1e0] sm:$0xff]  ;;  %v4477_v46 = vld [vmem:[%s11287_s9 + $0x1f8] sm:$0xff] }
 0x4dd   : > { %6935 = vmatpush1.bf16.msra.mxu0 %v6934_v34  ;;  %v4476_v34 = vld [vmem:[%s11287_s9 + $0x1f0] sm:$0xff] }
 0x4e0   : > { %4543 = vmatmul.mubr.f32.vlgmr.msra.gmra.mrb[64].mxu0 %v4414_v55 }
 0x4e1   : > { %4547 = vmatprep.mubr.f32.mxu0 %v4417_v36 }
 0x4e4   : > { %4548 = vmatmul.mubr.f32.gmra.mrb[66].mxu0 %v4416_v26 }
 0x4e5   : > { %4552 = vmatprep.mubr.f32.mxu0 %v4419_v42 }
 0x4e8   : > { %4553 = vmatmul.mubr.f32.gmra.mrb[68].mxu0 %v4418_v40  ;;  %v5085_v40 = vld [vmem:[%s11283_s5 + $0x80] sm:$0xff] }
 0x4e9   : > { %4557 = vmatprep.mubr.f32.mxu0 %v4421_v2  ;;  %v5086_v2 = vld [vmem:[%s11283_s5 + $0x88] sm:$0xff] }
 0x4ec   : > { %4558 = vmatmul.mubr.f32.gmra.mrb[70].mxu0 %v4420_v50  ;;  %v5069_v50 = vld [vmem:[%s11283_s5] sm:$0xff] }
 0x4ed   : > { %4562 = vmatprep.mubr.f32.mxu0 %v4423_v9 }
 0x4f0   : > { %4563 = vmatmul.mubr.f32.gmra.mrb[72].mxu0 %v4422_v1  ;;  %v6936_v1 = vpack.c.bf16 %v5086_v2, %v5085_v40 }
 0x4f1   : > { %4567 = vmatprep.mubr.f32.mxu0 %v4425_v49  ;;  %v5070_v49 = vld [vmem:[%s11283_s5 + $0x8] sm:$0xff] }
 0x4f2   : > { %6937 = vmatprep.subr.bf16.mxu1 %v6936_v1 }
 0x4f4   : > { %4568 = vmatmul.mubr.f32.gmra.mrb[74].mxu0 %v4424_v52 }
 0x4f5   : > { %4572 = vmatprep.mubr.f32.mxu0 %v4427_v25  ;;  %v6938_v25 = vpack.c.bf16 %v5070_v49, %v5069_v50 }
 0x4f7   : > { %6939 = vmatpush3.bf16.msra.mxu1 %v6938_v25 }
 0x4f8   : > { %4573 = vmatmul.mubr.f32.gmra.mrb[76].mxu0 %v4426_v32 }
 0x4f9   : > { %4577 = vmatprep.mubr.f32.mxu0 %v4429_v5 }
 0x4fc   : > { %4578 = vmatmul.mubr.f32.gmra.mrb[78].mxu0 %v4428_v54 }
 0x4fd   : > { %4582 = vmatprep.mubr.f32.mxu0 %v4431_v17 }
 0x500   : > { %4583 = vmatmul.mubr.f32.gmra.mrb[80].mxu0 %v4430_v60 }
 0x501   : > { %4587 = vmatprep.mubr.f32.mxu0 %v4433_v35 }
 0x504   : > { %4588 = vmatmul.mubr.f32.gmra.mrb[82].mxu0 %v4432_v15  ;;  %v5087_v15 = vld [vmem:[%s11283_s5 + $0x90] sm:$0xff] }
 0x505   : > { %4592 = vmatprep.mubr.f32.mxu0 %v4435_v37  ;;  %v5088_v37 = vld [vmem:[%s11283_s5 + $0x98] sm:$0xff] }
 0x508   : > { %4593 = vmatmul.mubr.f32.gmra.mrb[84].mxu0 %v4434_v53  ;;  %v5071_v53 = vld [vmem:[%s11283_s5 + $0x10] sm:$0xff] }
 0x509   : > { %4597 = vmatprep.mubr.f32.mxu0 %v4437_v14 }
 0x50c   : > { %4598 = vmatmul.mubr.f32.gmra.mrb[86].mxu0 %v4436_v10  ;;  %v6940_v10 = vpack.c.bf16 %v5088_v37, %v5087_v15 }
 0x50d   : > { %4602 = vmatprep.mubr.f32.mxu0 %v4439_v3  ;;  %v5072_v3 = vld [vmem:[%s11283_s5 + $0x18] sm:$0xff] }
 0x50e   : > { %6941 = vmatprep.subr.bf16.mxu1 %v6940_v10 }
 0x510   : > { %4603 = vmatmul.mubr.f32.gmra.mrb[88].mxu0 %v4438_v19 }
 0x511   : > { %4607 = vmatprep.mubr.f32.mxu0 %v4441_v63  ;;  %v6942_v63 = vpack.c.bf16 %v5072_v3, %v5071_v53 }
 0x513   : > { %6943 = vmatpush3.bf16.msra.mxu1 %v6942_v63 }
 0x514   : > { %4608 = vmatmul.mubr.f32.gmra.mrb[90].mxu0 %v4440_v13 }
 0x515   : > { %4612 = vmatprep.mubr.f32.mxu0 %v4443_v44 }
 0x518   : > { %4613 = vmatmul.mubr.f32.gmra.mrb[92].mxu0 %v4442_v39  ;;  %v5089_v39 = vld [vmem:[%s11283_s5 + $0xa0] sm:$0xff] }
 0x519   : > { %4617 = vmatprep.mubr.f32.mxu0 %v4445_v21  ;;  %v5090_v21 = vld [vmem:[%s11283_s5 + $0xa8] sm:$0xff] }
 0x51c   : > { %4618 = vmatmul.mubr.f32.gmra.mrb[94].mxu0 %v4444_v57  ;;  %v5073_v57 = vld [vmem:[%s11283_s5 + $0x20] sm:$0xff] }
 0x51d   : > { %4622 = vmatprep.mubr.f32.mxu0 %v4447_v51 }
 0x520   : > { %4623 = vmatmul.mubr.f32.gmra.mrb[96].mxu0 %v4446_v24  ;;  %v6944_v24 = vpack.c.bf16 %v5090_v21, %v5089_v39 }
 0x521   : > { %4627 = vmatprep.mubr.f32.mxu0 %v4449_v28  ;;  %v5074_v28 = vld [vmem:[%s11283_s5 + $0x28] sm:$0xff] }
 0x522   : > { %6945 = vmatprep.subr.bf16.mxu1 %v6944_v24 }
 0x524   : > { %4628 = vmatmul.mubr.f32.gmra.mrb[98].mxu0 %v4448_v12  ;;  %v5091_v12 = vld [vmem:[%s11283_s5 + $0xb0] sm:$0xff] }
 0x525   : > { %4632 = vmatprep.mubr.f32.mxu0 %v4451_v20  ;;  %v5092_v20 = vld [vmem:[%s11283_s5 + $0xb8] sm:$0xff] }
 0x528   : > { %4633 = vmatmul.mubr.f32.gmra.mrb[100].mxu0 %v4450_v27 }
 0x529   : > { %4637 = vmatprep.mubr.f32.mxu0 %v4453_v56 }
 0x52c   : > { %4638 = vmatmul.mubr.f32.gmra.mrb[102].mxu0 %v4452_v6  ;;  %v6946_v6 = vpack.c.bf16 %v5074_v28, %v5073_v57 }
 0x52d   : > { %4642 = vmatprep.mubr.f32.mxu0 %v4455_v38  ;;  %v6948_v38 = vpack.c.bf16 %v5092_v20, %v5091_v12 }
 0x52e   : > { %6947 = vmatpush3.bf16.msra.mxu1 %v6946_v6 }
 0x52f   : > { %6949 = vmatprep.subr.bf16.mxu1 %v6948_v38 }
 0x530   : > { %4643 = vmatmul.mubr.f32.gmra.mrb[104].mxu0 %v4454_v41  ;;  %v5075_v41 = vld [vmem:[%s11283_s5 + $0x30] sm:$0xff] }
 0x531   : > { %4647 = vmatprep.mubr.f32.mxu0 %v4457_v31  ;;  %v5076_v31 = vld [vmem:[%s11283_s5 + $0x38] sm:$0xff] }
 0x534   : > { %4648 = vmatmul.mubr.f32.gmra.mrb[106].mxu0 %v4456_v11  ;;  %v5093_v11 = vld [vmem:[%s11283_s5 + $0xc0] sm:$0xff] }
 0x535   : > { %4652 = vmatprep.mubr.f32.mxu0 %v4459_v4  ;;  %v5094_v4 = vld [vmem:[%s11283_s5 + $0xc8] sm:$0xff] }
 0x538   : > { %4653 = vmatmul.mubr.f32.gmra.mrb[108].mxu0 %v4458_v8  ;;  %v6950_v8 = vpack.c.bf16 %v5076_v31, %v5075_v41 }
 0x539   : > { %4657 = vmatprep.mubr.f32.mxu0 %v4461_v23 }
 0x53a   : > { %6951 = vmatpush3.bf16.msra.mxu1 %v6950_v8  ;;  %v5098_v8 = vld [vmem:[%s11283_s5 + $0xe8] sm:$0xff] }
 0x53c   : > { %4658 = vmatmul.mubr.f32.gmra.mrb[110].mxu0 %v4460_v7  ;;  %v6952_v7 = vpack.c.bf16 %v5094_v4, %v5093_v11  ;;  %v5097_v4 = vld [vmem:[%s11283_s5 + $0xe0] sm:$0xff] }
 0x53d   : > { %4662 = vmatprep.mubr.f32.mxu0 %v4463_v59  ;;  %v5077_v59 = vld [vmem:[%s11283_s5 + $0x40] sm:$0xff] }
 0x53e   : > { %6953 = vmatprep.subr.bf16.mxu1 %v6952_v7 }
 0x540   : > { %4663 = vmatmul.mubr.f32.gmra.mrb[112].mxu0 %v4462_v30  ;;  %v5078_v30 = vld [vmem:[%s11283_s5 + $0x48] sm:$0xff] }
 0x541   : > { %4667 = vmatprep.mubr.f32.mxu0 %v4465_v45 }
 0x544   : > { %4668 = vmatmul.mubr.f32.gmra.mrb[114].mxu0 %v4464_v62 }
 0x545   : > { %4672 = vmatprep.mubr.f32.mxu0 %v4467_v16  ;;  %v5095_v16 = vld [vmem:[%s11283_s5 + $0xd0] sm:$0xff] }
 0x548   : > { %4673 = vmatmul.mubr.f32.gmra.mrb[116].mxu0 %v4466_v22  ;;  %v5096_v22 = vld [vmem:[%s11283_s5 + $0xd8] sm:$0xff] }
 0x549   : > { %4677 = vmatprep.mubr.f32.mxu0 %v4469_v47  ;;  %v6954_v47 = vpack.c.bf16 %v5078_v30, %v5077_v59  ;;  %v6960_v59 = vpack.c.bf16 %v5098_v8, %v5097_v4  ;;  %v5081_v30 = vld [vmem:[%s11283_s5 + $0x60] sm:$0xff] }
 0x54b   : > { %6955 = vmatpush3.bf16.msra.mxu1 %v6954_v47  ;;  %v5100_v47 = vld [vmem:[%s11283_s5 + $0xf8] sm:$0xff] }
 0x54c   : > { %4678 = vmatmul.mubr.f32.gmra.mrb[118].mxu0 %v4468_v29 }
 0x54d   : > { %4682 = vmatprep.mubr.f32.mxu0 %v4471_v61  ;;  %v6956_v61 = vpack.c.bf16 %v5096_v22, %v5095_v16  ;;  %v5099_v22 = vld [vmem:[%s11283_s5 + $0xf0] sm:$0xff] }
 0x54f   : > { %6957 = vmatprep.subr.bf16.mxu1 %v6956_v61 }
 0x550   : > { %4683 = vmatmul.mubr.f32.gmra.mrb[120].mxu0 %v4470_v58  ;;  %v5079_v58 = vld [vmem:[%s11283_s5 + $0x50] sm:$0xff] }
 0x551   : > { %4687 = vmatprep.mubr.f32.mxu0 %v4473_v33  ;;  %v5080_v33 = vld [vmem:[%s11283_s5 + $0x58] sm:$0xff] }
 0x554   : > { %4688 = vmatmul.mubr.f32.gmra.mrb[122].mxu0 %v4472_v43 }
 0x555   : > { %4692 = vmatprep.mubr.f32.mxu0 %v4475_v18 }
 0x558   : > { %4693 = vmatmul.mubr.f32.gmra.mrb[124].mxu0 %v4474_v48  ;;  %v6958_v48 = vpack.c.bf16 %v5080_v33, %v5079_v58  ;;  %v6964_v58 = vpack.c.bf16 %v5100_v47, %v5099_v22  ;;  %v5083_v33 = vld [vmem:[%s11283_s5 + $0x70] sm:$0xff] }
 0x559   : > { %4697 = vmatprep.mubr.f32.mxu0 %v4477_v46 }
 0x55a   : > { %6959 = vmatpush3.bf16.msra.mxu1 %v6958_v48  ;;  %v4764_v48 = vld [vmem:[#allocation4 + $0x1] sm:$0xff] }
 0x55b   : > { %6961 = vmatprep.subr.bf16.mxu1 %v6960_v59 }
 0x55c   : > { %4698 = vmatmul.mubr.f32.gmra.mrb[126].mxu0 %v4476_v34 }
 0x5b3   : > { %v10434_v55 = vpop.f32.mrb[64].mxu0 }
 0x5b4   : > { %v4546_v36 = vpop.f32.mrb[65].mxu0 }
 0x5b7   : > { %v10436_v26 = vpop.f32.mrb[66].mxu0 }
 0x5b8   : > { %v4551_v42 = vpop.f32.mrb[67].mxu0 }
 0x5bb   : > { %v10447_v9 = vpop.f32.mrb[68].mxu0 }
 0x5bc   : > { %v4556_v52 = vpop.f32.mrb[69].mxu0 }
 0x5bf   : > { %v10452_v32 = vpop.f32.mrb[70].mxu0 }
 0x5c0   : > { %v4561_v5 = vpop.f32.mrb[71].mxu0 }
 0x5c3   : > { %v10454_v54 = vpop.f32.mrb[72].mxu0 }
 0x5c4   : > { %v4566_v17 = vpop.f32.mrb[73].mxu0 }
 0x5c7   : > { %v10456_v60 = vpop.f32.mrb[74].mxu0 }
 0x5c8   : > { %v4571_v35 = vpop.f32.mrb[75].mxu0 }
 0x5cb   : > { %v10467_v14 = vpop.f32.mrb[76].mxu0 }
 0x5cc   : > { %v4576_v19 = vpop.f32.mrb[77].mxu0 }
 0x5cf   : > { %v10472_v13 = vpop.f32.mrb[78].mxu0 }
 0x5d0   : > { %v4581_v44 = vpop.f32.mrb[79].mxu0 }
 0x5d3   : > { %v10483_v51 = vpop.f32.mrb[80].mxu0 }
 0x5d4   : > { %v4703_v27 = vmax.f32 %v10434_v55, %v10483_v51  ;;  %v4586_v56 = vpop.f32.mrb[81].mxu0 }
 0x5d7   : > { %v10508_v23 = vpop.f32.mrb[82].mxu0 }
 0x5d8   : > { %v4704_v45 = vmax.f32 %v10436_v26, %v10508_v23  ;;  %v4591_v62 = vpop.f32.mrb[83].mxu0  ;;  %v5084_v26 = vld [vmem:[%s11283_s5 + $0x78] sm:$0xff] }
 0x5d9   : > { %v5082_v62 = vld [vmem:[%s11283_s5 + $0x68] sm:$0xff] }
 0x5db   : > { %v10524_v29 = vpop.f32.mrb[84].mxu0 }
 0x5dc   : > { %v4705_v43 = vmax.f32 %v10447_v9, %v10524_v29  ;;  %v4596_v18 = vpop.f32.mrb[85].mxu0 }
 0x5dd   : > { %v6966_v18 = vpack.c.bf16 %v5084_v26, %v5083_v33  ;;  %v5102_v33 = vld [vmem:[%s11283_s5 + $0x108] sm:$0xff] }
 0x5df   : > { %v10534_v46 = vpop.f32.mrb[86].mxu0 }
 0x5e0   : > { %v4706_v34 = vmax.f32 %v10452_v32, %v10534_v46  ;;  %v4601_v36 = vpop.f32.mrb[87].mxu0 }
 0x5e3   : > { %v10538_v42 = vpop.f32.mrb[88].mxu0 }
 0x5e4   : > { %v4707_v40 = vmax.f32 %v10454_v54, %v10538_v42  ;;  %v4606_v2 = vpop.f32.mrb[89].mxu0 }
 0x5e7   : > { %v10542_v50 = vpop.f32.mrb[90].mxu0 }
 0x5e8   : > { %v4708_v1 = vmax.f32 %v10456_v60, %v10542_v50  ;;  %v4611_v49 = vpop.f32.mrb[91].mxu0 }
 0x5eb   : > { %v10546_v52 = vpop.f32.mrb[92].mxu0 }
 0x5ec   : > { %v4709_v25 = vmax.f32 %v10467_v14, %v10546_v52  ;;  %v4616_v5 = vpop.f32.mrb[93].mxu0 }
 0x5ef   : > { %v10550_v17 = vpop.f32.mrb[94].mxu0 }
 0x5f0   : > { %v4710_v35 = vmax.f32 %v10472_v13, %v10550_v17  ;;  %v4621_v15 = vpop.f32.mrb[95].mxu0 }
 0x5f3   : > { %v4624_v37 = vpop.f32.mrb[96].mxu0 }
 0x5f4   : > { %v4626_v53 = vpop.f32.mrb[97].mxu0 }
 0x5f5   : > { %v4772_v53 = vld [vmem:[#allocation4 + $0x2] sm:$0xff] }
 0x5f7   : > { %v4629_v10 = vpop.f32.mrb[98].mxu0 }
 0x5f8   : > { %v4631_v3 = vpop.f32.mrb[99].mxu0 }
 0x5fb   : > { %v4634_v19 = vpop.f32.mrb[100].mxu0 }
 0x5fc   : > { %v4636_v63 = vpop.f32.mrb[101].mxu0 }
 0x5ff   : > { %v4639_v44 = vpop.f32.mrb[102].mxu0 }
 0x600   : > { %v4641_v39 = vpop.f32.mrb[103].mxu0 }
 0x603   : > { %v4644_v21 = vpop.f32.mrb[104].mxu0 }
 0x604   : > { %v4646_v57 = vpop.f32.mrb[105].mxu0 }
 0x607   : > { %v10554_v24 = vpop.f32.mrb[106].mxu0 }
 0x608   : > { %v4651_v28 = vpop.f32.mrb[107].mxu0 }
 0x60b   : > { %v10556_v12 = vpop.f32.mrb[108].mxu0 }
 0x60c   : > { %v4656_v20 = vpop.f32.mrb[109].mxu0 }
 0x60f   : > { %v10558_v56 = vpop.f32.mrb[110].mxu0 }
 0x610   : > { %v4661_v6 = vpop.f32.mrb[111].mxu0 }
 0x613   : > { %v4664_v38 = vpop.f32.mrb[112].mxu0 }
 0x614   : > { %v4711_v41 = vmax.f32 %v4624_v37, %v4664_v38  ;;  %v4666_v31 = vpop.f32.mrb[113].mxu0 }
 0x616   : > { %v4719_v11 = vmax.f32 %v4703_v27, %v4711_v41  ;;  %v6962_v27 = vpack.c.bf16 %v5082_v62, %v5081_v30 }
 0x617   : > { %v4669_v7 = vpop.f32.mrb[114].mxu0 }
 0x618   : > { %4748 = vst.msk [vmem:[#allocation4 + $0x11] sm:$0xff] %vm2051_vm2, %v4719_v11  ;;  %v4712_v55 = vmax.f32 %v4629_v10, %v4669_v7  ;;  %v4671_v51 = vpop.f32.mrb[115].mxu0  ;;  %6963 = vmatpush3.bf16.msra.mxu1 %v6962_v27 }
 0x619   : > { %6965 = vmatprep.subr.bf16.mxu1 %v6964_v58  ;;  %v5101_v58 = vld [vmem:[%s11283_s5 + $0x100] sm:$0xff] }
 0x61a   : > { %v4720_v16 = vmax.f32 %v4704_v45, %v4712_v55  ;;  %v6968_v26 = vpack.c.bf16 %v5102_v33, %v5101_v58 }
 0x61b   : > { %v4674_v61 = vpop.f32.mrb[116].mxu0 }
 0x61c   : > { %4749 = vst.msk [vmem:[#allocation4 + $0x21] sm:$0xff] %vm2051_vm2, %v4720_v16  ;;  %v4713_v23 = vmax.f32 %v4634_v19, %v4674_v61  ;;  %v4676_v45 = vpop.f32.mrb[117].mxu0  ;;  %6967 = vmatpush3.bf16.msra.mxu1 %v6966_v18 }
 0x61d   : > { %6969 = vmatprep.subr.bf16.mxu1 %v6968_v26 }
 0x61e   : > { %v4721_v36 = vmax.f32 %v4705_v43, %v4713_v23 }
 0x61f   : > { %v4679_v2 = vpop.f32.mrb[118].mxu0  ;;  %v4796_v49 = vld [vmem:[#allocation4 + $0x12] sm:$0xff] }
 0x620   : > { %4750 = vst.msk [vmem:[#allocation4 + $0x31] sm:$0xff] %vm2051_vm2, %v4721_v36  ;;  %v4714_v5 = vmax.f32 %v4639_v44, %v4679_v2  ;;  %v7580_v15 = vpack.i.bf16 %v4764_v48, %v4796_v49  ;;  %v4681_v37 = vpop.f32.mrb[119].mxu0  ;;  %v10600_v19 = vld [vmem:[#allocation4 + $0x10] sm:$0xff] }
 0x621   : > { %v10617_v57 = vld [vmem:[#allocation4 + $0x11] sm:$0xff] }
 0x622   : > { %v4722_v10 = vmax.f32 %v4706_v34, %v4714_v5  ;;  %7581 = vrot.lane.b32.xlu0 %v7580_v15, %s7804_s29 }
 0x623   : > { %v4684_v3 = vpop.f32.mrb[120].mxu0  ;;  %v10602_v9 = vld [vmem:[#allocation4 + $0x21] sm:$0xff] }
 0x624   : > { %v10604_v29 = vld [vmem:[#allocation4 + $0x20] sm:$0xff]  ;;  %4751 = vst.msk [vmem:[#allocation4 + $0x41] sm:$0xff] %vm2051_vm2, %v4722_v10  ;;  %v4715_v43 = vmax.f32 %v4644_v21, %v4684_v3  ;;  %v7590_v63 = vpack.i.bf16 %v10600_v19, %v10602_v9  ;;  %v4686_v39 = vpop.f32.mrb[121].mxu0 }
 0x625   : > { %v7585_v44 = vpack.i.bf16 %v4772_v53, %v10604_v29  ;;  %v10610_v32 = vld [vmem:[#allocation4 + $0x22] sm:$0xff]  ;;  %v4812_v53 = vld [vmem:[#allocation4 + $0x90] sm:$0xff] }
 0x626   : > { %v4723_v46 = vmax.f32 %v4707_v40, %v4715_v43  ;;  %7591 = vrot.lane.b32.xlu0 %v7590_v63, %s7807_s20  ;;  %v7595_v20 = vpack.i.bf16 %v10617_v57, %v10610_v32  ;;  %v4820_v63 = vld [vmem:[#allocation4 + $0x91] sm:$0xff] }
 0x627   : > { %7586 = vrot.lane.b32.xlu1 %v7585_v44, %s7806_s13  ;;  %v4689_v34 = vpop.f32.mrb[122].mxu0  ;;  %v10619_v21 = vld [vmem:[#allocation4 + $0x30] sm:$0xff] }
 0x628   : > { %4752 = vst.msk [vmem:[#allocation4 + $0x51] sm:$0xff] %vm2051_vm2, %v4723_v46  ;;  %v4716_v28 = vmax.f32 %v10554_v24, %v4689_v34  ;;  %v7600_v6 = vpack.i.bf16 %v4796_v49, %v10619_v21  ;;  %v4691_v54 = vpop.f32.mrb[123].mxu0  ;;  %v10626_v42 = vld [vmem:[#allocation4 + $0x31] sm:$0xff] }
 0x629   : > { %v10628_v40 = vld [vmem:[#allocation4 + $0x32] sm:$0xff]  ;;  %v7605_v31 = vpack.i.bf16 %v10604_v29, %v10626_v42 }
 0x62a   : > { %v4724_v38 = vmax.f32 %v4708_v1, %v4716_v28  ;;  %7601 = vrot.lane.b32.xlu0 %v7600_v6, %s7806_s13  ;;  %v7610_v11 = vpack.i.bf16 %v10602_v9, %v10628_v40  ;;  %v4756_v28 = vld [vmem:[#allocation4] sm:$0xff] }
 0x62b   : > { %7596 = vrot.lane.b32.xlu1 %v7595_v20, %s7804_s29  ;;  %v4694_v41 = vpop.f32.mrb[124].mxu0  ;;  %v10641_v8 = vld [vmem:[#allocation4 + $0x41] sm:$0xff] }
 0x62c   : > { %4753 = vst.msk [vmem:[#allocation4 + $0x61] sm:$0xff] %vm2051_vm2, %v4724_v38  ;;  %v4717_v24 = vmax.f32 %v10556_v12, %v4694_v41  ;;  %v4696_v4 = vpop.f32.mrb[125].mxu0  ;;  %v10643_v60 = vld [vmem:[#allocation4 + $0x40] sm:$0xff]  ;;  %v7620_v7 = vpack.i.bf16 %v10619_v21, %v10641_v8 }
 0x62d   : > { %v7615_v59 = vpack.i.bf16 %v10610_v32, %v10643_v60  ;;  %v10656_v62 = vld [vmem:[#allocation4 + $0x42] sm:$0xff] }
 0x62e   : > { %v4725_v50 = vmax.f32 %v4709_v25, %v4717_v24  ;;  %7611 = vrot.lane.b32.xlu0 %v7610_v11, %s7804_s29  ;;  %v7625_v25 = vpack.i.bf16 %v10626_v42, %v10656_v62  ;;  %v5104_v11 = vld [vmem:[%s11283_s5 + $0x118] sm:$0xff] }
 0x62f   : > { %7606 = vrot.lane.b32.xlu1 %v7605_v31, %s7807_s20  ;;  %v4699_v1 = vpop.f32.mrb[126].mxu0  ;;  %v10658_v14 = vld [vmem:[#allocation4 + $0x50] sm:$0xff] }
 0x630   : > { %4754 = vst.msk [vmem:[#allocation4 + $0x71] sm:$0xff] %vm2051_vm2, %v4725_v50  ;;  %v4718_v12 = vmax.f32 %v10558_v56, %v4699_v1  ;;  %v4701_v30 = vpop.f32.mrb[127].mxu0  ;;  %v7630_v56 = vpack.i.bf16 %v10628_v40, %v10658_v14  ;;  %v10670_v55 = vld [vmem:[#allocation4 + $0x51] sm:$0xff] }
 0x631   : > { %v10672_v51 = vld [vmem:[#allocation4 + $0x52] sm:$0xff]  ;;  %v7635_v13 = vpack.i.bf16 %v10643_v60, %v10670_v55 }
 0x632   : > { %v4726_v52 = vmax.f32 %v4710_v35, %v4718_v12  ;;  %7621 = vrot.lane.b32.xlu0 %v7620_v7, %s7807_s20  ;;  %v7640_v17 = vpack.i.bf16 %v10641_v8, %v10672_v51  ;;  %v5103_v31 = vld [vmem:[%s11283_s5 + $0x110] sm:$0xff] }
 0x633   : > { %7616 = vrot.lane.b32.xlu1 %v7615_v59, %s7806_s13  ;;  %v10680_v35 = vld [vmem:[#allocation4 + $0x61] sm:$0xff] }
 0x634   : > { %4755 = vst.msk [vmem:[#allocation4 + $0x81] sm:$0xff] %vm2051_vm2, %v4726_v52  ;;  %v10682_v27 = vld [vmem:[#allocation4 + $0x60] sm:$0xff]  ;;  %v7650_v16 = vpack.i.bf16 %v10658_v14, %v10680_v35 }
 0x635   : > { %v7645_v22 = vpack.i.bf16 %v10656_v62, %v10682_v27  ;;  %v10690_v47 = vld [vmem:[#allocation4 + $0x62] sm:$0xff] }
 0x636   : > { %7631 = vrot.lane.b32.xlu0 %v7630_v56, %s7806_s13  ;;  %v7655_v23 = vpack.i.bf16 %v10670_v55, %v10690_v47 }
 0x637   : > { %7626 = vrot.lane.b32.xlu1 %v7625_v25, %s7804_s29  ;;  %v10692_v61 = vld [vmem:[#allocation4 + $0x70] sm:$0xff]  ;;  %v6972_v25 = vpack.c.bf16 %v5104_v11, %v5103_v31 }
 0x638   : > { %v7660_v45 = vpack.i.bf16 %v10672_v51, %v10692_v61  ;;  %v10706_v18 = vld [vmem:[#allocation4 + $0x71] sm:$0xff] }
 0x639   : > { %v10708_v48 = vld [vmem:[#allocation4 + $0x72] sm:$0xff]  ;;  %v7665_v36 = vpack.i.bf16 %v10682_v27, %v10706_v18 }
 0x63a   : > { %7641 = vrot.lane.b32.xlu0 %v7640_v17, %s7804_s29  ;;  %v7670_v2 = vpack.i.bf16 %v10680_v35, %v10708_v48  ;;  %v7685_v3 = vpack.i.bf16 %v10708_v48, %v4812_v53 }
 0x63b   : > { %7636 = vrot.lane.b32.xlu1 %v7635_v13, %s7807_s20  ;;  %v10716_v49 = vld [vmem:[#allocation4 + $0x81] sm:$0xff] }
 0x63c   : > { %v4811_v5 = vld [vmem:[#allocation4 + $0x80] sm:$0xff]  ;;  %v7680_v15 = vpack.i.bf16 %v10692_v61, %v10716_v49 }
 0x63d   : > { %v7675_v37 = vpack.i.bf16 %v10690_v47, %v4811_v5  ;;  %v10723_v10 = vld [vmem:[#allocation4 + $0x82] sm:$0xff]  ;;  %v7695_v44 = vpack.i.bf16 %v4811_v5, %v4820_v63 }
 0x63e   : > { %7651 = vrot.lane.b32.xlu0 %v7650_v16, %s7807_s20  ;;  %v7690_v43 = vpack.i.bf16 %v10706_v18, %v10723_v10 }
 0x63f   : > { %7646 = vrot.lane.b32.xlu1 %v7645_v22, %s7806_s13 }
 0x642   : > { %7661 = vrot.lane.b32.xlu0 %v7660_v45, %s7806_s13 }
 0x643   : > { %7656 = vrot.lane.b32.xlu1 %v7655_v23, %s7804_s29 }
 0x646   : > { %7671 = vrot.lane.b32.xlu0 %v7670_v2, %s7804_s29 }
 0x647   : > { %7666 = vrot.lane.b32.xlu1 %v7665_v36, %s7807_s20 }
 0x64a   : > { %7681 = vrot.lane.b32.xlu0 %v7680_v15, %s7807_s20 }
 0x64b   : > { %7676 = vrot.lane.b32.xlu1 %v7675_v37, %s7806_s13 }
 0x64e   : > { %7686 = vrot.lane.b32.xlu0 %v7685_v3, %s7806_s13 }
 0x64f   : > { %7691 = vrot.lane.b32.xlu1 %v7690_v43, %s7804_s29 }
 0x653   : > { %7696 = vrot.lane.b32.xlu1 %v7695_v44, %s7807_s20 }
 0x694   : > { %v7582_v39 = vpop.permute.xlu0 %7581 }
 0x695   : > { %v7584_v46 = vunpack.i.h.bf16 %v7582_v39  ;;  %v7583_v34 = vunpack.i.l.bf16 %v7582_v39 }
 0x697   : > { %v5021_v4 = vsel %vm2051_vm2, %v4756_v28, %v7584_v46  ;;  %v5045_v50 = vsel %vm2051_vm2, %v10617_v57, %v7583_v34 }
 0x698   : > { %v7592_v20 = vpop.permute.xlu0 %7591 }
 0x699   : > { %v7587_v6 = vpop.permute.xlu1 %7586  ;;  %v7594_v54 = vunpack.i.h.bf16 %v7592_v20  ;;  %v7593_v38 = vunpack.i.l.bf16 %v7592_v20 }
 0x69a   : > { %v7589_v41 = vunpack.i.h.bf16 %v7587_v6  ;;  %v7588_v24 = vunpack.i.l.bf16 %v7587_v6 }
 0x69c   : > { %v5029_v1 = vsel %vm3631_vm12, %v5021_v4, %v7589_v41  ;;  %v5053_v12 = vsel %vm3631_vm12, %v5045_v50, %v7588_v24  ;;  %v7602_v59 = vpop.permute.xlu0 %7601 }
 0x69d   : > { %v7597_v7 = vpop.permute.xlu1 %7596  ;;  %v5061_v30 = vsel %vm3664_vm13, %v5053_v12, %v7593_v38  ;;  %v5037_v52 = vsel %vm3664_vm13, %v5029_v1, %v7594_v54  ;;  %v7604_v17 = vunpack.i.h.bf16 %v7602_v59  ;;  %v7603_v16 = vunpack.i.l.bf16 %v7602_v59 }
 0x69e   : > { %v7599_v56 = vunpack.i.h.bf16 %v7597_v7  ;;  %v7598_v13 = vunpack.i.l.bf16 %v7597_v7  ;;  %5200 = vmatprep.mubr.f32.mxu1 %v5061_v30 }
 0x69f   : > { %5201 = vmatmul.mubr.f32.vlgmr.msra.gmra.mrb[64].mxu1 %v5037_v52 }
 0x6a0   : > { %v5046_v57 = vsel %vm2051_vm2, %v10602_v9, %v7598_v13  ;;  %v5022_v22 = vsel %vm2051_vm2, %v10600_v19, %v7599_v56  ;;  %6971 = vmatpush3.bf16.msra.mxu1 %v6968_v26  ;;  %v7612_v33 = vpop.permute.xlu0 %7611 }
 0x6a1   : > { %v7607_v58 = vpop.permute.xlu1 %7606  ;;  %6973 = vmatprep.subr.bf16.mxu1 %v6972_v25  ;;  %v7614_v36 = vunpack.i.h.bf16 %v7612_v33  ;;  %v7613_v2 = vunpack.i.l.bf16 %v7612_v33  ;;  %v5054_v5 = vsel %vm3631_vm12, %v5046_v57, %v7603_v16  ;;  %v5030_v15 = vsel %vm3631_vm12, %v5022_v22, %v7604_v17 }
 0x6a2   : > { %v7609_v23 = vunpack.i.h.bf16 %v7607_v58  ;;  %v7608_v45 = vunpack.i.l.bf16 %v7607_v58 }
 0x6a3   : > { %v5047_v44 = vsel %vm2051_vm2, %v10626_v42, %v7613_v2  ;;  %v5023_v39 = vsel %vm2051_vm2, %v10604_v29, %v7614_v36 }
 0x6a4   : > { %v5062_v37 = vsel %vm3664_vm13, %v5054_v5, %v7608_v45  ;;  %v5038_v53 = vsel %vm3664_vm13, %v5030_v15, %v7609_v23  ;;  %6975 = vmatpush3.bf16.msra.mxu1 %v6972_v25  ;;  %v7622_v9 = vpop.permute.xlu0 %7621 }
 0x6a5   : > { %5205 = vmatprep.mubr.f32.mxu1 %v5062_v37  ;;  %v7617_v19 = vpop.permute.xlu1 %7616  ;;  %v7624_v26 = vunpack.i.h.bf16 %v7622_v9  ;;  %v7623_v3 = vunpack.i.l.bf16 %v7622_v9 }
 0x6a6   : > { %v7619_v43 = vunpack.i.h.bf16 %v7617_v19  ;;  %v7618_v63 = vunpack.i.l.bf16 %v7617_v19  ;;  %5206 = vmatmul.mubr.f32.gmra.mrb[66].mxu1 %v5038_v53 }
 0x6a8   : > { %v5055_v46 = vsel %vm3631_vm12, %v5047_v44, %v7618_v63  ;;  %v5031_v34 = vsel %vm3631_vm12, %v5023_v39, %v7619_v43  ;;  %v7632_v20 = vpop.permute.xlu0 %7631 }
 0x6a9   : > { %v7627_v28 = vpop.permute.xlu1 %7626  ;;  %v5063_v6 = vsel %vm3664_vm13, %v5055_v46, %v7623_v3  ;;  %v5039_v54 = vsel %vm3664_vm13, %v5031_v34, %v7624_v26  ;;  %v7634_v24 = vunpack.i.h.bf16 %v7632_v20  ;;  %v7633_v31 = vunpack.i.l.bf16 %v7632_v20 }
 0x6aa   : > { %v7629_v38 = vunpack.i.h.bf16 %v7627_v28  ;;  %v7628_v41 = vunpack.i.l.bf16 %v7627_v28  ;;  %5210 = vmatprep.mubr.f32.mxu1 %v5063_v6 }
 0x6ab   : > { %5211 = vmatmul.mubr.f32.gmra.mrb[68].mxu1 %v5039_v54 }
 0x6ac   : > { %v5048_v42 = vsel %vm2051_vm2, %v10641_v8, %v7628_v41  ;;  %v5024_v29 = vsel %vm2051_vm2, %v10619_v21, %v7629_v38  ;;  %v7642_v4 = vpop.permute.xlu0 %7641 }
 0x6ad   : > { %v7637_v11 = vpop.permute.xlu1 %7636  ;;  %v7644_v12 = vunpack.i.h.bf16 %v7642_v4  ;;  %v7643_v7 = vunpack.i.l.bf16 %v7642_v4  ;;  %v5056_v59 = vsel %vm3631_vm12, %v5048_v42, %v7633_v31  ;;  %v5032_v30 = vsel %vm3631_vm12, %v5024_v29, %v7634_v24 }
 0x6ae   : > { %v7639_v50 = vunpack.i.h.bf16 %v7637_v11  ;;  %v7638_v1 = vunpack.i.l.bf16 %v7637_v11 }
 0x6af   : > { %v5049_v57 = vsel %vm2051_vm2, %v10670_v55, %v7643_v7  ;;  %v5025_v22 = vsel %vm2051_vm2, %v10643_v60, %v7644_v12 }
 0x6b0   : > { %v5064_v52 = vsel %vm3664_vm13, %v5056_v59, %v7638_v1  ;;  %v5040_v25 = vsel %vm3664_vm13, %v5032_v30, %v7639_v50  ;;  %v7652_v56 = vpop.permute.xlu0 %7651 }
 0x6b1   : > { %5215 = vmatprep.mubr.f32.mxu1 %v5064_v52  ;;  %v7647_v8 = vpop.permute.xlu1 %7646  ;;  %v7654_v13 = vunpack.i.h.bf16 %v7652_v56  ;;  %v7653_v17 = vunpack.i.l.bf16 %v7652_v56 }
 0x6b2   : > { %v7649_v21 = vunpack.i.h.bf16 %v7647_v8  ;;  %v7648_v16 = vunpack.i.l.bf16 %v7647_v8  ;;  %5216 = vmatmul.mubr.f32.gmra.mrb[70].mxu1 %v5040_v25 }
 0x6b4   : > { %v5057_v58 = vsel %vm3631_vm12, %v5049_v57, %v7648_v16  ;;  %v5033_v33 = vsel %vm3631_vm12, %v5025_v22, %v7649_v21  ;;  %v7662_v45 = vpop.permute.xlu0 %7661  ;;  %v5652_v21 = vld [vmem:[%s11285_s7 + $0x118] sm:$0xff]  ;;  %v5669_v16 = vld [vmem:[%s11285_s7 + $0x1a0] sm:$0xff]  ;;  %v5670_v57 = vld [vmem:[%s11285_s7 + $0x1a8] sm:$0xff] }
 0x6b5   : > { %v7657_v23 = vpop.permute.xlu1 %7656  ;;  %v5065_v36 = vsel %vm3664_vm13, %v5057_v58, %v7653_v17  ;;  %v5041_v2 = vsel %vm3664_vm13, %v5033_v33, %v7654_v13  ;;  %v7664_v37 = vunpack.i.h.bf16 %v7662_v45  ;;  %v7663_v53 = vunpack.i.l.bf16 %v7662_v45  ;;  %v5653_v33 = vld [vmem:[%s11285_s7 + $0x120] sm:$0xff]  ;;  %v5671_v45 = vld [vmem:[%s11285_s7 + $0x1b0] sm:$0xff] }
 0x6b6   : > { %v7659_v5 = vunpack.i.h.bf16 %v7657_v23  ;;  %v7658_v15 = vunpack.i.l.bf16 %v7657_v23  ;;  %5220 = vmatprep.mubr.f32.mxu1 %v5065_v36  ;;  %v7016_v58 = vpack.c.bf16 %v5670_v57, %v5669_v16  ;;  %v5654_v23 = vld [vmem:[%s11285_s7 + $0x128] sm:$0xff]  ;;  %v5672_v36 = vld [vmem:[%s11285_s7 + $0x1b8] sm:$0xff]  ;;  %v5629_v16 = vld [vmem:[%s11285_s7 + $0x60] sm:$0xff] }
 0x6b7   : > { %5221 = vmatmul.mubr.f32.gmra.mrb[72].mxu1 %v5041_v2  ;;  %v7018_v2 = vpack.c.bf16 %v5654_v23, %v5653_v33  ;;  %v5630_v57 = vld [vmem:[%s11285_s7 + $0x68] sm:$0xff] }
 0x6b8   : > { %v5050_v55 = vsel %vm2051_vm2, %v10680_v35, %v7658_v15  ;;  %v5026_v60 = vsel %vm2051_vm2, %v10658_v14, %v7659_v5  ;;  %v7672_v19 = vpop.permute.xlu0 %7671  ;;  %v5655_v5 = vld [vmem:[%s11285_s7 + $0x130] sm:$0xff]  ;;  %v5656_v15 = vld [vmem:[%s11285_s7 + $0x138] sm:$0xff] }
 0x6b9   : > { %v7667_v9 = vpop.permute.xlu1 %7666  ;;  %v7674_v43 = vunpack.i.h.bf16 %v7672_v19  ;;  %v7673_v63 = vunpack.i.l.bf16 %v7672_v19  ;;  %v5058_v44 = vsel %vm3631_vm12, %v5050_v55, %v7663_v53  ;;  %v5034_v39 = vsel %vm3631_vm12, %v5026_v60, %v7664_v37  ;;  %v5673_v37 = vld [vmem:[%s11285_s7 + $0x1c0] sm:$0xff]  ;;  %v5674_v55 = vld [vmem:[%s11285_s7 + $0x1c8] sm:$0xff] }
 0x6ba   : > { %v7669_v26 = vunpack.i.h.bf16 %v7667_v9  ;;  %v7668_v3 = vunpack.i.l.bf16 %v7667_v9  ;;  %v7020_v53 = vpack.c.bf16 %v5672_v36, %v5671_v45  ;;  %v5633_v60 = vld [vmem:[%s11285_s7 + $0x80] sm:$0xff]  ;;  %v5634_v9 = vld [vmem:[%s11285_s7 + $0x88] sm:$0xff] }
 0x6bb   : > { %v5051_v38 = vsel %vm2051_vm2, %v10706_v18, %v7673_v63  ;;  %v5027_v41 = vsel %vm2051_vm2, %v10682_v27, %v7674_v43  ;;  %v6976_v19 = vpack.c.bf16 %v5634_v9, %v5633_v60  ;;  %v5635_v43 = vld [vmem:[%s11285_s7 + $0x90] sm:$0xff] }
 0x6bc   : > { %v5066_v46 = vsel %vm3664_vm13, %v5058_v44, %v7668_v3  ;;  %v5042_v34 = vsel %vm3664_vm13, %v5034_v39, %v7669_v26  ;;  %v7682_v28 = vpop.permute.xlu0 %7681  ;;  %v5617_v26 = vld [vmem:[%s11285_s7] sm:$0xff]  ;;  %v5618_v3 = vld [vmem:[%s11285_s7 + $0x8] sm:$0xff]  ;;  %v5636_v44 = vld [vmem:[%s11285_s7 + $0x98] sm:$0xff] }
 0x6bd   : > { %5225 = vmatprep.mubr.f32.mxu1 %v5066_v46  ;;  %v7677_v35 = vpop.permute.xlu1 %7676  ;;  %v7684_v20 = vunpack.i.h.bf16 %v7682_v28  ;;  %v7683_v6 = vunpack.i.l.bf16 %v7682_v28  ;;  %v6978_v63 = vpack.c.bf16 %v5618_v3, %v5617_v26  ;;  %v5619_v39 = vld [vmem:[%s11285_s7 + $0x10] sm:$0xff]  ;;  %v5620_v46 = vld [vmem:[%s11285_s7 + $0x18] sm:$0xff]  ;;  %6977 = vmatprep.subr.bf16.mxu1 %v6976_v19  ;;  %v6980_v28 = vpack.c.bf16 %v5636_v44, %v5635_v43 }
 0x6be   : > { %v7679_v14 = vunpack.i.h.bf16 %v7677_v35  ;;  %v7678_v54 = vunpack.i.l.bf16 %v7677_v35  ;;  %5226 = vmatmul.mubr.f32.gmra.mrb[74].mxu1 %v5042_v34  ;;  %v7022_v34 = vpack.c.bf16 %v5656_v15, %v5655_v5  ;;  %v5637_v35 = vld [vmem:[%s11285_s7 + $0xa0] sm:$0xff] }
 0x6c0   : > { %v5059_v24 = vsel %vm3631_vm12, %v5051_v38, %v7678_v54  ;;  %v5035_v31 = vsel %vm3631_vm12, %v5027_v41, %v7679_v14  ;;  %v7687_v42 = vpop.permute.xlu0 %7686  ;;  %v5657_v14 = vld [vmem:[%s11285_s7 + $0x140] sm:$0xff]  ;;  %v5658_v54 = vld [vmem:[%s11285_s7 + $0x148] sm:$0xff]  ;;  %v6982_v38 = vpack.c.bf16 %v5620_v46, %v5619_v39 }
 0x6c1   : > { %v7692_v29 = vpop.permute.xlu1 %7691  ;;  %v5067_v11 = vsel %vm3664_vm13, %v5059_v24, %v7683_v6  ;;  %v5043_v4 = vsel %vm3664_vm13, %v5035_v31, %v7684_v20  ;;  %v7689_v12 = vunpack.i.h.bf16 %v7687_v42  ;;  %v7688_v7 = vunpack.i.l.bf16 %v7687_v42  ;;  %v5638_v20 = vld [vmem:[%s11285_s7 + $0xa8] sm:$0xff]  ;;  %v5621_v41 = vld [vmem:[%s11285_s7 + $0x20] sm:$0xff]  ;;  %v5675_v42 = vld [vmem:[%s11285_s7 + $0x1d0] sm:$0xff] }
 0x6c2   : > { %v7694_v50 = vunpack.i.h.bf16 %v7692_v29  ;;  %v7693_v1 = vunpack.i.l.bf16 %v7692_v29  ;;  %5230 = vmatprep.mubr.f32.mxu1 %v5067_v11  ;;  %v7024_v6 = vpack.c.bf16 %v5674_v55, %v5673_v37  ;;  %v6984_v24 = vpack.c.bf16 %v5638_v20, %v5637_v35  ;;  %v5622_v31 = vld [vmem:[%s11285_s7 + $0x28] sm:$0xff]  ;;  %v5676_v29 = vld [vmem:[%s11285_s7 + $0x1d8] sm:$0xff]  ;;  %v5639_v11 = vld [vmem:[%s11285_s7 + $0xb0] sm:$0xff] }
 0x6c3   : > { %5231 = vmatmul.mubr.f32.gmra.mrb[76].mxu1 %v5043_v4  ;;  %v5640_v4 = vld [vmem:[%s11285_s7 + $0xb8] sm:$0xff]  ;;  %v6319_v35 = vld [vmem:[%s11284_s6] ss:$0 sm:$0xff] }
 0x6c4   : > { %v5052_v18 = vsel %vm2051_vm2, %v10716_v49, %v7693_v1  ;;  %v5028_v27 = vsel %vm2051_vm2, %v10692_v61, %v7694_v50  ;;  %v4828_v61 = vld [vmem:[#allocation4 + $0x92] sm:$0xff]  ;;  %v7026_v50 = vpack.c.bf16 %v5658_v54, %v5657_v14  ;;  %v6986_v1 = vpack.c.bf16 %v5622_v31, %v5621_v41 }
 0x6c5   : > { %v7697_v59 = vpop.permute.xlu1 %7696  ;;  %v5060_v25 = vsel %vm3631_vm12, %v5052_v18, %v7688_v7  ;;  %v5036_v56 = vsel %vm3631_vm12, %v5028_v27, %v7689_v12  ;;  %v5668_v49 = vld [vmem:[%s11285_s7 + $0x198] sm:$0xff]  ;;  %v7028_v12 = vpack.c.bf16 %v5676_v29, %v5675_v42  ;;  %v5659_v7 = vld [vmem:[%s11285_s7 + $0x150] sm:$0xff]  ;;  %v6988_v27 = vpack.c.bf16 %v5640_v4, %v5639_v11  ;;  %v5677_v4 = vld [vmem:[%s11285_s7 + $0x1e0] sm:$0xff] }
 0x6c6   : > { %v7699_v30 = vunpack.i.h.bf16 %v7697_v59  ;;  %v7698_v52 = vunpack.i.l.bf16 %v7697_v59  ;;  %v7012_v17 = vpack.c.bf16 %v5668_v49, %v5667_v0  ;;  %v5660_v18 = vld [vmem:[%s11285_s7 + $0x158] sm:$0xff]  ;;  %v5623_v59 = vld [vmem:[%s11285_s7 + $0x30] sm:$0xff]  ;;  %v5645_v49 = vld [vmem:[%s11285_s7 + $0xe0] sm:$0xff] }
 0x6c7   : > { %v5628_v0 = vld [vmem:[%s11285_s7 + $0x58] sm:$0xff]  ;;  %v5647_v29 = vld [vmem:[%s11285_s7 + $0xf0] sm:$0xff] }
 0x6c8   : > { %v5068_v8 = vsel %vm3664_vm13, %v5060_v25, %v7698_v52  ;;  %v5044_v13 = vsel %vm3664_vm13, %v5036_v56, %v7699_v30  ;;  %v5624_v30 = vld [vmem:[%s11285_s7 + $0x38] sm:$0xff]  ;;  %v5641_v52 = vld [vmem:[%s11285_s7 + $0xc0] sm:$0xff]  ;;  %v5642_v25 = vld [vmem:[%s11285_s7 + $0xc8] sm:$0xff]  ;;  %v7030_v56 = vpack.c.bf16 %v5660_v18, %v5659_v7 }
 0x6c9   : > { %5235 = vmatprep.mubr.f32.mxu1 %v5068_v8  ;;  %v6990_v8 = vpack.c.bf16 %v5624_v30, %v5623_v59  ;;  %v5648_v11 = vld [vmem:[%s11285_s7 + $0xf8] sm:$0xff]  ;;  %v5678_v18 = vld [vmem:[%s11285_s7 + $0x1e8] sm:$0xff] }
 0x6ca   : > { %5236 = vmatmul.mubr.f32.gmra.mrb[78].mxu1 %v5044_v13  ;;  %v6992_v13 = vpack.c.bf16 %v5642_v25, %v5641_v52  ;;  %v7004_v7 = vpack.c.bf16 %v5648_v11, %v5647_v29  ;;  %v5632_v59 = vld [vmem:[%s11285_s7 + $0x78] sm:$0xff]  ;;  %v7032_v25 = vpack.c.bf16 %v5678_v18, %v5677_v4 }
 0x6cb   : > { %6756 = vmatprep.mubr.msk.f32.mxu1 %vm2051_vm2, %v10610_v32  ;;  %v5665_v32 = vld [vmem:[%s11285_s7 + $0x180] sm:$0xff] }
 0x6ce   : > { %6757 = vmatmul.mubr.msk.f32.vlgmr.msra.gmra.mrb[80].mxu1 %vm2051_vm2, %v10628_v40  ;;  %v5666_v40 = vld [vmem:[%s11285_s7 + $0x188] sm:$0xff] }
 0x6cf   : > { %6759 = vmatprep.mubr.msk.f32.mxu1 %vm2051_vm2, %v10656_v62  ;;  %v5649_v62 = vld [vmem:[%s11285_s7 + $0x100] sm:$0xff]  ;;  %6979 = vmatpush3.bf16.msra.mxu1 %v6978_v63 }
 0x6d0   : > { %6981 = vmatprep.subr.bf16.mxu1 %v6980_v28 }
 0x6d2   : > { %6760 = vmatmul.mubr.msk.f32.gmra.mrb[82].mxu1 %vm2051_vm2, %v10672_v51  ;;  %v7008_v51 = vpack.c.bf16 %v5666_v40, %v5665_v32  ;;  %v5626_v32 = vld [vmem:[%s11285_s7 + $0x48] sm:$0xff]  ;;  %v5643_v40 = vld [vmem:[%s11285_s7 + $0xd0] sm:$0xff] }
 0x6d3   : > { %6762 = vmatprep.mubr.msk.f32.mxu1 %vm2051_vm2, %v10690_v47  ;;  %v5650_v47 = vld [vmem:[%s11285_s7 + $0x108] sm:$0xff]  ;;  %6983 = vmatpush3.bf16.msra.mxu1 %v6982_v38 }
 0x6d4   : > { %7009 = vmatprep.subr.bf16.mxu0 %v7008_v51  ;;  %6985 = vmatprep.subr.bf16.mxu1 %v6984_v24 }
 0x6d6   : > { %6763 = vmatmul.mubr.msk.f32.gmra.mrb[84].mxu1 %vm2051_vm2, %v10708_v48  ;;  %v7010_v48 = vpack.c.bf16 %v5650_v47, %v5649_v62  ;;  %v5644_v62 = vld [vmem:[%s11285_s7 + $0xd8] sm:$0xff] }
 0x6d7   : > { %6765 = vmatprep.mubr.msk.f32.mxu1 %vm2051_vm2, %v10723_v10  ;;  %v5651_v10 = vld [vmem:[%s11285_s7 + $0x110] sm:$0xff]  ;;  %6987 = vmatpush3.bf16.msra.mxu1 %v6986_v1  ;;  %v6996_v47 = vpack.c.bf16 %v5644_v62, %v5643_v40 }
 0x6d8   : > { %7011 = vmatpush3.bf16.msra.mxu0 %v7010_v48  ;;  %v7014_v22 = vpack.c.bf16 %v5652_v21, %v5651_v10  ;;  %6989 = vmatprep.subr.bf16.mxu1 %v6988_v27  ;;  %v5627_v48 = vld [vmem:[%s11285_s7 + $0x50] sm:$0xff]  ;;  %v5646_v10 = vld [vmem:[%s11285_s7 + $0xe8] sm:$0xff] }
 0x6d9   : > { %7013 = vmatprep.subr.bf16.mxu0 %v7012_v17  ;;  %v6998_v17 = vpack.c.bf16 %v5628_v0, %v5627_v48  ;;  %v7000_v21 = vpack.c.bf16 %v5646_v10, %v5645_v49  ;;  %v5631_v27 = vld [vmem:[%s11285_s7 + $0x70] sm:$0xff]  ;;  %v5680_v49 = vld [vmem:[%s11285_s7 + $0x1f8] sm:$0xff] }
 0x6da   : > { %6766 = vmatmul.mubr.msk.f32.gmra.mrb[86].mxu1 %vm2051_vm2, %v4828_v61  ;;  %v5625_v61 = vld [vmem:[%s11285_s7 + $0x40] sm:$0xff]  ;;  %v5679_v0 = vld [vmem:[%s11285_s7 + $0x1f0] sm:$0xff] }
 0x6db   : > { %6991 = vmatpush3.bf16.msra.mxu1 %v6990_v8  ;;  %v6994_v51 = vpack.c.bf16 %v5626_v32, %v5625_v61  ;;  %v5661_v8 = vld [vmem:[%s11285_s7 + $0x160] sm:$0xff] }
 0x6dc   : > { %7015 = vmatpush3.bf16.msra.mxu0 %v7014_v22  ;;  %6993 = vmatprep.subr.bf16.mxu1 %v6992_v13  ;;  %v7002_v22 = vpack.c.bf16 %v5630_v57, %v5629_v16  ;;  %v5662_v13 = vld [vmem:[%s11285_s7 + $0x168] sm:$0xff] }
 0x6dd   : > { %7017 = vmatprep.subr.bf16.mxu0 %v7016_v58  ;;  %v7034_v32 = vpack.c.bf16 %v5662_v13, %v5661_v8 }
 0x6df   : > { %6995 = vmatpush3.bf16.msra.mxu1 %v6994_v51 }
 0x6e0   : > { %7019 = vmatpush3.bf16.msra.mxu0 %v7018_v2  ;;  %6997 = vmatprep.subr.bf16.mxu1 %v6996_v47 }
 0x6e1   : > { %7021 = vmatprep.subr.bf16.mxu0 %v7020_v53 }
 0x6e3   : > { %6999 = vmatpush3.bf16.msra.mxu1 %v6998_v17 }
 0x6e4   : > { %7023 = vmatpush3.bf16.msra.mxu0 %v7022_v34  ;;  %7001 = vmatprep.subr.bf16.mxu1 %v7000_v21  ;;  %v7036_v21 = vpack.c.bf16 %v5680_v49, %v5679_v0  ;;  %v5400_v0 = vld [vmem:[#allocation5 + $0x2] sm:$0xff] }
 0x6e5   : > { %7025 = vmatprep.subr.bf16.mxu0 %v7024_v6 }
 0x6e7   : > { %7003 = vmatpush3.bf16.msra.mxu1 %v7002_v22 }
 0x6e8   : > { %7027 = vmatpush3.bf16.msra.mxu0 %v7026_v50  ;;  %7005 = vmatprep.subr.bf16.mxu1 %v7004_v7 }
 0x6e9   : > { %7029 = vmatprep.subr.bf16.mxu0 %v7028_v12 }
 0x6ec   : > { %7031 = vmatpush3.bf16.msra.mxu0 %v7030_v56  ;;  %v7006_v56 = vpack.c.bf16 %v5632_v59, %v5631_v27 }
 0x6ed   : > { %7033 = vmatprep.subr.bf16.mxu0 %v7032_v25 }
 0x6ee   : > { %7007 = vmatpush3.bf16.msra.mxu1 %v7006_v56 }
 0x6f0   : > { %7035 = vmatpush3.bf16.msra.mxu0 %v7034_v32  ;;  %v5448_v32 = vld [vmem:[#allocation5 + $0x91] sm:$0xff] }
 0x6f1   : > { %7037 = vmatprep.subr.bf16.mxu0 %v7036_v21  ;;  %v5683_v21 = vld [vmem:[%s11285_s7 + $0x210] sm:$0xff] }
 0x772   : > { %v6454_v58 = vpop.f32.mrb[64].mxu1 }
 0x773   : > { %v6455_v33 = vpop.f32.mrb[65].mxu1 }
 0x774   : > { %v6456_v23 = vadd.f32 %v6455_v33, %v6454_v58  ;;  %v5392_v58 = vld [vmem:[#allocation5 + $0x1] sm:$0xff]  ;;  %v5663_v33 = vld [vmem:[%s11285_s7 + $0x170] sm:$0xff] }
 0x776   : > { %v5203_v54 = vadd.f32 %v6456_v23, %v6319_v35  ;;  %v5664_v23 = vld [vmem:[%s11285_s7 + $0x178] sm:$0xff] }
 0x779   : > { %v6457_v45 = vpop.f32.mrb[66].mxu1 }
 0x77a   : > { %v6458_v36 = vpop.f32.mrb[67].mxu1 }
 0x77b   : > { %v6459_v2 = vadd.f32 %v6458_v36, %v6457_v45 }
 0x77d   : > { %v5208_v6 = vadd.f32 %v6459_v2, %v6319_v35 }
 0x77e   : > { %v6460_v5 = vpop.f32.mrb[68].mxu1 }
 0x77f   : > { %v6461_v15 = vpop.f32.mrb[69].mxu1 }
 0x780   : > { %v6462_v37 = vadd.f32 %v6461_v15, %v6460_v5  ;;  %v7038_v15 = vpack.c.bf16 %v5664_v23, %v5663_v33 }
 0x782   : > { %v5213_v12 = vadd.f32 %v6462_v37, %v6319_v35  ;;  %7039 = vmatpush3.bf16.msra.mxu0 %v7038_v15 }
 0x785   : > { %v6463_v53 = vpop.f32.mrb[70].mxu1 }
 0x786   : > { %v6464_v55 = vpop.f32.mrb[71].mxu1 }
 0x787   : > { %v6465_v60 = vadd.f32 %v6464_v55, %v6463_v53 }
 0x789   : > { %v5218_v42 = vadd.f32 %v6465_v60, %v6319_v35 }
 0x78a   : > { %v6466_v9 = vpop.f32.mrb[72].mxu1 }
 0x78b   : > { %v6467_v19 = vpop.f32.mrb[73].mxu1 }
 0x78c   : > { %v6468_v26 = vadd.f32 %v6467_v19, %v6466_v9 }
 0x78e   : > { %v5223_v48 = vadd.f32 %v6468_v26, %v6319_v35 }
 0x791   : > { %v6469_v3 = vpop.f32.mrb[74].mxu1 }
 0x792   : > { %v6470_v43 = vpop.f32.mrb[75].mxu1 }
 0x793   : > { %v6471_v63 = vadd.f32 %v6470_v43, %v6469_v3 }
 0x795   : > { %v5228_v62 = vadd.f32 %v6471_v63, %v6319_v35 }
 0x796   : > { %v6472_v44 = vpop.f32.mrb[76].mxu1 }
 0x797   : > { %v6473_v39 = vpop.f32.mrb[77].mxu1 }
 0x798   : > { %v6474_v46 = vadd.f32 %v6473_v39, %v6472_v44 }
 0x79a   : > { %v5233_v2 = vadd.f32 %v6474_v46, %v6319_v35 }
 0x79d   : > { %v6475_v34 = vpop.f32.mrb[78].mxu1 }
 0x79e   : > { %v6476_v28 = vpop.f32.mrb[79].mxu1 }
 0x79f   : > { %v6477_v20 = vadd.f32 %v6476_v28, %v6475_v34 }
 0x7a1   : > { %v6758_v14 = vpop.f32.mrb[80].mxu1  ;;  %v5238_v22 = vadd.f32 %v6477_v20, %v6319_v35 }
 0x7a2   : > { %v5313_v38 = vadd.f32 %v6758_v14, %v5208_v6  ;;  %v5307_v41 = vpop.f32.mrb[81].mxu1 }
 0x7a3   : > { %v5308_v24 = vadd.f32 %v5307_v41, %v5203_v54  ;;  %v5681_v41 = vld [vmem:[%s11285_s7 + $0x200] sm:$0xff] }
 0x7a4   : > { %v5347_v31 = vmax.f32 %v5313_v38, 0.0 }
 0x7a5   : > { %v5346_v50 = vmax.f32 %v5308_v24, 0.0  ;;  %v6761_v1 = vpop.f32.mrb[82].mxu1  ;;  %v5682_v24 = vld [vmem:[%s11285_s7 + $0x208] sm:$0xff] }
 0x7a6   : > { %5377 = vst.msk [vmem:[#allocation5 + $0x21] sm:$0xff] %vm3631_vm12, %v5347_v31  ;;  %v5323_v30 = vadd.f32 %v6761_v1, %v5218_v42  ;;  %v5317_v52 = vpop.f32.mrb[83].mxu1  ;;  %v7040_v31 = vpack.c.bf16 %v5682_v24, %v5681_v41  ;;  %v5687_v41 = vld [vmem:[%s11285_s7 + $0x230] sm:$0xff] }
 0x7a7   : > { %5376 = vst.msk [vmem:[#allocation5 + $0x11] sm:$0xff] %vm3631_vm12, %v5346_v50  ;;  %v5318_v61 = vadd.f32 %v5317_v52, %v5213_v12 }
 0x7a8   : > { %v5349_v40 = vmax.f32 %v5323_v30, 0.0  ;;  %7041 = vmatprep.subr.bf16.mxu1 %v7040_v31 }
 0x7a9   : > { %v5348_v51 = vmax.f32 %v5318_v61, 0.0  ;;  %v6764_v47 = vpop.f32.mrb[84].mxu1 }
 0x7aa   : > { %5379 = vst.msk [vmem:[#allocation5 + $0x41] sm:$0xff] %vm3631_vm12, %v5349_v40  ;;  %v5333_v10 = vadd.f32 %v6764_v47, %v5228_v62  ;;  %v5327_v17 = vpop.f32.mrb[85].mxu1 }
 0x7ab   : > { %5378 = vst.msk [vmem:[#allocation5 + $0x31] sm:$0xff] %vm3631_vm12, %v5348_v51  ;;  %v5328_v16 = vadd.f32 %v5327_v17, %v5223_v48  ;;  %v5384_v17 = vld [vmem:[#allocation5] sm:$0xff] }
 0x7ac   : > { %v5351_v57 = vmax.f32 %v5333_v10, 0.0 }
 0x7ad   : > { %v5350_v45 = vmax.f32 %v5328_v16, 0.0  ;;  %v6767_v36 = vpop.f32.mrb[86].mxu1  ;;  %v11026_v5 = vld [vmem:[#allocation5 + $0x20] sm:$0xff]  ;;  %v5684_v16 = vld [vmem:[%s11285_s7 + $0x218] sm:$0xff] }
 0x7ae   : > { %5381 = vst.msk [vmem:[#allocation5 + $0x61] sm:$0xff] %vm3631_vm12, %v5351_v57  ;;  %v5343_v37 = vadd.f32 %v6767_v36, %v5238_v22  ;;  %v5337_v53 = vpop.f32.mrb[87].mxu1  ;;  %v11029_v55 = vld [vmem:[#allocation5 + $0x10] sm:$0xff]  ;;  %v11039_v63 = vld [vmem:[#allocation5 + $0x21] sm:$0xff] }
 0x7af   : > { %v11031_v60 = vld [vmem:[#allocation5 + $0x11] sm:$0xff]  ;;  %5380 = vst.msk [vmem:[#allocation5 + $0x51] sm:$0xff] %vm3631_vm12, %v5350_v45  ;;  %v5338_v9 = vadd.f32 %v5337_v53, %v5233_v2  ;;  %v7700_v19 = vpack.i.bf16 %v5392_v58, %v11029_v55  ;;  %v11075_v42 = vld [vmem:[#allocation5 + $0x22] sm:$0xff]  ;;  %v7044_v45 = vpack.c.bf16 %v5684_v16, %v5683_v21 }
 0x7b0   : > { %v7705_v26 = vpack.i.bf16 %v11031_v60, %v11026_v5  ;;  %v5353_v3 = vmax.f32 %v5343_v37, 0.0  ;;  %v11055_v35 = vld [vmem:[#allocation5 + $0x12] sm:$0xff]  ;;  %v5685_v37 = vld [vmem:[%s11285_s7 + $0x220] sm:$0xff]  ;;  %v5686_v53 = vld [vmem:[%s11285_s7 + $0x228] sm:$0xff] }
 0x7b1   : > { %v5352_v43 = vmax.f32 %v5338_v9, 0.0  ;;  %7701 = vrot.lane.b32.xlu0 %v7700_v19, %s7806_s13  ;;  %v11041_v44 = vld [vmem:[#allocation5 + $0x40] sm:$0xff] }
 0x7b2   : > { %7706 = vrot.lane.b32.xlu1 %v7705_v26, %s7806_s13  ;;  %5383 = vst.msk [vmem:[#allocation5 + $0x81] sm:$0xff] %vm3631_vm12, %v5353_v3  ;;  %v11044_v39 = vld [vmem:[#allocation5 + $0x30] sm:$0xff]  ;;  %v7715_v46 = vpack.i.bf16 %v11039_v63, %v11041_v44  ;;  %v11063_v54 = vld [vmem:[#allocation5 + $0x41] sm:$0xff] }
 0x7b3   : > { %5382 = vst.msk [vmem:[#allocation5 + $0x71] sm:$0xff] %vm3631_vm12, %v5352_v43  ;;  %v7710_v34 = vpack.i.bf16 %v11039_v63, %v11044_v39  ;;  %v11051_v28 = vld [vmem:[#allocation5 + $0x31] sm:$0xff]  ;;  %v7725_v29 = vpack.i.bf16 %v11075_v42, %v11063_v54  ;;  %v11099_v59 = vld [vmem:[#allocation5 + $0x42] sm:$0xff]  ;;  %v7048_v43 = vpack.c.bf16 %v5686_v53, %v5685_v37 }
 0x7b4   : > { %v7720_v6 = vpack.i.bf16 %v11055_v35, %v11051_v28  ;;  %v11087_v1 = vld [vmem:[#allocation5 + $0x32] sm:$0xff] }
 0x7b5   : > { %7711 = vrot.lane.b32.xlu0 %v7710_v34, %s7806_s13  ;;  %v11065_v38 = vld [vmem:[#allocation5 + $0x60] sm:$0xff] }
 0x7b6   : > { %7716 = vrot.lane.b32.xlu1 %v7715_v46, %s7806_s13  ;;  %v11057_v20 = vld [vmem:[#allocation5 + $0x50] sm:$0xff]  ;;  %v7735_v11 = vpack.i.bf16 %v11063_v54, %v11065_v38  ;;  %v11093_v18 = vld [vmem:[#allocation5 + $0x61] sm:$0xff] }
 0x7b7   : > { %v7730_v14 = vpack.i.bf16 %v11051_v28, %v11057_v20  ;;  %v11081_v4 = vld [vmem:[#allocation5 + $0x51] sm:$0xff]  ;;  %v7745_v30 = vpack.i.bf16 %v11099_v59, %v11093_v18  ;;  %v11111_v8 = vld [vmem:[#allocation5 + $0x62] sm:$0xff] }
 0x7b8   : > { %v7740_v12 = vpack.i.bf16 %v11087_v1, %v11081_v4  ;;  %v11109_v56 = vld [vmem:[#allocation5 + $0x52] sm:$0xff] }
 0x7b9   : > { %7721 = vrot.lane.b32.xlu0 %v7720_v6, %s7806_s13  ;;  %v11095_v27 = vld [vmem:[#allocation5 + $0x80] sm:$0xff] }
 0x7ba   : > { %7731 = vrot.lane.b32.xlu1 %v7730_v14, %s7806_s13  ;;  %v11083_v50 = vld [vmem:[#allocation5 + $0x70] sm:$0xff]  ;;  %v7755_v52 = vpack.i.bf16 %v11093_v18, %v11095_v27  ;;  %v11119_v62 = vld [vmem:[#allocation5 + $0x81] sm:$0xff] }
 0x7bb   : > { %v7750_v7 = vpack.i.bf16 %v11081_v4, %v11083_v50  ;;  %v11105_v25 = vld [vmem:[#allocation5 + $0x71] sm:$0xff]  ;;  %v11121_v51 = vld [vmem:[#allocation5 + $0x82] sm:$0xff] }
 0x7bc   : > { %v7760_v13 = vpack.i.bf16 %v11109_v56, %v11105_v25  ;;  %v7765_v61 = vpack.i.bf16 %v11111_v8, %v11105_v25  ;;  %v11117_v40 = vld [vmem:[#allocation5 + $0x72] sm:$0xff]  ;;  %v7775_v48 = vpack.i.bf16 %v11121_v51, %v5448_v32 }
 0x7bd   : > { %7726 = vrot.lane.b32.xlu0 %v7725_v29, %s7806_s13  ;;  %v7770_v47 = vpack.i.bf16 %v11117_v40, %v11119_v62 }
 0x7be   : > { %7736 = vrot.lane.b32.xlu1 %v7735_v11, %s7806_s13 }
 0x7c1   : > { %7741 = vrot.lane.b32.xlu0 %v7740_v12, %s7806_s13 }
 0x7c2   : > { %7751 = vrot.lane.b32.xlu1 %v7750_v7, %s7806_s13 }
 0x7c5   : > { %7746 = vrot.lane.b32.xlu0 %v7745_v30, %s7806_s13 }
 0x7c6   : > { %7756 = vrot.lane.b32.xlu1 %v7755_v52, %s7806_s13 }
 0x7c9   : > { %7761 = vrot.lane.b32.xlu0 %v7760_v13, %s7806_s13 }
 0x7ca   : > { %7766 = vrot.lane.b32.xlu1 %v7765_v61, %s7806_s13 }
 0x7cd   : > { %7771 = vrot.lane.b32.xlu0 %v7770_v47, %s7806_s13 }
 0x7ce   : > { %7776 = vrot.lane.b32.xlu1 %v7775_v48, %s7806_s13 }
 0x823   : > { %v7702_v49 = vpop.permute.xlu0 %7701 }
 0x824   : > { %v7707_v10 = vpop.permute.xlu1 %7706  ;;  %v7704_v57 = vunpack.i.h.bf16 %v7702_v49  ;;  %v7703_v22 = vunpack.i.l.bf16 %v7702_v49 }
 0x825   : > { %v7708_v58 = vunpack.i.l.bf16 %v7707_v10  ;;  %v7709_v36 = vunpack.i.h.bf16 %v7707_v10 }
 0x826   : > { %v5593_v33 = vsel %vm3631_vm12, %v5400_v0, %v7703_v22  ;;  %v5585_v23 = vsel %vm3631_vm12, %v5384_v17, %v7704_v57 }
 0x827   : > { %v7712_v2 = vpop.permute.xlu0 %7711  ;;  %5784 = vmatprep.mubr.f32.mxu1 %v5593_v33  ;;  %v5594_v26 = vsel %vm3631_vm12, %v11055_v35, %v7708_v58  ;;  %v5586_v14 = vsel %vm3631_vm12, %v11029_v55, %v7709_v36  ;;  %v5688_v35 = vld [vmem:[%s11285_s7 + $0x238] sm:$0xff] }
 0x828   : > { %v7717_v15 = vpop.permute.xlu1 %7716  ;;  %v7713_v9 = vunpack.i.l.bf16 %v7712_v2  ;;  %5785 = vmatmul.mubr.f32.vlgmr.msra.gmra.mrb[88].mxu1 %v5585_v23  ;;  %v7714_v46 = vunpack.i.h.bf16 %v7712_v2  ;;  %v7052_v7 = vpack.c.bf16 %v5688_v35, %v5687_v41 }
 0x829   : > { %v7719_v19 = vunpack.i.h.bf16 %v7717_v15  ;;  %5789 = vmatprep.mubr.f32.mxu1 %v5594_v26  ;;  %7043 = vmatpush3.bf16.msra.mxu1 %v7040_v31  ;;  %v7718_v24 = vunpack.i.l.bf16 %v7717_v15 }
 0x82a   : > { %7045 = vmatprep.subr.bf16.mxu1 %v7044_v45  ;;  %v5595_v11 = vsel %vm3631_vm12, %v11075_v42, %v7713_v9  ;;  %v5587_v61 = vsel %vm3631_vm12, %v11026_v5, %v7714_v46 }
 0x82b   : > { %v5609_v3 = vsel %vm3631_vm12, %v11026_v5, %v7719_v19  ;;  %v7722_v34 = vpop.permute.xlu0 %7721 }
 0x82c   : > { %v7732_v6 = vpop.permute.xlu1 %7731  ;;  %5889 = vmatprep.mubr.f32.mxu0 %v5609_v3  ;;  %v7724_v31 = vunpack.i.h.bf16 %v7722_v34  ;;  %5790 = vmatmul.mubr.f32.gmra.mrb[90].mxu1 %v5586_v14  ;;  %v7723_v30 = vunpack.i.l.bf16 %v7722_v34 }
 0x82d   : > { %v7734_v29 = vunpack.i.h.bf16 %v7732_v6  ;;  %5794 = vmatprep.mubr.f32.mxu1 %v5595_v11  ;;  %7047 = vmatpush3.bf16.msra.mxu1 %v7044_v45  ;;  %v7733_v32 = vunpack.i.l.bf16 %v7732_v6 }
 0x82e   : > { %v5601_v55 = vsel %vm3631_vm12, %v11031_v60, %v7724_v31  ;;  %7049 = vmatprep.subr.bf16.mxu1 %v7048_v43  ;;  %v5596_v60 = vsel %vm3631_vm12, %v11087_v1, %v7718_v24  ;;  %v5588_v21 = vsel %vm3631_vm12, %v11044_v39, %v7723_v30  ;;  %v5440_v30 = vld [vmem:[#allocation5 + $0x90] sm:$0xff] }
 0x82f   : > { %v5610_v12 = vsel %vm3631_vm12, %v11044_v39, %v7734_v29  ;;  %v7727_v52 = vpop.permute.xlu0 %7726  ;;  %5890 = vmatmul.mubr.f32.vlgmr.msra.gmra.mrb[128].mxu0 %v5601_v55  ;;  %v5597_v58 = vsel %vm3631_vm12, %v11099_v59, %v7733_v32 }
 0x830   : > { %v7737_v13 = vpop.permute.xlu1 %7736  ;;  %v7729_v47 = vunpack.i.h.bf16 %v7727_v52  ;;  %5795 = vmatmul.mubr.f32.gmra.mrb[92].mxu1 %v5587_v61  ;;  %5894 = vmatprep.mubr.f32.mxu0 %v5610_v12  ;;  %v7728_v10 = vunpack.i.l.bf16 %v7727_v52 }
 0x831   : > { %v7739_v48 = vunpack.i.h.bf16 %v7737_v13  ;;  %5799 = vmatprep.mubr.f32.mxu1 %v5596_v60  ;;  %7051 = vmatpush3.bf16.msra.mxu1 %v7048_v43  ;;  %v7738_v16 = vunpack.i.l.bf16 %v7737_v13 }
 0x832   : > { %v5602_v0 = vsel %vm3631_vm12, %v11039_v63, %v7729_v47  ;;  %7053 = vmatprep.subr.bf16.mxu1 %v7052_v7  ;;  %v5589_v36 = vsel %vm3631_vm12, %v11041_v44, %v7728_v10 }
 0x833   : > { %v5611_v49 = vsel %vm3631_vm12, %v11041_v44, %v7739_v48  ;;  %v7742_v17 = vpop.permute.xlu0 %7741  ;;  %5895 = vmatmul.mubr.f32.gmra.mrb[130].mxu0 %v5602_v0  ;;  %v5598_v53 = vsel %vm3631_vm12, %v11109_v56, %v7738_v16 }
 0x834   : > { %v7752_v5 = vpop.permute.xlu1 %7751  ;;  %v7744_v57 = vunpack.i.h.bf16 %v7742_v17  ;;  %5800 = vmatmul.mubr.f32.gmra.mrb[94].mxu1 %v5588_v21  ;;  %5899 = vmatprep.mubr.f32.mxu0 %v5611_v49  ;;  %v7743_v23 = vunpack.i.l.bf16 %v7742_v17 }
 0x835   : > { %v7754_v22 = vunpack.i.h.bf16 %v7752_v5  ;;  %5804 = vmatprep.mubr.f32.mxu1 %v5597_v58  ;;  %7055 = vmatpush3.bf16.msra.mxu1 %v7052_v7  ;;  %v7753_v2 = vunpack.i.l.bf16 %v7752_v5 }
 0x836   : > { %v5603_v63 = vsel %vm3631_vm12, %v11051_v28, %v7744_v57  ;;  %v5590_v44 = vsel %vm3631_vm12, %v11057_v20, %v7743_v23 }
 0x837   : > { %v5612_v33 = vsel %vm3631_vm12, %v11057_v20, %v7754_v22  ;;  %v7747_v45 = vpop.permute.xlu0 %7746  ;;  %5900 = vmatmul.mubr.f32.gmra.mrb[132].mxu0 %v5603_v63  ;;  %v5599_v6 = vsel %vm3631_vm12, %v11111_v8, %v7753_v2 }
 0x838   : > { %v7757_v39 = vpop.permute.xlu1 %7756  ;;  %v7749_v15 = vunpack.i.h.bf16 %v7747_v45  ;;  %5805 = vmatmul.mubr.f32.gmra.mrb[96].mxu1 %v5589_v36  ;;  %5904 = vmatprep.mubr.f32.mxu0 %v5612_v33  ;;  %v7748_v19 = vunpack.i.l.bf16 %v7747_v45 }
 0x839   : > { %v7759_v37 = vunpack.i.h.bf16 %v7757_v39  ;;  %5809 = vmatprep.mubr.f32.mxu1 %v5598_v53  ;;  %v7758_v43 = vunpack.i.l.bf16 %v7757_v39 }
 0x83a   : > { %v5604_v28 = vsel %vm3631_vm12, %v11063_v54, %v7749_v15  ;;  %v5591_v20 = vsel %vm3631_vm12, %v11065_v38, %v7748_v19 }
 0x83b   : > { %v5613_v9 = vsel %vm3631_vm12, %v11065_v38, %v7759_v37  ;;  %v7762_v26 = vpop.permute.xlu0 %7761  ;;  %5905 = vmatmul.mubr.f32.gmra.mrb[134].mxu0 %v5604_v28  ;;  %v5600_v11 = vsel %vm3631_vm12, %v11117_v40, %v7758_v43 }
 0x83c   : > { %v7767_v3 = vpop.permute.xlu1 %7766  ;;  %v7764_v46 = vunpack.i.h.bf16 %v7762_v26  ;;  %5810 = vmatmul.mubr.f32.gmra.mrb[98].mxu1 %v5590_v44  ;;  %5909 = vmatprep.mubr.f32.mxu0 %v5613_v9  ;;  %v7763_v35 = vunpack.i.l.bf16 %v7762_v26 }
 0x83d   : > { %v7768_v34 = vunpack.i.l.bf16 %v7767_v3  ;;  %5814 = vmatprep.mubr.f32.mxu1 %v5599_v6  ;;  %v7769_v54 = vunpack.i.h.bf16 %v7767_v3 }
 0x83e   : > { %v5605_v14 = vsel %vm3631_vm12, %v11081_v4, %v7764_v46  ;;  %v5592_v38 = vsel %vm3631_vm12, %v11083_v50, %v7763_v35 }
 0x83f   : > { %v5614_v41 = vsel %vm3631_vm12, %v11083_v50, %v7768_v34  ;;  %v7772_v24 = vpop.permute.xlu0 %7771  ;;  %5910 = vmatmul.mubr.f32.gmra.mrb[136].mxu0 %v5605_v14  ;;  %v5606_v4 = vsel %vm3631_vm12, %v11093_v18, %v7769_v54 }
 0x840   : > { %v7773_v31 = vunpack.i.l.bf16 %v7772_v24  ;;  %v7777_v29 = vpop.permute.xlu1 %7776  ;;  %5815 = vmatmul.mubr.f32.gmra.mrb[100].mxu1 %v5591_v20  ;;  %5914 = vmatprep.mubr.f32.mxu0 %v5614_v41  ;;  %v7774_v55 = vunpack.i.h.bf16 %v7772_v24 }
 0x841   : > { %5819 = vmatprep.mubr.f32.mxu1 %v5600_v11  ;;  %v7778_v7 = vunpack.i.l.bf16 %v7777_v29  ;;  %v7779_v52 = vunpack.i.h.bf16 %v7777_v29 }
 0x842   : > { %v5615_v12 = vsel %vm3631_vm12, %v11095_v27, %v7773_v31  ;;  %v5607_v13 = vsel %vm3631_vm12, %v11105_v25, %v7774_v55  ;;  %v6049_v27 = vld [vmem:[%s11288_s10 + $0x30] sm:$0xff] }
 0x843   : > { %5915 = vmatmul.mubr.f32.gmra.mrb[138].mxu0 %v5606_v4  ;;  %v5616_v18 = vsel %vm3631_vm12, %v5440_v30, %v7778_v7  ;;  %v5608_v50 = vsel %vm3631_vm12, %v11119_v62, %v7779_v52  ;;  %v11235_v62 = vld [vmem:[%s11286_s8] ss:$0 sm:$0xff] }
 0x844   : > { %5820 = vmatmul.mubr.f32.gmra.mrb[102].mxu1 %v5592_v38  ;;  %5919 = vmatprep.mubr.f32.mxu0 %v5615_v12 }
 0x845   : > { %6784 = vmatprep.mubr.msk.f32.mxu1 %vm3631_vm12, %v11075_v42  ;;  %v5456_v42 = vld [vmem:[#allocation5 + $0x92] sm:$0xff] }
 0x847   : > { %5920 = vmatmul.mubr.f32.gmra.mrb[140].mxu0 %v5607_v13 }
 0x848   : > { %5924 = vmatprep.mubr.f32.mxu0 %v5616_v18  ;;  %6785 = vmatmul.mubr.msk.f32.vlgmr.msra.gmra.mrb[104].mxu1 %vm3631_vm12, %v11087_v1  ;;  %v6043_v1 = vld [vmem:[%s11288_s10] sm:$0xff] }
 0x849   : > { %6787 = vmatprep.mubr.msk.f32.mxu1 %vm3631_vm12, %v11099_v59 }
 0x84b   : > { %5925 = vmatmul.mubr.f32.gmra.mrb[142].mxu0 %v5608_v50 }
 0x84c   : > { %6788 = vmatmul.mubr.msk.f32.gmra.mrb[106].mxu1 %vm3631_vm12, %v11109_v56  ;;  %6812 = vmatprep.mubr.msk.f32.mxu0 %vm3631_vm12, %v6043_v1 }
 0x84d   : > { %6790 = vmatprep.mubr.msk.f32.mxu1 %vm3631_vm12, %v11111_v8 }
 0x850   : > { %6791 = vmatmul.mubr.msk.f32.gmra.mrb[108].mxu1 %vm3631_vm12, %v11117_v40 }
 0x851   : > { %6793 = vmatprep.mubr.msk.f32.mxu1 %vm3631_vm12, %v11121_v51 }
 0x854   : > { %6794 = vmatmul.mubr.msk.f32.gmra.mrb[110].mxu1 %vm3631_vm12, %v5456_v42 }
 0x855   : > { %6821 = vmatprep.mubr.msk.f32.mxu1 %vm3631_vm12, %v6049_v27 }
 0x8fb   : > { %v6522_v59 = vpop.f32.mrb[88].mxu1 }
 0x8fc   : > { %v6523_v25 = vpop.f32.mrb[89].mxu1 }
 0x8fd   : > { %v6524_v56 = vadd.f32 %v6523_v25, %v6522_v59 }
 0x8ff   : > { %v6525_v8 = vpop.f32.mrb[90].mxu1  ;;  %v5787_v48 = vadd.f32 %v6524_v56, %v11235_v62 }
 0x900   : > { %v6526_v40 = vpop.f32.mrb[91].mxu1 }
 0x901   : > { %v6527_v51 = vadd.f32 %v6526_v40, %v6525_v8 }
 0x902   : > { %v6578_v61 = vpop.f32.mrb[128].mxu0 }
 0x903   : > { %v6528_v32 = vpop.f32.mrb[92].mxu1  ;;  %v6579_v47 = vpop.f32.mrb[129].mxu0  ;;  %v5792_v16 = vadd.f32 %v6527_v51, %v11235_v62 }
 0x904   : > { %v6580_v60 = vadd.f32 %v6579_v47, %v6578_v61  ;;  %v6529_v0 = vpop.f32.mrb[93].mxu1 }
 0x905   : > { %v6530_v49 = vadd.f32 %v6529_v0, %v6528_v32 }
 0x906   : > { %v6581_v10 = vpop.f32.mrb[130].mxu0  ;;  %v5892_v17 = vadd.f32 %v6580_v60, %v5787_v48 }
 0x907   : > { %v6531_v5 = vpop.f32.mrb[94].mxu1  ;;  %v6582_v21 = vpop.f32.mrb[131].mxu0  ;;  %v5797_v39 = vadd.f32 %v6530_v49, %v11235_v62 }
 0x908   : > { %v6583_v57 = vadd.f32 %v6582_v21, %v6581_v10  ;;  %v6532_v22 = vpop.f32.mrb[95].mxu1 }
 0x909   : > { %v6533_v58 = vadd.f32 %v6532_v22, %v6531_v5 }
 0x90a   : > { %v6584_v63 = vpop.f32.mrb[132].mxu0  ;;  %v5897_v33 = vadd.f32 %v6583_v57, %v5792_v16 }
 0x90b   : > { %v6534_v23 = vpop.f32.mrb[96].mxu1  ;;  %v6585_v45 = vpop.f32.mrb[133].mxu0  ;;  %v5802_v19 = vadd.f32 %v6533_v58, %v11235_v62 }
 0x90c   : > { %v6586_v36 = vadd.f32 %v6585_v45, %v6584_v63  ;;  %v6535_v2 = vpop.f32.mrb[97].mxu1 }
 0x90d   : > { %v6536_v15 = vadd.f32 %v6535_v2, %v6534_v23 }
 0x90e   : > { %v6587_v37 = vpop.f32.mrb[134].mxu0  ;;  %v5902_v53 = vadd.f32 %v6586_v36, %v5797_v39 }
 0x90f   : > { %v6537_v28 = vpop.f32.mrb[98].mxu1  ;;  %v6588_v9 = vpop.f32.mrb[135].mxu0  ;;  %v5807_v54 = vadd.f32 %v6536_v15, %v11235_v62  ;;  %v6044_v15 = vld [vmem:[%s11288_s10 + $0x8] sm:$0xff] }
 0x910   : > { %v6589_v26 = vadd.f32 %v6588_v9, %v6587_v37  ;;  %v6538_v3 = vpop.f32.mrb[99].mxu1  ;;  %v6050_v37 = vld [vmem:[%s11288_s10 + $0x38] sm:$0xff]  ;;  %v6047_v9 = vld [vmem:[%s11288_s10 + $0x20] sm:$0xff] }
 0x911   : > { %v6539_v44 = vadd.f32 %v6538_v3, %v6537_v28  ;;  %v6046_v28 = vld [vmem:[%s11288_s10 + $0x18] sm:$0xff] }
 0x912   : > { %v6590_v43 = vpop.f32.mrb[136].mxu0  ;;  %v5907_v46 = vadd.f32 %v6589_v26, %v5802_v19  ;;  %v6048_v19 = vld [vmem:[%s11288_s10 + $0x28] sm:$0xff] }
 0x913   : > { %v6540_v34 = vpop.f32.mrb[100].mxu1  ;;  %v6591_v6 = vpop.f32.mrb[137].mxu0  ;;  %v5812_v11 = vadd.f32 %v6539_v44, %v11235_v62 }
 0x914   : > { %v6592_v14 = vadd.f32 %v6591_v6, %v6590_v43  ;;  %v6541_v41 = vpop.f32.mrb[101].mxu1 }
 0x915   : > { %v6542_v35 = vadd.f32 %v6541_v41, %v6540_v34 }
 0x916   : > { %v6593_v24 = vpop.f32.mrb[138].mxu0  ;;  %v5912_v20 = vadd.f32 %v6592_v14, %v5807_v54 }
 0x917   : > { %v6543_v31 = vpop.f32.mrb[102].mxu1  ;;  %v6594_v29 = vpop.f32.mrb[139].mxu0  ;;  %v5817_v13 = vadd.f32 %v6542_v35, %v11235_v62 }
 0x918   : > { %v6595_v55 = vadd.f32 %v6594_v29, %v6593_v24  ;;  %v6544_v4 = vpop.f32.mrb[103].mxu1 }
 0x919   : > { %v6545_v12 = vadd.f32 %v6544_v4, %v6543_v31 }
 0x91a   : > { %v6596_v7 = vpop.f32.mrb[140].mxu0  ;;  %v5917_v38 = vadd.f32 %v6595_v55, %v5812_v11 }
 0x91b   : > { %v6597_v30 = vpop.f32.mrb[141].mxu0  ;;  %v6786_v52 = vpop.f32.mrb[104].mxu1  ;;  %v5822_v51 = vadd.f32 %v6545_v12, %v11235_v62 }
 0x91c   : > { %v6598_v18 = vadd.f32 %v6597_v30, %v6596_v7  ;;  %v6002_v50 = vadd.f32 %v6786_v52, %v5897_v33  ;;  %v5996_v42 = vpop.f32.mrb[105].mxu1 }
 0x91d   : > { %v5997_v1 = vadd.f32 %v5996_v42, %v5892_v17 }
 0x91e   : > { %v6036_v27 = vmax.f32 %v6002_v50, 0.0  ;;  %v6599_v59 = vpop.f32.mrb[142].mxu0  ;;  %v5922_v25 = vadd.f32 %v6598_v18, %v5817_v13 }
 0x91f   : > { %v6035_v56 = vmax.f32 %v5997_v1, 0.0  ;;  %v6600_v8 = vpop.f32.mrb[143].mxu0  ;;  %v6789_v40 = vpop.f32.mrb[106].mxu1 }
 0x920   : > { %v6601_v61 = vadd.f32 %v6600_v8, %v6599_v59  ;;  %v6012_v32 = vadd.f32 %v6789_v40, %v5907_v46  ;;  %v6006_v47 = vpop.f32.mrb[107].mxu1 }
 0x921   : > { %v7056_v48 = vpack.c.bf16 %v6036_v27, %v6035_v56  ;;  %v6007_v60 = vadd.f32 %v6006_v47, %v5902_v53  ;;  %v6045_v53 = vld [vmem:[%s11288_s10 + $0x10] sm:$0xff] }
 0x922   : > { %v6038_v0 = vmax.f32 %v6012_v32, 0.0  ;;  %v5927_v49 = vadd.f32 %v6601_v61, %v5822_v51 }
 0x923   : > { %v6037_v10 = vmax.f32 %v6007_v60, 0.0  ;;  %v6792_v5 = vpop.f32.mrb[108].mxu1  ;;  %7057 = vmatprep.subr.bf16.mxu0 %v7056_v48  ;;  %7072 = vmatprep.subr.bf16.mxu1 %v7056_v48 }
 0x924   : > { %v6022_v17 = vadd.f32 %v6792_v5, %v5917_v38  ;;  %v6016_v21 = vpop.f32.mrb[109].mxu1  ;;  %7059 = vmatpush3.bf16.msra.mxu0 %v7056_v48  ;;  %7076 = vmatpush3.bf16.msra.mxu1 %v7056_v48 }
 0x925   : > { %v7060_v16 = vpack.c.bf16 %v6038_v0, %v6037_v10  ;;  %v6017_v57 = vadd.f32 %v6016_v21, %v5912_v20 }
 0x926   : > { %v6040_v22 = vmax.f32 %v6022_v17, 0.0 }
 0x927   : > { %v6039_v58 = vmax.f32 %v6017_v57, 0.0  ;;  %v6795_v62 = vpop.f32.mrb[110].mxu1  ;;  %7061 = vmatprep.subr.bf16.mxu0 %v7060_v16  ;;  %7073 = vmatprep.subr.bf16.mxu1 %v7060_v16 }
 0x928   : > { %v6032_v63 = vadd.f32 %v6795_v62, %v5927_v49  ;;  %v6026_v33 = vpop.f32.mrb[111].mxu1  ;;  %7063 = vmatpush3.bf16.msra.mxu0 %v7060_v16  ;;  %7077 = vmatpush3.bf16.msra.mxu1 %v7060_v16 }
 0x929   : > { %v7064_v23 = vpack.c.bf16 %v6040_v22, %v6039_v58  ;;  %v6027_v45 = vadd.f32 %v6026_v33, %v5922_v25 }
 0x92a   : > { %v6042_v39 = vmax.f32 %v6032_v63, 0.0 }
 0x92b   : > { %v6041_v36 = vmax.f32 %v6027_v45, 0.0  ;;  %7065 = vmatprep.subr.bf16.mxu0 %v7064_v23  ;;  %7074 = vmatprep.subr.bf16.mxu1 %v7064_v23 }
 0x92c   : > { %7067 = vmatpush3.bf16.msra.mxu0 %v7064_v23  ;;  %7078 = vmatpush3.bf16.msra.mxu1 %v7064_v23 }
 0x92d   : > { %v7068_v2 = vpack.c.bf16 %v6042_v39, %v6041_v36 }
 0x92f   : > { %7069 = vmatprep.subr.bf16.mxu0 %v7068_v2  ;;  %7075 = vmatprep.subr.bf16.mxu1 %v7068_v2 }
 0x930   : > { %7071 = vmatpush3.bf16.msra.mxu0 %v7068_v2  ;;  %7079 = vmatpush3.bf16.msra.mxu1 %v7068_v2 }
 0x933   : > { %6813 = vmatmul.mubr.msk.f32.vlgmr.msra.gmra.mrb[144].mxu0 %vm3631_vm12, %v6044_v15  ;;  %6822 = vmatmul.mubr.msk.f32.vlgmr.msra.gmra.mrb[112].mxu1 %vm3631_vm12, %v6050_v37 }
 0x934   : > { %6815 = vmatprep.mubr.msk.f32.mxu0 %vm3631_vm12, %v6045_v53 }
 0x937   : > { %6816 = vmatmul.mubr.msk.f32.gmra.mrb[146].mxu0 %vm3631_vm12, %v6046_v28 }
 0x938   : > { %6818 = vmatprep.mubr.msk.f32.mxu0 %vm3631_vm12, %v6047_v9 }
 0x93b   : > { %6819 = vmatmul.mubr.msk.f32.gmra.mrb[148].mxu0 %vm3631_vm12, %v6048_v19 }
 0xa06   : > { %v6814_v26 = vpop.f32.mrb[144].mxu0  ;;  %v6823_v3 = vpop.f32.mrb[112].mxu1 }
 0xa07   : > { %v6141_v44 = vpop.f32.mrb[145].mxu0  ;;  %v6171_v43 = vpop.f32.mrb[113].mxu1 }
 0xa0a   : > { %v6817_v46 = vpop.f32.mrb[146].mxu0 }
 0xa0b   : > { %v6181_v34 = vmax.f32 %v6814_v26, %v6817_v46  ;;  %v6151_v6 = vpop.f32.mrb[147].mxu0 }
 0xa0c   : > { %v6180_v54 = vmax.f32 %v6141_v44, %v6151_v6 }
 0xa0e   : > { %v6820_v14 = vpop.f32.mrb[148].mxu0 }
 0xa0f   : > { %v6183_v41 = vmax.f32 %v6820_v14, %v6823_v3  ;;  %v6161_v35 = vpop.f32.mrb[149].mxu0 }
 0xa10   : > { %v6182_v24 = vmax.f32 %v6161_v35, %v6171_v43 }
 0xa11   : > { %v6185_v20 = vmax.f32 %v6181_v34, %v6183_v41 }
 0xa12   : > { %v6184_v31 = vmax.f32 %v6180_v54, %v6182_v24 }
 0xa13   : > { %6187 = vst.msk [vmem:[%s386_s24 + $0x8] sm:$0xff] %vm3631_vm12, %v6185_v20 }
 0xa14   : > { %6186 = vst.msk [vmem:[%s386_s24] sm:$0xff] %vm3631_vm12, %v6184_v31 }
 0xa15 PF: > { %s21_s17 = sadd.s32 1, %s7794_s17  }
 0xa16   : > { %p18_p4 = scmp.ge.s32.totalorder %s21_s17, 4  }
 0xa18   :  { %20 = sbr.rel (!%p18_p4) target bundleno = 1 (0x1), region = 102 }

</bundles_post_ra>
